<compile_context>
chip_gen: v5e
topology: v5e:2x2
jax: 0.10.0
libtpu: 0.0.40
codegen_flags: <defaults>
</compile_context>

<pallas_src>
import functools

import jax
import jax.numpy as jnp
from jax.experimental import pallas as pl
from jax.experimental.pallas import tpu as pltpu


# ----------------------------------------------------------------------------
# Kernel: generic 3x3 "same" conv (+folded BN) (+fused crop-gate / elementwise
# multiplier) (+ReLU) (+optional fused 3x3 Cout=1 head), one batch element per
# grid step.  Per-tap K=Cin dots accumulated into an f32 VMEM accumulator.
# ----------------------------------------------------------------------------
def _fam_conv_kernel(*refs, n_in, has_crop, has_mult, has_head, relu,
                     H, W, cins, cout):
    # ref order (matches wrapper):
    #   inputs : x_0..x_{n_in-1}, [crop], w_0..w_{n_in-1}, scale, shift,
    #            [mult], [head_w, head_b]
    #   outputs: out, [ra]
    #   scratch: xpad_0..xpad_{n_in-1} (bf16 padded image), acc (f32),
    #            [ra_acc (f32)]
    i = 0
    x_refs = refs[i:i + n_in]; i += n_in
    crop_ref = None
    if has_crop:
        crop_ref = refs[i]; i += 1
    w_refs = refs[i:i + n_in]; i += n_in
    scale_ref = refs[i]; i += 1
    shift_ref = refs[i]; i += 1
    m_ref = None
    if has_mult:
        m_ref = refs[i]; i += 1
    hw_ref = hb_ref = None
    if has_head:
        hw_ref = refs[i]; i += 1
        hb_ref = refs[i]; i += 1
    out_ref = refs[i]; i += 1
    ra_ref = None
    if has_head:
        ra_ref = refs[i]; i += 1
    xpad_refs = refs[i:i + n_in]; i += n_in
    acc_ref = refs[i]; i += 1
    ra_acc_ref = None
    if has_head:
        ra_acc_ref = refs[i]; i += 1

    def zero_border(xp, c):
        # only the 1-px halo needs to be zero; the interior is overwritten
        # every step.  Much cheaper than zero-filling the whole buffer.
        zr = jnp.zeros((1, W + 2, c), dtype=xp.dtype)
        zc = jnp.zeros((H + 2, 1, c), dtype=xp.dtype)
        xp[0:1, :, :] = zr
        xp[H + 1:H + 2, :, :] = zr
        xp[:, 0:1, :] = zc
        xp[:, W + 1:W + 2, :] = zc

    first = True
    for t in range(n_in):
        cin = cins[t]
        xp = xpad_refs[t]
        zero_border(xp, cin)

        x = x_refs[t][0]                                    # (H, W, cin)
        if has_crop and t == 0:
            # fused prologue: x = (1 - sigmoid(crop)) * x   (EUP work)
            gate = 1.0 - jax.nn.sigmoid(crop_ref[0].astype(jnp.float32))
            x = x.astype(jnp.float32) * gate
        xp[1:H + 1, 1:W + 1, :] = x.astype(xp.dtype)        # bf16 halo fill

        # 9 accumulated K=cin dots -> tap copies interleave with the MXU.
        for dy in range(3):
            for dx in range(3):
                tap = dy * 3 + dx
                lhs = xp[dy:dy + H, dx:dx + W, :].reshape(H * W, cin)
                d = jnp.dot(lhs, w_refs[t][tap],
                            preferred_element_type=jnp.float32)
                if first:
                    acc_ref[...] = d
                    first = False
                else:
                    acc_ref[...] += d

    y = acc_ref[...] * scale_ref[...] + shift_ref[...]
    if has_mult:
        y = y * m_ref[0].reshape(H * W, cout).astype(jnp.float32)
    if relu:
        y = jnp.maximum(y, 0.0)
    y_out = y.astype(out_ref.dtype)
    out_ref[...] = y_out.reshape(1, H, W, cout)

    if has_head:
        # Fused 3x3 linear head: reuse xpad_refs[0] (same channel count,
        # border already zero this step) as the padded buffer for `out`.
        hp = xpad_refs[0]
        src = y_out if out_ref.dtype == hp.dtype else y.astype(hp.dtype)
        hp[1:H + 1, 1:W + 1, :] = src.reshape(H, W, cout)
        for dy in range(3):
            for dx in range(3):
                tap = dy * 3 + dx
                lhs = hp[dy:dy + H, dx:dx + W, :].reshape(H * W, cout)
                d = jnp.dot(lhs, hw_ref[tap],
                            preferred_element_type=jnp.float32)
                if tap == 0:
                    ra_acc_ref[...] = d
                else:
                    ra_acc_ref[...] += d
        # only channel 0 is real (weight lane-padded for the MXU); store just
        # that channel -> no 128x-inflated HBM write.
        ra = ra_acc_ref[:, 0:1] + hb_ref[...]
        ra_ref[...] = ra.reshape(1, H, W, 1).astype(ra_ref.dtype)


# ----------------------------------------------------------------------------
# Wrapper
# ----------------------------------------------------------------------------
def fam_conv(xs, ws, bias, *, bn=None, crop=None, mult=None, relu=False,
             head_w=None, head_b=None, out_dtype=jnp.bfloat16):
    """3x3 same conv over (virtually concatenated) inputs xs with weights ws.

    xs : list of NHWC inputs (same N, H, W).
    ws : list of HWIO (3,3,Cin_i,Cout) weights, one per input (K halves summed).
    bias, bn : folded into a per-channel scale/shift epilogue.
    crop : optional (N,H,W,1) gate; input 0 is multiplied by (1 - sigmoid(crop)).
    mult : optional (N,H,W,Cout) elementwise multiplier applied post-BN.
    head_w/head_b : optional fused second 3x3 conv (Cout=1) applied to the
        output -> returned as a second (N,H,W,1) f32 array.
    """
    n_in = len(xs)
    N, H, W, _ = xs[0].shape
    Cout = int(ws[0].shape[-1])
    cins = tuple(int(x.shape[-1]) for x in xs)
    has_head = head_w is not None

    bias = bias.astype(jnp.float32)
    if bn is not None:
        gamma, beta, mean, var, eps = bn
        scale = gamma / jnp.sqrt(var + eps)
        shift = beta + (bias - mean) * scale
    else:
        scale = jnp.ones((Cout,), jnp.float32)
        shift = bias
    scale = scale.reshape(1, Cout).astype(jnp.float32)
    shift = shift.reshape(1, Cout).astype(jnp.float32)

    # per-tap weight layout: (9, Cin, Cout) bf16 MXU operands.
    w_taps = [w.reshape(9, c, Cout).astype(jnp.bfloat16)
              for w, c in zip(ws, cins)]

    args, in_specs = [], []
    for x, c in zip(xs, cins):
        args.append(x)
        in_specs.append(pl.BlockSpec((1, H, W, c), lambda n: (n, 0, 0, 0)))
    if crop is not None:
        args.append(crop)
        in_specs.append(pl.BlockSpec((1, H, W, 1), lambda n: (n, 0, 0, 0)))
    for wt, c in zip(w_taps, cins):
        args.append(wt)
        in_specs.append(pl.BlockSpec((9, c, Cout), lambda n: (0, 0, 0)))
    args += [scale, shift]
    in_specs += [pl.BlockSpec((1, Cout), lambda n: (0, 0)),
                 pl.BlockSpec((1, Cout), lambda n: (0, 0))]
    if mult is not None:
        args.append(mult)
        in_specs.append(pl.BlockSpec((1, H, W, Cout), lambda n: (n, 0, 0, 0)))

    head_pad = 128
    if has_head:
        assert cins[0] == Cout, "head fusion reuses xpad[0]; needs cin0 == Cout"
        c_head = int(head_w.shape[-1])
        hw = head_w.reshape(9, Cout, c_head).astype(jnp.bfloat16)
        # lane-pad the head weight (MXU runs 128 lanes anyway); only the
        # in-VMEM matmul sees the padding — HBM store stays 1 channel.
        hw = jnp.pad(hw, ((0, 0), (0, 0), (0, head_pad - c_head)))
        hb = head_b.reshape(1, 1).astype(jnp.float32)
        args += [hw, hb]
        in_specs += [pl.BlockSpec((9, Cout, head_pad), lambda n: (0, 0, 0)),
                     pl.BlockSpec((1, 1), lambda n: (0, 0))]

    out_shapes = [jax.ShapeDtypeStruct((N, H, W, Cout), out_dtype)]
    out_specs = [pl.BlockSpec((1, H, W, Cout), lambda n: (n, 0, 0, 0))]
    if has_head:
        out_shapes.append(jax.ShapeDtypeStruct((N, H, W, 1), jnp.float32))
        out_specs.append(pl.BlockSpec((1, H, W, 1), lambda n: (n, 0, 0, 0)))

    scratch = [pltpu.VMEM((H + 2, W + 2, c), jnp.bfloat16) for c in cins]
    scratch.append(pltpu.VMEM((H * W, Cout), jnp.float32))
    if has_head:
        scratch.append(pltpu.VMEM((H * W, head_pad), jnp.float32))

    kern = functools.partial(
        _fam_conv_kernel, n_in=n_in, has_crop=crop is not None,
        has_mult=mult is not None, has_head=has_head, relu=relu,
        H=H, W=W, cins=cins, cout=Cout)

    result = pl.pallas_call(
        kern,
        out_shape=tuple(out_shapes),
        grid=(N,),
        in_specs=in_specs,
        out_specs=tuple(out_specs),
        scratch_shapes=scratch,
        compiler_params=pltpu.CompilerParams(
            dimension_semantics=("parallel",),
            vmem_limit_bytes=64 * 1024 * 1024),
    )(*args)

    if has_head:
        return result[0], result[1]
    return result[0]


# ----------------------------------------------------------------------------
# FAM forward (Pallas) and pure-JAX reference
# ----------------------------------------------------------------------------
def fam_forward(p, left, down, right, crop):
    """Inputs in NCHW (PyTorch convention); returns (out, ra_feat) in NCHW."""
    to_nhwc = lambda t: jnp.transpose(t, (0, 2, 3, 1)).astype(jnp.float32)
    left, down, right, crop = map(to_nhwc, (left, down, right, crop))
    assert left.shape[1:3] == down.shape[1:3] == right.shape[1:3] == crop.shape[1:3]
    # TODO(synk): bilinear F.interpolate branch when spatial sizes differ.

    left_f = fam_conv([left], [p['conv0_w']], p['conv0_b'], bn=p['bn0'], relu=True)
    # conv1 with the (1 - sigmoid(crop)) gate fused into the kernel prologue
    down_f = fam_conv([down], [p['conv1_w']], p['conv1_b'], bn=p['bn1'],
                      crop=crop, relu=True)
    right_f = fam_conv([right], [p['conv2_w']], p['conv2_b'], bn=p['bn2'], relu=True)

    # NOTE: down_1 = conv_d1(down) is computed by the torch module but never
    # used in its outputs, so it is not materialized here.

    # z1 = relu(conv_l(left) * down) ; z3 = relu(conv_d2(right) * left)
    z1 = fam_conv([left_f], [p['conv_l_w']], p['conv_l_b'], mult=down_f, relu=True)
    z3 = fam_conv([right_f], [p['conv_d2_w']], p['conv_d2_b'], mult=left_f, relu=True)

    # conv3 over the virtual concat [z1, z3] (two K halves accumulated
    # in-kernel, no HBM concat) with the 3x3 linear head fused in the epilogue.
    c_half = p['conv3_w'].shape[2] // 2
    w3a = p['conv3_w'][:, :, :c_half, :]
    w3b = p['conv3_w'][:, :, c_half:, :]
    out, ra_feat = fam_conv([z1, z3], [w3a, w3b], p['conv3_b'], bn=p['bn3'],
                            relu=True, head_w=p['linear_w'], head_b=p['linear_b'])

    to_nchw = lambda t: jnp.transpose(t, (0, 3, 1, 2))
    return to_nchw(out.astype(jnp.float32)), to_nchw(ra_feat)


def ref_fam_forward(p, left, down, right, crop):
    """Pure-JAX reference (lax.conv, f32), NCHW in / NCHW out, for validation."""
    to_nhwc = lambda t: jnp.transpose(t, (0, 2, 3, 1)).astype(jnp.float32)
    left, down, right, crop = map(to_nhwc, (left, down, right, crop))

    def conv(x, w, b):
        return jax.lax.conv_general_dilated(
            x, w, (1, 1), 'SAME',
            dimension_numbers=('NHWC', 'HWIO', 'NHWC')) + b

    def bn(x, bp):
        gamma, beta, mean, var, eps = bp
        return gamma * (x - mean) / jnp.sqrt(var + eps) + beta

    relu = lambda x: jnp.maximum(x, 0.0)

    down_m = (1.0 - jax.nn.sigmoid(crop)) * down
    lf = relu(bn(conv(left, p['conv0_w'], p['conv0_b']), p['bn0']))
    df = relu(bn(conv(down_m, p['conv1_w'], p['conv1_b']), p['bn1']))
    rf = relu(bn(conv(right, p['conv2_w'], p['conv2_b']), p['bn2']))
    z1 = relu(conv(lf, p['conv_l_w'], p['conv_l_b']) * df)
    z3 = relu(conv(rf, p['conv_d2_w'], p['conv_d2_b']) * lf)
    out = relu(bn(conv(jnp.concatenate([z1, z3], axis=-1),
                       p['conv3_w'], p['conv3_b']), p['bn3']))
    ra = conv(out, p['linear_w'], p['linear_b'])
    to_nchw = lambda t: jnp.transpose(t, (0, 3, 1, 2))
    return to_nchw(out), to_nchw(ra)


# ----------------------------------------------------------------------------
# Deterministic parameter init (synthetic, no checkpoint)
# ----------------------------------------------------------------------------
def init_params(key, c_left, c_down, c_right):
    keys = iter(jax.random.split(key, 32))

    def conv_p(cin, cout):
        w = jax.random.normal(next(keys), (3, 3, cin, cout), jnp.float32) * 0.05
        b = jax.random.normal(next(keys), (cout,), jnp.float32) * 0.05
        return w, b

    def bn_p(c):
        gamma = 1.0 + 0.1 * jax.random.normal(next(keys), (c,), jnp.float32)
        beta = 0.1 * jax.random.normal(next(keys), (c,), jnp.float32)
        mean = 0.1 * jax.random.normal(next(keys), (c,), jnp.float32)
        var = 0.5 + jax.random.uniform(next(keys), (c,), jnp.float32)
        return (gamma, beta, mean, var, 1e-5)

    p = {}
    p['conv0_w'], p['conv0_b'] = conv_p(c_left, 256);  p['bn0'] = bn_p(256)
    p['conv1_w'], p['conv1_b'] = conv_p(c_down, 256);  p['bn1'] = bn_p(256)
    p['conv2_w'], p['conv2_b'] = conv_p(c_right, 256); p['bn2'] = bn_p(256)
    p['conv_d1_w'], p['conv_d1_b'] = conv_p(256, 256)   # dead in forward, kept for shape parity
    p['conv_d2_w'], p['conv_d2_b'] = conv_p(256, 256)
    p['conv_l_w'], p['conv_l_b'] = conv_p(256, 256)
    p['conv3_w'], p['conv3_b'] = conv_p(512, 256);     p['bn3'] = bn_p(256)
    p['linear_w'], p['linear_b'] = conv_p(256, 1)
    return p


if __name__ == "__main__":
    key = jax.random.PRNGKey(0)
    kp, k1, k2, k3, k4 = jax.random.split(key, 5)

    N, H, W = 2, 16, 16
    c_left = c_down = c_right = 4

    params = init_params(kp, c_left, c_down, c_right)

    left = jax.random.normal(k1, (N, c_left, H, W), jnp.float32)
    down = jax.random.normal(k2, (N, c_down, H, W), jnp.float32)
    right = jax.random.normal(k3, (N, c_right, H, W), jnp.float32)
    crop = jax.random.normal(k4, (N, 1, H, W), jnp.float32)

    out, ra_feat = fam_forward(params, left, down, right, crop)
    jax.block_until_ready((out, ra_feat))

    # validate against the pure-f32 JAX reference (tolerance covers bf16 MXU
    # operands + bf16 HBM intermediates)
    out_r, ra_r = ref_fam_forward(params, left, down, right, crop)

    def _close(a, b, tol=5e-2):
        return float(jnp.max(jnp.abs(a - b))) <= tol * (1.0 + float(jnp.max(jnp.abs(b))))

    assert out.shape == (N, 256, H, W) and ra_feat.shape == (N, 1, H, W)
    assert _close(out, out_r), "out mismatch vs reference"
    assert _close(ra_feat, ra_r), "ra_feat mismatch vs reference"

    print("KERNEL_OK")
</pallas_src>

<mosaic_0001>
module attributes {stable_mosaic.version = 11 : i64} {
  func.func @_fam_conv_kernel(%arg0: i32, %arg1: memref<1x16x16x4xf32, #tpu.memory_space<vmem>>, %arg2: memref<9x4x256xbf16, #tpu.memory_space<vmem>>, %arg3: memref<1x256xf32, #tpu.memory_space<vmem>>, %arg4: memref<1x256xf32, #tpu.memory_space<vmem>>, %arg5: memref<1x16x16x256xbf16, #tpu.memory_space<vmem>>, %arg6: memref<18x18x4xbf16, #tpu.memory_space<vmem>>, %arg7: memref<256x256xf32, #tpu.memory_space<vmem>>) attributes {dimension_semantics = [#tpu.dimension_semantics<parallel>], iteration_bounds = array<i64: 2>, scalar_prefetch = 0 : i64, scratch_operands = 2 : i64, tpu.core_type = #tpu.core_type<tc>, window_params = [{transform_indices = @transform_0, window_bounds = array<i64: 1, 16, 16, 4>}, {pipeline_mode = #tpu.pipeline_mode<synchronous>, transform_indices = @transform_1, window_bounds = array<i64: 9, 4, 256>}, {pipeline_mode = #tpu.pipeline_mode<synchronous>, transform_indices = @transform_2, window_bounds = array<i64: 1, 256>}, {pipeline_mode = #tpu.pipeline_mode<synchronous>, transform_indices = @transform_3, window_bounds = array<i64: 1, 256>}, {transform_indices = @transform_4, window_bounds = array<i64: 1, 16, 16, 256>}]} {
    %cst = arith.constant 0.000000e+00 : bf16
    %0 = vector.broadcast %cst : bf16 to vector<1x18x4xbf16>
    %cst_0 = arith.constant 0.000000e+00 : bf16
    %1 = vector.broadcast %cst_0 : bf16 to vector<18x1x4xbf16>
    %c0 = arith.constant 0 : index
    %c0_1 = arith.constant 0 : index
    %c0_2 = arith.constant 0 : index
    %2 = vector.load %arg6[%c0, %c0_1, %c0_2] : memref<18x18x4xbf16, #tpu.memory_space<vmem>>, vector<1x18x4xbf16>
    tpu.vector_store %arg6[%c0, %c0_1, %c0_2], %0 {strides = array<i32>} : memref<18x18x4xbf16, #tpu.memory_space<vmem>>, vector<1x18x4xbf16>,
    %c17 = arith.constant 17 : index
    %c0_3 = arith.constant 0 : index
    %c0_4 = arith.constant 0 : index
    %3 = vector.load %arg6[%c17, %c0_3, %c0_4] : memref<18x18x4xbf16, #tpu.memory_space<vmem>>, vector<1x18x4xbf16>
    tpu.vector_store %arg6[%c17, %c0_3, %c0_4], %0 {strides = array<i32>} : memref<18x18x4xbf16, #tpu.memory_space<vmem>>, vector<1x18x4xbf16>,
    %c0_5 = arith.constant 0 : index
    %c0_6 = arith.constant 0 : index
    %c0_7 = arith.constant 0 : index
    %4 = vector.load %arg6[%c0_5, %c0_6, %c0_7] : memref<18x18x4xbf16, #tpu.memory_space<vmem>>, vector<18x1x4xbf16>
    tpu.vector_store %arg6[%c0_5, %c0_6, %c0_7], %1 {strides = array<i32>} : memref<18x18x4xbf16, #tpu.memory_space<vmem>>, vector<18x1x4xbf16>,
    %c0_8 = arith.constant 0 : index
    %c17_9 = arith.constant 17 : index
    %c0_10 = arith.constant 0 : index
    %5 = vector.load %arg6[%c0_8, %c17_9, %c0_10] : memref<18x18x4xbf16, #tpu.memory_space<vmem>>, vector<18x1x4xbf16>
    tpu.vector_store %arg6[%c0_8, %c17_9, %c0_10], %1 {strides = array<i32>} : memref<18x18x4xbf16, #tpu.memory_space<vmem>>, vector<18x1x4xbf16>,
    %c0_11 = arith.constant 0 : index
    %c0_12 = arith.constant 0 : index
    %c0_13 = arith.constant 0 : index
    %c0_14 = arith.constant 0 : index
    %6 = vector.load %arg1[%c0_11, %c0_12, %c0_13, %c0_14] : memref<1x16x16x4xf32, #tpu.memory_space<vmem>>, vector<1x16x16x4xf32>
    %7 = vector.shape_cast %6 : vector<1x16x16x4xf32> to vector<16x16x4xf32>
    %8 = arith.truncf %7 : vector<16x16x4xf32> to vector<16x16x4xbf16>
    %c1 = arith.constant 1 : index
    %c1_15 = arith.constant 1 : index
    %c0_16 = arith.constant 0 : index
    %9 = vector.load %arg6[%c1, %c1_15, %c0_16] : memref<18x18x4xbf16, #tpu.memory_space<vmem>>, vector<16x16x4xbf16>
    tpu.vector_store %arg6[%c1, %c1_15, %c0_16], %8 {strides = array<i32>} : memref<18x18x4xbf16, #tpu.memory_space<vmem>>, vector<16x16x4xbf16>,
    %c0_17 = arith.constant 0 : index
    %c0_18 = arith.constant 0 : index
    %c0_19 = arith.constant 0 : index
    %10 = vector.load %arg6[%c0_17, %c0_18, %c0_19] : memref<18x18x4xbf16, #tpu.memory_space<vmem>>, vector<16x16x4xbf16>
    %11 = vector.shape_cast %10 : vector<16x16x4xbf16> to vector<256x4xbf16>
    %c0_20 = arith.constant 0 : index
    %c0_21 = arith.constant 0 : index
    %c0_22 = arith.constant 0 : index
    %12 = vector.load %arg2[%c0_20, %c0_21, %c0_22] : memref<9x4x256xbf16, #tpu.memory_space<vmem>>, vector<1x4x256xbf16>
    %13 = vector.shape_cast %12 : vector<1x4x256xbf16> to vector<4x256xbf16>
    %cst_23 = arith.constant dense<0.000000e+00> : vector<256x256xf32>
    %14 = tpu.matmul %11, %13, %cst_23 {dimension_numbers = #tpu.dot_dimension_numbers<[1], [0], [0], [1], [0, 0, 1, 1], [], []>} : vector<256x4xbf16>, vector<4x256xbf16>, vector<256x256xf32> -> vector<256x256xf32>
    %c0_24 = arith.constant 0 : index
    %c0_25 = arith.constant 0 : index
    %15 = vector.load %arg7[%c0_24, %c0_25] : memref<256x256xf32, #tpu.memory_space<vmem>>, vector<256x256xf32>
    tpu.vector_store %arg7[%c0_24, %c0_25], %14 {strides = array<i32>} : memref<256x256xf32, #tpu.memory_space<vmem>>, vector<256x256xf32>,
    %c0_26 = arith.constant 0 : index
    %c1_27 = arith.constant 1 : index
    %c0_28 = arith.constant 0 : index
    %16 = vector.load %arg6[%c0_26, %c1_27, %c0_28] : memref<18x18x4xbf16, #tpu.memory_space<vmem>>, vector<16x16x4xbf16>
    %17 = vector.shape_cast %16 : vector<16x16x4xbf16> to vector<256x4xbf16>
    %c1_29 = arith.constant 1 : index
    %c0_30 = arith.constant 0 : index
    %c0_31 = arith.constant 0 : index
    %18 = vector.load %arg2[%c1_29, %c0_30, %c0_31] : memref<9x4x256xbf16, #tpu.memory_space<vmem>>, vector<1x4x256xbf16>
    %19 = vector.shape_cast %18 : vector<1x4x256xbf16> to vector<4x256xbf16>
    %cst_32 = arith.constant dense<0.000000e+00> : vector<256x256xf32>
    %20 = tpu.matmul %17, %19, %cst_32 {dimension_numbers = #tpu.dot_dimension_numbers<[1], [0], [0], [1], [0, 0, 1, 1], [], []>} : vector<256x4xbf16>, vector<4x256xbf16>, vector<256x256xf32> -> vector<256x256xf32>
    %c0_33 = arith.constant 0 : index
    %c0_34 = arith.constant 0 : index
    %21 = vector.load %arg7[%c0_33, %c0_34] : memref<256x256xf32, #tpu.memory_space<vmem>>, vector<256x256xf32>
    %22 = arith.addf %21, %20 : vector<256x256xf32>
    %c0_35 = arith.constant 0 : index
    %c0_36 = arith.constant 0 : index
    %23 = vector.load %arg7[%c0_35, %c0_36] : memref<256x256xf32, #tpu.memory_space<vmem>>, vector<256x256xf32>
    tpu.vector_store %arg7[%c0_35, %c0_36], %22 {strides = array<i32>} : memref<256x256xf32, #tpu.memory_space<vmem>>, vector<256x256xf32>,
    %c0_37 = arith.constant 0 : index
    %c2 = arith.constant 2 : index
    %c0_38 = arith.constant 0 : index
    %24 = vector.load %arg6[%c0_37, %c2, %c0_38] : memref<18x18x4xbf16, #tpu.memory_space<vmem>>, vector<16x16x4xbf16>
    %25 = vector.shape_cast %24 : vector<16x16x4xbf16> to vector<256x4xbf16>
    %c2_39 = arith.constant 2 : index
    %c0_40 = arith.constant 0 : index
    %c0_41 = arith.constant 0 : index
    %26 = vector.load %arg2[%c2_39, %c0_40, %c0_41] : memref<9x4x256xbf16, #tpu.memory_space<vmem>>, vector<1x4x256xbf16>
    %27 = vector.shape_cast %26 : vector<1x4x256xbf16> to vector<4x256xbf16>
    %cst_42 = arith.constant dense<0.000000e+00> : vector<256x256xf32>
    %28 = tpu.matmul %25, %27, %cst_42 {dimension_numbers = #tpu.dot_dimension_numbers<[1], [0], [0], [1], [0, 0, 1, 1], [], []>} : vector<256x4xbf16>, vector<4x256xbf16>, vector<256x256xf32> -> vector<256x256xf32>
    %c0_43 = arith.constant 0 : index
    %c0_44 = arith.constant 0 : index
    %29 = vector.load %arg7[%c0_43, %c0_44] : memref<256x256xf32, #tpu.memory_space<vmem>>, vector<256x256xf32>
    %30 = arith.addf %29, %28 : vector<256x256xf32>
    %c0_45 = arith.constant 0 : index
    %c0_46 = arith.constant 0 : index
    %31 = vector.load %arg7[%c0_45, %c0_46] : memref<256x256xf32, #tpu.memory_space<vmem>>, vector<256x256xf32>
    tpu.vector_store %arg7[%c0_45, %c0_46], %30 {strides = array<i32>} : memref<256x256xf32, #tpu.memory_space<vmem>>, vector<256x256xf32>,
    %c1_47 = arith.constant 1 : index
    %c0_48 = arith.constant 0 : index
    %c0_49 = arith.constant 0 : index
    %32 = vector.load %arg6[%c1_47, %c0_48, %c0_49] : memref<18x18x4xbf16, #tpu.memory_space<vmem>>, vector<16x16x4xbf16>
    %33 = vector.shape_cast %32 : vector<16x16x4xbf16> to vector<256x4xbf16>
    %c3 = arith.constant 3 : index
    %c0_50 = arith.constant 0 : index
    %c0_51 = arith.constant 0 : index
    %34 = vector.load %arg2[%c3, %c0_50, %c0_51] : memref<9x4x256xbf16, #tpu.memory_space<vmem>>, vector<1x4x256xbf16>
    %35 = vector.shape_cast %34 : vector<1x4x256xbf16> to vector<4x256xbf16>
    %cst_52 = arith.constant dense<0.000000e+00> : vector<256x256xf32>
    %36 = tpu.matmul %33, %35, %cst_52 {dimension_numbers = #tpu.dot_dimension_numbers<[1], [0], [0], [1], [0, 0, 1, 1], [], []>} : vector<256x4xbf16>, vector<4x256xbf16>, vector<256x256xf32> -> vector<256x256xf32>
    %c0_53 = arith.constant 0 : index
    %c0_54 = arith.constant 0 : index
    %37 = vector.load %arg7[%c0_53, %c0_54] : memref<256x256xf32, #tpu.memory_space<vmem>>, vector<256x256xf32>
    %38 = arith.addf %37, %36 : vector<256x256xf32>
    %c0_55 = arith.constant 0 : index
    %c0_56 = arith.constant 0 : index
    %39 = vector.load %arg7[%c0_55, %c0_56] : memref<256x256xf32, #tpu.memory_space<vmem>>, vector<256x256xf32>
    tpu.vector_store %arg7[%c0_55, %c0_56], %38 {strides = array<i32>} : memref<256x256xf32, #tpu.memory_space<vmem>>, vector<256x256xf32>,
    %c1_57 = arith.constant 1 : index
    %c1_58 = arith.constant 1 : index
    %c0_59 = arith.constant 0 : index
    %40 = vector.load %arg6[%c1_57, %c1_58, %c0_59] : memref<18x18x4xbf16, #tpu.memory_space<vmem>>, vector<16x16x4xbf16>
    %41 = vector.shape_cast %40 : vector<16x16x4xbf16> to vector<256x4xbf16>
    %c4 = arith.constant 4 : index
    %c0_60 = arith.constant 0 : index
    %c0_61 = arith.constant 0 : index
    %42 = vector.load %arg2[%c4, %c0_60, %c0_61] : memref<9x4x256xbf16, #tpu.memory_space<vmem>>, vector<1x4x256xbf16>
    %43 = vector.shape_cast %42 : vector<1x4x256xbf16> to vector<4x256xbf16>
    %cst_62 = arith.constant dense<0.000000e+00> : vector<256x256xf32>
    %44 = tpu.matmul %41, %43, %cst_62 {dimension_numbers = #tpu.dot_dimension_numbers<[1], [0], [0], [1], [0, 0, 1, 1], [], []>} : vector<256x4xbf16>, vector<4x256xbf16>, vector<256x256xf32> -> vector<256x256xf32>
    %c0_63 = arith.constant 0 : index
    %c0_64 = arith.constant 0 : index
    %45 = vector.load %arg7[%c0_63, %c0_64] : memref<256x256xf32, #tpu.memory_space<vmem>>, vector<256x256xf32>
    %46 = arith.addf %45, %44 : vector<256x256xf32>
    %c0_65 = arith.constant 0 : index
    %c0_66 = arith.constant 0 : index
    %47 = vector.load %arg7[%c0_65, %c0_66] : memref<256x256xf32, #tpu.memory_space<vmem>>, vector<256x256xf32>
    tpu.vector_store %arg7[%c0_65, %c0_66], %46 {strides = array<i32>} : memref<256x256xf32, #tpu.memory_space<vmem>>, vector<256x256xf32>,
    %c1_67 = arith.constant 1 : index
    %c2_68 = arith.constant 2 : index
    %c0_69 = arith.constant 0 : index
    %48 = vector.load %arg6[%c1_67, %c2_68, %c0_69] : memref<18x18x4xbf16, #tpu.memory_space<vmem>>, vector<16x16x4xbf16>
    %49 = vector.shape_cast %48 : vector<16x16x4xbf16> to vector<256x4xbf16>
    %c5 = arith.constant 5 : index
    %c0_70 = arith.constant 0 : index
    %c0_71 = arith.constant 0 : index
    %50 = vector.load %arg2[%c5, %c0_70, %c0_71] : memref<9x4x256xbf16, #tpu.memory_space<vmem>>, vector<1x4x256xbf16>
    %51 = vector.shape_cast %50 : vector<1x4x256xbf16> to vector<4x256xbf16>
    %cst_72 = arith.constant dense<0.000000e+00> : vector<256x256xf32>
    %52 = tpu.matmul %49, %51, %cst_72 {dimension_numbers = #tpu.dot_dimension_numbers<[1], [0], [0], [1], [0, 0, 1, 1], [], []>} : vector<256x4xbf16>, vector<4x256xbf16>, vector<256x256xf32> -> vector<256x256xf32>
    %c0_73 = arith.constant 0 : index
    %c0_74 = arith.constant 0 : index
    %53 = vector.load %arg7[%c0_73, %c0_74] : memref<256x256xf32, #tpu.memory_space<vmem>>, vector<256x256xf32>
    %54 = arith.addf %53, %52 : vector<256x256xf32>
    %c0_75 = arith.constant 0 : index
    %c0_76 = arith.constant 0 : index
    %55 = vector.load %arg7[%c0_75, %c0_76] : memref<256x256xf32, #tpu.memory_space<vmem>>, vector<256x256xf32>
    tpu.vector_store %arg7[%c0_75, %c0_76], %54 {strides = array<i32>} : memref<256x256xf32, #tpu.memory_space<vmem>>, vector<256x256xf32>,
    %c2_77 = arith.constant 2 : index
    %c0_78 = arith.constant 0 : index
    %c0_79 = arith.constant 0 : index
    %56 = vector.load %arg6[%c2_77, %c0_78, %c0_79] : memref<18x18x4xbf16, #tpu.memory_space<vmem>>, vector<16x16x4xbf16>
    %57 = vector.shape_cast %56 : vector<16x16x4xbf16> to vector<256x4xbf16>
    %c6 = arith.constant 6 : index
    %c0_80 = arith.constant 0 : index
    %c0_81 = arith.constant 0 : index
    %58 = vector.load %arg2[%c6, %c0_80, %c0_81] : memref<9x4x256xbf16, #tpu.memory_space<vmem>>, vector<1x4x256xbf16>
    %59 = vector.shape_cast %58 : vector<1x4x256xbf16> to vector<4x256xbf16>
    %cst_82 = arith.constant dense<0.000000e+00> : vector<256x256xf32>
    %60 = tpu.matmul %57, %59, %cst_82 {dimension_numbers = #tpu.dot_dimension_numbers<[1], [0], [0], [1], [0, 0, 1, 1], [], []>} : vector<256x4xbf16>, vector<4x256xbf16>, vector<256x256xf32> -> vector<256x256xf32>
    %c0_83 = arith.constant 0 : index
    %c0_84 = arith.constant 0 : index
    %61 = vector.load %arg7[%c0_83, %c0_84] : memref<256x256xf32, #tpu.memory_space<vmem>>, vector<256x256xf32>
    %62 = arith.addf %61, %60 : vector<256x256xf32>
    %c0_85 = arith.constant 0 : index
    %c0_86 = arith.constant 0 : index
    %63 = vector.load %arg7[%c0_85, %c0_86] : memref<256x256xf32, #tpu.memory_space<vmem>>, vector<256x256xf32>
    tpu.vector_store %arg7[%c0_85, %c0_86], %62 {strides = array<i32>} : memref<256x256xf32, #tpu.memory_space<vmem>>, vector<256x256xf32>,
    %c2_87 = arith.constant 2 : index
    %c1_88 = arith.constant 1 : index
    %c0_89 = arith.constant 0 : index
    %64 = vector.load %arg6[%c2_87, %c1_88, %c0_89] : memref<18x18x4xbf16, #tpu.memory_space<vmem>>, vector<16x16x4xbf16>
    %65 = vector.shape_cast %64 : vector<16x16x4xbf16> to vector<256x4xbf16>
    %c7 = arith.constant 7 : index
    %c0_90 = arith.constant 0 : index
    %c0_91 = arith.constant 0 : index
    %66 = vector.load %arg2[%c7, %c0_90, %c0_91] : memref<9x4x256xbf16, #tpu.memory_space<vmem>>, vector<1x4x256xbf16>
    %67 = vector.shape_cast %66 : vector<1x4x256xbf16> to vector<4x256xbf16>
    %cst_92 = arith.constant dense<0.000000e+00> : vector<256x256xf32>
    %68 = tpu.matmul %65, %67, %cst_92 {dimension_numbers = #tpu.dot_dimension_numbers<[1], [0], [0], [1], [0, 0, 1, 1], [], []>} : vector<256x4xbf16>, vector<4x256xbf16>, vector<256x256xf32> -> vector<256x256xf32>
    %c0_93 = arith.constant 0 : index
    %c0_94 = arith.constant 0 : index
    %69 = vector.load %arg7[%c0_93, %c0_94] : memref<256x256xf32, #tpu.memory_space<vmem>>, vector<256x256xf32>
    %70 = arith.addf %69, %68 : vector<256x256xf32>
    %c0_95 = arith.constant 0 : index
    %c0_96 = arith.constant 0 : index
    %71 = vector.load %arg7[%c0_95, %c0_96] : memref<256x256xf32, #tpu.memory_space<vmem>>, vector<256x256xf32>
    tpu.vector_store %arg7[%c0_95, %c0_96], %70 {strides = array<i32>} : memref<256x256xf32, #tpu.memory_space<vmem>>, vector<256x256xf32>,
    %c2_97 = arith.constant 2 : index
    %c2_98 = arith.constant 2 : index
    %c0_99 = arith.constant 0 : index
    %72 = vector.load %arg6[%c2_97, %c2_98, %c0_99] : memref<18x18x4xbf16, #tpu.memory_space<vmem>>, vector<16x16x4xbf16>
    %73 = vector.shape_cast %72 : vector<16x16x4xbf16> to vector<256x4xbf16>
    %c8 = arith.constant 8 : index
    %c0_100 = arith.constant 0 : index
    %c0_101 = arith.constant 0 : index
    %74 = vector.load %arg2[%c8, %c0_100, %c0_101] : memref<9x4x256xbf16, #tpu.memory_space<vmem>>, vector<1x4x256xbf16>
    %75 = vector.shape_cast %74 : vector<1x4x256xbf16> to vector<4x256xbf16>
    %cst_102 = arith.constant dense<0.000000e+00> : vector<256x256xf32>
    %76 = tpu.matmul %73, %75, %cst_102 {dimension_numbers = #tpu.dot_dimension_numbers<[1], [0], [0], [1], [0, 0, 1, 1], [], []>} : vector<256x4xbf16>, vector<4x256xbf16>, vector<256x256xf32> -> vector<256x256xf32>
    %c0_103 = arith.constant 0 : index
    %c0_104 = arith.constant 0 : index
    %77 = vector.load %arg7[%c0_103, %c0_104] : memref<256x256xf32, #tpu.memory_space<vmem>>, vector<256x256xf32>
    %78 = arith.addf %77, %76 : vector<256x256xf32>
    %c0_105 = arith.constant 0 : index
    %c0_106 = arith.constant 0 : index
    %79 = vector.load %arg7[%c0_105, %c0_106] : memref<256x256xf32, #tpu.memory_space<vmem>>, vector<256x256xf32>
    tpu.vector_store %arg7[%c0_105, %c0_106], %78 {strides = array<i32>} : memref<256x256xf32, #tpu.memory_space<vmem>>, vector<256x256xf32>,
    %c0_107 = arith.constant 0 : index
    %c0_108 = arith.constant 0 : index
    %80 = vector.load %arg7[%c0_107, %c0_108] : memref<256x256xf32, #tpu.memory_space<vmem>>, vector<256x256xf32>
    %c0_109 = arith.constant 0 : index
    %c0_110 = arith.constant 0 : index
    %81 = vector.load %arg3[%c0_109, %c0_110] : memref<1x256xf32, #tpu.memory_space<vmem>>, vector<1x256xf32>
    %82 = vector.broadcast %81 : vector<1x256xf32> to vector<256x256xf32>
    %83 = arith.mulf %80, %82 : vector<256x256xf32>
    %c0_111 = arith.constant 0 : index
    %c0_112 = arith.constant 0 : index
    %84 = vector.load %arg4[%c0_111, %c0_112] : memref<1x256xf32, #tpu.memory_space<vmem>>, vector<1x256xf32>
    %85 = vector.broadcast %84 : vector<1x256xf32> to vector<256x256xf32>
    %86 = arith.addf %83, %85 : vector<256x256xf32>
    %cst_113 = arith.constant 0.000000e+00 : f32
    %87 = vector.broadcast %cst_113 : f32 to vector<256x256xf32>
    %88 = arith.maximumf %86, %87 : vector<256x256xf32>
    %89 = arith.truncf %88 : vector<256x256xf32> to vector<256x256xbf16>
    %90 = vector.shape_cast %89 : vector<256x256xbf16> to vector<1x16x16x256xbf16>
    %c0_114 = arith.constant 0 : index
    %c0_115 = arith.constant 0 : index
    %c0_116 = arith.constant 0 : index
    %c0_117 = arith.constant 0 : index
    %91 = vector.load %arg5[%c0_114, %c0_115, %c0_116, %c0_117] : memref<1x16x16x256xbf16, #tpu.memory_space<vmem>>, vector<1x16x16x256xbf16>
    tpu.vector_store %arg5[%c0_114, %c0_115, %c0_116, %c0_117], %90 {strides = array<i32>} : memref<1x16x16x256xbf16, #tpu.memory_space<vmem>>, vector<1x16x16x256xbf16>,
    return
  }
  func.func @transform_0(%arg0: i32) -> (i32, i32, i32, i32) {
    %c0_i32 = arith.constant 0 : i32
    %c0_i32_0 = arith.constant 0 : i32
    %c0_i32_1 = arith.constant 0 : i32
    %c0_i32_2 = arith.constant 0 : i32
    return %arg0, %c0_i32, %c0_i32_0, %c0_i32_1 : i32, i32, i32, i32
  }
  func.func @transform_1(%arg0: i32) -> (i32, i32, i32) {
    %c0_i32 = arith.constant 0 : i32
    %c0_i32_0 = arith.constant 0 : i32
    %c0_i32_1 = arith.constant 0 : i32
    %c0_i32_2 = arith.constant 0 : i32
    return %c0_i32, %c0_i32_0, %c0_i32_1 : i32, i32, i32
  }
  func.func @transform_2(%arg0: i32) -> (i32, i32) {
    %c0_i32 = arith.constant 0 : i32
    %c0_i32_0 = arith.constant 0 : i32
    %c0_i32_1 = arith.constant 0 : i32
    return %c0_i32, %c0_i32_0 : i32, i32
  }
  func.func @transform_3(%arg0: i32) -> (i32, i32) {
    %c0_i32 = arith.constant 0 : i32
    %c0_i32_0 = arith.constant 0 : i32
    %c0_i32_1 = arith.constant 0 : i32
    return %c0_i32, %c0_i32_0 : i32, i32
  }
  func.func @transform_4(%arg0: i32) -> (i32, i32, i32, i32) {
    %c0_i32 = arith.constant 0 : i32
    %c0_i32_0 = arith.constant 0 : i32
    %c0_i32_1 = arith.constant 0 : i32
    %c0_i32_2 = arith.constant 0 : i32
    return %arg0, %c0_i32, %c0_i32_0, %c0_i32_1 : i32, i32, i32, i32
  }
}

</mosaic_0001>

<bundles_post_ra>
// kernel: tpu_custom_call.1
= control target key start
LH: loop header
LB: loop body
LE: loop exit
PB: predicated region body
PF: predicated region fallthrough
CT: control target
= control target key end

     0   :  { %9 = vsyncpa [#allocation5], 0  ;;  %s10575_s0 = inlined_call_operand.vmem [shape: f32[2,16,16,4], index: 0, kind: input, shape index: {}]   ;;  %s10576_s1 = inlined_call_operand.vmem [shape: bf16[9,4,256], index: 1, kind: input, shape index: {}]   ;;  %s10577_s2 = inlined_call_operand.vmem [shape: f32[1,256], index: 2, kind: input, shape index: {}]   ;;  %s10578_s3 = inlined_call_operand.vmem [shape: f32[1,256], index: 3, kind: input, shape index: {}]   ;;  %s10579_s4 = inlined_call_operand.hbm [shape: bf16[2,16,16,256], index: 4, kind: output, shape index: {}]  }
   0x1   :  { %11 = vsyncpa [#allocation5 + $0x1], 0  ;;  %s8240_s15 = smov 0   ;;  %s8242_s16 = smov 0  }
   0x2   :  { %s8244_s17 = smov 0   ;;  %s8246_s18 = smov 0  }
   0x3 LB: > { %s8261_s19 = sadd.s32 4294967295, %s8210_s18   ;;  %s7506_s20 = sadd.s32 4294967294, %s8210_s18   ;;  %s8210_s18 = sphi %s8246_s18, %s10866_s18   ;;  %s8206_s17 = sphi %s8244_s17, %s10865_s17   ;;  %s8202_s16 = sphi %s8242_s16, %s10864_s16   ;;  %s8198_s15 = sphi %s8240_s15, %s10863_s15  }
   0x4   : > { %s8265_s21 = sadd.s32 1, %s8210_s18   ;;  %s113_s22 = sadd.s32 1, %s8206_s17 }
   0x5   : > { %s110_s23 = ssub.s32 %s8210_s18, %s8265_s21  ;;  %p123_p0 = scmp.ne.s32.totalorder %s8206_s17, %s8202_s16 }
   0x6   : > { %p111_p1 = scmp.eq.s32.totalorder %s110_s23, 0  ;;  %p124_p2 = scmp.eq.s32.totalorder %s8261_s19, 1 }
   0x7   : > { %p129_p3 = scmp.ne.s32.totalorder %s8202_s16, %s8198_s15  ;;  %p130_p4 = scmp.eq.s32.totalorder %s7506_s20, 1 }
   0x8   : > { %s8276_s24 = scalar_select %p111_p1, %s8206_s17, %s113_s22  }
   0x9   : > { %p8278_p5 = por %p124_p2, %p123_p0  ;;  %p8282_p6 = por %p130_p4, %p129_p3 }
   0xa   : > { %p7509_p7 = scmp.ge.s32.totalorder %s8210_s18, 1  ;;  %p165_p8 = scmp.lt.s32.totalorder %s8210_s18, 3 }
   0xc   : > { %p166_p9 = pnand %p7509_p7, %p165_p8 }
   0xe   : > { %169 = sbr.rel (%p166_p9) target bundleno = 1340 (0x53c), region = 36 }
  0x13   : > { %v852_v0 = vld [vmem:[%s10576_s1] sm:$0xf]  ;;  %vm197_vm0 = vcmask 27648   ;;  %vm200_vm1 = vcmask 24576   ;;  %vm207_vm2 = vsmask.f32 256 }
  0x14   : > { %934 = vst [vmem:[#allocation1] ss:$4 sm:$0xff] %v852_v0  ;;  %v8212_v1 = vmov 0   ;;  %p191_p10 = scmp.lt.s32.totalorder %s8261_s19, 1  ;;  %vm8296_vm3 = vmand %vm200_vm1, %vm207_vm2  ;;  %vm263_vm4 = vsmask.f32 7938 }
  0x15   : > { %198 = vst.msk [vmem:[#allocation2] sm:$0xf] %vm197_vm0, %v8212_v1  ;;  %v233_v3 = vld [vmem:[#allocation2 + $0x60] sm:$0x1]  ;;  %vm8304_vm5 = vmand %vm200_vm1, %vm263_vm4  ;;  %v10587_v4 = vmov 0  ;;  %vm986_vm7 = vcmask 1041408  }
  0x16   : > { %199 = vst.msk [vmem:[#allocation2 + $0x4] sm:$0xf] %vm197_vm0, %v8212_v1  ;;  %s192_s29 = scalar_select %p191_p10, %s8261_s19, 1  ;;  %v10588_v4 = vsel %vm8304_vm5, 4294967295, %v10587_v4  ;;  %v7609_v5 = vld [vmem:[%s10576_s1 + $0x4] sm:$0xf]  ;;  %vm8349_vm10 = vmand %vm197_vm0, %vm263_vm4 }
  0x17   : > { %201 = vst.msk [vmem:[#allocation2 + $0x8] sm:$0x1] %vm200_vm1, %v8212_v1  ;;  %vm383_vm6 = vsmask.f32 4368  ;;  %v212_v6 = vld [vmem:[#allocation2 + $0xc] sm:$0x1] }
  0x18   : > { %10589 = vst [vmem:[#allocation7_spill] sm:$0xff] %v10588_v4  ;;  %s8054_s6 = sshll.u32 %s192_s29, 8  ;;  %v234_v7 = vsel %vm8296_vm3, 0, %v233_v3  ;;  %v213_v8 = vsel %vm8296_vm3, 0, %v212_v6  ;;  %v236_v9 = vld [vmem:[#allocation2 + $0x6c] sm:$0x1]  ;;  %vm8341_vm9 = vmor %vm207_vm2, %vm383_vm6 }
  0x19   : > { %203 = vst.msk [vmem:[#allocation2 + $0xcc] sm:$0xf] %vm197_vm0, %v8212_v1  ;;  %s8317_s9 = scalar_lea.vmem %s10575_s0, %s8054_s6  ;;  %vm937_vm8 = vcmask 31744   ;;  %v7658_v25 = vld [vmem:[%s10576_s1 + $0x8] sm:$0xf]  ;;  %v237_v27 = vsel %vm8296_vm3, 0, %v236_v9 }
  0x1a   : > { %204 = vst.msk [vmem:[#allocation2 + $0xd0] sm:$0xf] %vm197_vm0, %v8212_v1  ;;  %v333_v16 = vld [vmem:[%s8317_s9 + $0x70] sm:$0xff]  ;;  %v334_v17 = vld [vmem:[%s8317_s9 + $0x78] sm:$0xff]  ;;  %v319_v18 = vld [vmem:[%s8317_s9] sm:$0xff]  ;;  %v10590_v39 = vmov 0 }
  0x1b   : > { %205 = vst.msk [vmem:[#allocation2 + $0xd4] sm:$0x1] %vm200_vm1, %v8212_v1  ;;  %v935_v10 = vld.sshfl [vmem:[#allocation1] sm:$0xff pattern:$0x73625140]  ;;  %v365_v19 = vpack.c.bf16 %v333_v16, %v333_v16  ;;  %v366_v20 = vpack.c.bf16 %v334_v17, %v334_v17  ;;  %v320_v21 = vld [vmem:[%s8317_s9 + $0x8] sm:$0xff]  ;;  %v351_v22 = vpack.c.bf16 %v319_v18, %v319_v18 }
  0x1c   : > { %v936_v11 = vld.sshfl [vmem:[#allocation1 + $0x8] sm:$0xff pattern:$0x73625140]  ;;  %v987_v12 = vsel %vm986_vm7, %v935_v10, 0  ;;  %235 = vst [vmem:[#allocation2 + $0x60] sm:$0x1] %v234_v7  ;;  %v352_v26 = vpack.c.bf16 %v320_v21, %v320_v21 }
  0x1d   : > { %v989_v13 = vsel %vm986_vm7, %v936_v11, 0  ;;  %1719 = vst [vmem:[#allocation1] ss:$4 sm:$0xff] %v7609_v5  ;;  %v209_v14 = vld [vmem:[#allocation2] sm:$0x1]  ;;  %998 = vmatpush.bf16.msra.mxu0 %v987_v12  ;;  %8104 = vmatpush.bf16.msra.mxu2 %v987_v12  ;;  %v335_v23 = vld [vmem:[%s8317_s9 + $0x80] sm:$0xff] }
  0x1e   : > { %v210_v15 = vsel %vm8296_vm3, 0, %v209_v14  ;;  %1087 = vmatpush.bf16.msra.mxu1 %v989_v13  ;;  %8105 = vmatpush.bf16.msra.mxu3 %v989_v13  ;;  %v336_v24 = vld [vmem:[%s8317_s9 + $0x88] sm:$0xff]  ;;  %214 = vst [vmem:[#allocation2 + $0xc] sm:$0x1] %v213_v8  ;;  %v367_v28 = vpack.c.bf16 %v335_v23, %v335_v23  ;;  %v505_v30 = vshrl.u32 %v365_v19, 16  ;;  %v508_v31 = vshll.u32 %v365_v19, 16 }
  0x1f   : > { %211 = vst [vmem:[#allocation2] sm:$0x1] %v210_v15  ;;  %v368_v29 = vpack.c.bf16 %v336_v24, %v336_v24  ;;  %v513_v32 = vshrl.u32 %v366_v20, 16  ;;  %v516_v33 = vshll.u32 %v366_v20, 16  ;;  %v386_v34 = vshrl.u32 %v351_v22, 16  ;;  %v321_v38 = vld [vmem:[%s8317_s9 + $0x10] sm:$0xff] }
  0x20   : > { %238 = vst [vmem:[#allocation2 + $0x6c] sm:$0x1] %v237_v27  ;;  %v389_v35 = vshll.u32 %v351_v22, 16  ;;  %v394_v36 = vshrl.u32 %v352_v26, 16  ;;  %v397_v37 = vshll.u32 %v352_v26, 16  ;;  %v10591_v39 = vsel %vm8341_vm9, 4294967295, %v10590_v39 }
  0x21   : > { %10592 = vst [vmem:[#allocation8_spill] sm:$0xff] %v10591_v39  ;;  %v507_v40 = vrot.slane %v505_v30, 7  ;;  %v8345_v41 = vrot.slane %v513_v32, 7  ;;  %v522_v42 = vshrl.u32 %v367_v28, 16  ;;  %v525_v43 = vshll.u32 %v367_v28, 16  ;;  %v322_v63 = vld [vmem:[%s8317_s9 + $0x18] sm:$0xff] }
  0x22   : > { %v10593_v44 = vmov 0  ;;  %v8354_v51 = vpack.c.bf16 %v321_v38, %v321_v38  ;;  %v388_v55 = vrot.slane %v386_v34, 7  ;;  %v8358_v56 = vrot.slane %v394_v36, 7  ;;  %v215_v57 = vld [vmem:[#allocation2 + $0x18] sm:$0x1]  ;;  %v337_v0 = vld [vmem:[%s8317_s9 + $0x90] sm:$0xff] }
  0x23   : > { %v10594_v44 = vsel %vm8349_vm10, 4294967295, %v10593_v44  ;;  %v510_v47 = vor.u32 %v508_v31, %v507_v40  ;;  %v511_v48 = vrot.slane %v507_v40, 4  ;;  %v518_v49 = vor.u32 %v516_v33, %v8345_v41  ;;  %v757_v50 = vld [vmem:[#allocation2 + $0x60] sm:$0xf]  ;;  %v338_v11 = vld [vmem:[%s8317_s9 + $0x98] sm:$0xff]  ;;  %v323_v36 = vld [vmem:[%s8317_s9 + $0x20] sm:$0xff] }
  0x24   : > { %10595 = vst [vmem:[#allocation9_spill] sm:$0xff] %v10594_v44  ;;  %v1720_v45 = vld.sshfl [vmem:[#allocation1] sm:$0xff pattern:$0x73625140]  ;;  %v524_v61 = vrot.slane %v522_v42, 7  ;;  %v530_v62 = vshrl.u32 %v368_v29, 16  ;;  %v391_v1 = vor.u32 %v389_v35, %v388_v55  ;;  %v399_v5 = vor.u32 %v397_v37, %v8358_v56 }
  0x25   : > { %v1721_v46 = vld.sshfl [vmem:[#allocation1 + $0x8] sm:$0xff pattern:$0x73625140]  ;;  %v1770_v53 = vsel %vm986_vm7, %v1720_v45, 0  ;;  %v519_v58 = vsel %vm8341_vm9, %v511_v48, %v518_v49  ;;  %v758_v59 = vsel %vm8349_vm10, %v510_v47, %v757_v50  ;;  %v708_v60 = vld [vmem:[#allocation2 + $0xc] sm:$0xf]  ;;  %v354_v14 = vpack.c.bf16 %v322_v63, %v322_v63 }
  0x26   : > { %2406 = vst [vmem:[#allocation1] ss:$4 sm:$0xff] %v7658_v25  ;;  %v8055_v52 = vld [vmem:[#allocation2] sm:$0xff]  ;;  %v1772_v54 = vsel %vm986_vm7, %v1721_v46, 0  ;;  %1781 = vmatpush.bf16.msrb.mxu2 %v1770_v53  ;;  %v392_v3 = vrot.slane %v388_v55, 4  ;;  %v527_v7 = vor.u32 %v525_v43, %v524_v61  ;;  %v528_v8 = vrot.slane %v524_v61, 4 }
  0x27   : > { %1870 = vmatpush.bf16.msrb.mxu3 %v1772_v54  ;;  %7577 = vmatmul.msk.bf16.vlgmr.msra.gmra.mxu0 %vm937_vm8, %v8055_v52  ;;  %759 = vst [vmem:[#allocation2 + $0x60] sm:$0xf] %v758_v59  ;;  %v764_v6 = vld [vmem:[#allocation2 + $0x6c] sm:$0xf]  ;;  %v8370_v9 = vrot.slane %v530_v62, 7  ;;  %v533_v10 = vshll.u32 %v368_v29, 16  ;;  %v709_v13 = vsel %vm8349_vm10, %v391_v1, %v708_v60  ;;  %v369_v16 = vpack.c.bf16 %v337_v0, %v337_v0 }
  0x28   : > { %7593 = vmatmul.msk.bf16.vlgmr.msra.gmra.mxu1 %vm937_vm8, %v8055_v52  ;;  %760 = vst.msk [vmem:[#allocation2 + $0x64] sm:$0xf] %vm197_vm0, %v519_v58  ;;  %v7691_v12 = vld [vmem:[%s10576_s1 + $0xc] sm:$0xf]  ;;  %v403_v15 = vshrl.u32 %v8354_v51, 16  ;;  %v400_v17 = vsel %vm8341_vm9, %v392_v3, %v399_v5  ;;  %v216_v19 = vsel %vm8296_vm3, 0, %v215_v57  ;;  %v765_v23 = vsel %vm8349_vm10, %v527_v7, %v764_v6 }
  0x29   : > { %710 = vst [vmem:[#allocation2 + $0xc] sm:$0xf] %v709_v13  ;;  %v535_v18 = vor.u32 %v533_v10, %v8370_v9  ;;  %v239_v20 = vld [vmem:[#allocation2 + $0x78] sm:$0x1]  ;;  %v370_v24 = vpack.c.bf16 %v338_v11, %v338_v11  ;;  %v406_v29 = vshll.u32 %v8354_v51, 16  ;;  %v411_v30 = vshrl.u32 %v354_v14, 16 }
  0x2a   : > { %v405_v28 = vrot.slane %v403_v15, 7  ;;  %711 = vst.msk [vmem:[#allocation2 + $0x10] sm:$0xf] %vm197_vm0, %v400_v17  ;;  %v414_v31 = vshll.u32 %v354_v14, 16  ;;  %v539_v32 = vshrl.u32 %v369_v16, 16  ;;  %v240_v34 = vsel %vm8296_vm3, 0, %v239_v20 }
  0x2b   : > { %v536_v27 = vsel %vm8341_vm9, %v528_v8, %v535_v18  ;;  %766 = vst [vmem:[#allocation2 + $0x6c] sm:$0xf] %v765_v23  ;;  %v547_v35 = vshrl.u32 %v370_v24, 16  ;;  %v8396_v38 = vrot.slane %v411_v30, 7  ;;  %v550_v42 = vshll.u32 %v370_v24, 16  ;;  %v324_v47 = vld [vmem:[%s8317_s9 + $0x28] sm:$0xff] }
  0x2c   : > { %v409_v33 = vrot.slane %v405_v28, 4  ;;  %767 = vst.msk [vmem:[#allocation2 + $0x70] sm:$0xf] %vm197_vm0, %v536_v27  ;;  %v541_v40 = vrot.slane %v539_v32, 7  ;;  %v355_v43 = vpack.c.bf16 %v323_v36, %v323_v36  ;;  %v218_v46 = vld [vmem:[#allocation2 + $0x24] sm:$0x1]  ;;  %v408_v52 = vor.u32 %v406_v29, %v405_v28 }
  0x2d   : > { %v2407_v21 = vld.sshfl [vmem:[#allocation1] sm:$0xff pattern:$0x73625140]  ;;  %v2408_v22 = vld.sshfl [vmem:[#allocation1 + $0x8] sm:$0xff pattern:$0x73625140]  ;;  %v416_v48 = vor.u32 %v414_v31, %v8396_v38  ;;  %v356_v55 = vpack.c.bf16 %v324_v47, %v324_v47 }
  0x2e   : > { %v2457_v25 = vsel %vm986_vm7, %v2407_v21, 0  ;;  %v2459_v26 = vsel %vm986_vm7, %v2408_v22, 0  ;;  %2946 = vst [vmem:[#allocation1] ss:$4 sm:$0xff] %v7691_v12  ;;  %v8398_v45 = vrot.slane %v547_v35, 7  ;;  %v542_v49 = vshll.u32 %v369_v16, 16 }
  0x2f   : > { %2468 = vmatpush.bf16.msrb.mxu0 %v2457_v25  ;;  %2557 = vmatpush.bf16.msrb.mxu1 %v2459_v26  ;;  %v8063_v37 = vld [vmem:[#allocation2 + $0x60] sm:$0xff]  ;;  %217 = vst [vmem:[#allocation2 + $0x18] sm:$0x1] %v216_v19  ;;  %v545_v50 = vrot.slane %v541_v40, 4  ;;  %v219_v54 = vsel %vm8296_vm3, 0, %v218_v46  ;;  %v339_v57 = vld [vmem:[%s8317_s9 + $0xa0] sm:$0xff]  ;;  %v417_v59 = vsel %vm8341_vm9, %v409_v33, %v416_v48 }
  0x30   : > { %7585 = vmatmul.msk.bf16.vlgmr.msra.gmra.mxu2 %vm937_vm8, %v8063_v37  ;;  %7601 = vmatmul.msk.bf16.vlgmr.msra.gmra.mxu3 %vm937_vm8, %v8063_v37  ;;  %241 = vst [vmem:[#allocation2 + $0x78] sm:$0x1] %v240_v34  ;;  %v242_v51 = vld [vmem:[#allocation2 + $0x84] sm:$0x1]  ;;  %v552_v53 = vor.u32 %v550_v42, %v8398_v45  ;;  %v420_v60 = vshrl.u32 %v355_v43, 16  ;;  %v423_v61 = vshll.u32 %v355_v43, 16  ;;  %v371_v5 = vpack.c.bf16 %v339_v57, %v339_v57 }
  0x31   : > { %v340_v58 = vld [vmem:[%s8317_s9 + $0xa8] sm:$0xff]  ;;  %220 = vst [vmem:[#allocation2 + $0x24] sm:$0x1] %v219_v54  ;;  %v243_v62 = vsel %vm8296_vm3, 0, %v242_v51  ;;  %v8056_v63 = vld [vmem:[#allocation2 + $0xc] sm:$0xff]  ;;  %v428_v1 = vshrl.u32 %v356_v55, 16  ;;  %v544_v6 = vor.u32 %v542_v49, %v541_v40 }
  0x32   : > { %718 = vst.msk [vmem:[#allocation2 + $0x1c] sm:$0xf] %vm197_vm0, %v417_v59  ;;  %v553_v0 = vsel %vm8341_vm9, %v545_v50, %v552_v53  ;;  %v431_v3 = vshll.u32 %v356_v55, 16  ;;  %v422_v7 = vrot.slane %v420_v60, 7  ;;  %v372_v8 = vpack.c.bf16 %v340_v58, %v340_v58  ;;  %v221_v33 = vld [vmem:[#allocation2 + $0x30] sm:$0x1] }
  0x33   : > { %774 = vst.msk [vmem:[#allocation2 + $0x7c] sm:$0xf] %vm197_vm0, %v553_v0  ;;  %v8417_v10 = vrot.slane %v428_v1, 7  ;;  %v556_v11 = vshrl.u32 %v371_v5, 16  ;;  %v559_v12 = vshll.u32 %v371_v5, 16  ;;  %v8064_v30 = vld [vmem:[#allocation2 + $0x6c] sm:$0xff] }
  0x34   : > { %244 = vst [vmem:[#allocation2 + $0x84] sm:$0x1] %v243_v62  ;;  %v425_v14 = vor.u32 %v423_v61, %v422_v7  ;;  %v426_v15 = vrot.slane %v422_v7, 4  ;;  %v564_v16 = vshrl.u32 %v372_v8, 16  ;;  %v567_v17 = vshll.u32 %v372_v8, 16  ;;  %v325_v37 = vld [vmem:[%s8317_s9 + $0x30] sm:$0xff] }
  0x35   : > { %v433_v20 = vor.u32 %v431_v3, %v8417_v10  ;;  %v558_v21 = vrot.slane %v556_v11, 7  ;;  %v245_v34 = vld [vmem:[#allocation2 + $0x90] sm:$0x1]  ;;  %v222_v36 = vsel %vm8296_vm3, 0, %v221_v33  ;;  %v357_v42 = vpack.c.bf16 %v325_v37, %v325_v37  ;;  %v341_v47 = vld [vmem:[%s8317_s9 + $0xb0] sm:$0xff]  ;;  %s188_s11 = sand.u32 1, %s8202_s16  }
  0x36   : > { %v715_v13 = vld [vmem:[#allocation2 + $0x18] sm:$0xf]  ;;  %v8426_v23 = vrot.slane %v564_v16, 7  ;;  %v326_v40 = vld [vmem:[%s8317_s9 + $0x38] sm:$0xff]  ;;  %v246_v46 = vsel %vm8296_vm3, 0, %v245_v34  ;;  %v373_v49 = vpack.c.bf16 %v341_v47, %v341_v47  ;;  %vm2240_vm11 = vcmask 1042432  }
  0x37   : > { %7578 = vmatmul.msk.bf16.gmra.mxu0 %vm937_vm8, %v8056_v63  ;;  %v716_v18 = vsel %vm8349_vm10, %v408_v52, %v715_v13  ;;  %v771_v19 = vld [vmem:[#allocation2 + $0x78] sm:$0xf]  ;;  %v434_v24 = vsel %vm8341_vm9, %v426_v15, %v433_v20  ;;  %v561_v26 = vor.u32 %v559_v12, %v558_v21  ;;  %v562_v27 = vrot.slane %v558_v21, 4  ;;  %v342_v48 = vld [vmem:[%s8317_s9 + $0xb8] sm:$0xff]  ;;  %223 = vst [vmem:[#allocation2 + $0x30] sm:$0x1] %v222_v36 }
  0x38   : > { %7594 = vmatmul.msk.bf16.gmra.mxu1 %vm937_vm8, %v8056_v63  ;;  %717 = vst [vmem:[#allocation2 + $0x18] sm:$0xf] %v716_v18  ;;  %v772_v22 = vsel %vm8349_vm10, %v544_v6, %v771_v19  ;;  %v722_v25 = vld [vmem:[#allocation2 + $0x24] sm:$0xf]  ;;  %v569_v29 = vor.u32 %v567_v17, %v8426_v23  ;;  %v358_v43 = vpack.c.bf16 %v326_v40, %v326_v40  ;;  %v437_v51 = vshrl.u32 %v357_v42, 16  ;;  %v327_v21 = vld [vmem:[%s8317_s9 + $0x40] sm:$0xff] }
  0x39   : > { %773 = vst [vmem:[#allocation2 + $0x78] sm:$0xf] %v772_v22  ;;  %v723_v28 = vsel %vm8349_vm10, %v425_v14, %v722_v25  ;;  %v374_v50 = vpack.c.bf16 %v342_v48, %v342_v48  ;;  %v440_v52 = vshll.u32 %v357_v42, 16  ;;  %v573_v55 = vshrl.u32 %v373_v49, 16  ;;  %v224_v18 = vld [vmem:[#allocation2 + $0x3c] sm:$0x1] }
  0x3a   : > { %725 = vst.msk [vmem:[#allocation2 + $0x28] sm:$0xf] %vm197_vm0, %v434_v24  ;;  %v570_v31 = vsel %vm8341_vm9, %v562_v27, %v569_v29  ;;  %v445_v53 = vshrl.u32 %v358_v43, 16  ;;  %v448_v54 = vshll.u32 %v358_v43, 16  ;;  %v439_v59 = vrot.slane %v437_v51, 7  ;;  %v328_v22 = vld [vmem:[%s8317_s9 + $0x48] sm:$0xff] }
  0x3b   : > { %724 = vst [vmem:[#allocation2 + $0x24] sm:$0xf] %v723_v28  ;;  %v778_v32 = vld [vmem:[#allocation2 + $0x84] sm:$0xf]  ;;  %v581_v57 = vshrl.u32 %v374_v50, 16  ;;  %v576_v61 = vshll.u32 %v373_v49, 16  ;;  %v360_v27 = vpack.c.bf16 %v328_v22, %v328_v22 }
  0x3c   : > { %v779_v35 = vsel %vm8349_vm10, %v561_v26, %v778_v32  ;;  %781 = vst.msk [vmem:[#allocation2 + $0x88] sm:$0xf] %vm197_vm0, %v570_v31  ;;  %v8449_v60 = vrot.slane %v445_v53, 7  ;;  %v584_v62 = vshll.u32 %v374_v50, 16  ;;  %v575_v63 = vrot.slane %v573_v55, 7  ;;  %v343_v25 = vld [vmem:[%s8317_s9 + $0xc0] sm:$0xff] }
  0x3d   : > { %780 = vst [vmem:[#allocation2 + $0x84] sm:$0xf] %v779_v35  ;;  %v8451_v0 = vrot.slane %v581_v57, 7  ;;  %v442_v1 = vor.u32 %v440_v52, %v439_v59  ;;  %v443_v3 = vrot.slane %v439_v59, 4  ;;  %v248_v19 = vld [vmem:[#allocation2 + $0x9c] sm:$0x1]  ;;  %v359_v26 = vpack.c.bf16 %v327_v21, %v327_v21 }
  0x3e   : > { %247 = vst [vmem:[#allocation2 + $0x90] sm:$0x1] %v246_v46  ;;  %v450_v5 = vor.u32 %v448_v54, %v8449_v60  ;;  %v578_v6 = vor.u32 %v576_v61, %v575_v63  ;;  %v579_v7 = vrot.slane %v575_v63, 4  ;;  %v729_v12 = vld [vmem:[#allocation2 + $0x30] sm:$0xf]  ;;  %v225_v20 = vsel %vm8296_vm3, 0, %v224_v18 }
  0x3f   : > { %v8057_v58 = vld [vmem:[#allocation2 + $0x18] sm:$0xff]  ;;  %v586_v8 = vor.u32 %v584_v62, %v8451_v0  ;;  %v730_v13 = vsel %vm8349_vm10, %v442_v1, %v729_v12  ;;  %v249_v24 = vsel %vm8296_vm3, 0, %v248_v19  ;;  %226 = vst [vmem:[#allocation2 + $0x3c] sm:$0x1] %v225_v20  ;;  %v344_v28 = vld [vmem:[%s8317_s9 + $0xc8] sm:$0xff]  ;;  %v375_v29 = vpack.c.bf16 %v343_v25, %v343_v25  ;;  %s7510_s12 = sshll.u32 %s188_s11, 8 }
  0x40   : > { %7586 = vmatmul.msk.bf16.gmra.mxu2 %vm937_vm8, %v8064_v30  ;;  %7602 = vmatmul.msk.bf16.gmra.mxu3 %vm937_vm8, %v8064_v30  ;;  %v451_v11 = vsel %vm8341_vm9, %v443_v3, %v450_v5  ;;  %731 = vst [vmem:[#allocation2 + $0x30] sm:$0xf] %v730_v13  ;;  %v8065_v17 = vld [vmem:[#allocation2 + $0x78] sm:$0xff]  ;;  %v376_v30 = vpack.c.bf16 %v344_v28, %v344_v28  ;;  %v454_v31 = vshrl.u32 %v359_v26, 16  ;;  %v457_v32 = vshll.u32 %v359_v26, 16  ;;  %s10176_s13 = scalar_lea.vmem [#allocation4], %s7510_s12 }
  0x41   : > { %732 = vst.msk [vmem:[#allocation2 + $0x34] sm:$0xf] %vm197_vm0, %v451_v11  ;;  %v587_v14 = vsel %vm8341_vm9, %v579_v7, %v586_v8  ;;  %v462_v33 = vshrl.u32 %v360_v27, 16  ;;  %v465_v34 = vshll.u32 %v360_v27, 16  ;;  %v590_v35 = vshrl.u32 %v375_v29, 16  ;;  %v330_v7 = vld [vmem:[%s8317_s9 + $0x58] sm:$0xff] }
  0x42   : > { %788 = vst.msk [vmem:[#allocation2 + $0x94] sm:$0xf] %vm197_vm0, %v587_v14  ;;  %v598_v36 = vshrl.u32 %v376_v30, 16  ;;  %v8058_v37 = vld [vmem:[#allocation2 + $0x24] sm:$0xff]  ;;  %v456_v40 = vrot.slane %v454_v31, 7  ;;  %v593_v43 = vshll.u32 %v375_v29, 16  ;;  %v362_v13 = vpack.c.bf16 %v330_v7, %v330_v7 }
  0x43   : > { %250 = vst [vmem:[#allocation2 + $0x9c] sm:$0x1] %v249_v24  ;;  %v8477_v42 = vrot.slane %v462_v33, 7  ;;  %v601_v46 = vshll.u32 %v376_v30, 16  ;;  %v592_v47 = vrot.slane %v590_v35, 7  ;;  %v345_v11 = vld [vmem:[%s8317_s9 + $0xd0] sm:$0xff] }
  0x44   : > { %v8479_v48 = vrot.slane %v598_v36, 7  ;;  %v459_v49 = vor.u32 %v457_v32, %v456_v40  ;;  %v460_v50 = vrot.slane %v456_v40, 4  ;;  %v8066_v63 = vld [vmem:[#allocation2 + $0x84] sm:$0xff]  ;;  %v346_v14 = vld [vmem:[%s8317_s9 + $0xd8] sm:$0xff]  ;;  %v479_v19 = vshrl.u32 %v362_v13, 16  ;;  %s8103_s14 = sshll.u32 %s8261_s19, 8 }
  0x45   : > { %v785_v15 = vld [vmem:[#allocation2 + $0x90] sm:$0xf]  ;;  %v467_v51 = vor.u32 %v465_v34, %v8477_v42  ;;  %v595_v53 = vor.u32 %v593_v43, %v592_v47  ;;  %v596_v54 = vrot.slane %v592_v47, 4  ;;  %v227_v1 = vld [vmem:[#allocation2 + $0x48] sm:$0x1]  ;;  %v482_v20 = vshll.u32 %v362_v13, 16  ;;  %s7440_s23 = scalar_lea.hbm %s10579_s4, %s8103_s14 }
  0x46   : > { %v786_v16 = vsel %vm8349_vm10, %v578_v6, %v785_v15  ;;  %v736_v52 = vld [vmem:[#allocation2 + $0x3c] sm:$0xf]  ;;  %v603_v55 = vor.u32 %v601_v46, %v8479_v48  ;;  %v251_v3 = vld [vmem:[#allocation2 + $0xa8] sm:$0x1]  ;;  %v228_v5 = vsel %vm8296_vm3, 0, %v227_v1  ;;  %v377_v15 = vpack.c.bf16 %v345_v11, %v345_v11  ;;  %s7441_s19 = sshll.u32 %s10176_s13, 4  ;;  %s7442_s19 = int_to_ptr.vmem [resolvable:$true] %s7441_s19 }
  0x47   : > { %7579 = vmatmul.msk.bf16.gmra.mxu0 %vm937_vm8, %v8057_v58  ;;  %787 = vst [vmem:[#allocation2 + $0x90] sm:$0xf] %v786_v16  ;;  %v468_v57 = vsel %vm8341_vm9, %v460_v50, %v467_v51  ;;  %v329_v6 = vld [vmem:[%s8317_s9 + $0x50] sm:$0xff]  ;;  %v252_v8 = vsel %vm8296_vm3, 0, %v251_v3  ;;  %v378_v16 = vpack.c.bf16 %v346_v14, %v346_v14  ;;  %v8505_v26 = vrot.slane %v479_v19, 7  ;;  %s7443_s27 = sshll.u32 %s7440_s23, 4  ;;  %s7444_s27 = int_to_ptr.hbm [resolvable:$true] %s7443_s27 }
  0x48   : > { %7595 = vmatmul.msk.bf16.gmra.mxu1 %vm937_vm8, %v8057_v58  ;;  %v737_v58 = vsel %vm8349_vm10, %v459_v49, %v736_v52  ;;  %v604_v61 = vsel %vm8341_vm9, %v596_v54, %v603_v55  ;;  %739 = vst.msk [vmem:[#allocation2 + $0x40] sm:$0xf] %vm197_vm0, %v468_v57  ;;  %v361_v12 = vpack.c.bf16 %v329_v6, %v329_v6  ;;  %v607_v21 = vshrl.u32 %v377_v15, 16  ;;  %v8059_v24 = vld [vmem:[#allocation2 + $0x30] sm:$0xff]  ;;  %v331_v54 = vld [vmem:[%s8317_s9 + $0x60] sm:$0xff]  ;;  %v332_v55 = vld [vmem:[%s8317_s9 + $0x68] sm:$0xff] }
  0x49   : > { %738 = vst [vmem:[#allocation2 + $0x3c] sm:$0xf] %v737_v58  ;;  %v615_v22 = vshrl.u32 %v378_v16, 16  ;;  %v610_v27 = vshll.u32 %v377_v15, 16  ;;  %v618_v28 = vshll.u32 %v378_v16, 16  ;;  %v484_v33 = vor.u32 %v482_v20, %v8505_v26  ;;  %v347_v58 = vld [vmem:[%s8317_s9 + $0xe0] sm:$0xff] }
  0x4a   : > { %v792_v59 = vld [vmem:[#allocation2 + $0x9c] sm:$0xf]  ;;  %795 = vst.msk [vmem:[#allocation2 + $0xa0] sm:$0xf] %vm197_vm0, %v604_v61  ;;  %v474_v18 = vshll.u32 %v361_v12, 16  ;;  %v609_v29 = vrot.slane %v607_v21, 7  ;;  %v364_v61 = vpack.c.bf16 %v332_v55, %v332_v55 }
  0x4b   : > { %v793_v62 = vsel %vm8349_vm10, %v595_v53, %v792_v59  ;;  %229 = vst [vmem:[#allocation2 + $0x48] sm:$0x1] %v228_v5  ;;  %v8507_v30 = vrot.slane %v615_v22, 7  ;;  %v230_v51 = vld [vmem:[#allocation2 + $0x54] sm:$0x1]  ;;  %v363_v59 = vpack.c.bf16 %v331_v54, %v331_v54  ;;  %vm2241_vm12 = vcmask 1046532  }
  0x4c   : > { %794 = vst [vmem:[#allocation2 + $0x9c] sm:$0xf] %v793_v62  ;;  %v612_v35 = vor.u32 %v610_v27, %v609_v29  ;;  %v613_v36 = vrot.slane %v609_v29, 4  ;;  %v254_v52 = vld [vmem:[#allocation2 + $0xb4] sm:$0x1]  ;;  %v231_v53 = vsel %vm8296_vm3, 0, %v230_v51  ;;  %vm8573_vm13 = vmor %vm2240_vm11, %vm2241_vm12 }
  0x4d   : > { %253 = vst [vmem:[#allocation2 + $0xa8] sm:$0x1] %v252_v8  ;;  %v255_v57 = vsel %vm8296_vm3, 0, %v254_v52  ;;  %v348_v62 = vld [vmem:[%s8317_s9 + $0xe8] sm:$0xff]  ;;  %v488_v3 = vshrl.u32 %v363_v59, 16  ;;  %v491_v5 = vshll.u32 %v363_v59, 16 }
  0x4e   : > { %v8067_v50 = vld [vmem:[#allocation2 + $0x90] sm:$0xff]  ;;  %232 = vst [vmem:[#allocation2 + $0x54] sm:$0x1] %v231_v53  ;;  %v380_v1 = vpack.c.bf16 %v348_v62, %v348_v62  ;;  %v496_v6 = vshrl.u32 %v364_v61, 16  ;;  %v499_v7 = vshll.u32 %v364_v61, 16  ;;  %s7429_s28 = scalar_lea.sflag [#allocation5], %s188_s11 }
  0x4f   : > { %256 = vst [vmem:[#allocation2 + $0xb4] sm:$0x1] %v255_v57  ;;  %v490_v13 = vrot.slane %v488_v3, 7  ;;  %v1234_v51 = vld [vmem:[#allocation2 + $0x4] sm:$0xf]  ;;  %s8162_s29 = sshra.s32 %s7444_s27, 4  ;;  %s8163_s29 = int_to_ptr.hbm [resolvable:$true] %s8162_s29 }
  0x50   : > { %7587 = vmatmul.msk.bf16.gmra.mxu2 %vm937_vm8, %v8065_v17  ;;  %7603 = vmatmul.msk.bf16.gmra.mxu3 %vm937_vm8, %v8065_v17  ;;  %v471_v17 = vshrl.u32 %v361_v12, 16  ;;  %v632_v11 = vshrl.u32 %v380_v1, 16  ;;  %v8060_v12 = vld [vmem:[#allocation2 + $0x3c] sm:$0xff]  ;;  %v8533_v14 = vrot.slane %v496_v6, 7  ;;  %v635_v16 = vshll.u32 %v380_v1, 16  ;;  %s8164_s30 = scalar_lea.hbm %s8163_s29, 256  ;;  %p8169_p0 = scmp.lt.s32.totalorder %s8163_s29, %s10579_s4 }
  0x51   : > { %v493_v19 = vor.u32 %v491_v5, %v490_v13  ;;  %v494_v20 = vrot.slane %v490_v13, 4  ;;  %v2145_v52 = vld [vmem:[#allocation2 + $0x4] sm:$0xf]  ;;  %v2947_v54 = vld.sshfl [vmem:[#allocation1] sm:$0xff pattern:$0x73625140]  ;;  %p8165_p11 = scmp.ne.s32.totalorder %s8163_s29, %s8164_s30 }
  0x52   : > { %v473_v25 = vrot.slane %v471_v17, 7  ;;  %v743_v34 = vld [vmem:[#allocation2 + $0x48] sm:$0xf]  ;;  %v501_v21 = vor.u32 %v499_v7, %v8533_v14  ;;  %v2948_v55 = vld.sshfl [vmem:[#allocation1 + $0x8] sm:$0xff pattern:$0x73625140] }
  0x53   : > { %v2997_v57 = vsel %vm986_vm7, %v2947_v54, 0  ;;  %v1298_v1 = vshrl.u32 %v1234_v51, 16  ;;  %v2245_v3 = vrot.slane %v2145_v52, 5  ;;  %v2144_v5 = vld [vmem:[#allocation2] sm:$0xe]  ;;  %p8166_p12 = pnand %p8165_p11, %p8278_p5  ;;  %s8168_s7 = scalar_lea.hbm %s10579_s4, 512 }
  0x54   : > { %v476_v31 = vor.u32 %v474_v18, %v473_v25  ;;  %v477_v32 = vrot.slane %v473_v25, 4  ;;  %v799_v46 = vld [vmem:[#allocation2 + $0xa8] sm:$0xf]  ;;  %v8535_v18 = vrot.slane %v632_v11, 7  ;;  %3008 = vmatpush.bf16.msra.mxu2 %v2997_v57  ;;  %v271_v7 = vld [vmem:[#allocation2 + $0x20] sm:$0x1]  ;;  %p8170_p1 = scmp.lt.s32.totalorder %s8168_s7, %s8164_s30 }
  0x55   : > { %v800_v49 = vsel %vm8349_vm10, %v612_v35, %v799_v46  ;;  %v750_v22 = vld [vmem:[#allocation2 + $0x54] sm:$0xf]  ;;  %v265_v35 = vld [vmem:[#allocation2 + $0x8] sm:$0x1]  ;;  %v401_v46 = vrot.slane %v8358_v56, 4  ;;  %v272_v11 = vsel %vm8304_vm5, 0, %v271_v7  ;;  %p8167_p13 = pneg %p8166_p12 }
  0x56   : > { %v485_v40 = vsel %vm8341_vm9, %v477_v32, %v484_v33  ;;  %v744_v43 = vsel %vm8349_vm10, %v476_v31, %v743_v34  ;;  %801 = vst [vmem:[#allocation2 + $0xa8] sm:$0xf] %v800_v49  ;;  %v637_v27 = vor.u32 %v635_v16, %v8535_v18  ;;  %v751_v29 = vsel %vm8349_vm10, %v493_v19, %v750_v22  ;;  %v806_v31 = vld [vmem:[#allocation2 + $0xb4] sm:$0xf]  ;;  %v8068_v34 = vld [vmem:[#allocation2 + $0x9c] sm:$0xff]  ;;  %p8171_p2 = por %p8170_p1, %p8169_p0 }
  0x57   : > { %7580 = vmatmul.msk.bf16.gmra.mxu0 %vm937_vm8, %v8058_v37  ;;  %745 = vst [vmem:[#allocation2 + $0x48] sm:$0xf] %v744_v43  ;;  %v7788_v56 = vld [vmem:[%s10576_s1 + $0x10] sm:$0xf]  ;;  %v7642_v13 = vrot.slane %v2144_v5, 9 }
  0x58   : > { %7596 = vmatmul.msk.bf16.gmra.mxu1 %vm937_vm8, %v8058_v37  ;;  %v620_v37 = vor.u32 %v618_v28, %v8507_v30  ;;  %746 = vst.msk [vmem:[#allocation2 + $0x4c] sm:$0xf] %vm197_vm0, %v485_v40  ;;  %v502_v28 = vsel %vm8341_vm9, %v494_v20, %v501_v21  ;;  %v268_v40 = vld [vmem:[#allocation2 + $0x14] sm:$0x1]  ;;  %v1300_v20 = vrot.slane %v1298_v1, 4  ;;  %p8172_p3 = pnand %p8171_p2, %p8167_p13 }
  0x59   : > { %752 = vst [vmem:[#allocation2 + $0x54] sm:$0xf] %v751_v29  ;;  %v269_v43 = vsel %vm8304_vm5, 0, %v268_v40  ;;  %vm1281_vm14 = vsmask.f32 3328 }
  0x5a   : > { %v621_v47 = vsel %vm8341_vm9, %v613_v36, %v620_v37  ;;  %753 = vst.msk [vmem:[#allocation2 + $0x58] sm:$0xf] %vm197_vm0, %v502_v28  ;;  %v266_v36 = vsel %vm8304_vm5, 0, %v265_v35  ;;  %v418_v28 = vrot.slane %v8396_v38, 4  ;;  %vm1282_vm15 = vsmask.f32 7440 }
  0x5b   : > { %802 = vst.msk [vmem:[#allocation2 + $0xac] sm:$0xf] %vm197_vm0, %v621_v47  ;;  %vm8588_vm1 = vmor %vm1281_vm14, %vm1282_vm15  ;;  %v1236_v52 = vld [vmem:[#allocation2 + $0xc] sm:$0xf] }
  0x5c   : > { %267 = vst [vmem:[#allocation2 + $0x8] sm:$0x1] %v266_v36  ;;  %v1312_v1 = vshll.u32 %v1236_v52, 16 }
  0x5d   : > { %270 = vst [vmem:[#allocation2 + $0x14] sm:$0x1] %v269_v43 }
  0x5e   : > { %3854 = vst [vmem:[#allocation1] ss:$4 sm:$0xff] %v7788_v56 }
  0x5f   : > { %v8061_v37 = vld [vmem:[#allocation2 + $0x48] sm:$0xff]  ;;  %273 = vst [vmem:[#allocation2 + $0x20] sm:$0x1] %v272_v11 }
  0x60   : > { %7588 = vmatmul.msk.bf16.gmra.mxu2 %vm937_vm8, %v8066_v63  ;;  %7604 = vmatmul.msk.bf16.gmra.mxu3 %vm937_vm8, %v8066_v63  ;;  %v379_v63 = vpack.c.bf16 %v347_v58, %v347_v58  ;;  %v2999_v58 = vsel %vm986_vm7, %v2948_v55, 0 }
  0x61   : > { %v8062_v59 = vld [vmem:[#allocation2 + $0x54] sm:$0xff]  ;;  %3097 = vmatpush.bf16.msra.mxu3 %v2999_v58 }
  0x62   : > { %v624_v8 = vshrl.u32 %v379_v63, 16  ;;  %v627_v15 = vshll.u32 %v379_v63, 16  ;;  %v8069_v47 = vld [vmem:[#allocation2 + $0xa8] sm:$0xff]  ;;  %v1294_v63 = vshll.u32 %v1234_v51, 16 }
  0x63   : > { %v2146_v6 = vld [vmem:[#allocation2 + $0x8] sm:$0x1] }
  0x64   : > { %v626_v17 = vrot.slane %v624_v8, 7  ;;  %v712_v49 = vld [vmem:[#allocation2 + $0x14] sm:$0x1]  ;;  %v2248_v16 = vrot.slane %v2146_v6, 5  ;;  %v1296_v19 = vrot.slane %v1294_v63, 5  ;;  %v1309_v63 = vshrl.u32 %v1236_v52, 16 }
  0x65   : > { %v713_v53 = vsel %vm8296_vm3, %v401_v46, %v712_v49  ;;  %v3855_v22 = vld.sshfl [vmem:[#allocation1] sm:$0xff pattern:$0x73625140]  ;;  %v2148_v49 = vld [vmem:[#allocation2 + $0x10] sm:$0xf] }
  0x66   : > { %v630_v25 = vrot.slane %v626_v17, 4  ;;  %714 = vst [vmem:[#allocation2 + $0x14] sm:$0x1] %v713_v53  ;;  %v719_v40 = vld [vmem:[#allocation2 + $0x20] sm:$0x1]  ;;  %v2252_v57 = vrot.slane %v2148_v49, 5 }
  0x67   : > { %7581 = vmatmul.msk.bf16.gmra.mxu0 %vm937_vm8, %v8059_v24  ;;  %v720_v38 = vsel %vm8296_vm3, %v418_v28, %v719_v40  ;;  %v1237_v53 = vld [vmem:[#allocation2 + $0x10] sm:$0xf]  ;;  %v1240_v40 = vld [vmem:[#allocation2 + $0x1c] sm:$0xf] }
  0x68   : > { %7597 = vmatmul.msk.bf16.gmra.mxu1 %vm937_vm8, %v8059_v24  ;;  %v629_v24 = vor.u32 %v627_v15, %v626_v17  ;;  %v638_v32 = vsel %vm8341_vm9, %v630_v25, %v637_v27  ;;  %v2247_v15 = vrot.slane %v2245_v3, 4  ;;  %v1235_v17 = vld [vmem:[#allocation2 + $0x8] sm:$0x1]  ;;  %v3905_v25 = vsel %vm986_vm7, %v3855_v22, 0  ;;  %721 = vst [vmem:[#allocation2 + $0x20] sm:$0x1] %v720_v38 }
  0x69   : > { %809 = vst.msk [vmem:[#allocation2 + $0xb8] sm:$0xf] %vm197_vm0, %v638_v32  ;;  %3916 = vmatpush.bf16.msra.mxu0 %v3905_v25  ;;  %v1304_v35 = vshll.u32 %v1235_v17, 16  ;;  %v1322_v5 = vshrl.u32 %v1237_v53, 16  ;;  %v435_v22 = vrot.slane %v8417_v10, 4 }
  0x6a   : > { %v807_v33 = vsel %vm8349_vm10, %v629_v24, %v806_v31  ;;  %v3856_v24 = vld.sshfl [vmem:[#allocation1 + $0x8] sm:$0xff pattern:$0x73625140]  ;;  %v2246_v31 = vsel %vm8573_vm13, %v7642_v13, %v2245_v3  ;;  %v2249_v32 = vsel %vm8573_vm13, %v2247_v15, %v2248_v16  ;;  %v1318_v3 = vshll.u32 %v1237_v53, 16 }
  0x6b   : > { %808 = vst [vmem:[#allocation2 + $0xb4] sm:$0xf] %v807_v33  ;;  %v3907_v27 = vsel %vm986_vm7, %v3856_v24, 0  ;;  %v2357_v36 = vunpack.c.l.b16 %v2246_v31  ;;  %v1311_v15 = vrot.slane %v1309_v63, 4  ;;  %v1314_v16 = vrot.slane %v1312_v1, 5 }
  0x6c   : > { %4005 = vmatpush.bf16.msra.mxu1 %v3907_v27  ;;  %v1320_v17 = vrot.slane %v1318_v3, 5  ;;  %v2150_v63 = vld [vmem:[#allocation2 + $0x18] sm:$0xe]  ;;  %v277_v3 = vld [vmem:[#allocation2 + $0x38] sm:$0x1] }
  0x6d   : > { %v1315_v31 = vor.u32 %v1314_v16, %v1311_v15 }
  0x6f   : > { %v1316_v38 = vrot.slane %v1315_v31, 4  ;;  %v2152_v1 = vld [vmem:[#allocation2 + $0x20] sm:$0x1] }
  0x70   : > { %7589 = vmatmul.msk.bf16.gmra.mxu2 %vm937_vm8, %v8067_v50  ;;  %7605 = vmatmul.msk.bf16.gmra.mxu3 %vm937_vm8, %v8067_v50  ;;  %v1233_v50 = vld [vmem:[#allocation2] sm:$0xf]  ;;  %v2262_v15 = vrot.slane %v2152_v1, 5 }
  0x71   : > { %v1285_v61 = vshrl.u32 %v1233_v50, 16  ;;  %v1288_v62 = vshll.u32 %v1233_v50, 16 }
  0x72   : > { %v8070_v33 = vld [vmem:[#allocation2 + $0xb4] sm:$0xff] }
  0x73   : > { %v1287_v8 = vrot.slane %v1285_v61, 4  ;;  %v2149_v61 = vld [vmem:[#allocation2 + $0x14] sm:$0x1] }
  0x74   : > { %v2255_v11 = vrot.slane %v2149_v61, 5 }
  0x77   : > { %7582 = vmatmul.msk.bf16.gmra.mxu0 %vm937_vm8, %v8060_v12 }
  0x78   : > { %7598 = vmatmul.msk.bf16.gmra.mxu1 %vm937_vm8, %v8060_v12  ;;  %v1290_v12 = vrot.slane %v1288_v62, 5  ;;  %v274_v62 = vld [vmem:[#allocation2 + $0x2c] sm:$0x1] }
  0x79   : > { %v275_v6 = vsel %vm8304_vm5, 0, %v274_v62 }
  0x7a   : > { %v1291_v29 = vor.u32 %v1290_v12, %v1287_v8  ;;  %v2254_v8 = vrot.slane %v2252_v57, 4  ;;  %276 = vst [vmem:[#allocation2 + $0x2c] sm:$0x1] %v275_v6 }
  0x7c   : > { %v1292_v43 = vrot.slane %v1291_v29, 4  ;;  %v2256_v28 = vsel %vm8573_vm13, %v2254_v8, %v2255_v11  ;;  %v278_v8 = vsel %vm8304_vm5, 0, %v277_v3 }
  0x7d   : > { %279 = vst [vmem:[#allocation2 + $0x38] sm:$0x1] %v278_v8  ;;  %v2153_v8 = vld [vmem:[#allocation2 + $0x24] sm:$0xe] }
  0x7e   : > { %v1297_v58 = vsel %vm8588_vm1, %v1292_v43, %v1296_v19  ;;  %v2151_v43 = vld [vmem:[#allocation2 + $0x1c] sm:$0xf] }
  0x7f   : > { %v1670_v12 = vunpack.c.l.b16 %v1297_v58  ;;  %v1342_v58 = vshll.u32 %v1240_v40, 16 }
  0x80   : > { %7590 = vmatmul.msk.bf16.gmra.mxu2 %vm937_vm8, %v8068_v34  ;;  %7606 = vmatmul.msk.bf16.gmra.mxu3 %vm937_vm8, %v8068_v34  ;;  %v1301_v34 = vor.u32 %v1300_v20, %v1296_v19  ;;  %v1324_v19 = vrot.slane %v1322_v5, 4  ;;  %v1238_v20 = vld [vmem:[#allocation2 + $0x14] sm:$0x1]  ;;  %v1321_v5 = vsel %vm8588_vm1, %v1316_v38, %v1320_v17 }
  0x81   : > { %v1672_v16 = vunpack.c.l.b16 %v1321_v5 }
  0x82   : > { %v1302_v46 = vrot.slane %v1301_v34, 4 }
  0x87   : > { %7583 = vmatmul.msk.bf16.gmra.mxu0 %vm937_vm8, %v8061_v37 }
  0x88   : > { %7599 = vmatmul.msk.bf16.gmra.mxu1 %vm937_vm8, %v8061_v37  ;;  %v2358_v37 = vunpack.c.l.b16 %v2249_v32  ;;  %v1325_v32 = vor.u32 %v1324_v19, %v1320_v17 }
  0x8a   : > { %v2389_v51 = vpack.c.b16 %v2358_v37, %v2357_v36  ;;  %v726_v36 = vld [vmem:[#allocation2 + $0x2c] sm:$0x1]  ;;  %v1239_v37 = vld [vmem:[#allocation2 + $0x18] sm:$0xf] }
  0x8b   : > { %v727_v10 = vsel %vm8296_vm3, %v435_v22, %v726_v36  ;;  %v1241_v22 = vld [vmem:[#allocation2 + $0x20] sm:$0x1] }
  0x8c   : > { %728 = vst [vmem:[#allocation2 + $0x2c] sm:$0x1] %v727_v10  ;;  %v1352_v10 = vshll.u32 %v1241_v22, 16  ;;  %v7645_v22 = vrot.slane %v2153_v8, 9 }
  0x90   : > { %7591 = vmatmul.msk.bf16.gmra.mxu2 %vm937_vm8, %v8069_v47  ;;  %7607 = vmatmul.msk.bf16.gmra.mxu3 %vm937_vm8, %v8069_v47  ;;  %v1306_v47 = vrot.slane %v1304_v35, 5  ;;  %v2360_v35 = vunpack.c.l.b16 %v2256_v28 }
  0x92   : > { %v1307_v56 = vsel %vm8588_vm1, %v1302_v46, %v1306_v47  ;;  %v1326_v46 = vrot.slane %v1325_v32, 4 }
  0x93   : > { %v1671_v13 = vunpack.c.l.b16 %v1307_v56  ;;  %v1346_v56 = vshrl.u32 %v1240_v40, 16 }
  0x95   : > { %v1702_v29 = vpack.c.b16 %v1671_v13, %v1670_v12  ;;  %v7644_v12 = vrot.slane %v2150_v63, 9  ;;  %v1348_v17 = vrot.slane %v1346_v56, 4  ;;  %v1243_v56 = vld [vmem:[#allocation2 + $0x28] sm:$0xf] }
  0x97   : > { %7584 = vmatmul.msk.bf16.gmra.mxu0 %vm937_vm8, %v8062_v59 }
  0x98   : > { %7600 = vmatmul.msk.bf16.gmra.mxu1 %vm937_vm8, %v8062_v59  ;;  %v2147_v59 = vld [vmem:[#allocation2 + $0xc] sm:$0xe] }
  0x99   : > { %v7643_v7 = vrot.slane %v2147_v59, 9  ;;  %v2259_v59 = vrot.slane %v2151_v43, 5  ;;  %v733_v43 = vld [vmem:[#allocation2 + $0x38] sm:$0x1] }
  0x9b   : > { %v2253_v27 = vsel %vm8573_vm13, %v7643_v7, %v2252_v57  ;;  %v1336_v57 = vshll.u32 %v1239_v37, 16  ;;  %v2261_v13 = vrot.slane %v2259_v59, 4  ;;  %v2260_v32 = vsel %vm8573_vm13, %v7644_v12, %v2259_v59  ;;  %v280_v12 = vld [vmem:[#allocation2 + $0x44] sm:$0x1] }
  0x9c   : > { %v2359_v34 = vunpack.c.l.b16 %v2253_v27  ;;  %v452_v27 = vrot.slane %v8449_v60, 4  ;;  %v2361_v40 = vunpack.c.l.b16 %v2260_v32 }
  0x9d   : > { %v1338_v11 = vrot.slane %v1336_v57, 5 }
  0x9e   : > { %v2390_v49 = vpack.c.b16 %v2360_v35, %v2359_v34 }
  0xa0   : > { %7592 = vmatmul.msk.bf16.gmra.mxu2 %vm937_vm8, %v8070_v33  ;;  %7608 = vmatmul.msk.bf16.gmra.mxu3 %vm937_vm8, %v8070_v33  ;;  %v1328_v33 = vshll.u32 %v1238_v20, 16  ;;  %v1344_v20 = vrot.slane %v1342_v58, 5  ;;  %v1242_v58 = vld [vmem:[#allocation2 + $0x24] sm:$0xf] }
  0xa2   : > { %v1330_v47 = vrot.slane %v1328_v33, 5  ;;  %v2263_v33 = vsel %vm8573_vm13, %v2261_v13, %v2262_v15  ;;  %v1357_v13 = vshrl.u32 %v1242_v58, 16  ;;  %v1360_v15 = vshll.u32 %v1242_v58, 16 }
  0xa3   : > { %v2362_v60 = vunpack.c.l.b16 %v2263_v33 }
  0xa4   : > { %v8592_v54 = vpop.f32.mrf.mxu0  ;;  %v1331_v6 = vsel %vm8588_vm1, %v1326_v46, %v1330_v47  ;;  %v734_v46 = vsel %vm8296_vm3, %v452_v27, %v733_v43  ;;  %v1359_v33 = vrot.slane %v1357_v13, 4  ;;  %v2157_v13 = vld [vmem:[#allocation2 + $0x34] sm:$0xf] }
  0xa5   : > { %v8594_v55 = vpop.f32.mrf.mxu1  ;;  %v1673_v19 = vunpack.c.l.b16 %v1331_v6  ;;  %735 = vst [vmem:[#allocation2 + $0x38] sm:$0x1] %v734_v46  ;;  %v2391_v57 = vpack.c.b16 %v2362_v60, %v2361_v40  ;;  %v1244_v40 = vld [vmem:[#allocation2 + $0x2c] sm:$0x1]  ;;  %v469_v60 = vrot.slane %v8477_v42, 4 }
  0xa7   : > { %7659 = vmatmul.msk.bf16.vlgmr.msrb.gmra.mxu0 %vm937_vm8, %v2389_v51  ;;  %v1703_v34 = vpack.c.b16 %v1673_v19, %v1672_v16  ;;  %v1366_v16 = vshll.u32 %v1243_v56, 16  ;;  %v1370_v19 = vshrl.u32 %v1243_v56, 16 }
  0xa8   : > { %7675 = vmatmul.msk.bf16.vlgmr.msrb.gmra.mxu1 %vm937_vm8, %v2389_v51  ;;  %v1333_v51 = vshrl.u32 %v1239_v37, 16  ;;  %v1349_v37 = vor.u32 %v1348_v17, %v1344_v20  ;;  %v281_v17 = vsel %vm8304_vm5, 0, %v280_v12 }
  0xa9   : > { %282 = vst [vmem:[#allocation2 + $0x44] sm:$0x1] %v281_v17 }
  0xaa   : > { %v1335_v7 = vrot.slane %v1333_v51, 4  ;;  %v1350_v47 = vrot.slane %v1349_v37, 4  ;;  %v2154_v51 = vld [vmem:[#allocation2 + $0x28] sm:$0xf]  ;;  %v1368_v37 = vrot.slane %v1366_v16, 5 }
  0xab   : > { %v2266_v1 = vrot.slane %v2154_v51, 5 }
  0xac   : > { %v8605_v24 = vpop.f32.mrf.mxu0  ;;  %v1339_v31 = vor.u32 %v1338_v11, %v1335_v7  ;;  %v2155_v11 = vld [vmem:[#allocation2 + $0x2c] sm:$0x1] }
  0xad   : > { %v8607_v25 = vpop.f32.mrf.mxu1  ;;  %v2268_v27 = vrot.slane %v2266_v1, 4  ;;  %v2267_v46 = vsel %vm8573_vm13, %v7645_v22, %v2266_v1  ;;  %v1246_v1 = vld [vmem:[#allocation2 + $0x34] sm:$0xf] }
  0xae   : > { %v1340_v38 = vrot.slane %v1339_v31, 4 }
  0xb0   : > { %7610 = vmatmul.msk.bf16.vlgmr.msrb.gmra.mxu2 %vm937_vm8, %v1702_v29  ;;  %7626 = vmatmul.msk.bf16.vlgmr.msrb.gmra.mxu3 %vm937_vm8, %v1702_v29  ;;  %v1345_v6 = vsel %vm8588_vm1, %v1340_v38, %v1344_v20  ;;  %v2269_v20 = vrot.slane %v2155_v11, 5  ;;  %v740_v8 = vld [vmem:[#allocation2 + $0x44] sm:$0x1]  ;;  %v1245_v11 = vld [vmem:[#allocation2 + $0x30] sm:$0xf] }
  0xb1   : > { %v1674_v31 = vunpack.c.l.b16 %v1345_v6  ;;  %v1376_v6 = vshll.u32 %v1244_v40, 16  ;;  %v741_v12 = vsel %vm8296_vm3, %v469_v60, %v740_v8  ;;  %v1381_v22 = vshrl.u32 %v1245_v11, 16  ;;  %v2156_v60 = vld [vmem:[#allocation2 + $0x30] sm:$0xe] }
  0xb2   : > { %742 = vst [vmem:[#allocation2 + $0x44] sm:$0x1] %v741_v12 }
  0xb3   : > { %v8617_v52 = vpop.f32.mrf.mxu2  ;;  %v8619_v53 = vpop.f32.mrf.mxu3 }
  0xb4   : > { %10600 = vst [vmem:[#allocation10_spill] sm:$0xff] %v8617_v52  ;;  %v8621_v61 = vpop.f32.mrf.mxu0 }
  0xb5   : > { %10601 = vst [vmem:[#allocation11_spill] sm:$0xff] %v8619_v53  ;;  %v8623_v62 = vpop.f32.mrf.mxu1 }
  0xb7   : > { %7660 = vmatmul.msk.bf16.gmra.mxu0 %vm937_vm8, %v2390_v49 }
  0xb8   : > { %7676 = vmatmul.msk.bf16.gmra.mxu1 %vm937_vm8, %v2390_v49  ;;  %v1354_v49 = vrot.slane %v1352_v10, 5  ;;  %v1372_v10 = vrot.slane %v1370_v19, 4  ;;  %v1378_v19 = vrot.slane %v1376_v6, 5 }
  0xba   : > { %v1355_v7 = vsel %vm8588_vm1, %v1350_v47, %v1354_v49  ;;  %v2270_v47 = vsel %vm8573_vm13, %v2268_v27, %v2269_v20  ;;  %v1373_v56 = vor.u32 %v1372_v10, %v1368_v37 }
  0xbb   : > { %v8634_v28 = vpop.f32.mrf.mxu2  ;;  %v8636_v29 = vpop.f32.mrf.mxu3  ;;  %v1675_v32 = vunpack.c.l.b16 %v1355_v7  ;;  %v2363_v7 = vunpack.c.l.b16 %v2267_v46  ;;  %v2364_v42 = vunpack.c.l.b16 %v2270_v47  ;;  %v2158_v46 = vld [vmem:[#allocation2 + $0x38] sm:$0x1]  ;;  %v283_v47 = vld [vmem:[#allocation2 + $0x50] sm:$0x1] }
  0xbc   : > { %10602 = vst [vmem:[#allocation12_spill] sm:$0xff] %v8634_v28  ;;  %v8642_v35 = vpop.f32.mrf.mxu0  ;;  %v1374_v16 = vrot.slane %v1373_v56, 4  ;;  %v1383_v56 = vrot.slane %v1381_v22, 4  ;;  %v284_v6 = vsel %vm8304_vm5, 0, %v283_v47 }
  0xbd   : > { %10603 = vst [vmem:[#allocation13_spill] sm:$0xff] %v8636_v29  ;;  %v8644_v36 = vpop.f32.mrf.mxu1  ;;  %v1704_v49 = vpack.c.b16 %v1675_v32, %v1674_v31  ;;  %v2392_v17 = vpack.c.b16 %v2364_v42, %v2363_v7  ;;  %v1384_v31 = vshll.u32 %v1245_v11, 16  ;;  %v1390_v32 = vshll.u32 %v1246_v1, 16 }
  0xbe   : > { %v7646_v42 = vrot.slane %v2156_v60, 9  ;;  %v2276_v11 = vrot.slane %v2158_v46, 5  ;;  %285 = vst [vmem:[#allocation2 + $0x50] sm:$0x1] %v284_v6 }
  0xbf   : > { %v1386_v7 = vrot.slane %v1384_v31, 5 }
  0xc0   : > { %7611 = vmatmul.msk.bf16.gmra.mxu2 %vm937_vm8, %v1703_v34  ;;  %7627 = vmatmul.msk.bf16.gmra.mxu3 %vm937_vm8, %v1703_v34  ;;  %v1362_v34 = vrot.slane %v1360_v15, 5 }
  0xc2   : > { %v1363_v58 = vor.u32 %v1362_v34, %v1359_v33  ;;  %v1394_v33 = vshrl.u32 %v1246_v1, 16  ;;  %v2273_v34 = vrot.slane %v2157_v13, 5  ;;  %v1392_v13 = vrot.slane %v1390_v32, 5 }
  0xc3   : > { %v8650_v59 = vpop.f32.mrf.mxu2  ;;  %v8652_v63 = vpop.f32.mrf.mxu3 }
  0xc4   : > { %10604 = vst [vmem:[#allocation14_spill] sm:$0xff] %v8650_v59  ;;  %v8654_v3 = vpop.f32.mrf.mxu0  ;;  %v1364_v15 = vrot.slane %v1363_v58, 4  ;;  %v1379_v58 = vsel %vm8588_vm1, %v1374_v16, %v1378_v19  ;;  %v2275_v8 = vrot.slane %v2273_v34, 4  ;;  %v486_v16 = vrot.slane %v8505_v26, 4 }
  0xc5   : > { %10605 = vst [vmem:[#allocation15_spill] sm:$0xff] %v8652_v63  ;;  %v8656_v5 = vpop.f32.mrf.mxu1  ;;  %v1677_v1 = vunpack.c.l.b16 %v1379_v58  ;;  %v2274_v22 = vsel %vm8573_vm13, %v7646_v42, %v2273_v34  ;;  %v747_v58 = vld [vmem:[#allocation2 + $0x50] sm:$0x1]  ;;  %v2160_v42 = vld [vmem:[#allocation2 + $0x40] sm:$0xf] }
  0xc6   : > { %v2277_v31 = vsel %vm8573_vm13, %v2275_v8, %v2276_v11  ;;  %v1248_v11 = vld [vmem:[#allocation2 + $0x3c] sm:$0xf] }
  0xc7   : > { %7661 = vmatmul.msk.bf16.gmra.mxu0 %vm937_vm8, %v2391_v57  ;;  %v2366_v26 = vunpack.c.l.b16 %v2277_v31 }
  0xc8   : > { %7677 = vmatmul.msk.bf16.gmra.mxu1 %vm937_vm8, %v2391_v57 }
  0xcb   : > { %v8667_v43 = vpop.f32.mrf.mxu2  ;;  %v8669_v38 = vpop.f32.mrf.mxu3 }
  0xcc   : > { %10606 = vst [vmem:[#allocation16_spill] sm:$0xff] %v8667_v43  ;;  %v8675_v51 = vpop.f32.mrf.mxu0 }
  0xcd   : > { %10607 = vst [vmem:[#allocation17_spill] sm:$0xff] %v8669_v38  ;;  %v8677_v57 = vpop.f32.mrf.mxu1 }
  0xd0   : > { %7612 = vmatmul.msk.bf16.gmra.mxu2 %vm937_vm8, %v1704_v49  ;;  %7628 = vmatmul.msk.bf16.gmra.mxu3 %vm937_vm8, %v1704_v49  ;;  %v1369_v49 = vsel %vm8588_vm1, %v1364_v15, %v1368_v37  ;;  %v1396_v37 = vrot.slane %v1394_v33, 4  ;;  %v1247_v15 = vld [vmem:[#allocation2 + $0x38] sm:$0x1] }
  0xd1   : > { %v1676_v12 = vunpack.c.l.b16 %v1369_v49  ;;  %v1400_v33 = vshll.u32 %v1247_v15, 16  ;;  %v2365_v49 = vunpack.c.l.b16 %v2274_v22  ;;  %v2280_v15 = vrot.slane %v2160_v42, 5 }
  0xd2   : > { %v1397_v32 = vor.u32 %v1396_v37, %v1392_v13 }
  0xd3   : > { %v8683_v27 = vpop.f32.mrf.mxu2  ;;  %v8685_v20 = vpop.f32.mrf.mxu3  ;;  %v1705_v60 = vpack.c.b16 %v1677_v1, %v1676_v12  ;;  %v2393_v8 = vpack.c.b16 %v2366_v26, %v2365_v49  ;;  %v1249_v12 = vld [vmem:[#allocation2 + $0x40] sm:$0xf]  ;;  %v1405_v49 = vshrl.u32 %v1248_v11, 16  ;;  %v1408_v26 = vshll.u32 %v1248_v11, 16  ;;  %v1250_v11 = vld [vmem:[#allocation2 + $0x44] sm:$0x1] }
  0xd4   : > { %10608 = vst [vmem:[#allocation18_spill] sm:$0xff] %v8683_v27  ;;  %v8687_v10 = vpop.f32.mrf.mxu0  ;;  %v1398_v34 = vrot.slane %v1397_v32, 4  ;;  %v2161_v32 = vld [vmem:[#allocation2 + $0x44] sm:$0x1] }
  0xd5   : > { %10609 = vst [vmem:[#allocation19_spill] sm:$0xff] %v8685_v20  ;;  %v8689_v40 = vpop.f32.mrf.mxu1 }
  0xd7   : > { %7662 = vmatmul.msk.bf16.gmra.mxu0 %vm937_vm8, %v2392_v17 }
  0xd8   : > { %7678 = vmatmul.msk.bf16.gmra.mxu1 %vm937_vm8, %v2392_v17  ;;  %v1387_v17 = vor.u32 %v1386_v7, %v1383_v56  ;;  %v748_v56 = vsel %vm8296_vm3, %v486_v16, %v747_v58  ;;  %v1402_v7 = vrot.slane %v1400_v33, 5  ;;  %v286_v33 = vld [vmem:[#allocation2 + $0x5c] sm:$0x1]  ;;  %v1414_v58 = vshll.u32 %v1249_v12, 16 }
  0xd9   : > { %749 = vst [vmem:[#allocation2 + $0x50] sm:$0x1] %v748_v56  ;;  %v1418_v56 = vshrl.u32 %v1249_v12, 16  ;;  %v287_v42 = vsel %vm8304_vm5, 0, %v286_v33  ;;  %v503_v12 = vrot.slane %v8533_v14, 4 }
  0xda   : > { %v1388_v6 = vrot.slane %v1387_v17, 4  ;;  %v1403_v31 = vsel %vm8588_vm1, %v1398_v34, %v1402_v7  ;;  %288 = vst [vmem:[#allocation2 + $0x5c] sm:$0x1] %v287_v42  ;;  %v1407_v7 = vrot.slane %v1405_v49, 4  ;;  %v1251_v42 = vld [vmem:[#allocation2 + $0x48] sm:$0xf] }
  0xdb   : > { %v8700_v19 = vpop.f32.mrf.mxu2  ;;  %v8702_v44 = vpop.f32.mrf.mxu3  ;;  %v1679_v34 = vunpack.c.l.b16 %v1403_v31 }
  0xdc   : > { %10610 = vst [vmem:[#allocation20_spill] sm:$0xff] %v8700_v19  ;;  %v8708_v46 = vpop.f32.mrf.mxu0  ;;  %v1393_v16 = vsel %vm8588_vm1, %v1388_v6, %v1392_v13  ;;  %v2283_v13 = vrot.slane %v2161_v32, 5  ;;  %v1420_v19 = vrot.slane %v1418_v56, 4 }
  0xdd   : > { %10611 = vst [vmem:[#allocation21_spill] sm:$0xff] %v8702_v44  ;;  %v8710_v47 = vpop.f32.mrf.mxu1  ;;  %v1678_v6 = vunpack.c.l.b16 %v1393_v16  ;;  %v1416_v44 = vrot.slane %v1414_v58, 5 }
  0xdf   : > { %v1706_v32 = vpack.c.b16 %v1679_v34, %v1678_v6  ;;  %v1421_v49 = vor.u32 %v1420_v19, %v1416_v44  ;;  %v1429_v19 = vshrl.u32 %v1251_v42, 16 }
  0xe0   : > { %7613 = vmatmul.msk.bf16.gmra.mxu2 %vm937_vm8, %v1705_v60  ;;  %7629 = vmatmul.msk.bf16.gmra.mxu3 %vm937_vm8, %v1705_v60  ;;  %v2159_v60 = vld [vmem:[#allocation2 + $0x3c] sm:$0xe]  ;;  %v2164_v38 = vld [vmem:[#allocation2 + $0x50] sm:$0x1] }
  0xe1   : > { %v7647_v39 = vrot.slane %v2159_v60, 9  ;;  %v754_v56 = vld [vmem:[#allocation2 + $0x5c] sm:$0x1] }
  0xe3   : > { %v8716_v1 = vpop.f32.mrf.mxu2  ;;  %v8718_v37 = vpop.f32.mrf.mxu3 }
  0xe4   : > { %10612 = vst [vmem:[#allocation22_spill] sm:$0xff] %v8716_v1  ;;  %v8720_v17 = vpop.f32.mrf.mxu0  ;;  %v1410_v1 = vrot.slane %v1408_v26, 5  ;;  %v1424_v26 = vshll.u32 %v1250_v11, 16  ;;  %v1432_v11 = vshll.u32 %v1251_v42, 16 }
  0xe5   : > { %10613 = vst [vmem:[#allocation23_spill] sm:$0xff] %v8718_v37  ;;  %v8722_v22 = vpop.f32.mrf.mxu1  ;;  %v2282_v37 = vrot.slane %v2280_v15, 4 }
  0xe6   : > { %v1411_v33 = vor.u32 %v1410_v1, %v1407_v7  ;;  %v1426_v6 = vrot.slane %v1424_v26, 5  ;;  %v1431_v26 = vrot.slane %v1429_v19, 4 }
  0xe7   : > { %7663 = vmatmul.msk.bf16.gmra.mxu0 %vm937_vm8, %v2393_v8  ;;  %v2284_v60 = vsel %vm8573_vm13, %v2282_v37, %v2283_v13  ;;  %v2163_v37 = vld [vmem:[#allocation2 + $0x4c] sm:$0xf]  ;;  %v1422_v13 = vrot.slane %v1421_v49, 4 }
  0xe8   : > { %7679 = vmatmul.msk.bf16.gmra.mxu1 %vm937_vm8, %v2393_v8  ;;  %v2281_v8 = vsel %vm8573_vm13, %v7647_v39, %v2280_v15  ;;  %v2368_v14 = vunpack.c.l.b16 %v2284_v60  ;;  %v1252_v39 = vld [vmem:[#allocation2 + $0x4c] sm:$0xf]  ;;  %v1412_v15 = vrot.slane %v1411_v33, 4 }
  0xe9   : > { %v2367_v58 = vunpack.c.l.b16 %v2281_v8  ;;  %v1438_v8 = vshll.u32 %v1252_v39, 16  ;;  %v1442_v60 = vshrl.u32 %v1252_v39, 16  ;;  %v1427_v49 = vsel %vm8588_vm1, %v1422_v13, %v1426_v6 }
  0xea   : > { %v1417_v33 = vsel %vm8588_vm1, %v1412_v15, %v1416_v44  ;;  %v1253_v15 = vld [vmem:[#allocation2 + $0x50] sm:$0x1]  ;;  %v520_v13 = vrot.slane %v8345_v41, 4 }
  0xeb   : > { %v8733_v20 = vpop.f32.mrf.mxu2  ;;  %v8735_v27 = vpop.f32.mrf.mxu3  ;;  %v2394_v1 = vpack.c.b16 %v2368_v14, %v2367_v58  ;;  %v1434_v14 = vrot.slane %v1432_v11, 5  ;;  %v1440_v43 = vrot.slane %v1438_v8, 5  ;;  %v1444_v44 = vrot.slane %v1442_v60, 4 }
  0xec   : > { %10614 = vst [vmem:[#allocation24_spill] sm:$0xff] %v8733_v20  ;;  %v8741_v16 = vpop.f32.mrf.mxu0  ;;  %v1448_v60 = vshll.u32 %v1253_v15, 16 }
  0xed   : > { %10615 = vst [vmem:[#allocation25_spill] sm:$0xff] %v8735_v27  ;;  %v8743_v31 = vpop.f32.mrf.mxu1  ;;  %v755_v27 = vsel %vm8296_vm3, %v503_v12, %v754_v56  ;;  %v2287_v12 = vrot.slane %v2163_v37, 5  ;;  %v2290_v37 = vrot.slane %v2164_v38, 5  ;;  %v1445_v8 = vor.u32 %v1444_v44, %v1440_v43 }
  0xee   : > { %756 = vst [vmem:[#allocation2 + $0x5c] sm:$0x1] %v755_v27  ;;  %v289_v27 = vld [vmem:[#allocation2 + $0x68] sm:$0x1] }
  0xef   : > { %v290_v58 = vsel %vm8304_vm5, 0, %v289_v27  ;;  %v2289_v39 = vrot.slane %v2287_v12, 4 }
  0xf0   : > { %7614 = vmatmul.msk.bf16.gmra.mxu2 %vm937_vm8, %v1706_v32  ;;  %7630 = vmatmul.msk.bf16.gmra.mxu3 %vm937_vm8, %v1706_v32  ;;  %v2162_v32 = vld [vmem:[#allocation2 + $0x48] sm:$0xe]  ;;  %291 = vst [vmem:[#allocation2 + $0x68] sm:$0x1] %v290_v58 }
  0xf1   : > { %v7648_v42 = vrot.slane %v2162_v32, 9  ;;  %v2291_v11 = vsel %vm8573_vm13, %v2289_v39, %v2290_v37  ;;  %v1255_v39 = vld [vmem:[#allocation2 + $0x58] sm:$0xf] }
  0xf2   : > { %v2370_v41 = vunpack.c.l.b16 %v2291_v11 }
  0xf3   : > { %v8749_v34 = vpop.f32.mrf.mxu2  ;;  %v8751_v7 = vpop.f32.mrf.mxu3  ;;  %v2288_v19 = vsel %vm8573_vm13, %v7648_v42, %v2287_v12  ;;  %v1446_v12 = vrot.slane %v1445_v8, 4  ;;  %v1254_v42 = vld [vmem:[#allocation2 + $0x54] sm:$0xf] }
  0xf4   : > { %10616 = vst [vmem:[#allocation26_spill] sm:$0xff] %v8749_v34  ;;  %v8753_v56 = vpop.f32.mrf.mxu0  ;;  %v1681_v34 = vunpack.c.l.b16 %v1427_v49 }
  0xf5   : > { %10617 = vst [vmem:[#allocation27_spill] sm:$0xff] %v8751_v7  ;;  %v8755_v20 = vpop.f32.mrf.mxu1  ;;  %v1680_v7 = vunpack.c.l.b16 %v1417_v33  ;;  %v2369_v33 = vunpack.c.l.b16 %v2288_v19  ;;  %v2167_v8 = vld [vmem:[#allocation2 + $0x5c] sm:$0x1] }
  0xf7   : > { %7664 = vmatmul.msk.bf16.gmra.mxu0 %vm937_vm8, %v2394_v1  ;;  %v1707_v38 = vpack.c.b16 %v1681_v34, %v1680_v7  ;;  %v761_v49 = vld [vmem:[#allocation2 + $0x68] sm:$0x1]  ;;  %v2166_v34 = vld [vmem:[#allocation2 + $0x58] sm:$0xf]  ;;  %v2395_v7 = vpack.c.b16 %v2370_v41, %v2369_v33  ;;  %v1453_v33 = vshrl.u32 %v1254_v42, 16  ;;  %v1456_v41 = vshll.u32 %v1254_v42, 16 }
  0xf8   : > { %7680 = vmatmul.msk.bf16.gmra.mxu1 %vm937_vm8, %v2394_v1  ;;  %v1435_v1 = vor.u32 %v1434_v14, %v1431_v26  ;;  %v762_v26 = vsel %vm8296_vm3, %v520_v13, %v761_v49  ;;  %v1450_v14 = vrot.slane %v1448_v60, 5  ;;  %v2294_v15 = vrot.slane %v2166_v34, 5  ;;  %v292_v60 = vld [vmem:[#allocation2 + $0x74] sm:$0x1]  ;;  %v1256_v42 = vld [vmem:[#allocation2 + $0x5c] sm:$0x1] }
  0xf9   : > { %763 = vst [vmem:[#allocation2 + $0x68] sm:$0x1] %v762_v26  ;;  %v1462_v49 = vshll.u32 %v1255_v39, 16  ;;  %v1466_v26 = vshrl.u32 %v1255_v39, 16  ;;  %v293_v34 = vsel %vm8304_vm5, 0, %v292_v60  ;;  %v537_v39 = vrot.slane %v8370_v9, 4 }
  0xfa   : > { %v1436_v58 = vrot.slane %v1435_v1, 4  ;;  %v1451_v11 = vsel %vm8588_vm1, %v1446_v12, %v1450_v14  ;;  %294 = vst [vmem:[#allocation2 + $0x74] sm:$0x1] %v293_v34  ;;  %v1455_v14 = vrot.slane %v1453_v33, 4 }
  0xfb   : > { %v8766_v6 = vpop.f32.mrf.mxu2  ;;  %v8768_v63 = vpop.f32.mrf.mxu3  ;;  %v1683_v12 = vunpack.c.l.b16 %v1451_v11  ;;  %v1468_v59 = vrot.slane %v1466_v26, 4 }
  0xfc   : > { %10618 = vst [vmem:[#allocation28_spill] sm:$0xff] %v8766_v6  ;;  %v8774_v32 = vpop.f32.mrf.mxu0  ;;  %v1441_v13 = vsel %vm8588_vm1, %v1436_v58, %v1440_v43  ;;  %v2297_v43 = vrot.slane %v2167_v8, 5  ;;  %v1464_v6 = vrot.slane %v1462_v49, 5 }
  0xfd   : > { %10619 = vst [vmem:[#allocation29_spill] sm:$0xff] %v8768_v63  ;;  %v8776_v27 = vpop.f32.mrf.mxu1  ;;  %v1682_v58 = vunpack.c.l.b16 %v1441_v13  ;;  %v1458_v63 = vrot.slane %v1456_v41, 5  ;;  %v1472_v41 = vshll.u32 %v1256_v42, 16 }
  0xfe   : > { %v1469_v33 = vor.u32 %v1468_v59, %v1464_v6 }
  0xff   : > { %v1708_v8 = vpack.c.b16 %v1683_v12, %v1682_v58  ;;  %v1459_v60 = vor.u32 %v1458_v63, %v1455_v14  ;;  %v1474_v58 = vrot.slane %v1472_v41, 5  ;;  %v1258_v63 = vld [vmem:[#allocation2 + $0x64] sm:$0xf] }
 0x100   : > { %7615 = vmatmul.msk.bf16.gmra.mxu2 %vm937_vm8, %v1707_v38  ;;  %7631 = vmatmul.msk.bf16.gmra.mxu3 %vm937_vm8, %v1707_v38  ;;  %v2165_v38 = vld [vmem:[#allocation2 + $0x54] sm:$0xe]  ;;  %v1486_v41 = vshll.u32 %v1258_v63, 16 }
 0x101   : > { %v768_v26 = vld [vmem:[#allocation2 + $0x74] sm:$0x1] }
 0x102   : > { %v769_v34 = vsel %vm8296_vm3, %v537_v39, %v768_v26 }
 0x103   : > { %v8782_v37 = vpop.f32.mrf.mxu2  ;;  %v8784_v44 = vpop.f32.mrf.mxu3  ;;  %770 = vst [vmem:[#allocation2 + $0x74] sm:$0x1] %v769_v34 }
 0x104   : > { %10620 = vst [vmem:[#allocation30_spill] sm:$0xff] %v8782_v37  ;;  %v8786_v1 = vpop.f32.mrf.mxu0  ;;  %v2296_v37 = vrot.slane %v2294_v15, 4 }
 0x105   : > { %10621 = vst [vmem:[#allocation31_spill] sm:$0xff] %v8784_v44  ;;  %v8788_v19 = vpop.f32.mrf.mxu1  ;;  %v7649_v44 = vrot.slane %v2165_v38, 9 }
 0x106   : > { %v2298_v38 = vsel %vm8573_vm13, %v2296_v37, %v2297_v43  ;;  %v2169_v37 = vld [vmem:[#allocation2 + $0x64] sm:$0xf]  ;;  %v1470_v43 = vrot.slane %v1469_v33, 4 }
 0x107   : > { %7665 = vmatmul.msk.bf16.gmra.mxu0 %vm937_vm8, %v2395_v7  ;;  %v2372_v9 = vunpack.c.l.b16 %v2298_v38  ;;  %v2301_v38 = vrot.slane %v2169_v37, 5 }
 0x108   : > { %7681 = vmatmul.msk.bf16.gmra.mxu1 %vm937_vm8, %v2395_v7  ;;  %v2295_v7 = vsel %vm8573_vm13, %v7649_v44, %v2294_v15  ;;  %v1257_v44 = vld [vmem:[#allocation2 + $0x60] sm:$0xf]  ;;  %v1460_v15 = vrot.slane %v1459_v60, 4  ;;  %v1475_v33 = vsel %vm8588_vm1, %v1470_v43, %v1474_v58  ;;  %v1259_v43 = vld [vmem:[#allocation2 + $0x68] sm:$0x1]  ;;  %v554_v58 = vrot.slane %v8398_v45, 4 }
 0x109   : > { %v2371_v49 = vunpack.c.l.b16 %v2295_v7  ;;  %v1477_v42 = vshrl.u32 %v1257_v44, 16  ;;  %v1480_v7 = vshll.u32 %v1257_v44, 16  ;;  %v2303_v44 = vrot.slane %v2301_v38, 4 }
 0x10a   : > { %v1465_v60 = vsel %vm8588_vm1, %v1460_v15, %v1464_v6  ;;  %v1488_v15 = vrot.slane %v1486_v41, 5 }
 0x10b   : > { %v8799_v29 = vpop.f32.mrf.mxu2  ;;  %v8801_v28 = vpop.f32.mrf.mxu3  ;;  %v2396_v12 = vpack.c.b16 %v2372_v9, %v2371_v49  ;;  %v1490_v49 = vshrl.u32 %v1258_v63, 16  ;;  %v1479_v53 = vrot.slane %v1477_v42, 4  ;;  %v1482_v6 = vrot.slane %v1480_v7, 5 }
 0x10c   : > { %10622 = vst [vmem:[#allocation32_spill] sm:$0xff] %v8799_v29  ;;  %v8807_v13 = vpop.f32.mrf.mxu0  ;;  %v295_v29 = vld [vmem:[#allocation2 + $0x80] sm:$0x1] }
 0x10d   : > { %10623 = vst [vmem:[#allocation33_spill] sm:$0xff] %v8801_v28  ;;  %v8809_v11 = vpop.f32.mrf.mxu1  ;;  %v2170_v28 = vld [vmem:[#allocation2 + $0x68] sm:$0x1]  ;;  %v296_v9 = vsel %vm8304_vm5, 0, %v295_v29  ;;  %v1492_v52 = vrot.slane %v1490_v49, 4  ;;  %v1483_v7 = vor.u32 %v1482_v6, %v1479_v53 }
 0x10e   : > { %10624 = vst [vmem:[#allocation34_spill] sm:$0xff] %v8807_v13  ;;  %v2304_v37 = vrot.slane %v2170_v28, 5  ;;  %v1260_v49 = vld [vmem:[#allocation2 + $0x6c] sm:$0xf] }
 0x10f   : > { %10625 = vst [vmem:[#allocation35_spill] sm:$0xff] %v8809_v11  ;;  %v1501_v53 = vshrl.u32 %v1260_v49, 16 }
 0x110   : > { %7616 = vmatmul.msk.bf16.gmra.mxu2 %vm937_vm8, %v1708_v8  ;;  %7632 = vmatmul.msk.bf16.gmra.mxu3 %vm937_vm8, %v1708_v8  ;;  %v2168_v8 = vld [vmem:[#allocation2 + $0x60] sm:$0xe]  ;;  %297 = vst [vmem:[#allocation2 + $0x80] sm:$0x1] %v296_v9  ;;  %v2305_v28 = vsel %vm8573_vm13, %v2303_v44, %v2304_v37 }
 0x111   : > { %v7650_v34 = vrot.slane %v2168_v8, 9  ;;  %v2374_v45 = vunpack.c.l.b16 %v2305_v28 }
 0x113   : > { %v8815_v59 = vpop.f32.mrf.mxu2  ;;  %v8817_v14 = vpop.f32.mrf.mxu3  ;;  %v2302_v29 = vsel %vm8573_vm13, %v7650_v34, %v2301_v38 }
 0x114   : > { %10626 = vst [vmem:[#allocation36_spill] sm:$0xff] %v8815_v59  ;;  %v8819_v39 = vpop.f32.mrf.mxu0  ;;  %v1685_v59 = vunpack.c.l.b16 %v1475_v33  ;;  %v1496_v33 = vshll.u32 %v1259_v43, 16  ;;  %v2373_v41 = vunpack.c.l.b16 %v2302_v29 }
 0x115   : > { %10627 = vst [vmem:[#allocation37_spill] sm:$0xff] %v8817_v14  ;;  %v8821_v26 = vpop.f32.mrf.mxu1  ;;  %v1684_v14 = vunpack.c.l.b16 %v1465_v60  ;;  %v1493_v60 = vor.u32 %v1492_v52, %v1488_v15  ;;  %v1504_v52 = vshll.u32 %v1260_v49, 16 }
 0x116   : > { %10628 = vst [vmem:[#allocation38_spill] sm:$0xff] %v8819_v39  ;;  %v1498_v34 = vrot.slane %v1496_v33, 5  ;;  %v2397_v44 = vpack.c.b16 %v2374_v45, %v2373_v41  ;;  %v1503_v33 = vrot.slane %v1501_v53, 4  ;;  %v1262_v41 = vld [vmem:[#allocation2 + $0x74] sm:$0x1]  ;;  %v571_v53 = vrot.slane %v8426_v23, 4 }
 0x117   : > { %10629 = vst [vmem:[#allocation39_spill] sm:$0xff] %v8821_v26  ;;  %7666 = vmatmul.msk.bf16.gmra.mxu0 %vm937_vm8, %v2396_v12  ;;  %v775_v9 = vld [vmem:[#allocation2 + $0x80] sm:$0x1]  ;;  %v1494_v38 = vrot.slane %v1493_v60, 4 }
 0x118   : > { %7682 = vmatmul.msk.bf16.gmra.mxu1 %vm937_vm8, %v2396_v12  ;;  %v1709_v12 = vpack.c.b16 %v1685_v59, %v1684_v14  ;;  %v1484_v59 = vrot.slane %v1483_v7, 4  ;;  %v2172_v14 = vld [vmem:[#allocation2 + $0x70] sm:$0xf]  ;;  %v2173_v7 = vld [vmem:[#allocation2 + $0x74] sm:$0x1] }
 0x119   : > { %v2308_v28 = vrot.slane %v2172_v14, 5  ;;  %v1499_v60 = vsel %vm8588_vm1, %v1494_v38, %v1498_v34  ;;  %v1520_v34 = vshll.u32 %v1262_v41, 16 }
 0x11b   : > { %v8832_v63 = vpop.f32.mrf.mxu2  ;;  %v8834_v26 = vpop.f32.mrf.mxu3 }
 0x11c   : > { %10630 = vst [vmem:[#allocation40_spill] sm:$0xff] %v8832_v63  ;;  %v8840_v8 = vpop.f32.mrf.mxu0  ;;  %v1261_v63 = vld [vmem:[#allocation2 + $0x70] sm:$0xf] }
 0x11d   : > { %10631 = vst [vmem:[#allocation41_spill] sm:$0xff] %v8834_v26  ;;  %v8842_v42 = vpop.f32.mrf.mxu1  ;;  %v776_v26 = vsel %vm8296_vm3, %v554_v58, %v775_v9  ;;  %v1510_v37 = vshll.u32 %v1261_v63, 16  ;;  %v1514_v6 = vshrl.u32 %v1261_v63, 16  ;;  %v1506_v63 = vrot.slane %v1504_v52, 5 }
 0x11e   : > { %10632 = vst [vmem:[#allocation42_spill] sm:$0xff] %v8840_v8  ;;  %v2311_v8 = vrot.slane %v2173_v7, 5 }
 0x11f   : > { %10633 = vst [vmem:[#allocation43_spill] sm:$0xff] %v8842_v42  ;;  %v298_v42 = vld [vmem:[#allocation2 + $0x8c] sm:$0x1]  ;;  %v1512_v45 = vrot.slane %v1510_v37, 5  ;;  %v1516_v49 = vrot.slane %v1514_v6, 4  ;;  %v1507_v39 = vor.u32 %v1506_v63, %v1503_v33  ;;  %v1522_v33 = vrot.slane %v1520_v34, 5 }
 0x120   : > { %7617 = vmatmul.msk.bf16.gmra.mxu2 %vm937_vm8, %v1709_v12  ;;  %7633 = vmatmul.msk.bf16.gmra.mxu3 %vm937_vm8, %v1709_v12  ;;  %777 = vst [vmem:[#allocation2 + $0x80] sm:$0x1] %v776_v26  ;;  %v2171_v12 = vld [vmem:[#allocation2 + $0x6c] sm:$0xe]  ;;  %v1489_v26 = vsel %vm8588_vm1, %v1484_v59, %v1488_v15  ;;  %v299_v14 = vsel %vm8304_vm5, 0, %v298_v42  ;;  %v1687_v59 = vunpack.c.l.b16 %v1499_v60 }
 0x121   : > { %300 = vst [vmem:[#allocation2 + $0x8c] sm:$0x1] %v299_v14  ;;  %v1686_v15 = vunpack.c.l.b16 %v1489_v26  ;;  %v1517_v38 = vor.u32 %v1516_v49, %v1512_v45  ;;  %v1508_v26 = vrot.slane %v1507_v39, 4  ;;  %v1263_v49 = vld [vmem:[#allocation2 + $0x78] sm:$0xf] }
 0x122   : > { %v1528_v34 = vshll.u32 %v1263_v49, 16 }
 0x123   : > { %v8848_v43 = vpop.f32.mrf.mxu2  ;;  %v8850_v29 = vpop.f32.mrf.mxu3  ;;  %v1710_v6 = vpack.c.b16 %v1687_v59, %v1686_v15  ;;  %v1518_v60 = vrot.slane %v1517_v38, 4  ;;  %v1525_v15 = vshrl.u32 %v1263_v49, 16 }
 0x124   : > { %10634 = vst [vmem:[#allocation44_spill] sm:$0xff] %v8848_v43  ;;  %v8852_v58 = vpop.f32.mrf.mxu0  ;;  %v2310_v43 = vrot.slane %v2308_v28, 4  ;;  %v1530_v49 = vrot.slane %v1528_v34, 5 }
 0x125   : > { %10635 = vst [vmem:[#allocation45_spill] sm:$0xff] %v8850_v29  ;;  %v8854_v9 = vpop.f32.mrf.mxu1  ;;  %v7651_v29 = vrot.slane %v2171_v12, 9  ;;  %v1523_v39 = vsel %vm8588_vm1, %v1518_v60, %v1522_v33 }
 0x126   : > { %v2312_v42 = vsel %vm8573_vm13, %v2310_v43, %v2311_v8  ;;  %v1264_v8 = vld [vmem:[#allocation2 + $0x7c] sm:$0xf]  ;;  %v1689_v33 = vunpack.c.l.b16 %v1523_v39 }
 0x127   : > { %7667 = vmatmul.msk.bf16.gmra.mxu0 %vm937_vm8, %v2397_v44  ;;  %v2309_v37 = vsel %vm8573_vm13, %v7651_v29, %v2308_v28  ;;  %v2376_v23 = vunpack.c.l.b16 %v2312_v42  ;;  %v2175_v43 = vld [vmem:[#allocation2 + $0x7c] sm:$0xf]  ;;  %v1513_v29 = vsel %vm8588_vm1, %v1508_v26, %v1512_v45  ;;  %v2174_v45 = vld [vmem:[#allocation2 + $0x78] sm:$0xe]  ;;  %v2176_v26 = vld [vmem:[#allocation2 + $0x80] sm:$0x1] }
 0x128   : > { %7683 = vmatmul.msk.bf16.gmra.mxu1 %vm937_vm8, %v2397_v44  ;;  %v2375_v63 = vunpack.c.l.b16 %v2309_v37  ;;  %v782_v41 = vld [vmem:[#allocation2 + $0x8c] sm:$0x1]  ;;  %v1534_v37 = vshll.u32 %v1264_v8, 16  ;;  %v2315_v42 = vrot.slane %v2175_v43, 5  ;;  %v1688_v60 = vunpack.c.l.b16 %v1513_v29 }
 0x129   : > { %v783_v14 = vsel %vm8296_vm3, %v571_v53, %v782_v41  ;;  %v1538_v53 = vshrl.u32 %v1264_v8, 16  ;;  %v7652_v8 = vrot.slane %v2174_v45, 9 }
 0x12a   : > { %784 = vst [vmem:[#allocation2 + $0x8c] sm:$0x1] %v783_v14  ;;  %v2398_v28 = vpack.c.b16 %v2376_v23, %v2375_v63  ;;  %v1527_v63 = vrot.slane %v1525_v15, 4  ;;  %v2317_v43 = vrot.slane %v2315_v42, 4  ;;  %v1536_v29 = vrot.slane %v1534_v37, 5 }
 0x12b   : > { %v8865_v52 = vpop.f32.mrf.mxu2  ;;  %v8867_v44 = vpop.f32.mrf.mxu3  ;;  %v1540_v39 = vrot.slane %v1538_v53, 4  ;;  %v1711_v13 = vpack.c.b16 %v1689_v33, %v1688_v60  ;;  %v1266_v60 = vld [vmem:[#allocation2 + $0x84] sm:$0xf]  ;;  %v1267_v33 = vld [vmem:[#allocation2 + $0x88] sm:$0xf] }
 0x12c   : > { %10636 = vst [vmem:[#allocation46_spill] sm:$0xff] %v8865_v52  ;;  %v8873_v12 = vpop.f32.mrf.mxu0  ;;  %v301_v52 = vld [vmem:[#allocation2 + $0x98] sm:$0x1] }
 0x12d   : > { %10637 = vst [vmem:[#allocation47_spill] sm:$0xff] %v8867_v44  ;;  %v8875_v7 = vpop.f32.mrf.mxu1  ;;  %v302_v23 = vsel %vm8304_vm5, 0, %v301_v52  ;;  %v1531_v52 = vor.u32 %v1530_v49, %v1527_v63  ;;  %v1541_v53 = vor.u32 %v1540_v39, %v1536_v29  ;;  %v1558_v39 = vshll.u32 %v1267_v33, 16 }
 0x12e   : > { %303 = vst [vmem:[#allocation2 + $0x98] sm:$0x1] %v302_v23 }
 0x130   : > { %7618 = vmatmul.msk.bf16.gmra.mxu2 %vm937_vm8, %v1710_v6  ;;  %7634 = vmatmul.msk.bf16.gmra.mxu3 %vm937_vm8, %v1710_v6 }
 0x133   : > { %v1783_v59 = vpop.f32.mrf.mxu2  ;;  %v1872_v38 = vpop.f32.mrf.mxu3 }
 0x134   : > { %v2016_v41 = vadd.f32 %v1783_v59, %v8592_v54  ;;  %v2017_v6 = vadd.f32 %v1872_v38, %v8594_v55  ;;  %v8887_v44 = vpop.f32.mrf.mxu0  ;;  %v2318_v59 = vrot.slane %v2176_v26, 5  ;;  %v1265_v38 = vld [vmem:[#allocation2 + $0x80] sm:$0x1] }
 0x135   : > { %v8889_v14 = vpop.f32.mrf.mxu1  ;;  %v789_v63 = vld [vmem:[#allocation2 + $0x98] sm:$0x1] }
 0x136   : > { %v8896_v54 = vadd.f32 %v8852_v58, %v2016_v41  ;;  %v8899_v55 = vadd.f32 %v8854_v9, %v2017_v6  ;;  %v2316_v58 = vsel %vm8573_vm13, %v7652_v8, %v2315_v42  ;;  %v2319_v9 = vsel %vm8573_vm13, %v2317_v43, %v2318_v59  ;;  %v2178_v8 = vld [vmem:[#allocation2 + $0x88] sm:$0xf] }
 0x137   : > { %7668 = vmatmul.msk.bf16.gmra.mxu0 %vm937_vm8, %v2398_v28  ;;  %v2377_v45 = vunpack.c.l.b16 %v2316_v58  ;;  %v2378_v26 = vunpack.c.l.b16 %v2319_v9  ;;  %v1549_v43 = vshrl.u32 %v1266_v60, 16  ;;  %v1552_v59 = vshll.u32 %v1266_v60, 16 }
 0x138   : > { %7684 = vmatmul.msk.bf16.gmra.mxu1 %vm937_vm8, %v2398_v28  ;;  %v588_v28 = vrot.slane %v8451_v0, 4  ;;  %v1544_v0 = vshll.u32 %v1265_v38, 16  ;;  %v2322_v58 = vrot.slane %v2178_v8, 5 }
 0x139   : > { %v2399_v38 = vpack.c.b16 %v2378_v26, %v2377_v45  ;;  %v304_v45 = vld [vmem:[#allocation2 + $0xa4] sm:$0x1]  ;;  %v1551_v26 = vrot.slane %v1549_v43, 4  ;;  %v1554_v60 = vrot.slane %v1552_v59, 5 }
 0x13a   : > { %v1546_v49 = vrot.slane %v1544_v0, 5  ;;  %v2179_v0 = vld [vmem:[#allocation2 + $0x8c] sm:$0x1] }
 0x13b   : > { %v1785_v15 = vpop.f32.mrf.mxu2  ;;  %v1874_v11 = vpop.f32.mrf.mxu3  ;;  %v1555_v59 = vor.u32 %v1554_v60, %v1551_v26 }
 0x13c   : > { %v2018_v34 = vadd.f32 %v1785_v15, %v8605_v24  ;;  %v2019_v41 = vadd.f32 %v1874_v11, %v8607_v25  ;;  %v8908_v6 = vpop.f32.mrf.mxu0  ;;  %v1532_v24 = vrot.slane %v1531_v52, 4  ;;  %v790_v25 = vsel %vm8296_vm3, %v588_v28, %v789_v63 }
 0x13d   : > { %v8910_v37 = vpop.f32.mrf.mxu1  ;;  %v1542_v11 = vrot.slane %v1541_v53, 4  ;;  %791 = vst [vmem:[#allocation2 + $0x98] sm:$0x1] %v790_v25  ;;  %v2177_v53 = vld [vmem:[#allocation2 + $0x84] sm:$0xe] }
 0x13e   : > { %v8913_v42 = vadd.f32 %v8873_v12, %v2018_v34  ;;  %v8916_v23 = vadd.f32 %v8875_v7, %v2019_v41  ;;  %v1562_v12 = vshrl.u32 %v1267_v33, 16  ;;  %v1560_v33 = vrot.slane %v1558_v39, 5 }
 0x13f   : > { %v1547_v41 = vsel %vm8588_vm1, %v1542_v11, %v1546_v49  ;;  %v7653_v25 = vrot.slane %v2177_v53, 9  ;;  %v2324_v11 = vrot.slane %v2322_v58, 4  ;;  %v2325_v49 = vrot.slane %v2179_v0, 5 }
 0x140   : > { %7619 = vmatmul.msk.bf16.gmra.mxu2 %vm937_vm8, %v1711_v13  ;;  %7635 = vmatmul.msk.bf16.gmra.mxu3 %vm937_vm8, %v1711_v13  ;;  %v1537_v13 = vsel %vm8588_vm1, %v1532_v24, %v1536_v29  ;;  %v1564_v63 = vrot.slane %v1562_v12, 4  ;;  %v1691_v43 = vunpack.c.l.b16 %v1547_v41  ;;  %v1556_v0 = vrot.slane %v1555_v59, 4 }
 0x141   : > { %v1690_v8 = vunpack.c.l.b16 %v1537_v13 }
 0x142   : > { %v1565_v39 = vor.u32 %v1564_v63, %v1560_v33 }
 0x143   : > { %v1788_v15 = vpop.f32.mrf.mxu2  ;;  %v1877_v7 = vpop.f32.mrf.mxu3  ;;  %v1712_v53 = vpack.c.b16 %v1691_v43, %v1690_v8 }
 0x144   : > { %v2020_v52 = vadd.f32 %v1788_v15, %v8621_v61  ;;  %v2021_v28 = vadd.f32 %v1877_v7, %v8623_v62  ;;  %v8924_v9 = vpop.f32.mrf.mxu0  ;;  %v1268_v61 = vld [vmem:[#allocation2 + $0x8c] sm:$0x1]  ;;  %v305_v62 = vsel %vm8304_vm5, 0, %v304_v45  ;;  %v1566_v45 = vrot.slane %v1565_v39, 4 }
 0x145   : > { %v8926_v34 = vpop.f32.mrf.mxu1  ;;  %306 = vst [vmem:[#allocation2 + $0xa4] sm:$0x1] %v305_v62  ;;  %v1568_v12 = vshll.u32 %v1268_v61, 16  ;;  %v1270_v62 = vld [vmem:[#allocation2 + $0x94] sm:$0xf] }
 0x146   : > { %v8937_v29 = vadd.f32 %v8887_v44, %v2020_v52  ;;  %v8940_v24 = vadd.f32 %v8889_v14, %v2021_v28  ;;  %v2323_v44 = vsel %vm8573_vm13, %v7653_v25, %v2322_v58  ;;  %v2326_v14 = vsel %vm8573_vm13, %v2324_v11, %v2325_v49  ;;  %v2181_v25 = vld [vmem:[#allocation2 + $0x94] sm:$0xf] }
 0x147   : > { %7669 = vmatmul.msk.bf16.gmra.mxu0 %vm937_vm8, %v2399_v38  ;;  %v2379_v26 = vunpack.c.l.b16 %v2323_v44  ;;  %v2380_v60 = vunpack.c.l.b16 %v2326_v14  ;;  %v1561_v11 = vsel %vm8588_vm1, %v1556_v0, %v1560_v33  ;;  %v1582_v39 = vshll.u32 %v1270_v62, 16  ;;  %v2180_v33 = vld [vmem:[#allocation2 + $0x90] sm:$0xe] }
 0x148   : > { %7685 = vmatmul.msk.bf16.gmra.mxu1 %vm937_vm8, %v2399_v38  ;;  %v605_v38 = vrot.slane %v8479_v48, 4  ;;  %v1570_v48 = vrot.slane %v1568_v12, 5  ;;  %v1586_v12 = vshrl.u32 %v1270_v62, 16 }
 0x149   : > { %v2400_v49 = vpack.c.b16 %v2380_v60, %v2379_v26  ;;  %v7654_v60 = vrot.slane %v2180_v33, 9 }
 0x14a   : > { %v1588_v62 = vrot.slane %v1586_v12, 4 }
 0x14b   : > { %v1790_v15 = vpop.f32.mrf.mxu2  ;;  %v1879_v7 = vpop.f32.mrf.mxu3 }
 0x14c   : > { %v2022_v52 = vadd.f32 %v1790_v15, %v8642_v35  ;;  %v2023_v28 = vadd.f32 %v1879_v7, %v8644_v36  ;;  %v8949_v13 = vpop.f32.mrf.mxu0  ;;  %v796_v63 = vld [vmem:[#allocation2 + $0xa4] sm:$0x1]  ;;  %v1269_v35 = vld [vmem:[#allocation2 + $0x90] sm:$0xf] }
 0x14d   : > { %v8951_v41 = vpop.f32.mrf.mxu1  ;;  %v797_v36 = vsel %vm8296_vm3, %v605_v38, %v796_v63  ;;  %v1576_v59 = vshll.u32 %v1269_v35, 16  ;;  %v2329_v38 = vrot.slane %v2181_v25, 5  ;;  %v1271_v25 = vld [vmem:[#allocation2 + $0x98] sm:$0x1] }
 0x14e   : > { %v8954_v58 = vadd.f32 %v8908_v6, %v2022_v52  ;;  %v8957_v61 = vadd.f32 %v8910_v37, %v2023_v28  ;;  %798 = vst [vmem:[#allocation2 + $0xa4] sm:$0x1] %v797_v36  ;;  %v1571_v6 = vsel %vm8588_vm1, %v1566_v45, %v1570_v48  ;;  %v1573_v37 = vshrl.u32 %v1269_v35, 16  ;;  %v2182_v52 = vld [vmem:[#allocation2 + $0x98] sm:$0x1] }
 0x14f   : > { %v307_v28 = vld [vmem:[#allocation2 + $0xb0] sm:$0x1]  ;;  %v1693_v0 = vunpack.c.l.b16 %v1571_v6  ;;  %v1578_v26 = vrot.slane %v1576_v59, 5  ;;  %v2331_v63 = vrot.slane %v2329_v38, 4  ;;  %v2332_v35 = vrot.slane %v2182_v52, 5 }
 0x150   : > { %7620 = vmatmul.msk.bf16.gmra.mxu2 %vm937_vm8, %v1712_v53  ;;  %7636 = vmatmul.msk.bf16.gmra.mxu3 %vm937_vm8, %v1712_v53  ;;  %v1692_v53 = vunpack.c.l.b16 %v1561_v11  ;;  %v1575_v45 = vrot.slane %v1573_v37, 4  ;;  %v308_v48 = vsel %vm8304_vm5, 0, %v307_v28  ;;  %v1584_v36 = vrot.slane %v1582_v39, 5 }
 0x151   : > { %309 = vst [vmem:[#allocation2 + $0xb0] sm:$0x1] %v308_v48  ;;  %v622_v11 = vrot.slane %v8507_v30, 4  ;;  %v1592_v30 = vshll.u32 %v1271_v25, 16 }
 0x152   : > { %v1713_v37 = vpack.c.b16 %v1693_v0, %v1692_v53  ;;  %v1589_v12 = vor.u32 %v1588_v62, %v1584_v36 }
 0x153   : > { %v1793_v8 = vpop.f32.mrf.mxu2  ;;  %v1882_v43 = vpop.f32.mrf.mxu3  ;;  %v1594_v0 = vrot.slane %v1592_v30, 5 }
 0x154   : > { %v2024_v15 = vadd.f32 %v1793_v8, %v8654_v3  ;;  %v2025_v7 = vadd.f32 %v1882_v43, %v8656_v5  ;;  %v8969_v44 = vpop.f32.mrf.mxu0  ;;  %v1579_v8 = vor.u32 %v1578_v26, %v1575_v45  ;;  %v2184_v45 = vld [vmem:[#allocation2 + $0xa0] sm:$0xf]  ;;  %v1272_v26 = vld [vmem:[#allocation2 + $0x9c] sm:$0xf] }
 0x155   : > { %v8971_v14 = vpop.f32.mrf.mxu1 }
 0x156   : > { %v8978_v3 = vadd.f32 %v8924_v9, %v2024_v15  ;;  %v8981_v5 = vadd.f32 %v8926_v34, %v2025_v7  ;;  %v2330_v9 = vsel %vm8573_vm13, %v7654_v60, %v2329_v38  ;;  %v2333_v34 = vsel %vm8573_vm13, %v2331_v63, %v2332_v35  ;;  %v1273_v60 = vld [vmem:[#allocation2 + $0xa0] sm:$0xf] }
 0x157   : > { %7670 = vmatmul.msk.bf16.gmra.mxu0 %vm937_vm8, %v2400_v49  ;;  %v2381_v7 = vunpack.c.l.b16 %v2330_v9  ;;  %v2382_v33 = vunpack.c.l.b16 %v2333_v34  ;;  %v1580_v53 = vrot.slane %v1579_v8, 4  ;;  %v2336_v35 = vrot.slane %v2184_v45, 5  ;;  %v2185_v8 = vld [vmem:[#allocation2 + $0xa4] sm:$0x1]  ;;  %v310_v9 = vld [vmem:[#allocation2 + $0xbc] sm:$0x1] }
 0x158   : > { %7686 = vmatmul.msk.bf16.gmra.mxu1 %vm937_vm8, %v2400_v49  ;;  %v803_v52 = vld [vmem:[#allocation2 + $0xb0] sm:$0x1]  ;;  %v1597_v34 = vshrl.u32 %v1272_v26, 16 }
 0x159   : > { %v2401_v48 = vpack.c.b16 %v2382_v33, %v2381_v7  ;;  %v2338_v7 = vrot.slane %v2336_v35, 4  ;;  %v2339_v33 = vrot.slane %v2185_v8, 5 }
 0x15b   : > { %v1795_v6 = vpop.f32.mrf.mxu2  ;;  %v1884_v49 = vpop.f32.mrf.mxu3 }
 0x15c   : > { %v2026_v43 = vadd.f32 %v1795_v6, %v8675_v51  ;;  %v2027_v59 = vadd.f32 %v1884_v49, %v8677_v57  ;;  %v8990_v15 = vpop.f32.mrf.mxu0  ;;  %v804_v51 = vsel %vm8296_vm3, %v622_v11, %v803_v52  ;;  %v1590_v57 = vrot.slane %v1589_v12, 4 }
 0x15d   : > { %v8992_v39 = vpop.f32.mrf.mxu1  ;;  %805 = vst [vmem:[#allocation2 + $0xb0] sm:$0x1] %v804_v51  ;;  %v1585_v6 = vsel %vm8588_vm1, %v1580_v53, %v1584_v36  ;;  %v1610_v12 = vshrl.u32 %v1273_v60, 16  ;;  %v1599_v51 = vrot.slane %v1597_v34, 4 }
 0x15e   : > { %v8995_v28 = vadd.f32 %v8949_v13, %v2026_v43  ;;  %v8998_v38 = vadd.f32 %v8951_v41, %v2027_v59  ;;  %v1595_v49 = vsel %vm8588_vm1, %v1590_v57, %v1594_v0  ;;  %v1600_v43 = vshll.u32 %v1272_v26, 16 }
 0x15f   : > { %v1606_v59 = vshll.u32 %v1273_v60, 16  ;;  %v1694_v52 = vunpack.c.l.b16 %v1585_v6  ;;  %v1695_v53 = vunpack.c.l.b16 %v1595_v49  ;;  %v1612_v45 = vrot.slane %v1610_v12, 4 }
 0x160   : > { %7621 = vmatmul.msk.bf16.gmra.mxu2 %vm937_vm8, %v1713_v37  ;;  %7637 = vmatmul.msk.bf16.gmra.mxu3 %vm937_vm8, %v1713_v37  ;;  %v2183_v37 = vld [vmem:[#allocation2 + $0x9c] sm:$0xe]  ;;  %v1602_v57 = vrot.slane %v1600_v43, 5  ;;  %v639_v26 = vrot.slane %v8535_v18, 4  ;;  %v1275_v43 = vld [vmem:[#allocation2 + $0xa8] sm:$0xf] }
 0x161   : > { %v7655_v30 = vrot.slane %v2183_v37, 9  ;;  %v1608_v0 = vrot.slane %v1606_v59, 5 }
 0x162   : > { %v1603_v37 = vor.u32 %v1602_v57, %v1599_v51 }
 0x163   : > { %v1798_v13 = vpop.f32.mrf.mxu2  ;;  %v1887_v63 = vpop.f32.mrf.mxu3  ;;  %v1613_v8 = vor.u32 %v1612_v45, %v1608_v0 }
 0x164   : > { %v2028_v41 = vadd.f32 %v1798_v13, %v8687_v10  ;;  %v2029_v62 = vadd.f32 %v1887_v63, %v8689_v40  ;;  %v9006_v25 = vpop.f32.mrf.mxu0  ;;  %v311_v10 = vsel %vm8304_vm5, 0, %v310_v9 }
 0x165   : > { %v9008_v11 = vpop.f32.mrf.mxu1  ;;  %312 = vst [vmem:[#allocation2 + $0xbc] sm:$0x1] %v311_v10  ;;  %v2187_v10 = vld [vmem:[#allocation2 + $0xac] sm:$0xf] }
 0x166   : > { %v9019_v40 = vadd.f32 %v8969_v44, %v2028_v41  ;;  %v9022_v36 = vadd.f32 %v8971_v14, %v2029_v62  ;;  %v2337_v44 = vsel %vm8573_vm13, %v7655_v30, %v2336_v35  ;;  %v2340_v14 = vsel %vm8573_vm13, %v2338_v7, %v2339_v33 }
 0x167   : > { %7671 = vmatmul.msk.bf16.gmra.mxu0 %vm937_vm8, %v2401_v48  ;;  %v1714_v62 = vpack.c.b16 %v1695_v53, %v1694_v52  ;;  %v2383_v9 = vunpack.c.l.b16 %v2337_v44  ;;  %v2384_v34 = vunpack.c.l.b16 %v2340_v14  ;;  %v1604_v30 = vrot.slane %v1603_v37, 4  ;;  %v2186_v14 = vld [vmem:[#allocation2 + $0xa8] sm:$0xe] }
 0x168   : > { %7687 = vmatmul.msk.bf16.gmra.mxu1 %vm937_vm8, %v2401_v48  ;;  %v1274_v48 = vld [vmem:[#allocation2 + $0xa4] sm:$0x1]  ;;  %v1614_v7 = vrot.slane %v1613_v8, 4  ;;  %v1621_v52 = vshrl.u32 %v1275_v43, 16 }
 0x169   : > { %v1616_v18 = vshll.u32 %v1274_v48, 16  ;;  %v2402_v53 = vpack.c.b16 %v2384_v34, %v2383_v9  ;;  %v2343_v48 = vrot.slane %v2187_v10, 5  ;;  %v7656_v34 = vrot.slane %v2186_v14, 9 }
 0x16a   : > { %v1623_v37 = vrot.slane %v1621_v52, 4 }
 0x16b   : > { %v1800_v60 = vpop.f32.mrf.mxu2  ;;  %v1889_v13 = vpop.f32.mrf.mxu3  ;;  %v1618_v33 = vrot.slane %v1616_v18, 5 }
 0x16c   : > { %v2030_v63 = vadd.f32 %v1800_v60, %v8708_v46  ;;  %v2031_v41 = vadd.f32 %v1889_v13, %v8710_v47  ;;  %v9031_v6 = vpop.f32.mrf.mxu0  ;;  %v810_v59 = vld [vmem:[#allocation2 + $0xbc] sm:$0x1]  ;;  %v1276_v46 = vld [vmem:[#allocation2 + $0xac] sm:$0xf] }
 0x16d   : > { %v9033_v49 = vpop.f32.mrf.mxu1  ;;  %v811_v47 = vsel %vm8296_vm3, %v639_v26, %v810_v59  ;;  %v1630_v51 = vshll.u32 %v1276_v46, 16  ;;  %v1634_v45 = vshrl.u32 %v1276_v46, 16 }
 0x16e   : > { %v9036_v35 = vadd.f32 %v8990_v15, %v2030_v63  ;;  %v9039_v12 = vadd.f32 %v8992_v39, %v2031_v41  ;;  %812 = vst [vmem:[#allocation2 + $0xbc] sm:$0x1] %v811_v47  ;;  %v1624_v15 = vshll.u32 %v1275_v43, 16  ;;  %v2188_v63 = vld [vmem:[#allocation2 + $0xb0] sm:$0x1]  ;;  %v1609_v41 = vsel %vm8588_vm1, %v1604_v30, %v1608_v0 }
 0x16f   : > { %v1632_v8 = vrot.slane %v1630_v51, 5  ;;  %v1636_v9 = vrot.slane %v1634_v45, 4  ;;  %v2345_v43 = vrot.slane %v2343_v48, 4  ;;  %v2346_v0 = vrot.slane %v2188_v63, 5  ;;  %v1277_v47 = vld [vmem:[#allocation2 + $0xb0] sm:$0x1] }
 0x170   : > { %7622 = vmatmul.msk.bf16.gmra.mxu2 %vm937_vm8, %v1714_v62  ;;  %7638 = vmatmul.msk.bf16.gmra.mxu3 %vm937_vm8, %v1714_v62  ;;  %v1619_v62 = vsel %vm8588_vm1, %v1614_v7, %v1618_v33  ;;  %v1696_v59 = vunpack.c.l.b16 %v1609_v41  ;;  %v1640_v52 = vshll.u32 %v1277_v47, 16 }
 0x171   : > { %v1697_v46 = vunpack.c.l.b16 %v1619_v62  ;;  %v1637_v33 = vor.u32 %v1636_v9, %v1632_v8  ;;  %v2190_v62 = vld [vmem:[#allocation2 + $0xb8] sm:$0xf] }
 0x172   : > { %v1642_v41 = vrot.slane %v1640_v52, 5  ;;  %v2350_v9 = vrot.slane %v2190_v62, 5 }
 0x173   : > { %v1803_v57 = vpop.f32.mrf.mxu2  ;;  %v1892_v39 = vpop.f32.mrf.mxu3  ;;  %v1715_v51 = vpack.c.b16 %v1697_v46, %v1696_v59  ;;  %v1638_v63 = vrot.slane %v1637_v33, 4 }
 0x174   : > { %v2032_v60 = vadd.f32 %v1803_v57, %v8720_v17  ;;  %v2033_v26 = vadd.f32 %v1892_v39, %v8722_v22  ;;  %v9047_v13 = vpop.f32.mrf.mxu0  ;;  %v1626_v17 = vrot.slane %v1624_v15, 5 }
 0x175   : > { %v9049_v44 = vpop.f32.mrf.mxu1  ;;  %v2191_v46 = vld [vmem:[#allocation2 + $0xbc] sm:$0x1] }
 0x176   : > { %v9058_v22 = vadd.f32 %v9006_v25, %v2032_v60  ;;  %v9061_v18 = vadd.f32 %v9008_v11, %v2033_v26  ;;  %v1627_v10 = vor.u32 %v1626_v17, %v1623_v37  ;;  %v2347_v25 = vsel %vm8573_vm13, %v2345_v43, %v2346_v0  ;;  %v2189_v17 = vld [vmem:[#allocation2 + $0xb4] sm:$0xe]  ;;  %v1280_v62 = vld [vmem:[#allocation2 + $0xbc] sm:$0x1] }
 0x177   : > { %7672 = vmatmul.msk.bf16.gmra.mxu0 %vm937_vm8, %v2402_v53  ;;  %v2386_v60 = vunpack.c.l.b16 %v2347_v25  ;;  %v2353_v25 = vrot.slane %v2191_v46, 5 }
 0x178   : > { %7688 = vmatmul.msk.bf16.gmra.mxu1 %vm937_vm8, %v2402_v53  ;;  %v2344_v53 = vsel %vm8573_vm13, %v7656_v34, %v2343_v48  ;;  %v1628_v48 = vrot.slane %v1627_v10, 4 }
 0x179   : > { %v2385_v45 = vunpack.c.l.b16 %v2344_v53  ;;  %v7657_v53 = vrot.slane %v2189_v17, 9 }
 0x17b   : > { %v1805_v30 = vpop.f32.mrf.mxu2  ;;  %v1894_v7 = vpop.f32.mrf.mxu3  ;;  %v2403_v37 = vpack.c.b16 %v2386_v60, %v2385_v45 }
 0x17c   : > { %v2034_v11 = vadd.f32 %v1805_v30, %v8741_v16  ;;  %v2035_v15 = vadd.f32 %v1894_v7, %v8743_v31  ;;  %v9069_v57 = vpop.f32.mrf.mxu0  ;;  %v1278_v16 = vld [vmem:[#allocation2 + $0xb4] sm:$0xf]  ;;  %v1279_v31 = vld [vmem:[#allocation2 + $0xb8] sm:$0xf] }
 0x17d   : > { %v9071_v39 = vpop.f32.mrf.mxu1  ;;  %v1645_v0 = vshrl.u32 %v1278_v16, 16  ;;  %v1648_v59 = vshll.u32 %v1278_v16, 16  ;;  %v1654_v33 = vshll.u32 %v1279_v31, 16  ;;  %v1658_v52 = vshrl.u32 %v1279_v31, 16 }
 0x17e   : > { %v9074_v26 = vadd.f32 %v9031_v6, %v2034_v11  ;;  %v9077_v14 = vadd.f32 %v9033_v49, %v2035_v15  ;;  %v1633_v6 = vsel %vm8588_vm1, %v1628_v48, %v1632_v8  ;;  %v1643_v49 = vsel %vm8588_vm1, %v1638_v63, %v1642_v41  ;;  %v3371_v11 = vld [vmem:[#allocation2 + $0xc] sm:$0xf]  ;;  %v3372_v48 = vld [vmem:[#allocation2 + $0x10] sm:$0xf] }
 0x17f   : > { %v2352_v8 = vrot.slane %v2350_v9, 4  ;;  %v1647_v45 = vrot.slane %v1645_v0, 4  ;;  %v1650_v60 = vrot.slane %v1648_v59, 5  ;;  %v1656_v63 = vrot.slane %v1654_v33, 5 }
 0x180   : > { %7623 = vmatmul.msk.bf16.gmra.mxu2 %vm937_vm8, %v1715_v51  ;;  %7639 = vmatmul.msk.bf16.gmra.mxu3 %vm937_vm8, %v1715_v51  ;;  %v1699_v51 = vunpack.c.l.b16 %v1643_v49  ;;  %v1660_v41 = vrot.slane %v1658_v52, 4  ;;  %v3420_v16 = vshrl.u32 %v3371_v11, 16  ;;  %v3423_v31 = vshll.u32 %v3371_v11, 16 }
 0x181   : > { %v3429_v17 = vshll.u32 %v3372_v48, 16  ;;  %v1651_v49 = vor.u32 %v1650_v60, %v1647_v45  ;;  %v1664_v33 = vshll.u32 %v1280_v62, 16 }
 0x183   : > { %v1808_v34 = vpop.f32.mrf.mxu2  ;;  %v1897_v43 = vpop.f32.mrf.mxu3  ;;  %v1666_v60 = vrot.slane %v1664_v33, 5 }
 0x184   : > { %v2036_v47 = vadd.f32 %v1808_v34, %v8753_v56  ;;  %v2037_v10 = vadd.f32 %v1897_v43, %v8755_v20  ;;  %v9087_v30 = vpop.f32.mrf.mxu0  ;;  %v1698_v20 = vunpack.c.l.b16 %v1633_v6  ;;  %v3433_v34 = vshrl.u32 %v3372_v48, 16 }
 0x185   : > { %v9089_v7 = vpop.f32.mrf.mxu1 }
 0x186   : > { %v9094_v15 = vadd.f32 %v9047_v13, %v2036_v47  ;;  %v9097_v56 = vadd.f32 %v9049_v44, %v2037_v10  ;;  %v2354_v13 = vsel %vm8573_vm13, %v2352_v8, %v2353_v25  ;;  %v1716_v6 = vpack.c.b16 %v1699_v51, %v1698_v20 }
 0x187   : > { %7673 = vmatmul.msk.bf16.gmra.mxu0 %vm937_vm8, %v2403_v37  ;;  %v1661_v10 = vor.u32 %v1660_v41, %v1656_v63  ;;  %v2388_v52 = vunpack.c.l.b16 %v2354_v13  ;;  %v3425_v8 = vrot.slane %v3423_v31, 5  ;;  %v3431_v25 = vrot.slane %v3429_v17, 5 }
 0x188   : > { %7689 = vmatmul.msk.bf16.gmra.mxu1 %vm937_vm8, %v2403_v37  ;;  %v2351_v37 = vsel %vm8573_vm13, %v7657_v53, %v2350_v9  ;;  %v3422_v53 = vrot.slane %v3420_v16, 4  ;;  %v3435_v11 = vrot.slane %v3433_v34, 4  ;;  %v1652_v51 = vrot.slane %v1651_v49, 4 }
 0x189   : > { %v2387_v9 = vunpack.c.l.b16 %v2351_v37  ;;  %v1662_v45 = vrot.slane %v1661_v10, 4  ;;  %v3375_v10 = vld [vmem:[#allocation2 + $0x1c] sm:$0xf] }
 0x18a   : > { %v3426_v41 = vor.u32 %v3425_v8, %v3422_v53 }
 0x18b   : > { %v1810_v44 = vpop.f32.mrf.mxu2  ;;  %v1899_v43 = vpop.f32.mrf.mxu3  ;;  %v2404_v62 = vpack.c.b16 %v2388_v52, %v2387_v9 }
 0x18c   : > { %v2038_v0 = vadd.f32 %v1810_v44, %v8774_v32  ;;  %v2039_v59 = vadd.f32 %v1899_v43, %v8776_v27  ;;  %v9105_v46 = vpop.f32.mrf.mxu0  ;;  %v3373_v32 = vld [vmem:[#allocation2 + $0x14] sm:$0x1]  ;;  %v7837_v27 = vld [vmem:[%s10576_s1 + $0x14] sm:$0xf]  ;;  %v1657_v44 = vsel %vm8588_vm1, %v1652_v51, %v1656_v63  ;;  %v1667_v43 = vsel %vm8588_vm1, %v1662_v45, %v1666_v60 }
 0x18d   : > { %v9107_v47 = vpop.f32.mrf.mxu1  ;;  %4538 = vst [vmem:[#allocation1] ss:$4 sm:$0xff] %v7837_v27  ;;  %v3439_v16 = vshll.u32 %v3373_v32, 16  ;;  %v1700_v33 = vunpack.c.l.b16 %v1657_v44  ;;  %v1701_v9 = vunpack.c.l.b16 %v1667_v43  ;;  %v3457_v45 = vshrl.u32 %v3375_v10, 16 }
 0x18e   : > { %v9110_v48 = vadd.f32 %v9069_v57, %v2038_v0  ;;  %v9113_v20 = vadd.f32 %v9071_v39, %v2039_v59  ;;  %v3436_v57 = vor.u32 %v3435_v11, %v3431_v25 }
 0x18f   : > { %v3441_v0 = vrot.slane %v3439_v16, 5  ;;  %v10639_v16 = vld [vmem:[#allocation35_spill] sm:$0xff] }
 0x190   : > { %7624 = vmatmul.msk.bf16.gmra.mxu2 %vm937_vm8, %v1716_v6  ;;  %7640 = vmatmul.msk.bf16.gmra.mxu3 %vm937_vm8, %v1716_v6  ;;  %v3427_v6 = vrot.slane %v3426_v41, 4  ;;  %v3437_v49 = vrot.slane %v3436_v57, 4 }
 0x192   : > { %v3432_v51 = vsel %vm8588_vm1, %v3427_v6, %v3431_v25 }
 0x193   : > { %v1813_v31 = vpop.f32.mrf.mxu2  ;;  %v1902_v39 = vpop.f32.mrf.mxu3  ;;  %v3805_v44 = vunpack.c.l.b16 %v3432_v51  ;;  %v10640_v51 = vld [vmem:[#allocation38_spill] sm:$0xff] }
 0x194   : > { %v2040_v37 = vadd.f32 %v1813_v31, %v8786_v1  ;;  %v2041_v13 = vadd.f32 %v1902_v39, %v8788_v19  ;;  %v9122_v17 = vpop.f32.mrf.mxu0  ;;  %v7870_v1 = vld [vmem:[%s10576_s1 + $0x18] sm:$0xf]  ;;  %v3374_v19 = vld [vmem:[#allocation2 + $0x18] sm:$0xf]  ;;  %v1717_v39 = vpack.c.b16 %v1701_v9, %v1700_v33 }
 0x195   : > { %v9124_v34 = vpop.f32.mrf.mxu1  ;;  %v4539_v52 = vld.sshfl [vmem:[#allocation1] sm:$0xff pattern:$0x73625140]  ;;  %v4540_v53 = vld.sshfl [vmem:[#allocation1 + $0x8] sm:$0xff pattern:$0x73625140] }
 0x196   : > { %v9136_v59 = vadd.f32 %v9087_v30, %v2040_v37  ;;  %v9139_v63 = vadd.f32 %v9089_v7, %v2041_v13  ;;  %v4589_v8 = vsel %vm986_vm7, %v4539_v52, 0  ;;  %v4591_v11 = vsel %vm986_vm7, %v4540_v53, 0  ;;  %5079 = vst [vmem:[#allocation1] ss:$4 sm:$0xff] %v7870_v1 }
 0x197   : > { %7674 = vmatmul.msk.bf16.gmra.mxu0 %vm937_vm8, %v2404_v62  ;;  %v3444_v32 = vshrl.u32 %v3374_v19, 16  ;;  %v3447_v27 = vshll.u32 %v3374_v19, 16  ;;  %v3442_v30 = vsel %vm8588_vm1, %v3437_v49, %v3441_v0  ;;  %4600 = vmatpush.bf16.msrb.mxu2 %v4589_v8  ;;  %v3453_v7 = vshll.u32 %v3375_v10, 16  ;;  %v3376_v10 = vld [vmem:[#allocation2 + $0x20] sm:$0x1] }
 0x198   : > { %7690 = vmatmul.msk.bf16.gmra.mxu1 %vm937_vm8, %v2404_v62  ;;  %4689 = vmatpush.bf16.msrb.mxu3 %v4591_v11  ;;  %v10638_v62 = vld [vmem:[#allocation34_spill] sm:$0xff]  ;;  %v3806_v43 = vunpack.c.l.b16 %v3442_v30  ;;  %v3459_v19 = vrot.slane %v3457_v45, 4 }
 0x199   : > { %v3446_v1 = vrot.slane %v3444_v32, 4  ;;  %v3449_v25 = vrot.slane %v3447_v27, 5  ;;  %v3455_v6 = vrot.slane %v3453_v7, 5  ;;  %v3463_v32 = vshll.u32 %v3376_v10, 16  ;;  %v10641_v7 = vld [vmem:[#allocation39_spill] sm:$0xff] }
 0x19a   : > { %v3837_v11 = vpack.c.b16 %v3806_v43, %v3805_v44  ;;  %v3378_v43 = vld [vmem:[#allocation2 + $0x28] sm:$0xf] }
 0x19b   : > { %v1815_v60 = vpop.f32.mrf.mxu2  ;;  %v1904_v41 = vpop.f32.mrf.mxu3  ;;  %v3450_v8 = vor.u32 %v3449_v25, %v3446_v1 }
 0x19c   : > { %v2042_v57 = vadd.f32 %v1815_v60, %v10638_v62  ;;  %v2043_v31 = vadd.f32 %v1904_v41, %v10639_v16  ;;  %v2507_v37 = vpop.f32.mrf.mxu0  ;;  %v3465_v16 = vrot.slane %v3463_v32, 5  ;;  %v8071_v32 = vld [vmem:[#allocation2 + $0xc] sm:$0xff] }
 0x19d   : > { %v2596_v13 = vpop.f32.mrf.mxu1  ;;  %v5080_v33 = vld.sshfl [vmem:[#allocation1] sm:$0xff pattern:$0x73625140]  ;;  %v5081_v9 = vld.sshfl [vmem:[#allocation1 + $0x8] sm:$0xff pattern:$0x73625140] }
 0x19e   : > { %v9150_v49 = vadd.f32 %v9105_v46, %v2042_v57  ;;  %v9153_v0 = vadd.f32 %v9107_v47, %v2043_v31  ;;  %v5130_v52 = vsel %vm986_vm7, %v5080_v33, 0  ;;  %v5132_v53 = vsel %vm986_vm7, %v5081_v9, 0  ;;  %v3377_v31 = vld [vmem:[#allocation2 + $0x24] sm:$0xf] }
 0x19f   : > { %5141 = vmatpush.bf16.msrb.mxu0 %v5130_v52  ;;  %5230 = vmatpush.bf16.msrb.mxu1 %v5132_v53  ;;  %v3460_v46 = vor.u32 %v3459_v19, %v3455_v6  ;;  %v3451_v62 = vrot.slane %v3450_v8, 4  ;;  %v3468_v1 = vshrl.u32 %v3377_v31, 16  ;;  %v3471_v25 = vshll.u32 %v3377_v31, 16  ;;  %v10642_v8 = vld [vmem:[#allocation42_spill] sm:$0xff] }
 0x1a0   : > { %7625 = vmatmul.msk.bf16.gmra.mxu2 %vm937_vm8, %v1717_v39  ;;  %7641 = vmatmul.msk.bf16.gmra.mxu3 %vm937_vm8, %v1717_v39  ;;  %v3477_v33 = vshll.u32 %v3378_v43, 16  ;;  %v3481_v9 = vshrl.u32 %v3378_v43, 16 }
 0x1a1   : > { %v3461_v57 = vrot.slane %v3460_v46, 4  ;;  %v3456_v19 = vsel %vm8588_vm1, %v3451_v62, %v3455_v6 }
 0x1a2   : > { %v3483_v6 = vrot.slane %v3481_v9, 4 }
 0x1a3   : > { %v1818_v27 = vpop.f32.mrf.mxu2  ;;  %v1907_v47 = vpop.f32.mrf.mxu3  ;;  %v3466_v10 = vsel %vm8588_vm1, %v3461_v57, %v3465_v16  ;;  %v3379_v16 = vld [vmem:[#allocation2 + $0x2c] sm:$0x1] }
 0x1a4   : > { %v2044_v30 = vadd.f32 %v1818_v27, %v10640_v51  ;;  %v2045_v45 = vadd.f32 %v1907_v47, %v10641_v7  ;;  %v2510_v60 = vpop.f32.mrf.mxu0  ;;  %v3807_v47 = vunpack.c.l.b16 %v3456_v19  ;;  %v3808_v51 = vunpack.c.l.b16 %v3466_v10  ;;  %v10645_v10 = vld [vmem:[#allocation10_spill] sm:$0xff] }
 0x1a5   : > { %v2599_v41 = vpop.f32.mrf.mxu1  ;;  %v3473_v7 = vrot.slane %v3471_v25, 5  ;;  %v10646_v25 = vld [vmem:[#allocation11_spill] sm:$0xff] }
 0x1a6   : > { %v9164_v39 = vadd.f32 %v9122_v17, %v2044_v30  ;;  %v9167_v44 = vadd.f32 %v9124_v34, %v2045_v45  ;;  %v10643_v17 = vld [vmem:[#allocation43_spill] sm:$0xff]  ;;  %v3470_v30 = vrot.slane %v3468_v1, 4  ;;  %v3479_v45 = vrot.slane %v3477_v33, 5 }
 0x1a7   : > { %7789 = vmatmul.msk.bf16.vlgmr.msra.gmra.mxu0 %vm937_vm8, %v3837_v11  ;;  %v3838_v43 = vpack.c.b16 %v3808_v51, %v3807_v47  ;;  %v3381_v51 = vld [vmem:[#allocation2 + $0x34] sm:$0xf] }
 0x1a8   : > { %7805 = vmatmul.msk.bf16.vlgmr.msra.gmra.mxu1 %vm937_vm8, %v3837_v11  ;;  %v3474_v31 = vor.u32 %v3473_v7, %v3470_v30 }
 0x1ab   : > { %v1820_v52 = vpop.f32.mrf.mxu2  ;;  %v1909_v53 = vpop.f32.mrf.mxu3 }
 0x1ac   : > { %v2046_v11 = vadd.f32 %v1820_v52, %v10642_v8  ;;  %v2047_v46 = vadd.f32 %v1909_v53, %v10643_v17  ;;  %v2512_v34 = vpop.f32.mrf.mxu0  ;;  %v3484_v52 = vor.u32 %v3483_v6, %v3479_v45  ;;  %v3487_v53 = vshll.u32 %v3379_v16, 16 }
 0x1ad   : > { %v2601_v27 = vpop.f32.mrf.mxu1 }
 0x1ae   : > { %v9175_v62 = vadd.f32 %v2507_v37, %v2046_v11  ;;  %v9177_v57 = vadd.f32 %v2596_v13, %v2047_v46  ;;  %v3475_v11 = vrot.slane %v3474_v31, 4  ;;  %v3485_v13 = vrot.slane %v3484_v52, 4  ;;  %v3380_v46 = vld [vmem:[#allocation2 + $0x30] sm:$0xf]  ;;  %v10649_v52 = vld [vmem:[#allocation12_spill] sm:$0xff] }
 0x1af   : > { %v3489_v17 = vrot.slane %v3487_v53, 5  ;;  %v3492_v30 = vshrl.u32 %v3380_v46, 16  ;;  %v3495_v7 = vshll.u32 %v3380_v46, 16  ;;  %v3501_v31 = vshll.u32 %v3381_v51, 16 }
 0x1b0   : > { %10644 = vst [vmem:[#allocation34_spill] sm:$0xff] %v9177_v57  ;;  %7756 = vmatmul.msk.bf16.vlgmr.msra.gmra.mxu2 %vm937_vm8, %v8071_v32  ;;  %7772 = vmatmul.msk.bf16.vlgmr.msra.gmra.mxu3 %vm937_vm8, %v8071_v32  ;;  %v3480_v6 = vsel %vm8588_vm1, %v3475_v11, %v3479_v45 }
 0x1b1   : > { %v3490_v16 = vsel %vm8588_vm1, %v3485_v13, %v3489_v17  ;;  %v3494_v46 = vrot.slane %v3492_v30, 4  ;;  %v3503_v57 = vrot.slane %v3501_v31, 5  ;;  %v3382_v17 = vld [vmem:[#allocation2 + $0x38] sm:$0x1] }
 0x1b3   : > { %v1823_v8 = vpop.f32.mrf.mxu2  ;;  %v1912_v19 = vpop.f32.mrf.mxu3 }
 0x1b4   : > { %v2048_v1 = vadd.f32 %v1823_v8, %v10645_v10  ;;  %v2049_v33 = vadd.f32 %v1912_v19, %v10646_v25  ;;  %v2515_v9 = vpop.f32.mrf.mxu0  ;;  %v3505_v8 = vshrl.u32 %v3381_v51, 16  ;;  %v10650_v10 = vld [vmem:[#allocation13_spill] sm:$0xff] }
 0x1b5   : > { %v2604_v37 = vpop.f32.mrf.mxu1 }
 0x1b6   : > { %v9185_v32 = vadd.f32 %v2510_v60, %v2048_v1  ;;  %v9187_v47 = vadd.f32 %v2599_v41, %v2049_v33  ;;  %v8072_v1 = vld [vmem:[#allocation2 + $0x18] sm:$0xff]  ;;  %v3809_v33 = vunpack.c.l.b16 %v3480_v6  ;;  %v3507_v45 = vrot.slane %v3505_v8, 4 }
 0x1b7   : > { %7790 = vmatmul.msk.bf16.gmra.mxu0 %vm937_vm8, %v3838_v43 }
 0x1b8   : > { %7806 = vmatmul.msk.bf16.gmra.mxu1 %vm937_vm8, %v3838_v43  ;;  %10647 = vst [vmem:[#allocation35_spill] sm:$0xff] %v9185_v32  ;;  %v3497_v32 = vrot.slane %v3495_v7, 5  ;;  %v10654_v7 = vld [vmem:[#allocation15_spill] sm:$0xff] }
 0x1b9   : > { %10648 = vst [vmem:[#allocation38_spill] sm:$0xff] %v9187_v47  ;;  %v3810_v47 = vunpack.c.l.b16 %v3490_v16  ;;  %v10653_v16 = vld [vmem:[#allocation14_spill] sm:$0xff] }
 0x1ba   : > { %v3498_v51 = vor.u32 %v3497_v32, %v3494_v46 }
 0x1bb   : > { %v1825_v19 = vpop.f32.mrf.mxu2  ;;  %v1914_v43 = vpop.f32.mrf.mxu3 }
 0x1bc   : > { %v2050_v53 = vadd.f32 %v1825_v19, %v10649_v52  ;;  %v2051_v60 = vadd.f32 %v1914_v43, %v10650_v10  ;;  %v2517_v41 = vpop.f32.mrf.mxu0  ;;  %v3839_v19 = vpack.c.b16 %v3810_v47, %v3809_v33  ;;  %v3508_v43 = vor.u32 %v3507_v45, %v3503_v57  ;;  %v3384_v33 = vld [vmem:[#allocation2 + $0x40] sm:$0xf] }
 0x1bd   : > { %v2606_v25 = vpop.f32.mrf.mxu1  ;;  %v3511_v52 = vshll.u32 %v3382_v17, 16 }
 0x1be   : > { %v9195_v11 = vadd.f32 %v2512_v34, %v2050_v53  ;;  %v9197_v13 = vadd.f32 %v2601_v27, %v2051_v60  ;;  %v3499_v53 = vrot.slane %v3498_v51, 4  ;;  %v3509_v27 = vrot.slane %v3508_v43, 4  ;;  %v10657_v43 = vld [vmem:[#allocation16_spill] sm:$0xff] }
 0x1bf   : > { %v3513_v60 = vrot.slane %v3511_v52, 5 }
 0x1c0   : > { %10651 = vst [vmem:[#allocation39_spill] sm:$0xff] %v9195_v11  ;;  %7757 = vmatmul.msk.bf16.gmra.mxu2 %vm937_vm8, %v8072_v1  ;;  %7773 = vmatmul.msk.bf16.gmra.mxu3 %vm937_vm8, %v8072_v1  ;;  %v3383_v1 = vld [vmem:[#allocation2 + $0x3c] sm:$0xf]  ;;  %v3504_v17 = vsel %vm8588_vm1, %v3499_v53, %v3503_v57 }
 0x1c1   : > { %10652 = vst [vmem:[#allocation42_spill] sm:$0xff] %v9197_v13  ;;  %v3516_v46 = vshrl.u32 %v3383_v1, 16  ;;  %v3519_v45 = vshll.u32 %v3383_v1, 16  ;;  %v3514_v51 = vsel %vm8588_vm1, %v3509_v27, %v3513_v60  ;;  %v3385_v60 = vld [vmem:[#allocation2 + $0x44] sm:$0x1] }
 0x1c3   : > { %v1828_v10 = vpop.f32.mrf.mxu2  ;;  %v1917_v6 = vpop.f32.mrf.mxu3  ;;  %v3518_v1 = vrot.slane %v3516_v46, 4  ;;  %v3521_v13 = vrot.slane %v3519_v45, 5  ;;  %v10662_v45 = vld [vmem:[#allocation19_spill] sm:$0xff] }
 0x1c4   : > { %v2052_v30 = vadd.f32 %v1828_v10, %v10653_v16  ;;  %v2053_v31 = vadd.f32 %v1917_v6, %v10654_v7  ;;  %v2520_v8 = vpop.f32.mrf.mxu0  ;;  %v3525_v10 = vshll.u32 %v3384_v33, 16  ;;  %v3529_v6 = vshrl.u32 %v3384_v33, 16  ;;  %v10658_v7 = vld [vmem:[#allocation17_spill] sm:$0xff] }
 0x1c5   : > { %v2609_v34 = vpop.f32.mrf.mxu1  ;;  %v3522_v33 = vor.u32 %v3521_v13, %v3518_v1 }
 0x1c6   : > { %v9205_v32 = vadd.f32 %v2515_v9, %v2052_v30  ;;  %v9207_v47 = vadd.f32 %v2604_v37, %v2053_v31  ;;  %v8073_v30 = vld [vmem:[#allocation2 + $0x24] sm:$0xff]  ;;  %v3527_v11 = vrot.slane %v3525_v10, 5  ;;  %v3531_v57 = vrot.slane %v3529_v6, 4 }
 0x1c7   : > { %7791 = vmatmul.msk.bf16.gmra.mxu0 %vm937_vm8, %v3839_v19 }
 0x1c8   : > { %7807 = vmatmul.msk.bf16.gmra.mxu1 %vm937_vm8, %v3839_v19  ;;  %10655 = vst [vmem:[#allocation43_spill] sm:$0xff] %v9205_v32  ;;  %v3812_v32 = vunpack.c.l.b16 %v3514_v51  ;;  %v10661_v51 = vld [vmem:[#allocation18_spill] sm:$0xff] }
 0x1c9   : > { %10656 = vst [vmem:[#allocation10_spill] sm:$0xff] %v9207_v47  ;;  %v3811_v47 = vunpack.c.l.b16 %v3504_v17 }
 0x1cb   : > { %v1830_v16 = vpop.f32.mrf.mxu2  ;;  %v1919_v19 = vpop.f32.mrf.mxu3 }
 0x1cc   : > { %v2054_v52 = vadd.f32 %v1830_v16, %v10657_v43  ;;  %v2055_v9 = vadd.f32 %v1919_v19, %v10658_v7  ;;  %v2522_v37 = vpop.f32.mrf.mxu0  ;;  %v3840_v16 = vpack.c.b16 %v3812_v32, %v3811_v47  ;;  %v3532_v19 = vor.u32 %v3531_v57, %v3527_v11  ;;  %v3387_v47 = vld [vmem:[#allocation2 + $0x4c] sm:$0xf] }
 0x1cd   : > { %v2611_v31 = vpop.f32.mrf.mxu1  ;;  %v3535_v43 = vshll.u32 %v3385_v60, 16 }
 0x1ce   : > { %v9215_v53 = vadd.f32 %v2517_v41, %v2054_v52  ;;  %v9217_v27 = vadd.f32 %v2606_v25, %v2055_v9  ;;  %v3523_v52 = vrot.slane %v3522_v33, 4  ;;  %v3533_v25 = vrot.slane %v3532_v19, 4  ;;  %v10665_v19 = vld [vmem:[#allocation20_spill] sm:$0xff] }
 0x1cf   : > { %v3537_v9 = vrot.slane %v3535_v43, 5 }
 0x1d0   : > { %10659 = vst [vmem:[#allocation11_spill] sm:$0xff] %v9215_v53  ;;  %7758 = vmatmul.msk.bf16.gmra.mxu2 %vm937_vm8, %v8073_v30  ;;  %7774 = vmatmul.msk.bf16.gmra.mxu3 %vm937_vm8, %v8073_v30  ;;  %v3386_v30 = vld [vmem:[#allocation2 + $0x48] sm:$0xf]  ;;  %v3528_v60 = vsel %vm8588_vm1, %v3523_v52, %v3527_v11 }
 0x1d1   : > { %10660 = vst [vmem:[#allocation12_spill] sm:$0xff] %v9217_v27  ;;  %v3540_v1 = vshrl.u32 %v3386_v30, 16  ;;  %v3543_v57 = vshll.u32 %v3386_v30, 16  ;;  %v3538_v33 = vsel %vm8588_vm1, %v3533_v25, %v3537_v9  ;;  %v3388_v9 = vld [vmem:[#allocation2 + $0x50] sm:$0x1] }
 0x1d3   : > { %v1833_v7 = vpop.f32.mrf.mxu2  ;;  %v1922_v17 = vpop.f32.mrf.mxu3  ;;  %v3542_v30 = vrot.slane %v3540_v1, 4  ;;  %v3545_v27 = vrot.slane %v3543_v57, 5  ;;  %v10670_v57 = vld [vmem:[#allocation23_spill] sm:$0xff] }
 0x1d4   : > { %v2056_v46 = vadd.f32 %v1833_v7, %v10661_v51  ;;  %v2057_v10 = vadd.f32 %v1922_v17, %v10662_v45  ;;  %v2525_v6 = vpop.f32.mrf.mxu0  ;;  %v3549_v7 = vshll.u32 %v3387_v47, 16  ;;  %v3553_v17 = vshrl.u32 %v3387_v47, 16  ;;  %v10666_v45 = vld [vmem:[#allocation21_spill] sm:$0xff] }
 0x1d5   : > { %v2614_v41 = vpop.f32.mrf.mxu1  ;;  %v3546_v47 = vor.u32 %v3545_v27, %v3542_v30 }
 0x1d6   : > { %v9225_v13 = vadd.f32 %v2520_v8, %v2056_v46  ;;  %v9227_v32 = vadd.f32 %v2609_v34, %v2057_v10  ;;  %v8074_v46 = vld [vmem:[#allocation2 + $0x30] sm:$0xff]  ;;  %v3551_v53 = vrot.slane %v3549_v7, 5  ;;  %v3555_v11 = vrot.slane %v3553_v17, 4 }
 0x1d7   : > { %7792 = vmatmul.msk.bf16.gmra.mxu0 %vm937_vm8, %v3840_v16 }
 0x1d8   : > { %7808 = vmatmul.msk.bf16.gmra.mxu1 %vm937_vm8, %v3840_v16  ;;  %10663 = vst [vmem:[#allocation13_spill] sm:$0xff] %v9225_v13  ;;  %v3814_v13 = vunpack.c.l.b16 %v3538_v33  ;;  %v10669_v33 = vld [vmem:[#allocation22_spill] sm:$0xff] }
 0x1d9   : > { %10664 = vst [vmem:[#allocation14_spill] sm:$0xff] %v9227_v32  ;;  %v3813_v32 = vunpack.c.l.b16 %v3528_v60 }
 0x1db   : > { %v1835_v51 = vpop.f32.mrf.mxu2  ;;  %v1924_v16 = vpop.f32.mrf.mxu3 }
 0x1dc   : > { %v2058_v43 = vadd.f32 %v1835_v51, %v10665_v19  ;;  %v2059_v8 = vadd.f32 %v1924_v16, %v10666_v45  ;;  %v2527_v34 = vpop.f32.mrf.mxu0  ;;  %v3841_v51 = vpack.c.b16 %v3814_v13, %v3813_v32  ;;  %v3556_v16 = vor.u32 %v3555_v11, %v3551_v53  ;;  %v3390_v32 = vld [vmem:[#allocation2 + $0x58] sm:$0xf] }
 0x1dd   : > { %v2616_v10 = vpop.f32.mrf.mxu1  ;;  %v3559_v19 = vshll.u32 %v3388_v9, 16 }
 0x1de   : > { %v9235_v52 = vadd.f32 %v2522_v37, %v2058_v43  ;;  %v9237_v25 = vadd.f32 %v2611_v31, %v2059_v8  ;;  %v3547_v43 = vrot.slane %v3546_v47, 4  ;;  %v3557_v31 = vrot.slane %v3556_v16, 4  ;;  %v10673_v16 = vld [vmem:[#allocation24_spill] sm:$0xff] }
 0x1df   : > { %v3561_v8 = vrot.slane %v3559_v19, 5 }
 0x1e0   : > { %10667 = vst [vmem:[#allocation15_spill] sm:$0xff] %v9235_v52  ;;  %7759 = vmatmul.msk.bf16.gmra.mxu2 %vm937_vm8, %v8074_v46  ;;  %7775 = vmatmul.msk.bf16.gmra.mxu3 %vm937_vm8, %v8074_v46  ;;  %v3389_v46 = vld [vmem:[#allocation2 + $0x54] sm:$0xf]  ;;  %v3552_v9 = vsel %vm8588_vm1, %v3547_v43, %v3551_v53 }
 0x1e1   : > { %10668 = vst [vmem:[#allocation16_spill] sm:$0xff] %v9237_v25  ;;  %v3564_v30 = vshrl.u32 %v3389_v46, 16  ;;  %v3567_v11 = vshll.u32 %v3389_v46, 16  ;;  %v3562_v47 = vsel %vm8588_vm1, %v3557_v31, %v3561_v8  ;;  %v3391_v8 = vld [vmem:[#allocation2 + $0x5c] sm:$0x1] }
 0x1e3   : > { %v1838_v45 = vpop.f32.mrf.mxu2  ;;  %v1927_v60 = vpop.f32.mrf.mxu3  ;;  %v3566_v46 = vrot.slane %v3564_v30, 4  ;;  %v3569_v25 = vrot.slane %v3567_v11, 5  ;;  %v10678_v11 = vld [vmem:[#allocation27_spill] sm:$0xff] }
 0x1e4   : > { %v2060_v1 = vadd.f32 %v1838_v45, %v10669_v33  ;;  %v2061_v7 = vadd.f32 %v1927_v60, %v10670_v57  ;;  %v2530_v17 = vpop.f32.mrf.mxu0  ;;  %v3573_v45 = vshll.u32 %v3390_v32, 16  ;;  %v3577_v60 = vshrl.u32 %v3390_v32, 16  ;;  %v10674_v57 = vld [vmem:[#allocation25_spill] sm:$0xff] }
 0x1e5   : > { %v2619_v37 = vpop.f32.mrf.mxu1  ;;  %v3570_v32 = vor.u32 %v3569_v25, %v3566_v46 }
 0x1e6   : > { %v9245_v27 = vadd.f32 %v2525_v6, %v2060_v1  ;;  %v9247_v13 = vadd.f32 %v2614_v41, %v2061_v7  ;;  %v8075_v1 = vld [vmem:[#allocation2 + $0x3c] sm:$0xff]  ;;  %v3575_v52 = vrot.slane %v3573_v45, 5  ;;  %v3579_v53 = vrot.slane %v3577_v60, 4 }
 0x1e7   : > { %7793 = vmatmul.msk.bf16.gmra.mxu0 %vm937_vm8, %v3841_v51 }
 0x1e8   : > { %7809 = vmatmul.msk.bf16.gmra.mxu1 %vm937_vm8, %v3841_v51  ;;  %10671 = vst [vmem:[#allocation17_spill] sm:$0xff] %v9245_v27  ;;  %v3816_v27 = vunpack.c.l.b16 %v3562_v47  ;;  %v10677_v47 = vld [vmem:[#allocation26_spill] sm:$0xff] }
 0x1e9   : > { %10672 = vst [vmem:[#allocation18_spill] sm:$0xff] %v9247_v13  ;;  %v3815_v13 = vunpack.c.l.b16 %v3552_v9 }
 0x1eb   : > { %v1840_v33 = vpop.f32.mrf.mxu2  ;;  %v1929_v51 = vpop.f32.mrf.mxu3 }
 0x1ec   : > { %v2062_v19 = vadd.f32 %v1840_v33, %v10673_v16  ;;  %v2063_v6 = vadd.f32 %v1929_v51, %v10674_v57  ;;  %v2532_v41 = vpop.f32.mrf.mxu0  ;;  %v3842_v33 = vpack.c.b16 %v3816_v27, %v3815_v13  ;;  %v3580_v51 = vor.u32 %v3579_v53, %v3575_v52  ;;  %v3393_v13 = vld [vmem:[#allocation2 + $0x64] sm:$0xf] }
 0x1ed   : > { %v2621_v7 = vpop.f32.mrf.mxu1  ;;  %v3583_v16 = vshll.u32 %v3391_v8, 16 }
 0x1ee   : > { %v9255_v43 = vadd.f32 %v2527_v34, %v2062_v19  ;;  %v9257_v31 = vadd.f32 %v2616_v10, %v2063_v6  ;;  %v3571_v19 = vrot.slane %v3570_v32, 4  ;;  %v3581_v10 = vrot.slane %v3580_v51, 4  ;;  %v10681_v51 = vld [vmem:[#allocation28_spill] sm:$0xff] }
 0x1ef   : > { %v3585_v6 = vrot.slane %v3583_v16, 5 }
 0x1f0   : > { %10675 = vst [vmem:[#allocation19_spill] sm:$0xff] %v9255_v43  ;;  %7760 = vmatmul.msk.bf16.gmra.mxu2 %vm937_vm8, %v8075_v1  ;;  %7776 = vmatmul.msk.bf16.gmra.mxu3 %vm937_vm8, %v8075_v1  ;;  %v3392_v1 = vld [vmem:[#allocation2 + $0x60] sm:$0xf]  ;;  %v3576_v8 = vsel %vm8588_vm1, %v3571_v19, %v3575_v52 }
 0x1f1   : > { %10676 = vst [vmem:[#allocation20_spill] sm:$0xff] %v9257_v31  ;;  %v3588_v46 = vshrl.u32 %v3392_v1, 16  ;;  %v3591_v53 = vshll.u32 %v3392_v1, 16  ;;  %v3586_v32 = vsel %vm8588_vm1, %v3581_v10, %v3585_v6  ;;  %v3394_v6 = vld [vmem:[#allocation2 + $0x68] sm:$0x1] }
 0x1f3   : > { %v1843_v57 = vpop.f32.mrf.mxu2  ;;  %v1932_v9 = vpop.f32.mrf.mxu3  ;;  %v3590_v1 = vrot.slane %v3588_v46, 4  ;;  %v3593_v31 = vrot.slane %v3591_v53, 5  ;;  %v10686_v53 = vld [vmem:[#allocation31_spill] sm:$0xff] }
 0x1f4   : > { %v2064_v30 = vadd.f32 %v1843_v57, %v10677_v47  ;;  %v2065_v45 = vadd.f32 %v1932_v9, %v10678_v11  ;;  %v2535_v60 = vpop.f32.mrf.mxu0  ;;  %v3597_v57 = vshll.u32 %v3393_v13, 16  ;;  %v3601_v9 = vshrl.u32 %v3393_v13, 16  ;;  %v10682_v11 = vld [vmem:[#allocation29_spill] sm:$0xff] }
 0x1f5   : > { %v2624_v34 = vpop.f32.mrf.mxu1  ;;  %v3594_v13 = vor.u32 %v3593_v31, %v3590_v1 }
 0x1f6   : > { %v9265_v25 = vadd.f32 %v2530_v17, %v2064_v30  ;;  %v9267_v27 = vadd.f32 %v2619_v37, %v2065_v45  ;;  %v8076_v30 = vld [vmem:[#allocation2 + $0x48] sm:$0xff]  ;;  %v3599_v43 = vrot.slane %v3597_v57, 5  ;;  %v3603_v52 = vrot.slane %v3601_v9, 4 }
 0x1f7   : > { %7794 = vmatmul.msk.bf16.gmra.mxu0 %vm937_vm8, %v3842_v33 }
 0x1f8   : > { %7810 = vmatmul.msk.bf16.gmra.mxu1 %vm937_vm8, %v3842_v33  ;;  %10679 = vst [vmem:[#allocation21_spill] sm:$0xff] %v9265_v25  ;;  %v3818_v25 = vunpack.c.l.b16 %v3586_v32  ;;  %v10685_v32 = vld [vmem:[#allocation30_spill] sm:$0xff] }
 0x1f9   : > { %10680 = vst [vmem:[#allocation22_spill] sm:$0xff] %v9267_v27  ;;  %v3817_v27 = vunpack.c.l.b16 %v3576_v8 }
 0x1fb   : > { %v1845_v47 = vpop.f32.mrf.mxu2  ;;  %v1934_v33 = vpop.f32.mrf.mxu3 }
 0x1fc   : > { %v2066_v16 = vadd.f32 %v1845_v47, %v10681_v51  ;;  %v2067_v17 = vadd.f32 %v1934_v33, %v10682_v11  ;;  %v2537_v37 = vpop.f32.mrf.mxu0  ;;  %v3843_v47 = vpack.c.b16 %v3818_v25, %v3817_v27  ;;  %v3604_v33 = vor.u32 %v3603_v52, %v3599_v43  ;;  %v3396_v27 = vld [vmem:[#allocation2 + $0x70] sm:$0xf] }
 0x1fd   : > { %v2626_v45 = vpop.f32.mrf.mxu1  ;;  %v3607_v51 = vshll.u32 %v3394_v6, 16 }
 0x1fe   : > { %v9275_v19 = vadd.f32 %v2532_v41, %v2066_v16  ;;  %v9277_v10 = vadd.f32 %v2621_v7, %v2067_v17  ;;  %v3595_v16 = vrot.slane %v3594_v13, 4  ;;  %v3605_v7 = vrot.slane %v3604_v33, 4  ;;  %v10689_v33 = vld [vmem:[#allocation32_spill] sm:$0xff] }
 0x1ff   : > { %v3609_v17 = vrot.slane %v3607_v51, 5 }
 0x200   : > { %10683 = vst [vmem:[#allocation23_spill] sm:$0xff] %v9275_v19  ;;  %7761 = vmatmul.msk.bf16.gmra.mxu2 %vm937_vm8, %v8076_v30  ;;  %7777 = vmatmul.msk.bf16.gmra.mxu3 %vm937_vm8, %v8076_v30  ;;  %v3395_v30 = vld [vmem:[#allocation2 + $0x6c] sm:$0xf]  ;;  %v3600_v6 = vsel %vm8588_vm1, %v3595_v16, %v3599_v43 }
 0x201   : > { %10684 = vst [vmem:[#allocation24_spill] sm:$0xff] %v9277_v10  ;;  %v3612_v1 = vshrl.u32 %v3395_v30, 16  ;;  %v3615_v52 = vshll.u32 %v3395_v30, 16  ;;  %v3610_v13 = vsel %vm8588_vm1, %v3605_v7, %v3609_v17  ;;  %v3397_v17 = vld [vmem:[#allocation2 + $0x74] sm:$0x1] }
 0x203   : > { %v1848_v11 = vpop.f32.mrf.mxu2  ;;  %v1937_v8 = vpop.f32.mrf.mxu3  ;;  %v3614_v30 = vrot.slane %v3612_v1, 4  ;;  %v3617_v10 = vrot.slane %v3615_v52, 5  ;;  %v10694_v52 = vld [vmem:[#allocation37_spill] sm:$0xff] }
 0x204   : > { %v2068_v46 = vadd.f32 %v1848_v11, %v10685_v32  ;;  %v2069_v57 = vadd.f32 %v1937_v8, %v10686_v53  ;;  %v2540_v9 = vpop.f32.mrf.mxu0  ;;  %v3621_v11 = vshll.u32 %v3396_v27, 16  ;;  %v3625_v8 = vshrl.u32 %v3396_v27, 16  ;;  %v10690_v53 = vld [vmem:[#allocation33_spill] sm:$0xff] }
 0x205   : > { %v2629_v41 = vpop.f32.mrf.mxu1  ;;  %v3618_v27 = vor.u32 %v3617_v10, %v3614_v30 }
 0x206   : > { %v9285_v31 = vadd.f32 %v2535_v60, %v2068_v46  ;;  %v9287_v25 = vadd.f32 %v2624_v34, %v2069_v57  ;;  %v8077_v46 = vld [vmem:[#allocation2 + $0x54] sm:$0xff]  ;;  %v3623_v19 = vrot.slane %v3621_v11, 5  ;;  %v3627_v43 = vrot.slane %v3625_v8, 4 }
 0x207   : > { %7795 = vmatmul.msk.bf16.gmra.mxu0 %vm937_vm8, %v3843_v47 }
 0x208   : > { %7811 = vmatmul.msk.bf16.gmra.mxu1 %vm937_vm8, %v3843_v47  ;;  %10687 = vst [vmem:[#allocation25_spill] sm:$0xff] %v9285_v31  ;;  %v3820_v31 = vunpack.c.l.b16 %v3610_v13  ;;  %v10693_v13 = vld [vmem:[#allocation36_spill] sm:$0xff] }
 0x209   : > { %10688 = vst [vmem:[#allocation26_spill] sm:$0xff] %v9287_v25  ;;  %v3819_v25 = vunpack.c.l.b16 %v3600_v6 }
 0x20b   : > { %v1850_v32 = vpop.f32.mrf.mxu2  ;;  %v1939_v47 = vpop.f32.mrf.mxu3 }
 0x20c   : > { %v2070_v51 = vadd.f32 %v1850_v32, %v10689_v33  ;;  %v2071_v60 = vadd.f32 %v1939_v47, %v10690_v53  ;;  %v2542_v34 = vpop.f32.mrf.mxu0  ;;  %v3844_v32 = vpack.c.b16 %v3820_v31, %v3819_v25  ;;  %v3628_v47 = vor.u32 %v3627_v43, %v3623_v19  ;;  %v3399_v25 = vld [vmem:[#allocation2 + $0x7c] sm:$0xf] }
 0x20d   : > { %v2631_v57 = vpop.f32.mrf.mxu1  ;;  %v3631_v33 = vshll.u32 %v3397_v17, 16 }
 0x20e   : > { %v9295_v16 = vadd.f32 %v2537_v37, %v2070_v51  ;;  %v9297_v7 = vadd.f32 %v2626_v45, %v2071_v60  ;;  %v3619_v51 = vrot.slane %v3618_v27, 4  ;;  %v3629_v45 = vrot.slane %v3628_v47, 4  ;;  %v10697_v47 = vld [vmem:[#allocation40_spill] sm:$0xff] }
 0x20f   : > { %v3633_v60 = vrot.slane %v3631_v33, 5 }
 0x210   : > { %10691 = vst [vmem:[#allocation27_spill] sm:$0xff] %v9295_v16  ;;  %7762 = vmatmul.msk.bf16.gmra.mxu2 %vm937_vm8, %v8077_v46  ;;  %7778 = vmatmul.msk.bf16.gmra.mxu3 %vm937_vm8, %v8077_v46  ;;  %v3398_v46 = vld [vmem:[#allocation2 + $0x78] sm:$0xf]  ;;  %v3624_v17 = vsel %vm8588_vm1, %v3619_v51, %v3623_v19 }
 0x211   : > { %10692 = vst [vmem:[#allocation28_spill] sm:$0xff] %v9297_v7  ;;  %v3636_v30 = vshrl.u32 %v3398_v46, 16  ;;  %v3639_v43 = vshll.u32 %v3398_v46, 16  ;;  %v3634_v27 = vsel %vm8588_vm1, %v3629_v45, %v3633_v60  ;;  %v3400_v60 = vld [vmem:[#allocation2 + $0x80] sm:$0x1] }
 0x213   : > { %v1853_v53 = vpop.f32.mrf.mxu2  ;;  %v1942_v6 = vpop.f32.mrf.mxu3  ;;  %v3638_v46 = vrot.slane %v3636_v30, 4  ;;  %v3641_v7 = vrot.slane %v3639_v43, 5  ;;  %v10702_v43 = vld [vmem:[#allocation45_spill] sm:$0xff] }
 0x214   : > { %v2072_v1 = vadd.f32 %v1853_v53, %v10693_v13  ;;  %v2073_v11 = vadd.f32 %v1942_v6, %v10694_v52  ;;  %v2545_v8 = vpop.f32.mrf.mxu0  ;;  %v3645_v53 = vshll.u32 %v3399_v25, 16  ;;  %v3649_v6 = vshrl.u32 %v3399_v25, 16  ;;  %v10698_v52 = vld [vmem:[#allocation41_spill] sm:$0xff] }
 0x215   : > { %v2634_v37 = vpop.f32.mrf.mxu1  ;;  %v3642_v25 = vor.u32 %v3641_v7, %v3638_v46 }
 0x216   : > { %v9305_v10 = vadd.f32 %v2540_v9, %v2072_v1  ;;  %v9307_v31 = vadd.f32 %v2629_v41, %v2073_v11  ;;  %v8078_v1 = vld [vmem:[#allocation2 + $0x60] sm:$0xff]  ;;  %v3647_v16 = vrot.slane %v3645_v53, 5  ;;  %v3651_v19 = vrot.slane %v3649_v6, 4 }
 0x217   : > { %7796 = vmatmul.msk.bf16.gmra.mxu0 %vm937_vm8, %v3844_v32 }
 0x218   : > { %7812 = vmatmul.msk.bf16.gmra.mxu1 %vm937_vm8, %v3844_v32  ;;  %10695 = vst [vmem:[#allocation29_spill] sm:$0xff] %v9305_v10  ;;  %v3822_v10 = vunpack.c.l.b16 %v3634_v27  ;;  %v10701_v27 = vld [vmem:[#allocation44_spill] sm:$0xff] }
 0x219   : > { %10696 = vst [vmem:[#allocation30_spill] sm:$0xff] %v9307_v31  ;;  %v3821_v31 = vunpack.c.l.b16 %v3624_v17 }
 0x21b   : > { %v1855_v13 = vpop.f32.mrf.mxu2  ;;  %v1944_v32 = vpop.f32.mrf.mxu3 }
 0x21c   : > { %v2074_v33 = vadd.f32 %v1855_v13, %v10697_v47  ;;  %v2075_v9 = vadd.f32 %v1944_v32, %v10698_v52  ;;  %v2547_v41 = vpop.f32.mrf.mxu0  ;;  %v3845_v13 = vpack.c.b16 %v3822_v10, %v3821_v31  ;;  %v3652_v32 = vor.u32 %v3651_v19, %v3647_v16  ;;  %v3402_v31 = vld [vmem:[#allocation2 + $0x88] sm:$0xf] }
 0x21d   : > { %v2636_v11 = vpop.f32.mrf.mxu1  ;;  %v3655_v47 = vshll.u32 %v3400_v60, 16 }
 0x21e   : > { %v9315_v51 = vadd.f32 %v2542_v34, %v2074_v33  ;;  %v9317_v45 = vadd.f32 %v2631_v57, %v2075_v9  ;;  %v3643_v33 = vrot.slane %v3642_v25, 4  ;;  %v3653_v57 = vrot.slane %v3652_v32, 4  ;;  %v10705_v32 = vld [vmem:[#allocation46_spill] sm:$0xff] }
 0x21f   : > { %v3657_v9 = vrot.slane %v3655_v47, 5 }
 0x220   : > { %10699 = vst [vmem:[#allocation31_spill] sm:$0xff] %v9315_v51  ;;  %7763 = vmatmul.msk.bf16.gmra.mxu2 %vm937_vm8, %v8078_v1  ;;  %7779 = vmatmul.msk.bf16.gmra.mxu3 %vm937_vm8, %v8078_v1  ;;  %v3401_v1 = vld [vmem:[#allocation2 + $0x84] sm:$0xf]  ;;  %v3648_v60 = vsel %vm8588_vm1, %v3643_v33, %v3647_v16 }
 0x221   : > { %10700 = vst [vmem:[#allocation32_spill] sm:$0xff] %v9317_v45  ;;  %v3660_v46 = vshrl.u32 %v3401_v1, 16  ;;  %v3663_v19 = vshll.u32 %v3401_v1, 16  ;;  %v3658_v25 = vsel %vm8588_vm1, %v3653_v57, %v3657_v9  ;;  %v3403_v9 = vld [vmem:[#allocation2 + $0x8c] sm:$0x1] }
 0x223   : > { %v1858_v52 = vpop.f32.mrf.mxu2  ;;  %v1947_v17 = vpop.f32.mrf.mxu3  ;;  %v3662_v1 = vrot.slane %v3660_v46, 4  ;;  %v3665_v45 = vrot.slane %v3663_v19, 5 }
 0x224   : > { %v2076_v30 = vadd.f32 %v1858_v52, %v10701_v27  ;;  %v2077_v53 = vadd.f32 %v1947_v17, %v10702_v43  ;;  %v3918_v6 = vpop.f32.mrf.mxu0  ;;  %v3669_v52 = vshll.u32 %v3402_v31, 16  ;;  %v3673_v17 = vshrl.u32 %v3402_v31, 16  ;;  %v10706_v43 = vld [vmem:[#allocation47_spill] sm:$0xff] }
 0x225   : > { %v4007_v34 = vpop.f32.mrf.mxu1  ;;  %v3666_v31 = vor.u32 %v3665_v45, %v3662_v1 }
 0x226   : > { %v9325_v7 = vadd.f32 %v2545_v8, %v2076_v30  ;;  %v9327_v10 = vadd.f32 %v2634_v37, %v2077_v53  ;;  %v8079_v30 = vld [vmem:[#allocation2 + $0x6c] sm:$0xff]  ;;  %v3671_v51 = vrot.slane %v3669_v52, 5  ;;  %v3675_v16 = vrot.slane %v3673_v17, 4 }
 0x227   : > { %7797 = vmatmul.msk.bf16.gmra.mxu0 %vm937_vm8, %v3845_v13  ;;  %v3667_v52 = vrot.slane %v3666_v31, 4 }
 0x228   : > { %7813 = vmatmul.msk.bf16.gmra.mxu1 %vm937_vm8, %v3845_v13  ;;  %10703 = vst [vmem:[#allocation33_spill] sm:$0xff] %v9325_v7  ;;  %v3824_v7 = vunpack.c.l.b16 %v3658_v25 }
 0x229   : > { %10704 = vst [vmem:[#allocation36_spill] sm:$0xff] %v9327_v10  ;;  %v3823_v10 = vunpack.c.l.b16 %v3648_v60 }
 0x22b   : > { %v1860_v27 = vpop.f32.mrf.mxu2  ;;  %v1949_v13 = vpop.f32.mrf.mxu3 }
 0x22c   : > { %v2078_v47 = vadd.f32 %v1860_v27, %v10705_v32  ;;  %v2079_v8 = vadd.f32 %v1949_v13, %v10706_v43  ;;  %v3920_v37 = vpop.f32.mrf.mxu0  ;;  %v3846_v27 = vpack.c.b16 %v3824_v7, %v3823_v10  ;;  %v3676_v13 = vor.u32 %v3675_v16, %v3671_v51  ;;  %v3405_v10 = vld [vmem:[#allocation2 + $0x94] sm:$0xf] }
 0x22d   : > { %v4009_v53 = vpop.f32.mrf.mxu1  ;;  %v3679_v32 = vshll.u32 %v3403_v9, 16  ;;  %v3693_v1 = vshll.u32 %v3405_v10, 16  ;;  %v3697_v16 = vshrl.u32 %v3405_v10, 16 }
 0x22e   : > { %v9335_v33 = vadd.f32 %v2547_v41, %v2078_v47  ;;  %v9337_v57 = vadd.f32 %v2636_v11, %v2079_v8  ;;  %v3677_v11 = vrot.slane %v3676_v13, 4  ;;  %v3404_v47 = vld [vmem:[#allocation2 + $0x90] sm:$0xf]  ;;  %v8080_v13 = vld [vmem:[#allocation2 + $0x78] sm:$0xff] }
 0x22f   : > { %v3681_v17 = vrot.slane %v3679_v32, 5  ;;  %v3684_v8 = vshrl.u32 %v3404_v47, 16 }
 0x230   : > { %7764 = vmatmul.msk.bf16.gmra.mxu2 %vm937_vm8, %v8079_v30  ;;  %7780 = vmatmul.msk.bf16.gmra.mxu3 %vm937_vm8, %v8079_v30  ;;  %v3687_v30 = vshll.u32 %v3404_v47, 16  ;;  %v3695_v47 = vrot.slane %v3693_v1, 5 }
 0x233   : > { %v3010_v43 = vpop.f32.mrf.mxu2  ;;  %v3099_v60 = vpop.f32.mrf.mxu3 }
 0x234   : > { %v3243_v46 = vadd.f32 %v3010_v43, %v8896_v54  ;;  %v3244_v19 = vadd.f32 %v3099_v60, %v8899_v55  ;;  %v3923_v25 = vpop.f32.mrf.mxu0  ;;  %v3672_v54 = vsel %vm8588_vm1, %v3667_v52, %v3671_v51  ;;  %v3682_v55 = vsel %vm8588_vm1, %v3677_v11, %v3681_v17  ;;  %v3406_v17 = vld [vmem:[#allocation2 + $0x98] sm:$0x1] }
 0x235   : > { %v4012_v41 = vpop.f32.mrf.mxu1  ;;  %v3825_v43 = vunpack.c.l.b16 %v3672_v54  ;;  %v3826_v60 = vunpack.c.l.b16 %v3682_v55  ;;  %v3699_v51 = vrot.slane %v3697_v16, 4 }
 0x236   : > { %v9345_v45 = vadd.f32 %v3918_v6, %v3243_v46  ;;  %v9347_v7 = vadd.f32 %v4007_v34, %v3244_v19  ;;  %v3686_v46 = vrot.slane %v3684_v8, 4  ;;  %v3689_v19 = vrot.slane %v3687_v30, 5 }
 0x237   : > { %7798 = vmatmul.msk.bf16.gmra.mxu0 %vm937_vm8, %v3846_v27  ;;  %v3700_v10 = vor.u32 %v3699_v51, %v3695_v47 }
 0x238   : > { %7814 = vmatmul.msk.bf16.gmra.mxu1 %vm937_vm8, %v3846_v27 }
 0x23b   : > { %v3012_v9 = vpop.f32.mrf.mxu2  ;;  %v3101_v31 = vpop.f32.mrf.mxu3 }
 0x23c   : > { %v3245_v27 = vadd.f32 %v3012_v9, %v8913_v42  ;;  %v3246_v6 = vadd.f32 %v3101_v31, %v8916_v23  ;;  %v3925_v34 = vpop.f32.mrf.mxu0  ;;  %v3690_v42 = vor.u32 %v3689_v19, %v3686_v46  ;;  %v3847_v23 = vpack.c.b16 %v3826_v60, %v3825_v43  ;;  %v3408_v43 = vld [vmem:[#allocation2 + $0xa0] sm:$0xf] }
 0x23d   : > { %v4014_v32 = vpop.f32.mrf.mxu1  ;;  %v3703_v9 = vshll.u32 %v3406_v17, 16  ;;  %v3717_v17 = vshll.u32 %v3408_v43, 16 }
 0x23e   : > { %v9355_v52 = vadd.f32 %v3920_v37, %v3245_v27  ;;  %v9357_v11 = vadd.f32 %v4009_v53, %v3246_v6  ;;  %v3691_v1 = vrot.slane %v3690_v42, 4  ;;  %v3701_v53 = vrot.slane %v3700_v10, 4 }
 0x23f   : > { %v3705_v16 = vrot.slane %v3703_v9, 5  ;;  %v3721_v42 = vshrl.u32 %v3408_v43, 16 }
 0x240   : > { %7765 = vmatmul.msk.bf16.gmra.mxu2 %vm937_vm8, %v8080_v13  ;;  %7781 = vmatmul.msk.bf16.gmra.mxu3 %vm937_vm8, %v8080_v13  ;;  %v3407_v13 = vld [vmem:[#allocation2 + $0x9c] sm:$0xf] }
 0x241   : > { %v3708_v60 = vshrl.u32 %v3407_v13, 16  ;;  %v3711_v46 = vshll.u32 %v3407_v13, 16 }
 0x243   : > { %v3015_v31 = vpop.f32.mrf.mxu2  ;;  %v3104_v54 = vpop.f32.mrf.mxu3 }
 0x244   : > { %v3247_v8 = vadd.f32 %v3015_v31, %v8937_v29  ;;  %v3248_v30 = vadd.f32 %v3104_v54, %v8940_v24  ;;  %v3928_v55 = vpop.f32.mrf.mxu0  ;;  %v3696_v29 = vsel %vm8588_vm1, %v3691_v1, %v3695_v47  ;;  %v3706_v24 = vsel %vm8588_vm1, %v3701_v53, %v3705_v16 }
 0x245   : > { %v4017_v37 = vpop.f32.mrf.mxu1  ;;  %v3827_v31 = vunpack.c.l.b16 %v3696_v29  ;;  %v3828_v54 = vunpack.c.l.b16 %v3706_v24  ;;  %v3713_v47 = vrot.slane %v3711_v46, 5  ;;  %v3719_v53 = vrot.slane %v3717_v17, 5  ;;  %v3410_v46 = vld [vmem:[#allocation2 + $0xa8] sm:$0xf] }
 0x246   : > { %v9365_v27 = vadd.f32 %v3923_v25, %v3247_v8  ;;  %v9367_v6 = vadd.f32 %v4012_v41, %v3248_v30  ;;  %v8081_v41 = vld [vmem:[#allocation2 + $0x84] sm:$0xff]  ;;  %v3710_v8 = vrot.slane %v3708_v60, 4  ;;  %v3723_v16 = vrot.slane %v3721_v42, 4  ;;  %v3411_v42 = vld [vmem:[#allocation2 + $0xac] sm:$0xf] }
 0x247   : > { %7799 = vmatmul.msk.bf16.gmra.mxu0 %vm937_vm8, %v3847_v23  ;;  %v3848_v13 = vpack.c.b16 %v3828_v54, %v3827_v31  ;;  %v3735_v54 = vshll.u32 %v3410_v46, 16 }
 0x248   : > { %7815 = vmatmul.msk.bf16.gmra.mxu1 %vm937_vm8, %v3847_v23 }
 0x24b   : > { %v3017_v19 = vpop.f32.mrf.mxu2  ;;  %v3106_v51 = vpop.f32.mrf.mxu3 }
 0x24c   : > { %v3249_v23 = vadd.f32 %v3017_v19, %v8954_v58  ;;  %v3250_v25 = vadd.f32 %v3106_v51, %v8957_v61  ;;  %v3930_v10 = vpop.f32.mrf.mxu0  ;;  %v3409_v58 = vld [vmem:[#allocation2 + $0xa4] sm:$0x1]  ;;  %v3714_v61 = vor.u32 %v3713_v47, %v3710_v8  ;;  %v3724_v51 = vor.u32 %v3723_v16, %v3719_v53 }
 0x24d   : > { %v4019_v9 = vpop.f32.mrf.mxu1  ;;  %v3727_v29 = vshll.u32 %v3409_v58, 16  ;;  %v3745_v8 = vshrl.u32 %v3411_v42, 16 }
 0x24e   : > { %v9375_v30 = vadd.f32 %v3925_v34, %v3249_v23  ;;  %v9377_v1 = vadd.f32 %v4014_v32, %v3250_v25  ;;  %v3715_v17 = vrot.slane %v3714_v61, 4 }
 0x24f   : > { %v3729_v31 = vrot.slane %v3727_v29, 5 }
 0x250   : > { %7766 = vmatmul.msk.bf16.gmra.mxu2 %vm937_vm8, %v8081_v41  ;;  %7782 = vmatmul.msk.bf16.gmra.mxu3 %vm937_vm8, %v8081_v41  ;;  %v3725_v41 = vrot.slane %v3724_v51, 4  ;;  %v3720_v58 = vsel %vm8588_vm1, %v3715_v17, %v3719_v53  ;;  %v3412_v17 = vld [vmem:[#allocation2 + $0xb0] sm:$0x1] }
 0x251   : > { %v3829_v53 = vunpack.c.l.b16 %v3720_v58 }
 0x253   : > { %v3020_v43 = vpop.f32.mrf.mxu2  ;;  %v3109_v19 = vpop.f32.mrf.mxu3 }
 0x254   : > { %v3251_v24 = vadd.f32 %v3020_v43, %v8978_v3  ;;  %v3252_v34 = vadd.f32 %v3109_v19, %v8981_v5  ;;  %v9383_v60 = vpop.f32.mrf.mxu0  ;;  %v3732_v3 = vshrl.u32 %v3410_v46, 16  ;;  %v3741_v5 = vshll.u32 %v3411_v42, 16  ;;  %v8082_v19 = vld [vmem:[#allocation2 + $0x90] sm:$0xff] }
 0x255   : > { %v9385_v32 = vpop.f32.mrf.mxu1  ;;  %v3737_v43 = vrot.slane %v3735_v54, 5 }
 0x256   : > { %v9389_v23 = vadd.f32 %v3928_v55, %v3251_v24  ;;  %v9391_v25 = vadd.f32 %v4017_v37, %v3252_v34  ;;  %v3734_v61 = vrot.slane %v3732_v3, 4  ;;  %v9403_v24 = vrot.slane %v3741_v5, 5  ;;  %v349_v5 = vld [vmem:[%s8317_s9 + $0xf0] sm:$0xff] }
 0x257   : > { %7800 = vmatmul.msk.bf16.gmra.mxu0 %vm937_vm8, %v3848_v13  ;;  %v3747_v34 = vrot.slane %v3745_v8, 4  ;;  %v3751_v3 = vshll.u32 %v3412_v17, 16  ;;  %v350_v8 = vld [vmem:[%s8317_s9 + $0xf8] sm:$0xff]  ;;  %v313_v17 = vld [vmem:[#allocation2 + $0xc8] sm:$0x1] }
 0x258   : > { %7816 = vmatmul.msk.bf16.gmra.mxu1 %vm937_vm8, %v3848_v13  ;;  %v3730_v13 = vsel %vm8588_vm1, %v3725_v41, %v3729_v31 }
 0x259   : > { %v3830_v46 = vunpack.c.l.b16 %v3730_v13  ;;  %v3748_v31 = vor.u32 %v3747_v34, %v9403_v24 }
 0x25b   : > { %v3022_v47 = vpop.f32.mrf.mxu2  ;;  %v3111_v16 = vpop.f32.mrf.mxu3 }
 0x25c   : > { %v3253_v55 = vadd.f32 %v3022_v47, %v8995_v28  ;;  %v3254_v37 = vadd.f32 %v3111_v16, %v8998_v38  ;;  %v9399_v51 = vpop.f32.mrf.mxu0  ;;  %v3738_v28 = vor.u32 %v3737_v43, %v3734_v61  ;;  %v257_v38 = vld [vmem:[#allocation2 + $0xc0] sm:$0x1]  ;;  %v3849_v47 = vpack.c.b16 %v3830_v46, %v3829_v53  ;;  %v3413_v53 = vld [vmem:[#allocation2 + $0xb4] sm:$0xf] }
 0x25d   : > { %v9401_v29 = vpop.f32.mrf.mxu1  ;;  %v258_v54 = vsel %vm8296_vm3, 0, %v257_v38  ;;  %v382_v16 = vpack.c.bf16 %v350_v8, %v350_v8  ;;  %v3749_v38 = vrot.slane %v3748_v31, 4  ;;  %v314_v8 = vsel %vm8304_vm5, 0, %v313_v17 }
 0x25e   : > { %v9405_v42 = vadd.f32 %v3930_v10, %v3253_v55  ;;  %v9407_v41 = vadd.f32 %v4019_v9, %v3254_v37  ;;  %259 = vst [vmem:[#allocation2 + $0xc0] sm:$0x1] %v258_v54  ;;  %v381_v10 = vpack.c.bf16 %v349_v5, %v349_v5  ;;  %v3739_v13 = vrot.slane %v3738_v28, 4  ;;  %v3414_v5 = vld [vmem:[#allocation2 + $0xb8] sm:$0xf] }
 0x25f   : > { %v649_v34 = vshrl.u32 %v382_v16, 16  ;;  %315 = vst [vmem:[#allocation2 + $0xc8] sm:$0x1] %v314_v8 }
 0x260   : > { %10707 = vst [vmem:[#allocation37_spill] sm:$0xff] %v9407_v41  ;;  %7767 = vmatmul.msk.bf16.gmra.mxu2 %vm937_vm8, %v8082_v19  ;;  %7783 = vmatmul.msk.bf16.gmra.mxu3 %vm937_vm8, %v8082_v19  ;;  %v641_v19 = vshrl.u32 %v381_v10, 16  ;;  %v3753_v41 = vrot.slane %v3751_v3, 5  ;;  %v644_v28 = vshll.u32 %v381_v10, 16  ;;  %v3756_v10 = vshrl.u32 %v3413_v53, 16 }
 0x261   : > { %v651_v54 = vrot.slane %v649_v34, 7 }
 0x262   : > { %v643_v46 = vrot.slane %v641_v19, 7 }
 0x263   : > { %v3025_v9 = vpop.f32.mrf.mxu2  ;;  %v3114_v58 = vpop.f32.mrf.mxu3 }
 0x264   : > { %v3255_v61 = vadd.f32 %v3025_v9, %v9019_v40  ;;  %v3256_v43 = vadd.f32 %v3114_v58, %v9022_v36  ;;  %v9418_v55 = vpop.f32.mrf.mxu0  ;;  %v652_v40 = vshll.u32 %v382_v16, 16  ;;  %v3744_v36 = vsel %vm8588_vm1, %v3739_v13, %v9403_v24 }
 0x265   : > { %v9420_v37 = vpop.f32.mrf.mxu1  ;;  %v646_v9 = vor.u32 %v644_v28, %v643_v46  ;;  %v647_v31 = vrot.slane %v643_v46, 4  ;;  %v3759_v16 = vshll.u32 %v3413_v53, 16  ;;  %v813_v19 = vld [vmem:[#allocation2 + $0xc0] sm:$0xf]  ;;  %v3765_v24 = vshll.u32 %v3414_v5, 16 }
 0x266   : > { %v654_v3 = vor.u32 %v652_v40, %v651_v54  ;;  %v9430_v58 = vadd.f32 %v9383_v60, %v3255_v61  ;;  %v9435_v34 = vadd.f32 %v9385_v32, %v3256_v43  ;;  %v3769_v13 = vshrl.u32 %v3414_v5, 16 }
 0x267   : > { %7801 = vmatmul.msk.bf16.gmra.mxu0 %vm937_vm8, %v3849_v47  ;;  %v814_v28 = vsel %vm8349_vm10, %v646_v9, %v813_v19  ;;  %v3831_v32 = vunpack.c.l.b16 %v3744_v36  ;;  %v3758_v5 = vrot.slane %v3756_v10, 4  ;;  %v3761_v4 = vrot.slane %v3759_v16, 5 }
 0x268   : > { %7817 = vmatmul.msk.bf16.gmra.mxu1 %vm937_vm8, %v3849_v47  ;;  %v3754_v47 = vsel %vm8588_vm1, %v3749_v38, %v3753_v41  ;;  %v655_v17 = vsel %vm8341_vm9, %v647_v31, %v654_v3  ;;  %815 = vst [vmem:[#allocation2 + $0xc0] sm:$0xf] %v814_v28  ;;  %v8083_v38 = vld [vmem:[#allocation2 + $0x9c] sm:$0xff]  ;;  %v656_v31 = vrot.slane %v651_v54, 4  ;;  %v3767_v3 = vrot.slane %v3765_v24, 5 }
 0x269   : > { %816 = vst.msk [vmem:[#allocation2 + $0xc4] sm:$0xf] %vm197_vm0, %v655_v17  ;;  %v3832_v43 = vunpack.c.l.b16 %v3754_v47  ;;  %v3771_v46 = vrot.slane %v3769_v13, 4  ;;  %v3762_v47 = vor.u32 %v3761_v4, %v3758_v5 }
 0x26b   : > { %v3027_v40 = vpop.f32.mrf.mxu2  ;;  %v3116_v60 = vpop.f32.mrf.mxu3  ;;  %v3850_v54 = vpack.c.b16 %v3832_v43, %v3831_v32  ;;  %v3772_v10 = vor.u32 %v3771_v46, %v3767_v3 }
 0x26c   : > { %v3257_v61 = vadd.f32 %v3027_v40, %v9036_v35  ;;  %v3258_v41 = vadd.f32 %v3116_v60, %v9039_v12  ;;  %v3940_v53 = vpop.f32.mrf.mxu0  ;;  %v3415_v35 = vld [vmem:[#allocation2 + $0xbc] sm:$0x1]  ;;  %v817_v12 = vld [vmem:[#allocation2 + $0xc8] sm:$0x1]  ;;  %v3763_v40 = vrot.slane %v3762_v47, 4 }
 0x26d   : > { %v4029_v8 = vpop.f32.mrf.mxu1  ;;  %v818_v36 = vsel %vm8296_vm3, %v656_v31, %v817_v12  ;;  %v3775_v16 = vshll.u32 %v3415_v35, 16  ;;  %v3773_v60 = vrot.slane %v3772_v10, 4 }
 0x26e   : > { %v9445_v9 = vadd.f32 %v9399_v51, %v3257_v61  ;;  %v9448_v19 = vadd.f32 %v9401_v29, %v3258_v41  ;;  %819 = vst [vmem:[#allocation2 + $0xc8] sm:$0x1] %v818_v36 }
 0x26f   : > { %v3777_v61 = vrot.slane %v3775_v16, 5  ;;  %v3416_v32 = vld [vmem:[#allocation2 + $0xc0] sm:$0xf] }
 0x270   : > { %7768 = vmatmul.msk.bf16.gmra.mxu2 %vm937_vm8, %v8083_v38  ;;  %7784 = vmatmul.msk.bf16.gmra.mxu3 %vm937_vm8, %v8083_v38  ;;  %v3417_v43 = vld [vmem:[#allocation2 + $0xc4] sm:$0xf]  ;;  %v3780_v31 = vshrl.u32 %v3416_v32, 16  ;;  %v3783_v46 = vshll.u32 %v3416_v32, 16 }
 0x271   : > { %v3789_v35 = vshll.u32 %v3417_v43, 16  ;;  %v3793_v12 = vshrl.u32 %v3417_v43, 16 }
 0x273   : > { %v3030_v24 = vpop.f32.mrf.mxu2  ;;  %v3119_v51 = vpop.f32.mrf.mxu3 }
 0x274   : > { %v3259_v13 = vadd.f32 %v3030_v24, %v9058_v22  ;;  %v3260_v29 = vadd.f32 %v3119_v51, %v9061_v18  ;;  %v3943_v17 = vpop.f32.mrf.mxu0  ;;  %v3768_v22 = vsel %vm8588_vm1, %v3763_v40, %v3767_v3  ;;  %v3778_v18 = vsel %vm8588_vm1, %v3773_v60, %v3777_v61 }
 0x275   : > { %v4032_v28 = vpop.f32.mrf.mxu1  ;;  %v3833_v10 = vunpack.c.l.b16 %v3768_v22  ;;  %v3834_v16 = vunpack.c.l.b16 %v3778_v18  ;;  %v3782_v51 = vrot.slane %v3780_v31, 4  ;;  %v3795_v40 = vrot.slane %v3793_v12, 4 }
 0x276   : > { %v9459_v41 = vadd.f32 %v9418_v55, %v3259_v13  ;;  %v9462_v38 = vadd.f32 %v9420_v37, %v3260_v29  ;;  %v8084_v37 = vld [vmem:[#allocation2 + $0xa8] sm:$0xff]  ;;  %v3785_v13 = vrot.slane %v3783_v46, 5  ;;  %v3791_v29 = vrot.slane %v3789_v35, 5 }
 0x277   : > { %7802 = vmatmul.msk.bf16.gmra.mxu0 %vm937_vm8, %v3850_v54  ;;  %v3851_v60 = vpack.c.b16 %v3834_v16, %v3833_v10  ;;  %v8085_v16 = vld [vmem:[#allocation2 + $0xb4] sm:$0xff] }
 0x278   : > { %7818 = vmatmul.msk.bf16.gmra.mxu1 %vm937_vm8, %v3850_v54  ;;  %v3786_v32 = vor.u32 %v3785_v13, %v3782_v51  ;;  %v3796_v43 = vor.u32 %v3795_v40, %v3791_v29 }
 0x27a   : > { %v3787_v46 = vrot.slane %v3786_v32, 4  ;;  %v3797_v35 = vrot.slane %v3796_v43, 4 }
 0x27b   : > { %v3032_v5 = vpop.f32.mrf.mxu2  ;;  %v3121_v4 = vpop.f32.mrf.mxu3 }
 0x27c   : > { %v3261_v55 = vadd.f32 %v3032_v5, %v9074_v26  ;;  %v3262_v36 = vadd.f32 %v3121_v4, %v9077_v14  ;;  %v3945_v47 = vpop.f32.mrf.mxu0  ;;  %v3418_v26 = vld [vmem:[#allocation2 + $0xc8] sm:$0x1] }
 0x27d   : > { %v4034_v54 = vpop.f32.mrf.mxu1  ;;  %v3799_v22 = vshll.u32 %v3418_v26, 16 }
 0x27e   : > { %v9470_v24 = vadd.f32 %v3940_v53, %v3261_v55  ;;  %v9472_v3 = vadd.f32 %v4029_v8, %v3262_v36 }
 0x27f   : > { %v3801_v12 = vrot.slane %v3799_v22, 5 }
 0x280   : > { %7769 = vmatmul.msk.bf16.gmra.mxu2 %vm937_vm8, %v8084_v37  ;;  %7785 = vmatmul.msk.bf16.gmra.mxu3 %vm937_vm8, %v8084_v37 }
 0x283   : > { %v3035_v14 = vpop.f32.mrf.mxu2  ;;  %v3124_v61 = vpop.f32.mrf.mxu3 }
 0x284   : > { %v3263_v53 = vadd.f32 %v3035_v14, %v9094_v15  ;;  %v3264_v8 = vadd.f32 %v3124_v61, %v9097_v56  ;;  %v3948_v18 = vpop.f32.mrf.mxu0  ;;  %v3792_v15 = vsel %vm8588_vm1, %v3787_v46, %v3791_v29  ;;  %v3802_v56 = vsel %vm8588_vm1, %v3797_v35, %v3801_v12  ;;  %v7967_v29 = vld [vmem:[%s10576_s1 + $0x1c] sm:$0xf]  ;;  %v4280_v46 = vld [vmem:[#allocation2 + $0x10] sm:$0xf] }
 0x285   : > { %v4037_v5 = vpop.f32.mrf.mxu1  ;;  %v3836_v13 = vunpack.c.l.b16 %v3802_v56  ;;  %5987 = vst [vmem:[#allocation1] ss:$4 sm:$0xff] %v7967_v29  ;;  %v4279_v56 = vld [vmem:[#allocation2 + $0xc] sm:$0xe] }
 0x286   : > { %v9480_v4 = vadd.f32 %v3943_v17, %v3263_v53  ;;  %v9482_v31 = vadd.f32 %v4032_v28, %v3264_v8  ;;  %v3835_v28 = vunpack.c.l.b16 %v3792_v15 }
 0x287   : > { %7803 = vmatmul.msk.bf16.gmra.mxu0 %vm937_vm8, %v3851_v60 }
 0x288   : > { %7819 = vmatmul.msk.bf16.gmra.mxu1 %vm937_vm8, %v3851_v60 }
 0x28b   : > { %v3037_v55 = vpop.f32.mrf.mxu2  ;;  %v3126_v36 = vpop.f32.mrf.mxu3 }
 0x28c   : > { %v3265_v37 = vadd.f32 %v3037_v55, %v9110_v48  ;;  %v3266_v10 = vadd.f32 %v3126_v36, %v9113_v20  ;;  %v3950_v17 = vpop.f32.mrf.mxu0  ;;  %v3852_v48 = vpack.c.b16 %v3836_v13, %v3835_v28  ;;  %v5988_v53 = vld.sshfl [vmem:[#allocation1] sm:$0xff pattern:$0x73625140]  ;;  %v5989_v8 = vld.sshfl [vmem:[#allocation1 + $0x8] sm:$0xff pattern:$0x73625140] }
 0x28d   : > { %v4039_v51 = vpop.f32.mrf.mxu1  ;;  %v7821_v13 = vrot.slane %v4279_v56, 9  ;;  %v10710_v56 = vld [vmem:[#allocation34_spill] sm:$0xff] }
 0x28e   : > { %v9490_v40 = vadd.f32 %v3945_v47, %v3265_v37  ;;  %v9492_v26 = vadd.f32 %v4034_v54, %v3266_v10  ;;  %v8016_v54 = vld [vmem:[%s10576_s1 + $0x20] sm:$0xf]  ;;  %v4377_v37 = vrot.slane %v4280_v46, 5  ;;  %v4281_v10 = vld [vmem:[#allocation2 + $0x14] sm:$0x1] }
 0x28f   : > { %6671 = vst [vmem:[#allocation1] ss:$4 sm:$0xff] %v8016_v54 }
 0x290   : > { %7770 = vmatmul.msk.bf16.gmra.mxu2 %vm937_vm8, %v8085_v16  ;;  %7786 = vmatmul.msk.bf16.gmra.mxu3 %vm937_vm8, %v8085_v16 }
 0x293   : > { %v3040_v20 = vpop.f32.mrf.mxu2  ;;  %v3129_v60 = vpop.f32.mrf.mxu3 }
 0x294   : > { %v3267_v14 = vadd.f32 %v3040_v20, %v9136_v59  ;;  %v3268_v61 = vadd.f32 %v3129_v60, %v9139_v63  ;;  %v3953_v47 = vpop.f32.mrf.mxu0  ;;  %v6038_v59 = vsel %vm986_vm7, %v5988_v53, 0  ;;  %v6040_v63 = vsel %vm986_vm7, %v5989_v8, 0 }
 0x295   : > { %v4042_v32 = vpop.f32.mrf.mxu1  ;;  %6049 = vmatpush.bf16.msra.mxu2 %v6038_v59  ;;  %6138 = vmatpush.bf16.msra.mxu3 %v6040_v63  ;;  %v4380_v20 = vrot.slane %v4281_v10, 5  ;;  %v4378_v59 = vsel %vm8573_vm13, %v7821_v13, %v4377_v37 }
 0x296   : > { %v9506_v43 = vadd.f32 %v3948_v18, %v3267_v14  ;;  %v9508_v22 = vadd.f32 %v4037_v5, %v3268_v61  ;;  %v8086_v18 = vld [vmem:[#allocation2 + $0xc0] sm:$0xff]  ;;  %v6672_v29 = vld.sshfl [vmem:[#allocation1] sm:$0xff pattern:$0x73625140] }
 0x297   : > { %7804 = vmatmul.msk.bf16.gmra.mxu0 %vm937_vm8, %v3852_v48  ;;  %v8087_v14 = vld [vmem:[#allocation2 + $0x18] sm:$0xff] }
 0x298   : > { %7820 = vmatmul.msk.bf16.gmra.mxu1 %vm937_vm8, %v3852_v48  ;;  %v6673_v48 = vld.sshfl [vmem:[#allocation1 + $0x8] sm:$0xff pattern:$0x73625140] }
 0x299   : > { %v6724_v60 = vsel %vm986_vm7, %v6673_v48, 0 }
 0x29a   : > { %6822 = vmatpush.bf16.msra.mxu1 %v6724_v60 }
 0x29b   : > { %v3042_v35 = vpop.f32.mrf.mxu2  ;;  %v3131_v12 = vpop.f32.mrf.mxu3 }
 0x29c   : > { %v3269_v55 = vadd.f32 %v3042_v35, %v9150_v49  ;;  %v3270_v36 = vadd.f32 %v3131_v12, %v9153_v0  ;;  %v3955_v15 = vpop.f32.mrf.mxu0  ;;  %v4379_v49 = vrot.slane %v4377_v37, 4  ;;  %v6722_v0 = vsel %vm986_vm7, %v6672_v29, 0 }
 0x29d   : > { %v4044_v5 = vpop.f32.mrf.mxu1  ;;  %6733 = vmatpush.bf16.msra.mxu0 %v6722_v0  ;;  %v4489_v12 = vunpack.c.l.b16 %v4378_v59  ;;  %v10712_v59 = vld [vmem:[#allocation38_spill] sm:$0xff] }
 0x29e   : > { %v9514_v16 = vadd.f32 %v3950_v17, %v3269_v55  ;;  %v9516_v28 = vadd.f32 %v4039_v51, %v3270_v36  ;;  %v4381_v63 = vsel %vm8573_vm13, %v4379_v49, %v4380_v20  ;;  %v4283_v55 = vld [vmem:[#allocation2 + $0x1c] sm:$0xf]  ;;  %v4282_v49 = vld [vmem:[#allocation2 + $0x18] sm:$0xe]  ;;  %v4284_v20 = vld [vmem:[#allocation2 + $0x20] sm:$0x1] }
 0x29f   : > { %v4384_v48 = vrot.slane %v4283_v55, 5 }
 0x2a0   : > { %7771 = vmatmul.msk.bf16.gmra.mxu2 %vm937_vm8, %v8086_v18  ;;  %7787 = vmatmul.msk.bf16.gmra.mxu3 %vm937_vm8, %v8086_v18 }
 0x2a1   : > { %v4386_v60 = vrot.slane %v4384_v48, 4 }
 0x2a3   : > { %v3045_v17 = vpop.f32.mrf.mxu2  ;;  %v3134_v61 = vpop.f32.mrf.mxu3 }
 0x2a4   : > { %v3271_v51 = vadd.f32 %v3045_v17, %v9164_v39  ;;  %v3272_v54 = vadd.f32 %v3134_v61, %v9167_v44  ;;  %v3958_v53 = vpop.f32.mrf.mxu0  ;;  %v4490_v39 = vunpack.c.l.b16 %v4381_v63 }
 0x2a5   : > { %v4047_v8 = vpop.f32.mrf.mxu1 }
 0x2a6   : > { %v9530_v46 = vadd.f32 %v3953_v47, %v3271_v51  ;;  %v9532_v35 = vadd.f32 %v4042_v32, %v3272_v54  ;;  %v4521_v10 = vpack.c.b16 %v4490_v39, %v4489_v12  ;;  %v7822_v32 = vrot.slane %v4282_v49, 9  ;;  %v10711_v51 = vld [vmem:[#allocation35_spill] sm:$0xff] }
 0x2a7   : > { %7935 = vmatmul.msk.bf16.vlgmr.msrb.gmra.mxu0 %vm937_vm8, %v8087_v14  ;;  %v10715_v49 = vld [vmem:[#allocation39_spill] sm:$0xff] }
 0x2a8   : > { %7951 = vmatmul.msk.bf16.vlgmr.msrb.gmra.mxu1 %vm937_vm8, %v8087_v14  ;;  %v4387_v14 = vrot.slane %v4284_v20, 5 }
 0x2ab   : > { %v3047_v44 = vpop.f32.mrf.mxu2  ;;  %v3136_v36 = vpop.f32.mrf.mxu3 }
 0x2ac   : > { %v3273_v18 = vadd.f32 %v3047_v44, %v9175_v62  ;;  %v3274_v37 = vadd.f32 %v3136_v36, %v10710_v56  ;;  %v3960_v13 = vpop.f32.mrf.mxu0  ;;  %v8088_v62 = vld [vmem:[#allocation2 + $0x24] sm:$0xff] }
 0x2ad   : > { %v4049_v29 = vpop.f32.mrf.mxu1  ;;  %v4286_v56 = vld [vmem:[#allocation2 + $0x28] sm:$0xf] }
 0x2ae   : > { %v9536_v0 = vadd.f32 %v3955_v15, %v3273_v18  ;;  %v9538_v47 = vadd.f32 %v4044_v5, %v3274_v37  ;;  %v4385_v15 = vsel %vm8573_vm13, %v7822_v32, %v4384_v48  ;;  %v4388_v5 = vsel %vm8573_vm13, %v4386_v60, %v4387_v14 }
 0x2af   : > { %v4491_v36 = vunpack.c.l.b16 %v4385_v15  ;;  %v4492_v18 = vunpack.c.l.b16 %v4388_v5  ;;  %v4391_v14 = vrot.slane %v4286_v56, 5  ;;  %v8089_v15 = vld [vmem:[#allocation2 + $0x30] sm:$0xff] }
 0x2b0   : > { %7838 = vmatmul.msk.bf16.vlgmr.msrb.gmra.mxu2 %vm937_vm8, %v4521_v10  ;;  %7854 = vmatmul.msk.bf16.vlgmr.msrb.gmra.mxu3 %vm937_vm8, %v4521_v10 }
 0x2b1   : > { %v4522_v32 = vpack.c.b16 %v4492_v18, %v4491_v36  ;;  %v10719_v36 = vld [vmem:[#allocation43_spill] sm:$0xff] }
 0x2b3   : > { %v3050_v17 = vpop.f32.mrf.mxu2  ;;  %v3139_v61 = vpop.f32.mrf.mxu3 }
 0x2b4   : > { %v3275_v54 = vadd.f32 %v3050_v17, %v10711_v51  ;;  %v3276_v63 = vadd.f32 %v3139_v61, %v10712_v59  ;;  %v3963_v12 = vpop.f32.mrf.mxu0  ;;  %v10716_v17 = vld [vmem:[#allocation42_spill] sm:$0xff]  ;;  %v4285_v51 = vld [vmem:[#allocation2 + $0x24] sm:$0xe]  ;;  %v4287_v59 = vld [vmem:[#allocation2 + $0x2c] sm:$0x1] }
 0x2b5   : > { %v4052_v39 = vpop.f32.mrf.mxu1 }
 0x2b6   : > { %v9550_v55 = vadd.f32 %v3958_v53, %v3275_v54  ;;  %v9552_v44 = vadd.f32 %v4047_v8, %v3276_v63  ;;  %v7823_v8 = vrot.slane %v4285_v51, 9  ;;  %v4393_v54 = vrot.slane %v4391_v14, 4 }
 0x2b7   : > { %7936 = vmatmul.msk.bf16.gmra.mxu0 %vm937_vm8, %v8088_v62  ;;  %v4394_v63 = vrot.slane %v4287_v59, 5  ;;  %v4289_v59 = vld [vmem:[#allocation2 + $0x34] sm:$0xf] }
 0x2b8   : > { %7952 = vmatmul.msk.bf16.gmra.mxu1 %vm937_vm8, %v8088_v62  ;;  %10713 = vst [vmem:[#allocation40_spill] sm:$0xff] %v9550_v55  ;;  %v4290_v55 = vld [vmem:[#allocation2 + $0x38] sm:$0x1] }
 0x2b9   : > { %10714 = vst [vmem:[#allocation41_spill] sm:$0xff] %v9552_v44  ;;  %v4288_v44 = vld [vmem:[#allocation2 + $0x30] sm:$0xe] }
 0x2bb   : > { %v3052_v37 = vpop.f32.mrf.mxu2  ;;  %v3141_v10 = vpop.f32.mrf.mxu3 }
 0x2bc   : > { %v3277_v20 = vadd.f32 %v3052_v37, %v10715_v49  ;;  %v3278_v48 = vadd.f32 %v3141_v10, %v10716_v17  ;;  %v3965_v61 = vpop.f32.mrf.mxu0  ;;  %v10720_v10 = vld [vmem:[#allocation10_spill] sm:$0xff] }
 0x2bd   : > { %v4054_v60 = vpop.f32.mrf.mxu1 }
 0x2be   : > { %v9556_v62 = vadd.f32 %v3960_v13, %v3277_v20  ;;  %v9558_v53 = vadd.f32 %v4049_v29, %v3278_v48  ;;  %v4392_v13 = vsel %vm8573_vm13, %v7823_v8, %v4391_v14  ;;  %v4395_v29 = vsel %vm8573_vm13, %v4393_v54, %v4394_v63 }
 0x2bf   : > { %v4494_v51 = vunpack.c.l.b16 %v4395_v29  ;;  %v4398_v63 = vrot.slane %v4289_v59, 5 }
 0x2c0   : > { %10717 = vst [vmem:[#allocation44_spill] sm:$0xff] %v9556_v62  ;;  %7839 = vmatmul.msk.bf16.gmra.mxu2 %vm937_vm8, %v4522_v32  ;;  %7855 = vmatmul.msk.bf16.gmra.mxu3 %vm937_vm8, %v4522_v32  ;;  %v4493_v32 = vunpack.c.l.b16 %v4392_v13  ;;  %v8090_v13 = vld [vmem:[#allocation2 + $0x3c] sm:$0xff] }
 0x2c1   : > { %10718 = vst [vmem:[#allocation45_spill] sm:$0xff] %v9558_v53  ;;  %v10724_v53 = vld [vmem:[#allocation12_spill] sm:$0xff] }
 0x2c2   : > { %v4523_v8 = vpack.c.b16 %v4494_v51, %v4493_v32  ;;  %v10727_v32 = vld [vmem:[#allocation13_spill] sm:$0xff] }
 0x2c3   : > { %v3055_v5 = vpop.f32.mrf.mxu2  ;;  %v3144_v37 = vpop.f32.mrf.mxu3 }
 0x2c4   : > { %v3279_v18 = vadd.f32 %v3055_v5, %v10719_v36  ;;  %v3280_v56 = vadd.f32 %v3144_v37, %v10720_v10  ;;  %v3968_v49 = vpop.f32.mrf.mxu0  ;;  %v10723_v36 = vld [vmem:[#allocation11_spill] sm:$0xff] }
 0x2c5   : > { %v4057_v17 = vpop.f32.mrf.mxu1 }
 0x2c6   : > { %v9570_v20 = vadd.f32 %v3963_v12, %v3279_v18  ;;  %v9572_v48 = vadd.f32 %v4052_v39, %v3280_v56  ;;  %v7824_v39 = vrot.slane %v4288_v44, 9  ;;  %v4400_v18 = vrot.slane %v4398_v63, 4 }
 0x2c7   : > { %7937 = vmatmul.msk.bf16.gmra.mxu0 %vm937_vm8, %v8089_v15  ;;  %v4401_v56 = vrot.slane %v4290_v55, 5 }
 0x2c8   : > { %7953 = vmatmul.msk.bf16.gmra.mxu1 %vm937_vm8, %v8089_v15  ;;  %10721 = vst [vmem:[#allocation46_spill] sm:$0xff] %v9570_v20  ;;  %v4293_v20 = vld [vmem:[#allocation2 + $0x44] sm:$0x1] }
 0x2c9   : > { %10722 = vst [vmem:[#allocation47_spill] sm:$0xff] %v9572_v48  ;;  %v4291_v48 = vld [vmem:[#allocation2 + $0x3c] sm:$0xe] }
 0x2cb   : > { %v3057_v5 = vpop.f32.mrf.mxu2  ;;  %v3146_v37 = vpop.f32.mrf.mxu3 }
 0x2cc   : > { %v3281_v10 = vadd.f32 %v3057_v5, %v10723_v36  ;;  %v3282_v14 = vadd.f32 %v3146_v37, %v10724_v53  ;;  %v3970_v62 = vpop.f32.mrf.mxu0  ;;  %v10728_v5 = vld [vmem:[#allocation14_spill] sm:$0xff] }
 0x2cd   : > { %v4059_v54 = vpop.f32.mrf.mxu1 }
 0x2ce   : > { %v9576_v15 = vadd.f32 %v3965_v61, %v3281_v10  ;;  %v9578_v12 = vadd.f32 %v4054_v60, %v3282_v14  ;;  %v4399_v61 = vsel %vm8573_vm13, %v7824_v39, %v4398_v63  ;;  %v4402_v60 = vsel %vm8573_vm13, %v4400_v18, %v4401_v56 }
 0x2cf   : > { %v4495_v10 = vunpack.c.l.b16 %v4399_v61  ;;  %v4496_v14 = vunpack.c.l.b16 %v4402_v60  ;;  %v8091_v61 = vld [vmem:[#allocation2 + $0x48] sm:$0xff] }
 0x2d0   : > { %10725 = vst [vmem:[#allocation8_spill] sm:$0xff] %v9576_v15  ;;  %7840 = vmatmul.msk.bf16.gmra.mxu2 %vm937_vm8, %v4523_v8  ;;  %7856 = vmatmul.msk.bf16.gmra.mxu3 %vm937_vm8, %v4523_v8  ;;  %v4292_v8 = vld [vmem:[#allocation2 + $0x40] sm:$0xf] }
 0x2d1   : > { %10726 = vst [vmem:[#allocation9_spill] sm:$0xff] %v9578_v12  ;;  %v10732_v12 = vld [vmem:[#allocation16_spill] sm:$0xff]  ;;  %v4524_v39 = vpack.c.b16 %v4496_v14, %v4495_v10  ;;  %v4405_v56 = vrot.slane %v4292_v8, 5  ;;  %v10735_v10 = vld [vmem:[#allocation17_spill] sm:$0xff] }
 0x2d3   : > { %v3060_v29 = vpop.f32.mrf.mxu2  ;;  %v3149_v53 = vpop.f32.mrf.mxu3 }
 0x2d4   : > { %v3283_v51 = vadd.f32 %v3060_v29, %v10727_v32  ;;  %v3284_v59 = vadd.f32 %v3149_v53, %v10728_v5  ;;  %v3973_v37 = vpop.f32.mrf.mxu0  ;;  %v10731_v32 = vld [vmem:[#allocation15_spill] sm:$0xff] }
 0x2d5   : > { %v4062_v36 = vpop.f32.mrf.mxu1 }
 0x2d6   : > { %v9590_v55 = vadd.f32 %v3968_v49, %v3283_v51  ;;  %v9592_v44 = vadd.f32 %v4057_v17, %v3284_v59  ;;  %v7825_v17 = vrot.slane %v4291_v48, 9  ;;  %v4407_v51 = vrot.slane %v4405_v56, 4 }
 0x2d7   : > { %7938 = vmatmul.msk.bf16.gmra.mxu0 %vm937_vm8, %v8090_v13  ;;  %v4408_v59 = vrot.slane %v4293_v20, 5 }
 0x2d8   : > { %7954 = vmatmul.msk.bf16.gmra.mxu1 %vm937_vm8, %v8090_v13  ;;  %10729 = vst [vmem:[#allocation34_spill] sm:$0xff] %v9590_v55  ;;  %v4296_v55 = vld [vmem:[#allocation2 + $0x50] sm:$0x1] }
 0x2d9   : > { %10730 = vst [vmem:[#allocation35_spill] sm:$0xff] %v9592_v44  ;;  %v4294_v44 = vld [vmem:[#allocation2 + $0x48] sm:$0xe] }
 0x2db   : > { %v3062_v29 = vpop.f32.mrf.mxu2  ;;  %v3151_v53 = vpop.f32.mrf.mxu3 }
 0x2dc   : > { %v3285_v5 = vadd.f32 %v3062_v29, %v10731_v32  ;;  %v3286_v63 = vadd.f32 %v3151_v53, %v10732_v12  ;;  %v3975_v15 = vpop.f32.mrf.mxu0  ;;  %v10736_v29 = vld [vmem:[#allocation18_spill] sm:$0xff] }
 0x2dd   : > { %v4064_v18 = vpop.f32.mrf.mxu1 }
 0x2de   : > { %v9596_v13 = vadd.f32 %v3970_v62, %v3285_v5  ;;  %v9598_v49 = vadd.f32 %v4059_v54, %v3286_v63  ;;  %v4406_v62 = vsel %vm8573_vm13, %v7825_v17, %v4405_v56  ;;  %v4409_v54 = vsel %vm8573_vm13, %v4407_v51, %v4408_v59 }
 0x2df   : > { %v4497_v5 = vunpack.c.l.b16 %v4406_v62  ;;  %v4498_v63 = vunpack.c.l.b16 %v4409_v54  ;;  %v8092_v62 = vld [vmem:[#allocation2 + $0x54] sm:$0xff] }
 0x2e0   : > { %10733 = vst [vmem:[#allocation38_spill] sm:$0xff] %v9596_v13  ;;  %7841 = vmatmul.msk.bf16.gmra.mxu2 %vm937_vm8, %v4524_v39  ;;  %7857 = vmatmul.msk.bf16.gmra.mxu3 %vm937_vm8, %v4524_v39  ;;  %v4295_v39 = vld [vmem:[#allocation2 + $0x4c] sm:$0xf] }
 0x2e1   : > { %10734 = vst [vmem:[#allocation39_spill] sm:$0xff] %v9598_v49  ;;  %v10740_v49 = vld [vmem:[#allocation20_spill] sm:$0xff]  ;;  %v4525_v17 = vpack.c.b16 %v4498_v63, %v4497_v5  ;;  %v4412_v59 = vrot.slane %v4295_v39, 5  ;;  %v10743_v5 = vld [vmem:[#allocation21_spill] sm:$0xff] }
 0x2e3   : > { %v3065_v60 = vpop.f32.mrf.mxu2  ;;  %v3154_v12 = vpop.f32.mrf.mxu3 }
 0x2e4   : > { %v3287_v14 = vadd.f32 %v3065_v60, %v10735_v10  ;;  %v3288_v8 = vadd.f32 %v3154_v12, %v10736_v29  ;;  %v3978_v53 = vpop.f32.mrf.mxu0  ;;  %v10739_v10 = vld [vmem:[#allocation19_spill] sm:$0xff] }
 0x2e5   : > { %v4067_v32 = vpop.f32.mrf.mxu1 }
 0x2e6   : > { %v9610_v20 = vadd.f32 %v3973_v37, %v3287_v14  ;;  %v9612_v48 = vadd.f32 %v4062_v36, %v3288_v8  ;;  %v7826_v36 = vrot.slane %v4294_v44, 9  ;;  %v4414_v14 = vrot.slane %v4412_v59, 4 }
 0x2e7   : > { %7939 = vmatmul.msk.bf16.gmra.mxu0 %vm937_vm8, %v8091_v61  ;;  %v4415_v8 = vrot.slane %v4296_v55, 5 }
 0x2e8   : > { %7955 = vmatmul.msk.bf16.gmra.mxu1 %vm937_vm8, %v8091_v61  ;;  %10737 = vst [vmem:[#allocation42_spill] sm:$0xff] %v9610_v20  ;;  %v4299_v20 = vld [vmem:[#allocation2 + $0x5c] sm:$0x1] }
 0x2e9   : > { %10738 = vst [vmem:[#allocation43_spill] sm:$0xff] %v9612_v48  ;;  %v4297_v48 = vld [vmem:[#allocation2 + $0x54] sm:$0xe] }
 0x2eb   : > { %v3067_v60 = vpop.f32.mrf.mxu2  ;;  %v3156_v12 = vpop.f32.mrf.mxu3 }
 0x2ec   : > { %v3289_v29 = vadd.f32 %v3067_v60, %v10739_v10  ;;  %v3290_v56 = vadd.f32 %v3156_v12, %v10740_v49  ;;  %v3980_v13 = vpop.f32.mrf.mxu0  ;;  %v10744_v60 = vld [vmem:[#allocation22_spill] sm:$0xff] }
 0x2ed   : > { %v4069_v51 = vpop.f32.mrf.mxu1 }
 0x2ee   : > { %v9616_v61 = vadd.f32 %v3975_v15, %v3289_v29  ;;  %v9618_v37 = vadd.f32 %v4064_v18, %v3290_v56  ;;  %v4413_v15 = vsel %vm8573_vm13, %v7826_v36, %v4412_v59  ;;  %v4416_v18 = vsel %vm8573_vm13, %v4414_v14, %v4415_v8 }
 0x2ef   : > { %v4499_v29 = vunpack.c.l.b16 %v4413_v15  ;;  %v4500_v56 = vunpack.c.l.b16 %v4416_v18  ;;  %v8093_v15 = vld [vmem:[#allocation2 + $0x60] sm:$0xff] }
 0x2f0   : > { %10741 = vst [vmem:[#allocation10_spill] sm:$0xff] %v9616_v61  ;;  %7842 = vmatmul.msk.bf16.gmra.mxu2 %vm937_vm8, %v4525_v17  ;;  %7858 = vmatmul.msk.bf16.gmra.mxu3 %vm937_vm8, %v4525_v17  ;;  %v4298_v17 = vld [vmem:[#allocation2 + $0x58] sm:$0xf] }
 0x2f1   : > { %10742 = vst [vmem:[#allocation11_spill] sm:$0xff] %v9618_v37  ;;  %v10748_v37 = vld [vmem:[#allocation24_spill] sm:$0xff]  ;;  %v4526_v36 = vpack.c.b16 %v4500_v56, %v4499_v29  ;;  %v4419_v8 = vrot.slane %v4298_v17, 5  ;;  %v10751_v29 = vld [vmem:[#allocation25_spill] sm:$0xff] }
 0x2f3   : > { %v3070_v54 = vpop.f32.mrf.mxu2  ;;  %v3159_v49 = vpop.f32.mrf.mxu3 }
 0x2f4   : > { %v3291_v63 = vadd.f32 %v3070_v54, %v10743_v5  ;;  %v3292_v39 = vadd.f32 %v3159_v49, %v10744_v60  ;;  %v3983_v12 = vpop.f32.mrf.mxu0  ;;  %v10747_v5 = vld [vmem:[#allocation23_spill] sm:$0xff] }
 0x2f5   : > { %v4072_v10 = vpop.f32.mrf.mxu1 }
 0x2f6   : > { %v9630_v55 = vadd.f32 %v3978_v53, %v3291_v63  ;;  %v9632_v44 = vadd.f32 %v4067_v32, %v3292_v39  ;;  %v7827_v32 = vrot.slane %v4297_v48, 9  ;;  %v4421_v63 = vrot.slane %v4419_v8, 4 }
 0x2f7   : > { %7940 = vmatmul.msk.bf16.gmra.mxu0 %vm937_vm8, %v8092_v62  ;;  %v4422_v39 = vrot.slane %v4299_v20, 5 }
 0x2f8   : > { %7956 = vmatmul.msk.bf16.gmra.mxu1 %vm937_vm8, %v8092_v62  ;;  %10745 = vst [vmem:[#allocation12_spill] sm:$0xff] %v9630_v55  ;;  %v4302_v55 = vld [vmem:[#allocation2 + $0x68] sm:$0x1] }
 0x2f9   : > { %10746 = vst [vmem:[#allocation13_spill] sm:$0xff] %v9632_v44  ;;  %v4300_v44 = vld [vmem:[#allocation2 + $0x60] sm:$0xe] }
 0x2fb   : > { %v3072_v54 = vpop.f32.mrf.mxu2  ;;  %v3161_v49 = vpop.f32.mrf.mxu3 }
 0x2fc   : > { %v3293_v60 = vadd.f32 %v3072_v54, %v10747_v5  ;;  %v3294_v59 = vadd.f32 %v3161_v49, %v10748_v37  ;;  %v3985_v61 = vpop.f32.mrf.mxu0  ;;  %v10752_v54 = vld [vmem:[#allocation26_spill] sm:$0xff] }
 0x2fd   : > { %v4074_v14 = vpop.f32.mrf.mxu1 }
 0x2fe   : > { %v9636_v62 = vadd.f32 %v3980_v13, %v3293_v60  ;;  %v9638_v53 = vadd.f32 %v4069_v51, %v3294_v59  ;;  %v4420_v13 = vsel %vm8573_vm13, %v7827_v32, %v4419_v8  ;;  %v4423_v51 = vsel %vm8573_vm13, %v4421_v63, %v4422_v39 }
 0x2ff   : > { %v4501_v60 = vunpack.c.l.b16 %v4420_v13  ;;  %v4502_v59 = vunpack.c.l.b16 %v4423_v51  ;;  %v8094_v13 = vld [vmem:[#allocation2 + $0x6c] sm:$0xff] }
 0x300   : > { %10749 = vst [vmem:[#allocation14_spill] sm:$0xff] %v9636_v62  ;;  %7843 = vmatmul.msk.bf16.gmra.mxu2 %vm937_vm8, %v4526_v36  ;;  %7859 = vmatmul.msk.bf16.gmra.mxu3 %vm937_vm8, %v4526_v36  ;;  %v4301_v36 = vld [vmem:[#allocation2 + $0x64] sm:$0xf] }
 0x301   : > { %10750 = vst [vmem:[#allocation15_spill] sm:$0xff] %v9638_v53  ;;  %v10756_v53 = vld [vmem:[#allocation28_spill] sm:$0xff]  ;;  %v4527_v32 = vpack.c.b16 %v4502_v59, %v4501_v60  ;;  %v4426_v39 = vrot.slane %v4301_v36, 5  ;;  %v10759_v60 = vld [vmem:[#allocation29_spill] sm:$0xff] }
 0x303   : > { %v3075_v18 = vpop.f32.mrf.mxu2  ;;  %v3164_v37 = vpop.f32.mrf.mxu3 }
 0x304   : > { %v3295_v56 = vadd.f32 %v3075_v18, %v10751_v29  ;;  %v3296_v17 = vadd.f32 %v3164_v37, %v10752_v54  ;;  %v3988_v49 = vpop.f32.mrf.mxu0  ;;  %v10755_v29 = vld [vmem:[#allocation27_spill] sm:$0xff] }
 0x305   : > { %v4077_v5 = vpop.f32.mrf.mxu1 }
 0x306   : > { %v9650_v20 = vadd.f32 %v3983_v12, %v3295_v56  ;;  %v9652_v48 = vadd.f32 %v4072_v10, %v3296_v17  ;;  %v7828_v10 = vrot.slane %v4300_v44, 9  ;;  %v4428_v56 = vrot.slane %v4426_v39, 4 }
 0x307   : > { %7941 = vmatmul.msk.bf16.gmra.mxu0 %vm937_vm8, %v8093_v15  ;;  %v4429_v17 = vrot.slane %v4302_v55, 5 }
 0x308   : > { %7957 = vmatmul.msk.bf16.gmra.mxu1 %vm937_vm8, %v8093_v15  ;;  %10753 = vst [vmem:[#allocation16_spill] sm:$0xff] %v9650_v20  ;;  %v4305_v20 = vld [vmem:[#allocation2 + $0x74] sm:$0x1] }
 0x309   : > { %10754 = vst [vmem:[#allocation17_spill] sm:$0xff] %v9652_v48  ;;  %v4303_v48 = vld [vmem:[#allocation2 + $0x6c] sm:$0xe] }
 0x30b   : > { %v3077_v18 = vpop.f32.mrf.mxu2  ;;  %v3166_v37 = vpop.f32.mrf.mxu3 }
 0x30c   : > { %v3297_v54 = vadd.f32 %v3077_v18, %v10755_v29  ;;  %v3298_v8 = vadd.f32 %v3166_v37, %v10756_v53  ;;  %v3990_v62 = vpop.f32.mrf.mxu0  ;;  %v10760_v18 = vld [vmem:[#allocation30_spill] sm:$0xff] }
 0x30d   : > { %v4079_v63 = vpop.f32.mrf.mxu1 }
 0x30e   : > { %v9656_v15 = vadd.f32 %v3985_v61, %v3297_v54  ;;  %v9658_v12 = vadd.f32 %v4074_v14, %v3298_v8  ;;  %v4427_v61 = vsel %vm8573_vm13, %v7828_v10, %v4426_v39  ;;  %v4430_v14 = vsel %vm8573_vm13, %v4428_v56, %v4429_v17 }
 0x30f   : > { %v4503_v54 = vunpack.c.l.b16 %v4427_v61  ;;  %v4504_v8 = vunpack.c.l.b16 %v4430_v14  ;;  %v8095_v61 = vld [vmem:[#allocation2 + $0x78] sm:$0xff] }
 0x310   : > { %10757 = vst [vmem:[#allocation18_spill] sm:$0xff] %v9656_v15  ;;  %7844 = vmatmul.msk.bf16.gmra.mxu2 %vm937_vm8, %v4527_v32  ;;  %7860 = vmatmul.msk.bf16.gmra.mxu3 %vm937_vm8, %v4527_v32  ;;  %v4304_v32 = vld [vmem:[#allocation2 + $0x70] sm:$0xf] }
 0x311   : > { %10758 = vst [vmem:[#allocation19_spill] sm:$0xff] %v9658_v12  ;;  %v10762_v12 = vld [vmem:[#allocation32_spill] sm:$0xff]  ;;  %v4528_v10 = vpack.c.b16 %v4504_v8, %v4503_v54  ;;  %v4433_v17 = vrot.slane %v4304_v32, 5  ;;  %v10765_v54 = vld [vmem:[#allocation33_spill] sm:$0xff] }
 0x313   : > { %v3080_v51 = vpop.f32.mrf.mxu2  ;;  %v3169_v53 = vpop.f32.mrf.mxu3 }
 0x314   : > { %v3299_v59 = vadd.f32 %v3080_v51, %v10759_v60  ;;  %v3300_v36 = vadd.f32 %v3169_v53, %v10760_v18  ;;  %v3993_v37 = vpop.f32.mrf.mxu0  ;;  %v10761_v60 = vld [vmem:[#allocation31_spill] sm:$0xff] }
 0x315   : > { %v4082_v29 = vpop.f32.mrf.mxu1 }
 0x316   : > { %v9670_v55 = vadd.f32 %v3988_v49, %v3299_v59  ;;  %v9672_v44 = vadd.f32 %v4077_v5, %v3300_v36  ;;  %v7829_v5 = vrot.slane %v4303_v48, 9  ;;  %v4435_v59 = vrot.slane %v4433_v17, 4 }
 0x317   : > { %7942 = vmatmul.msk.bf16.gmra.mxu0 %vm937_vm8, %v8094_v13  ;;  %v4436_v36 = vrot.slane %v4305_v20, 5 }
 0x318   : > { %7958 = vmatmul.msk.bf16.gmra.mxu1 %vm937_vm8, %v8094_v13 }
 0x31b   : > { %v3082_v51 = vpop.f32.mrf.mxu2  ;;  %v3171_v53 = vpop.f32.mrf.mxu3 }
 0x31c   : > { %v3301_v18 = vadd.f32 %v3082_v51, %v10761_v60  ;;  %v3302_v39 = vadd.f32 %v3171_v53, %v10762_v12  ;;  %v3995_v15 = vpop.f32.mrf.mxu0  ;;  %v10766_v51 = vld [vmem:[#allocation36_spill] sm:$0xff] }
 0x31d   : > { %v4084_v56 = vpop.f32.mrf.mxu1 }
 0x31e   : > { %v9676_v13 = vadd.f32 %v3990_v62, %v3301_v18  ;;  %v9678_v49 = vadd.f32 %v4079_v63, %v3302_v39  ;;  %v4434_v62 = vsel %vm8573_vm13, %v7829_v5, %v4433_v17  ;;  %v4437_v63 = vsel %vm8573_vm13, %v4435_v59, %v4436_v36 }
 0x31f   : > { %v4505_v18 = vunpack.c.l.b16 %v4434_v62  ;;  %v4506_v39 = vunpack.c.l.b16 %v4437_v63 }
 0x320   : > { %10763 = vst [vmem:[#allocation20_spill] sm:$0xff] %v9676_v13  ;;  %7845 = vmatmul.msk.bf16.gmra.mxu2 %vm937_vm8, %v4528_v10  ;;  %7861 = vmatmul.msk.bf16.gmra.mxu3 %vm937_vm8, %v4528_v10  ;;  %v4307_v10 = vld [vmem:[#allocation2 + $0x7c] sm:$0xf]  ;;  %v4308_v13 = vld [vmem:[#allocation2 + $0x80] sm:$0x1] }
 0x321   : > { %10764 = vst [vmem:[#allocation21_spill] sm:$0xff] %v9678_v49  ;;  %v4529_v5 = vpack.c.b16 %v4506_v39, %v4505_v18  ;;  %v4440_v36 = vrot.slane %v4307_v10, 5  ;;  %v4306_v49 = vld [vmem:[#allocation2 + $0x78] sm:$0xe] }
 0x323   : > { %v3085_v14 = vpop.f32.mrf.mxu2  ;;  %v3174_v12 = vpop.f32.mrf.mxu3 }
 0x324   : > { %v3303_v8 = vadd.f32 %v3085_v14, %v10765_v54  ;;  %v3304_v32 = vadd.f32 %v3174_v12, %v10766_v51  ;;  %v5143_v53 = vpop.f32.mrf.mxu0 }
 0x325   : > { %v5232_v60 = vpop.f32.mrf.mxu1 }
 0x326   : > { %v9690_v20 = vadd.f32 %v3993_v37, %v3303_v8  ;;  %v9692_v48 = vadd.f32 %v4082_v29, %v3304_v32  ;;  %v7830_v29 = vrot.slane %v4306_v49, 9  ;;  %v4442_v8 = vrot.slane %v4440_v36, 4 }
 0x327   : > { %7943 = vmatmul.msk.bf16.gmra.mxu0 %vm937_vm8, %v8095_v61  ;;  %v4443_v32 = vrot.slane %v4308_v13, 5 }
 0x328   : > { %7959 = vmatmul.msk.bf16.gmra.mxu1 %vm937_vm8, %v8095_v61 }
 0x32b   : > { %v3087_v14 = vpop.f32.mrf.mxu2  ;;  %v3176_v12 = vpop.f32.mrf.mxu3 }
 0x32c   : > { %v3305_v54 = vadd.f32 %v3087_v14, %v9335_v33  ;;  %v3306_v17 = vadd.f32 %v3176_v12, %v9337_v57  ;;  %v5145_v51 = vpop.f32.mrf.mxu0  ;;  %v8096_v33 = vld [vmem:[#allocation2 + $0x84] sm:$0xff] }
 0x32d   : > { %v5234_v59 = vpop.f32.mrf.mxu1  ;;  %v4310_v12 = vld [vmem:[#allocation2 + $0x88] sm:$0xf] }
 0x32e   : > { %v9696_v61 = vadd.f32 %v3995_v15, %v3305_v54  ;;  %v9698_v37 = vadd.f32 %v4084_v56, %v3306_v17  ;;  %v4441_v15 = vsel %vm8573_vm13, %v7830_v29, %v4440_v36  ;;  %v4444_v56 = vsel %vm8573_vm13, %v4442_v8, %v4443_v32 }
 0x32f   : > { %v4507_v14 = vunpack.c.l.b16 %v4441_v15  ;;  %v4447_v32 = vrot.slane %v4310_v12, 5 }
 0x330   : > { %7846 = vmatmul.msk.bf16.gmra.mxu2 %vm937_vm8, %v4529_v5  ;;  %7862 = vmatmul.msk.bf16.gmra.mxu3 %vm937_vm8, %v4529_v5 }
 0x333   : > { %v4602_v62 = vpop.f32.mrf.mxu2  ;;  %v4691_v57 = vpop.f32.mrf.mxu3 }
 0x334   : > { %v4835_v63 = vadd.f32 %v4602_v62, %v9345_v45  ;;  %v4836_v18 = vadd.f32 %v4691_v57, %v9347_v7  ;;  %v5148_v39 = vpop.f32.mrf.mxu0  ;;  %v4508_v45 = vunpack.c.l.b16 %v4444_v56  ;;  %v4309_v62 = vld [vmem:[#allocation2 + $0x84] sm:$0xe]  ;;  %v4311_v57 = vld [vmem:[#allocation2 + $0x8c] sm:$0x1] }
 0x335   : > { %v5237_v10 = vpop.f32.mrf.mxu1 }
 0x336   : > { %v9710_v13 = vadd.f32 %v5143_v53, %v4835_v63  ;;  %v9712_v49 = vadd.f32 %v5232_v60, %v4836_v18  ;;  %v4530_v36 = vpack.c.b16 %v4508_v45, %v4507_v14  ;;  %v7831_v60 = vrot.slane %v4309_v62, 9 }
 0x337   : > { %7944 = vmatmul.msk.bf16.gmra.mxu0 %vm937_vm8, %v8096_v33  ;;  %v4449_v63 = vrot.slane %v4447_v32, 4  ;;  %v4450_v18 = vrot.slane %v4311_v57, 5 }
 0x338   : > { %7960 = vmatmul.msk.bf16.gmra.mxu1 %vm937_vm8, %v8096_v33 }
 0x33b   : > { %v4604_v7 = vpop.f32.mrf.mxu2  ;;  %v4693_v54 = vpop.f32.mrf.mxu3 }
 0x33c   : > { %v4837_v17 = vadd.f32 %v4604_v7, %v9355_v52  ;;  %v4838_v5 = vadd.f32 %v4693_v54, %v9357_v11  ;;  %v5150_v29 = vpop.f32.mrf.mxu0  ;;  %v8097_v52 = vld [vmem:[#allocation2 + $0x90] sm:$0xff] }
 0x33d   : > { %v5239_v8 = vpop.f32.mrf.mxu1 }
 0x33e   : > { %v9716_v33 = vadd.f32 %v5145_v51, %v4837_v17  ;;  %v9718_v53 = vadd.f32 %v5234_v59, %v4838_v5  ;;  %v4448_v51 = vsel %vm8573_vm13, %v7831_v60, %v4447_v32  ;;  %v4451_v59 = vsel %vm8573_vm13, %v4449_v63, %v4450_v18  ;;  %v4313_v5 = vld [vmem:[#allocation2 + $0x94] sm:$0xf] }
 0x33f   : > { %v4509_v17 = vunpack.c.l.b16 %v4448_v51  ;;  %v4454_v18 = vrot.slane %v4313_v5, 5 }
 0x340   : > { %7847 = vmatmul.msk.bf16.gmra.mxu2 %vm937_vm8, %v4530_v36  ;;  %7863 = vmatmul.msk.bf16.gmra.mxu3 %vm937_vm8, %v4530_v36 }
 0x343   : > { %v4607_v15 = vpop.f32.mrf.mxu2  ;;  %v4696_v11 = vpop.f32.mrf.mxu3 }
 0x344   : > { %v4839_v56 = vadd.f32 %v4607_v15, %v9365_v27  ;;  %v4840_v14 = vadd.f32 %v4696_v11, %v9367_v6  ;;  %v5153_v45 = vpop.f32.mrf.mxu0  ;;  %v4510_v27 = vunpack.c.l.b16 %v4451_v59  ;;  %v4312_v15 = vld [vmem:[#allocation2 + $0x90] sm:$0xe]  ;;  %v4314_v11 = vld [vmem:[#allocation2 + $0x98] sm:$0x1] }
 0x345   : > { %v5242_v12 = vpop.f32.mrf.mxu1 }
 0x346   : > { %v9730_v7 = vadd.f32 %v5148_v39, %v4839_v56  ;;  %v9732_v54 = vadd.f32 %v5237_v10, %v4840_v14  ;;  %v4531_v57 = vpack.c.b16 %v4510_v27, %v4509_v17  ;;  %v7832_v10 = vrot.slane %v4312_v15, 9 }
 0x347   : > { %7945 = vmatmul.msk.bf16.gmra.mxu0 %vm937_vm8, %v8097_v52  ;;  %v4456_v56 = vrot.slane %v4454_v18, 4  ;;  %v4457_v14 = vrot.slane %v4314_v11, 5  ;;  %v10768_v11 = vld [vmem:[#allocation37_spill] sm:$0xff] }
 0x348   : > { %7961 = vmatmul.msk.bf16.gmra.mxu1 %vm937_vm8, %v8097_v52 }
 0x34b   : > { %v4609_v6 = vpop.f32.mrf.mxu2  ;;  %v4698_v36 = vpop.f32.mrf.mxu3 }
 0x34c   : > { %v4841_v62 = vadd.f32 %v4609_v6, %v9375_v30  ;;  %v4842_v32 = vadd.f32 %v4698_v36, %v9377_v1  ;;  %v5155_v60 = vpop.f32.mrf.mxu0  ;;  %v8098_v30 = vld [vmem:[#allocation2 + $0x9c] sm:$0xff] }
 0x34d   : > { %v5244_v63 = vpop.f32.mrf.mxu1 }
 0x34e   : > { %v9736_v52 = vadd.f32 %v5150_v29, %v4841_v62  ;;  %v9738_v39 = vadd.f32 %v5239_v8, %v4842_v32  ;;  %v4455_v29 = vsel %vm8573_vm13, %v7832_v10, %v4454_v18  ;;  %v4458_v8 = vsel %vm8573_vm13, %v4456_v56, %v4457_v14  ;;  %v4316_v32 = vld [vmem:[#allocation2 + $0xa0] sm:$0xf] }
 0x34f   : > { %v4511_v62 = vunpack.c.l.b16 %v4455_v29  ;;  %v4461_v14 = vrot.slane %v4316_v32, 5 }
 0x350   : > { %10767 = vst [vmem:[#allocation22_spill] sm:$0xff] %v9738_v39  ;;  %7848 = vmatmul.msk.bf16.gmra.mxu2 %vm937_vm8, %v4531_v57  ;;  %7864 = vmatmul.msk.bf16.gmra.mxu3 %vm937_vm8, %v4531_v57  ;;  %v4317_v39 = vld [vmem:[#allocation2 + $0xa4] sm:$0x1] }
 0x353   : > { %v4612_v51 = vpop.f32.mrf.mxu2  ;;  %v4701_v1 = vpop.f32.mrf.mxu3 }
 0x354   : > { %v4843_v59 = vadd.f32 %v4612_v51, %v9389_v23  ;;  %v4844_v17 = vadd.f32 %v4701_v1, %v9391_v25  ;;  %v5158_v27 = vpop.f32.mrf.mxu0  ;;  %v4512_v23 = vunpack.c.l.b16 %v4458_v8  ;;  %v4315_v1 = vld [vmem:[#allocation2 + $0x9c] sm:$0xe] }
 0x355   : > { %v5247_v5 = vpop.f32.mrf.mxu1 }
 0x356   : > { %v9750_v6 = vadd.f32 %v5153_v45, %v4843_v59  ;;  %v9752_v36 = vadd.f32 %v5242_v12, %v4844_v17  ;;  %v4532_v10 = vpack.c.b16 %v4512_v23, %v4511_v62  ;;  %v7833_v12 = vrot.slane %v4315_v1, 9 }
 0x357   : > { %7946 = vmatmul.msk.bf16.gmra.mxu0 %vm937_vm8, %v8098_v30  ;;  %v4463_v59 = vrot.slane %v4461_v14, 4  ;;  %v4464_v17 = vrot.slane %v4317_v39, 5 }
 0x358   : > { %7962 = vmatmul.msk.bf16.gmra.mxu1 %vm937_vm8, %v8098_v30 }
 0x35b   : > { %v4614_v25 = vpop.f32.mrf.mxu2  ;;  %v4703_v57 = vpop.f32.mrf.mxu3 }
 0x35c   : > { %v4845_v15 = vadd.f32 %v4614_v25, %v9405_v42  ;;  %v4846_v18 = vadd.f32 %v4703_v57, %v10768_v11  ;;  %v5160_v51 = vpop.f32.mrf.mxu0  ;;  %v8099_v42 = vld [vmem:[#allocation2 + $0xa8] sm:$0xff] }
 0x35d   : > { %v5249_v56 = vpop.f32.mrf.mxu1  ;;  %v4319_v11 = vld [vmem:[#allocation2 + $0xac] sm:$0xf] }
 0x35e   : > { %v9756_v30 = vadd.f32 %v5155_v60, %v4845_v15  ;;  %v9758_v45 = vadd.f32 %v5244_v63, %v4846_v18  ;;  %v4462_v60 = vsel %vm8573_vm13, %v7833_v12, %v4461_v14  ;;  %v4465_v63 = vsel %vm8573_vm13, %v4463_v59, %v4464_v17 }
 0x35f   : > { %v4513_v15 = vunpack.c.l.b16 %v4462_v60  ;;  %v4468_v17 = vrot.slane %v4319_v11, 5 }
 0x360   : > { %7849 = vmatmul.msk.bf16.gmra.mxu2 %vm937_vm8, %v4532_v10  ;;  %7865 = vmatmul.msk.bf16.gmra.mxu3 %vm937_vm8, %v4532_v10 }
 0x363   : > { %v4617_v29 = vpop.f32.mrf.mxu2  ;;  %v4706_v8 = vpop.f32.mrf.mxu3 }
 0x364   : > { %v4847_v62 = vadd.f32 %v4617_v29, %v9430_v58  ;;  %v4848_v23 = vadd.f32 %v4706_v8, %v9435_v34  ;;  %v5163_v32 = vpop.f32.mrf.mxu0  ;;  %v4514_v58 = vunpack.c.l.b16 %v4465_v63  ;;  %v4318_v29 = vld [vmem:[#allocation2 + $0xa8] sm:$0xe]  ;;  %v4320_v8 = vld [vmem:[#allocation2 + $0xb0] sm:$0x1] }
 0x365   : > { %v5252_v25 = vpop.f32.mrf.mxu1 }
 0x366   : > { %v9770_v39 = vadd.f32 %v5158_v27, %v4847_v62  ;;  %v9772_v57 = vadd.f32 %v5247_v5, %v4848_v23  ;;  %v4533_v1 = vpack.c.b16 %v4514_v58, %v4513_v15  ;;  %v7834_v5 = vrot.slane %v4318_v29, 9 }
 0x367   : > { %7947 = vmatmul.msk.bf16.gmra.mxu0 %vm937_vm8, %v8099_v42  ;;  %v4470_v62 = vrot.slane %v4468_v17, 4  ;;  %v4471_v23 = vrot.slane %v4320_v8, 5 }
 0x368   : > { %7963 = vmatmul.msk.bf16.gmra.mxu1 %vm937_vm8, %v8099_v42 }
 0x36b   : > { %v4619_v34 = vpop.f32.mrf.mxu2  ;;  %v4708_v18 = vpop.f32.mrf.mxu3 }
 0x36c   : > { %v4849_v10 = vadd.f32 %v4619_v34, %v9445_v9  ;;  %v4850_v14 = vadd.f32 %v4708_v18, %v9448_v19  ;;  %v5165_v12 = vpop.f32.mrf.mxu0  ;;  %v8100_v9 = vld [vmem:[#allocation2 + $0xb4] sm:$0xff] }
 0x36d   : > { %v5254_v59 = vpop.f32.mrf.mxu1 }
 0x36e   : > { %v9776_v42 = vadd.f32 %v5160_v51, %v4849_v10  ;;  %v9778_v27 = vadd.f32 %v5249_v56, %v4850_v14  ;;  %v4469_v51 = vsel %vm8573_vm13, %v7834_v5, %v4468_v17  ;;  %v4472_v56 = vsel %vm8573_vm13, %v4470_v62, %v4471_v23  ;;  %v260_v14 = vld [vmem:[#allocation2 + $0xcc] sm:$0x1] }
 0x36f   : > { %v4515_v10 = vunpack.c.l.b16 %v4469_v51 }
 0x370   : > { %7850 = vmatmul.msk.bf16.gmra.mxu2 %vm937_vm8, %v4533_v1  ;;  %7866 = vmatmul.msk.bf16.gmra.mxu3 %vm937_vm8, %v4533_v1  ;;  %v4322_v1 = vld [vmem:[#allocation2 + $0xb8] sm:$0xf] }
 0x373   : > { %v4622_v60 = vpop.f32.mrf.mxu2  ;;  %v4711_v19 = vpop.f32.mrf.mxu3 }
 0x374   : > { %v4851_v63 = vadd.f32 %v4622_v60, %v9459_v41  ;;  %v4852_v15 = vadd.f32 %v4711_v19, %v9462_v38  ;;  %v5168_v58 = vpop.f32.mrf.mxu0  ;;  %v4516_v41 = vunpack.c.l.b16 %v4472_v56  ;;  %v261_v38 = vsel %vm8296_vm3, 0, %v260_v14  ;;  %v4323_v60 = vld [vmem:[#allocation2 + $0xbc] sm:$0x1] }
 0x375   : > { %v5257_v11 = vpop.f32.mrf.mxu1  ;;  %262 = vst [vmem:[#allocation2 + $0xcc] sm:$0x1] %v261_v38  ;;  %v4478_v51 = vrot.slane %v4323_v60, 5 }
 0x376   : > { %v9790_v34 = vadd.f32 %v5163_v32, %v4851_v63  ;;  %v9792_v18 = vadd.f32 %v5252_v25, %v4852_v15  ;;  %v4534_v62 = vpack.c.b16 %v4516_v41, %v4515_v10  ;;  %v4321_v25 = vld [vmem:[#allocation2 + $0xb4] sm:$0xe] }
 0x377   : > { %7948 = vmatmul.msk.bf16.gmra.mxu0 %vm937_vm8, %v8100_v9  ;;  %v7835_v2 = vrot.slane %v4321_v25, 9 }
 0x378   : > { %7964 = vmatmul.msk.bf16.gmra.mxu1 %vm937_vm8, %v8100_v9  ;;  %v4475_v9 = vrot.slane %v4322_v1, 5 }
 0x37a   : > { %v4477_v15 = vrot.slane %v4475_v9, 4 }
 0x37b   : > { %v4624_v17 = vpop.f32.mrf.mxu2  ;;  %v4713_v29 = vpop.f32.mrf.mxu3 }
 0x37c   : > { %v4853_v8 = vadd.f32 %v4624_v17, %v9470_v24  ;;  %v4854_v5 = vadd.f32 %v4713_v29, %v9472_v3  ;;  %v5170_v23 = vpop.f32.mrf.mxu0  ;;  %v8101_v24 = vld [vmem:[#allocation2 + $0xc0] sm:$0xff] }
 0x37d   : > { %v5259_v32 = vpop.f32.mrf.mxu1 }
 0x37e   : > { %v9798_v19 = vadd.f32 %v5165_v12, %v4853_v8  ;;  %v9800_v63 = vadd.f32 %v5254_v59, %v4854_v5  ;;  %v4476_v12 = vsel %vm8573_vm13, %v7835_v2, %v4475_v9  ;;  %v4479_v59 = vsel %vm8573_vm13, %v4477_v15, %v4478_v51  ;;  %v4325_v8 = vld [vmem:[#allocation2 + $0xc4] sm:$0xf]  ;;  %v4324_v15 = vld [vmem:[#allocation2 + $0xc0] sm:$0xe] }
 0x37f   : > { %v4517_v29 = vunpack.c.l.b16 %v4476_v12  ;;  %v4482_v51 = vrot.slane %v4325_v8, 5 }
 0x380   : > { %10769 = vst [vmem:[#allocation23_spill] sm:$0xff] %v9798_v19  ;;  %7851 = vmatmul.msk.bf16.gmra.mxu2 %vm937_vm8, %v4534_v62  ;;  %7867 = vmatmul.msk.bf16.gmra.mxu3 %vm937_vm8, %v4534_v62 }
 0x381   : > { %10770 = vst [vmem:[#allocation24_spill] sm:$0xff] %v9800_v63 }
 0x383   : > { %v4627_v56 = vpop.f32.mrf.mxu2  ;;  %v4716_v3 = vpop.f32.mrf.mxu3 }
 0x384   : > { %v4855_v10 = vadd.f32 %v4627_v56, %v9480_v4  ;;  %v4856_v41 = vadd.f32 %v4716_v3, %v9482_v31  ;;  %v5173_v14 = vpop.f32.mrf.mxu0  ;;  %v4518_v4 = vunpack.c.l.b16 %v4479_v59  ;;  %v4326_v56 = vld [vmem:[#allocation2 + $0xc8] sm:$0x1]  ;;  %v5505_v3 = vld [vmem:[#allocation2 + $0x1c] sm:$0xf] }
 0x385   : > { %v5262_v38 = vpop.f32.mrf.mxu1  ;;  %v5566_v8 = vshrl.u32 %v5505_v3, 16 }
 0x386   : > { %v9812_v1 = vadd.f32 %v5168_v58, %v4855_v10  ;;  %v9814_v17 = vadd.f32 %v5257_v11, %v4856_v41  ;;  %v4535_v25 = vpack.c.b16 %v4518_v4, %v4517_v29  ;;  %v7836_v10 = vrot.slane %v4324_v15, 9  ;;  %v8102_v29 = vld [vmem:[#allocation2 + $0xcc] sm:$0xff]  ;;  %v6414_v15 = vld [vmem:[#allocation2 + $0x20] sm:$0x1] }
 0x387   : > { %7949 = vmatmul.msk.bf16.gmra.mxu0 %vm937_vm8, %v8101_v24  ;;  %v4484_v41 = vrot.slane %v4482_v51, 4  ;;  %v5562_v4 = vshll.u32 %v5505_v3, 16 }
 0x388   : > { %7965 = vmatmul.msk.bf16.gmra.mxu1 %vm937_vm8, %v8101_v24  ;;  %10771 = vst [vmem:[#allocation25_spill] sm:$0xff] %v9812_v1  ;;  %v5504_v24 = vld [vmem:[#allocation2 + $0x18] sm:$0xf] }
 0x389   : > { %10772 = vst [vmem:[#allocation26_spill] sm:$0xff] %v9814_v17  ;;  %v5553_v12 = vshrl.u32 %v5504_v24, 16  ;;  %v5556_v59 = vshll.u32 %v5504_v24, 16 }
 0x38b   : > { %v4629_v31 = vpop.f32.mrf.mxu2  ;;  %v4718_v5 = vpop.f32.mrf.mxu3  ;;  %v5555_v3 = vrot.slane %v5553_v12, 4 }
 0x38c   : > { %v4857_v62 = vadd.f32 %v4629_v31, %v9490_v40  ;;  %v4858_v9 = vadd.f32 %v4718_v5, %v9492_v26  ;;  %v5175_v60 = vpop.f32.mrf.mxu0  ;;  %v6413_v40 = vld [vmem:[#allocation2 + $0x1c] sm:$0xf]  ;;  %v4485_v26 = vrot.slane %v4326_v56, 5  ;;  %v4483_v56 = vsel %vm8573_vm13, %v7836_v10, %v4482_v51  ;;  %v5506_v10 = vld [vmem:[#allocation2 + $0x20] sm:$0x1] }
 0x38d   : > { %v5264_v2 = vpop.f32.mrf.mxu1  ;;  %v4519_v63 = vunpack.c.l.b16 %v4483_v56 }
 0x38e   : > { %v9818_v58 = vadd.f32 %v5170_v23, %v4857_v62  ;;  %v9820_v11 = vadd.f32 %v5259_v32, %v4858_v9  ;;  %v6412_v23 = vld [vmem:[#allocation2 + $0x18] sm:$0xe]  ;;  %v6510_v62 = vrot.slane %v6413_v40, 5  ;;  %v4486_v24 = vsel %vm8573_vm13, %v4484_v41, %v4485_v26 }
 0x38f   : > { %v5568_v40 = vrot.slane %v5566_v8, 4  ;;  %v4520_v51 = vunpack.c.l.b16 %v4486_v24 }
 0x390   : > { %10773 = vst [vmem:[#allocation27_spill] sm:$0xff] %v9818_v58  ;;  %7852 = vmatmul.msk.bf16.gmra.mxu2 %vm937_vm8, %v4535_v25  ;;  %7868 = vmatmul.msk.bf16.gmra.mxu3 %vm937_vm8, %v4535_v25  ;;  %v5558_v58 = vrot.slane %v5556_v59, 5  ;;  %v5572_v59 = vshll.u32 %v5506_v10, 16 }
 0x391   : > { %10774 = vst [vmem:[#allocation28_spill] sm:$0xff] %v9820_v11 }
 0x392   : > { %v5559_v19 = vor.u32 %v5558_v58, %v5555_v3 }
 0x393   : > { %v4632_v31 = vpop.f32.mrf.mxu2  ;;  %v4721_v5 = vpop.f32.mrf.mxu3 }
 0x394   : > { %v4859_v32 = vadd.f32 %v4632_v31, %v9506_v43  ;;  %v4860_v9 = vadd.f32 %v4721_v5, %v9508_v22  ;;  %v9826_v11 = vpop.f32.mrf.mxu0  ;;  %v5564_v43 = vrot.slane %v5562_v4, 5  ;;  %v8000_v22 = vrot.slane %v6412_v23, 9 }
 0x395   : > { %v9828_v25 = vpop.f32.mrf.mxu1  ;;  %v6512_v31 = vrot.slane %v6510_v62, 4  ;;  %v6513_v5 = vrot.slane %v6414_v15, 5 }
 0x396   : > { %v9836_v17 = vadd.f32 %v5173_v14, %v4859_v32  ;;  %v9838_v1 = vadd.f32 %v5262_v38, %v4860_v9  ;;  %v5569_v12 = vor.u32 %v5568_v40, %v5564_v43  ;;  %v4536_v38 = vpack.c.b16 %v4520_v51, %v4519_v63  ;;  %v6415_v51 = vld [vmem:[#allocation2 + $0x24] sm:$0xe] }
 0x397   : > { %7950 = vmatmul.msk.bf16.gmra.mxu0 %vm937_vm8, %v8102_v29  ;;  %v6514_v4 = vsel %vm8573_vm13, %v6512_v31, %v6513_v5  ;;  %v5560_v9 = vrot.slane %v5559_v19, 4  ;;  %v5574_v40 = vrot.slane %v5572_v59, 5 }
 0x398   : > { %7966 = vmatmul.msk.bf16.gmra.mxu1 %vm937_vm8, %v8102_v29  ;;  %v6511_v29 = vsel %vm8573_vm13, %v8000_v22, %v6510_v62  ;;  %v6623_v58 = vunpack.c.l.b16 %v6514_v4  ;;  %v5570_v3 = vrot.slane %v5569_v12, 4  ;;  %v5507_v62 = vld [vmem:[#allocation2 + $0x24] sm:$0xf]  ;;  %v5508_v22 = vld [vmem:[#allocation2 + $0x28] sm:$0xf] }
 0x399   : > { %v6622_v15 = vunpack.c.l.b16 %v6511_v29  ;;  %v5577_v19 = vshrl.u32 %v5507_v62, 16  ;;  %v5580_v31 = vshll.u32 %v5507_v62, 16  ;;  %v5586_v29 = vshll.u32 %v5508_v22, 16  ;;  %v6417_v4 = vld [vmem:[#allocation2 + $0x2c] sm:$0x1] }
 0x39b   : > { %v4634_v41 = vpop.f32.mrf.mxu2  ;;  %v4723_v26 = vpop.f32.mrf.mxu3  ;;  %v6654_v63 = vpack.c.b16 %v6623_v58, %v6622_v15  ;;  %v8001_v15 = vrot.slane %v6415_v51, 9 }
 0x39c   : > { %v4861_v8 = vadd.f32 %v4634_v41, %v9514_v16  ;;  %v4862_v14 = vadd.f32 %v4723_v26, %v9516_v28  ;;  %v5180_v23 = vpop.f32.mrf.mxu0  ;;  %v6416_v16 = vld [vmem:[#allocation2 + $0x28] sm:$0xf]  ;;  %v5565_v28 = vsel %vm8588_vm1, %v5560_v9, %v5564_v43  ;;  %v5590_v43 = vshrl.u32 %v5508_v22, 16 }
 0x39d   : > { %v5269_v32 = vpop.f32.mrf.mxu1  ;;  %v6517_v10 = vrot.slane %v6416_v16, 5  ;;  %v5582_v9 = vrot.slane %v5580_v31, 5  ;;  %v5509_v16 = vld [vmem:[#allocation2 + $0x2c] sm:$0x1] }
 0x39e   : > { %v9846_v56 = vadd.f32 %v5175_v60, %v4861_v8  ;;  %v9848_v24 = vadd.f32 %v5264_v2, %v4862_v14  ;;  %v5575_v2 = vsel %vm8588_vm1, %v5570_v3, %v5574_v40  ;;  %v5938_v8 = vunpack.c.l.b16 %v5565_v28 }
 0x39f   : > { %v5939_v14 = vunpack.c.l.b16 %v5575_v2  ;;  %v6519_v58 = vrot.slane %v6517_v10, 4  ;;  %v5588_v40 = vrot.slane %v5586_v29, 5  ;;  %v5592_v62 = vrot.slane %v5590_v43, 4 }
 0x3a0   : > { %7853 = vmatmul.msk.bf16.gmra.mxu2 %vm937_vm8, %v4536_v38  ;;  %7869 = vmatmul.msk.bf16.gmra.mxu3 %vm937_vm8, %v4536_v38  ;;  %v5579_v38 = vrot.slane %v5577_v19, 4 }
 0x3a1   : > { %v5593_v51 = vor.u32 %v5592_v62, %v5588_v40 }
 0x3a3   : > { %v4637_v5 = vpop.f32.mrf.mxu2  ;;  %v4726_v60 = vpop.f32.mrf.mxu3 }
 0x3a4   : > { %v4863_v41 = vadd.f32 %v4637_v5, %v9530_v46  ;;  %v4864_v26 = vadd.f32 %v4726_v60, %v9532_v35  ;;  %v9858_v12 = vpop.f32.mrf.mxu0  ;;  %v6520_v46 = vrot.slane %v6417_v4, 5  ;;  %v5970_v5 = vpack.c.b16 %v5939_v14, %v5938_v8 }
 0x3a5   : > { %v9860_v59 = vpop.f32.mrf.mxu1  ;;  %v5583_v60 = vor.u32 %v5582_v9, %v5579_v38  ;;  %v5594_v8 = vrot.slane %v5593_v51, 4  ;;  %v5511_v9 = vld [vmem:[#allocation2 + $0x34] sm:$0xf] }
 0x3a6   : > { %v9865_v35 = vadd.f32 %v9826_v11, %v4863_v41  ;;  %v9868_v3 = vadd.f32 %v9828_v25, %v4864_v26  ;;  %v6521_v19 = vsel %vm8573_vm13, %v6519_v58, %v6520_v46  ;;  %v5596_v41 = vshll.u32 %v5509_v16, 16  ;;  %v6418_v46 = vld [vmem:[#allocation2 + $0x30] sm:$0xe]  ;;  %v10778_v16 = vld [vmem:[#allocation40_spill] sm:$0xff] }
 0x3a7   : > { %8017 = vmatmul.msk.bf16.vlgmr.msra.gmra.mxu0 %vm937_vm8, %v6654_v63  ;;  %v6625_v29 = vunpack.c.l.b16 %v6521_v19  ;;  %v6420_v19 = vld [vmem:[#allocation2 + $0x38] sm:$0x1]  ;;  %v5610_v51 = vshll.u32 %v5511_v9, 16 }
 0x3a8   : > { %8033 = vmatmul.msk.bf16.vlgmr.msra.gmra.mxu1 %vm937_vm8, %v6654_v63  ;;  %10775 = vst [vmem:[#allocation29_spill] sm:$0xff] %v9868_v3  ;;  %v6518_v63 = vsel %vm8573_vm13, %v8001_v15, %v6517_v10  ;;  %v5584_v10 = vrot.slane %v5583_v60, 4  ;;  %v5598_v14 = vrot.slane %v5596_v41, 5  ;;  %v5614_v41 = vshrl.u32 %v5511_v9, 16  ;;  %v5512_v9 = vld [vmem:[#allocation2 + $0x38] sm:$0x1] }
 0x3a9   : > { %v6624_v26 = vunpack.c.l.b16 %v6518_v63 }
 0x3aa   : > { %v5599_v60 = vsel %vm8588_vm1, %v5594_v8, %v5598_v14 }
 0x3ab   : > { %v4639_v22 = vpop.f32.mrf.mxu2  ;;  %v4728_v28 = vpop.f32.mrf.mxu3  ;;  %v6655_v38 = vpack.c.b16 %v6625_v29, %v6624_v26  ;;  %v8002_v26 = vrot.slane %v6418_v46, 9  ;;  %v5941_v8 = vunpack.c.l.b16 %v5599_v60 }
 0x3ac   : > { %v4865_v31 = vadd.f32 %v4639_v22, %v9536_v0  ;;  %v4866_v11 = vadd.f32 %v4728_v28, %v9538_v47  ;;  %v5185_v2 = vpop.f32.mrf.mxu0  ;;  %v6419_v0 = vld [vmem:[#allocation2 + $0x34] sm:$0xf]  ;;  %v5510_v47 = vld [vmem:[#allocation2 + $0x30] sm:$0xf]  ;;  %v10779_v22 = vld [vmem:[#allocation41_spill] sm:$0xff] }
 0x3ad   : > { %v5274_v25 = vpop.f32.mrf.mxu1  ;;  %v6524_v62 = vrot.slane %v6419_v0, 5  ;;  %v6527_v0 = vrot.slane %v6420_v19, 5  ;;  %v10783_v19 = vld [vmem:[#allocation45_spill] sm:$0xff] }
 0x3ae   : > { %v9876_v43 = vadd.f32 %v5180_v23, %v4865_v31  ;;  %v9878_v4 = vadd.f32 %v5269_v32, %v4866_v11  ;;  %v5601_v31 = vshrl.u32 %v5510_v47, 16  ;;  %v5604_v11 = vshll.u32 %v5510_v47, 16 }
 0x3af   : > { %v6526_v29 = vrot.slane %v6524_v62, 4  ;;  %v5612_v47 = vrot.slane %v5610_v51, 5  ;;  %v5620_v51 = vshll.u32 %v5512_v9, 16 }
 0x3b0   : > { %10776 = vst [vmem:[#allocation30_spill] sm:$0xff] %v9876_v43  ;;  %7968 = vmatmul.msk.bf16.vlgmr.msra.gmra.mxu2 %vm937_vm8, %v5970_v5  ;;  %7984 = vmatmul.msk.bf16.vlgmr.msra.gmra.mxu3 %vm937_vm8, %v5970_v5  ;;  %v5589_v5 = vsel %vm8588_vm1, %v5584_v10, %v5588_v40  ;;  %v5603_v14 = vrot.slane %v5601_v31, 4 }
 0x3b1   : > { %10777 = vst [vmem:[#allocation31_spill] sm:$0xff] %v9878_v4  ;;  %v5940_v10 = vunpack.c.l.b16 %v5589_v5  ;;  %v6528_v46 = vsel %vm8573_vm13, %v6526_v29, %v6527_v0  ;;  %v5513_v0 = vld [vmem:[#allocation2 + $0x3c] sm:$0xf] }
 0x3b3   : > { %v4642_v15 = vpop.f32.mrf.mxu2  ;;  %v4731_v58 = vpop.f32.mrf.mxu3 }
 0x3b4   : > { %v4867_v23 = vadd.f32 %v4642_v15, %v10778_v16  ;;  %v4868_v32 = vadd.f32 %v4731_v58, %v10779_v22  ;;  %v9884_v28 = vpop.f32.mrf.mxu0  ;;  %v5606_v58 = vrot.slane %v5604_v11, 5  ;;  %v5616_v16 = vrot.slane %v5614_v41, 4 }
 0x3b5   : > { %v9886_v63 = vpop.f32.mrf.mxu1 }
 0x3b6   : > { %v9895_v15 = vadd.f32 %v9858_v12, %v4867_v23  ;;  %v9898_v40 = vadd.f32 %v9860_v59, %v4868_v32  ;;  %v10782_v12 = vld [vmem:[#allocation44_spill] sm:$0xff]  ;;  %v5971_v32 = vpack.c.b16 %v5941_v8, %v5940_v10  ;;  %v5607_v31 = vor.u32 %v5606_v58, %v5603_v14 }
 0x3b7   : > { %8018 = vmatmul.msk.bf16.gmra.mxu0 %vm937_vm8, %v6655_v38  ;;  %v5617_v11 = vor.u32 %v5616_v16, %v5612_v47  ;;  %v5514_v8 = vld [vmem:[#allocation2 + $0x40] sm:$0xf]  ;;  %v6421_v16 = vld [vmem:[#allocation2 + $0x3c] sm:$0xe] }
 0x3b8   : > { %8034 = vmatmul.msk.bf16.gmra.mxu1 %vm937_vm8, %v6655_v38  ;;  %10780 = vst [vmem:[#allocation32_spill] sm:$0xff] %v9895_v15  ;;  %v6525_v38 = vsel %vm8573_vm13, %v8002_v26, %v6524_v62  ;;  %v6422_v62 = vld [vmem:[#allocation2 + $0x40] sm:$0xf]  ;;  %v5608_v26 = vrot.slane %v5607_v31, 4  ;;  %v5634_v31 = vshll.u32 %v5514_v8, 16 }
 0x3b9   : > { %10781 = vst [vmem:[#allocation33_spill] sm:$0xff] %v9898_v40  ;;  %v6626_v41 = vunpack.c.l.b16 %v6525_v38  ;;  %v6627_v40 = vunpack.c.l.b16 %v6528_v46  ;;  %v5618_v29 = vrot.slane %v5617_v11, 4  ;;  %v6531_v9 = vrot.slane %v6422_v62, 5  ;;  %v10787_v38 = vld [vmem:[#allocation47_spill] sm:$0xff] }
 0x3ba   : > { %v5638_v11 = vshrl.u32 %v5514_v8, 16  ;;  %v5515_v8 = vld [vmem:[#allocation2 + $0x44] sm:$0x1] }
 0x3bb   : > { %v4644_v22 = vpop.f32.mrf.mxu2  ;;  %v4733_v4 = vpop.f32.mrf.mxu3  ;;  %v6656_v10 = vpack.c.b16 %v6627_v40, %v6626_v41  ;;  %v6533_v41 = vrot.slane %v6531_v9, 4 }
 0x3bc   : > { %v4869_v23 = vadd.f32 %v4644_v22, %v10782_v12  ;;  %v4870_v59 = vadd.f32 %v4733_v4, %v10783_v19  ;;  %v5190_v5 = vpop.f32.mrf.mxu0  ;;  %v5622_v4 = vrot.slane %v5620_v51, 5  ;;  %v10786_v22 = vld [vmem:[#allocation46_spill] sm:$0xff]  ;;  %v5628_v19 = vshll.u32 %v5513_v0, 16 }
 0x3bd   : > { %v5279_v60 = vpop.f32.mrf.mxu1  ;;  %v8003_v51 = vrot.slane %v6421_v16, 9 }
 0x3be   : > { %v9906_v15 = vadd.f32 %v5185_v2, %v4869_v23  ;;  %v9908_v43 = vadd.f32 %v5274_v25, %v4870_v59  ;;  %v5625_v23 = vshrl.u32 %v5513_v0, 16  ;;  %v6423_v59 = vld [vmem:[#allocation2 + $0x44] sm:$0x1]  ;;  %v5623_v40 = vsel %vm8588_vm1, %v5618_v29, %v5622_v4 }
 0x3bf   : > { %v6534_v62 = vrot.slane %v6423_v59, 5  ;;  %v5636_v29 = vrot.slane %v5634_v31, 5  ;;  %v5640_v4 = vrot.slane %v5638_v11, 4  ;;  %v10791_v59 = vld [vmem:[#allocation9_spill] sm:$0xff]  ;;  %v5644_v31 = vshll.u32 %v5515_v8, 16 }
 0x3c0   : > { %10784 = vst [vmem:[#allocation36_spill] sm:$0xff] %v9906_v15  ;;  %7969 = vmatmul.msk.bf16.gmra.mxu2 %vm937_vm8, %v5971_v32  ;;  %7985 = vmatmul.msk.bf16.gmra.mxu3 %vm937_vm8, %v5971_v32  ;;  %v5613_v32 = vsel %vm8588_vm1, %v5608_v26, %v5612_v47  ;;  %v5943_v47 = vunpack.c.l.b16 %v5623_v40  ;;  %v5627_v26 = vrot.slane %v5625_v23, 4 }
 0x3c1   : > { %10785 = vst [vmem:[#allocation37_spill] sm:$0xff] %v9908_v43  ;;  %v6535_v16 = vsel %vm8573_vm13, %v6533_v41, %v6534_v62  ;;  %v5646_v62 = vrot.slane %v5644_v31, 5 }
 0x3c3   : > { %v4647_v14 = vpop.f32.mrf.mxu2  ;;  %v4736_v58 = vpop.f32.mrf.mxu3 }
 0x3c4   : > { %v4871_v2 = vadd.f32 %v4647_v14, %v10786_v22  ;;  %v4872_v25 = vadd.f32 %v4736_v58, %v10787_v38  ;;  %v9914_v46 = vpop.f32.mrf.mxu0  ;;  %v5942_v58 = vunpack.c.l.b16 %v5613_v32  ;;  %v5630_v22 = vrot.slane %v5628_v19, 5 }
 0x3c5   : > { %v9916_v12 = vpop.f32.mrf.mxu1  ;;  %v5641_v19 = vor.u32 %v5640_v4, %v5636_v29 }
 0x3c6   : > { %v9925_v14 = vadd.f32 %v9884_v28, %v4871_v2  ;;  %v9928_v0 = vadd.f32 %v9886_v63, %v4872_v25  ;;  %v10790_v28 = vld [vmem:[#allocation8_spill] sm:$0xff]  ;;  %v5972_v25 = vpack.c.b16 %v5943_v47, %v5942_v58  ;;  %v5631_v23 = vor.u32 %v5630_v22, %v5627_v26 }
 0x3c7   : > { %8019 = vmatmul.msk.bf16.gmra.mxu0 %vm937_vm8, %v6656_v10  ;;  %v5642_v41 = vrot.slane %v5641_v19, 4 }
 0x3c8   : > { %8035 = vmatmul.msk.bf16.gmra.mxu1 %vm937_vm8, %v6656_v10  ;;  %10788 = vst [vmem:[#allocation40_spill] sm:$0xff] %v9925_v14  ;;  %v6532_v10 = vsel %vm8573_vm13, %v8003_v51, %v6531_v9  ;;  %v5516_v14 = vld [vmem:[#allocation2 + $0x48] sm:$0xf]  ;;  %v5517_v9 = vld [vmem:[#allocation2 + $0x4c] sm:$0xf]  ;;  %v5632_v51 = vrot.slane %v5631_v23, 4 }
 0x3c9   : > { %10789 = vst [vmem:[#allocation41_spill] sm:$0xff] %v9928_v0  ;;  %v6628_v11 = vunpack.c.l.b16 %v6532_v10  ;;  %v6629_v0 = vunpack.c.l.b16 %v6535_v16  ;;  %v5649_v58 = vshrl.u32 %v5516_v14, 16  ;;  %v5652_v47 = vshll.u32 %v5516_v14, 16 }
 0x3ca   : > { %v5658_v22 = vshll.u32 %v5517_v9, 16  ;;  %v5662_v4 = vshrl.u32 %v5517_v9, 16  ;;  %v5637_v23 = vsel %vm8588_vm1, %v5632_v51, %v5636_v29  ;;  %v5647_v14 = vsel %vm8588_vm1, %v5642_v41, %v5646_v62  ;;  %v5518_v41 = vld [vmem:[#allocation2 + $0x50] sm:$0x1] }
 0x3cb   : > { %v4649_v38 = vpop.f32.mrf.mxu2  ;;  %v4738_v43 = vpop.f32.mrf.mxu3  ;;  %v6657_v26 = vpack.c.b16 %v6629_v0, %v6628_v11  ;;  %v5651_v0 = vrot.slane %v5649_v58, 4  ;;  %v5654_v19 = vrot.slane %v5652_v47, 5  ;;  %v5944_v29 = vunpack.c.l.b16 %v5637_v23 }
 0x3cc   : > { %v4873_v2 = vadd.f32 %v4649_v38, %v10790_v28  ;;  %v4874_v63 = vadd.f32 %v4738_v43, %v10791_v59  ;;  %v5195_v32 = vpop.f32.mrf.mxu0  ;;  %v6425_v43 = vld [vmem:[#allocation2 + $0x4c] sm:$0xf]  ;;  %v10795_v28 = vld [vmem:[#allocation35_spill] sm:$0xff]  ;;  %v5660_v31 = vrot.slane %v5658_v22, 5  ;;  %v5664_v11 = vrot.slane %v5662_v4, 4  ;;  %v10798_v4 = vld [vmem:[#allocation38_spill] sm:$0xff] }
 0x3cd   : > { %v5284_v40 = vpop.f32.mrf.mxu1  ;;  %v6538_v10 = vrot.slane %v6425_v43, 5  ;;  %v5945_v51 = vunpack.c.l.b16 %v5647_v14  ;;  %v5655_v62 = vor.u32 %v5654_v19, %v5651_v0 }
 0x3ce   : > { %v9936_v15 = vadd.f32 %v5190_v5, %v4873_v2  ;;  %v9938_v3 = vadd.f32 %v5279_v60, %v4874_v63  ;;  %v6424_v5 = vld [vmem:[#allocation2 + $0x48] sm:$0xe]  ;;  %v10794_v60 = vld [vmem:[#allocation34_spill] sm:$0xff] }
 0x3cf   : > { %v8004_v9 = vrot.slane %v6424_v5, 9  ;;  %v6540_v43 = vrot.slane %v6538_v10, 4  ;;  %v10799_v5 = vld [vmem:[#allocation39_spill] sm:$0xff]  ;;  %v5656_v23 = vrot.slane %v5655_v62, 4 }
 0x3d0   : > { %10792 = vst [vmem:[#allocation44_spill] sm:$0xff] %v9936_v15  ;;  %7970 = vmatmul.msk.bf16.gmra.mxu2 %vm937_vm8, %v5972_v25  ;;  %7986 = vmatmul.msk.bf16.gmra.mxu3 %vm937_vm8, %v5972_v25  ;;  %v6426_v25 = vld [vmem:[#allocation2 + $0x50] sm:$0x1] }
 0x3d1   : > { %10793 = vst [vmem:[#allocation45_spill] sm:$0xff] %v9938_v3  ;;  %v5668_v3 = vshll.u32 %v5518_v41, 16 }
 0x3d3   : > { %v4652_v8 = vpop.f32.mrf.mxu2  ;;  %v4741_v38 = vpop.f32.mrf.mxu3 }
 0x3d4   : > { %v4875_v16 = vadd.f32 %v4652_v8, %v10794_v60  ;;  %v4876_v2 = vadd.f32 %v4741_v38, %v10795_v28  ;;  %v9944_v59 = vpop.f32.mrf.mxu0  ;;  %v6541_v8 = vrot.slane %v6426_v25, 5  ;;  %v5665_v28 = vor.u32 %v5664_v11, %v5660_v31 }
 0x3d5   : > { %v9946_v63 = vpop.f32.mrf.mxu1 }
 0x3d6   : > { %v9955_v38 = vadd.f32 %v9914_v46, %v4875_v16  ;;  %v9958_v60 = vadd.f32 %v9916_v12, %v4876_v2  ;;  %v6542_v22 = vsel %vm8573_vm13, %v6540_v43, %v6541_v8  ;;  %v5973_v12 = vpack.c.b16 %v5945_v51, %v5944_v29  ;;  %v5520_v43 = vld [vmem:[#allocation2 + $0x58] sm:$0xf] }
 0x3d7   : > { %8020 = vmatmul.msk.bf16.gmra.mxu0 %vm937_vm8, %v6657_v26  ;;  %v6631_v0 = vunpack.c.l.b16 %v6542_v22  ;;  %v5666_v41 = vrot.slane %v5665_v28, 4  ;;  %v5661_v8 = vsel %vm8588_vm1, %v5656_v23, %v5660_v31  ;;  %v10802_v28 = vld [vmem:[#allocation42_spill] sm:$0xff]  ;;  %v10803_v22 = vld [vmem:[#allocation43_spill] sm:$0xff]  ;;  %v5686_v31 = vshrl.u32 %v5520_v43, 16 }
 0x3d8   : > { %8036 = vmatmul.msk.bf16.gmra.mxu1 %vm937_vm8, %v6657_v26  ;;  %10796 = vst [vmem:[#allocation46_spill] sm:$0xff] %v9955_v38  ;;  %v6539_v26 = vsel %vm8573_vm13, %v8004_v9, %v6538_v10  ;;  %v5519_v10 = vld [vmem:[#allocation2 + $0x54] sm:$0xf]  ;;  %v6428_v9 = vld [vmem:[#allocation2 + $0x58] sm:$0xf]  ;;  %v5946_v23 = vunpack.c.l.b16 %v5661_v8 }
 0x3d9   : > { %10797 = vst [vmem:[#allocation47_spill] sm:$0xff] %v9958_v60  ;;  %v6630_v14 = vunpack.c.l.b16 %v6539_v26  ;;  %v5670_v60 = vrot.slane %v5668_v3, 5  ;;  %v5673_v51 = vshrl.u32 %v5519_v10, 16  ;;  %v5676_v62 = vshll.u32 %v5519_v10, 16 }
 0x3da   : > { %v6545_v3 = vrot.slane %v6428_v9, 5 }
 0x3db   : > { %v4654_v58 = vpop.f32.mrf.mxu2  ;;  %v4743_v47 = vpop.f32.mrf.mxu3  ;;  %v6658_v29 = vpack.c.b16 %v6631_v0, %v6630_v14  ;;  %v5678_v0 = vrot.slane %v5676_v62, 5  ;;  %v10806_v62 = vld [vmem:[#allocation10_spill] sm:$0xff] }
 0x3dc   : > { %v4877_v46 = vadd.f32 %v4654_v58, %v10798_v4  ;;  %v4878_v16 = vadd.f32 %v4743_v47, %v10799_v5  ;;  %v5200_v2 = vpop.f32.mrf.mxu0  ;;  %v6427_v47 = vld [vmem:[#allocation2 + $0x54] sm:$0xe]  ;;  %v6547_v10 = vrot.slane %v6545_v3, 4 }
 0x3dd   : > { %v5289_v25 = vpop.f32.mrf.mxu1 }
 0x3de   : > { %v9966_v19 = vadd.f32 %v5195_v32, %v4877_v46  ;;  %v9968_v11 = vadd.f32 %v5284_v40, %v4878_v16  ;;  %v5671_v40 = vsel %vm8588_vm1, %v5666_v41, %v5670_v60  ;;  %v5682_v16 = vshll.u32 %v5520_v43, 16 }
 0x3df   : > { %v5947_v14 = vunpack.c.l.b16 %v5671_v40  ;;  %v5675_v60 = vrot.slane %v5673_v51, 4  ;;  %v8005_v41 = vrot.slane %v6427_v47, 9  ;;  %v5688_v43 = vrot.slane %v5686_v31, 4 }
 0x3e0   : > { %10800 = vst [vmem:[#allocation8_spill] sm:$0xff] %v9966_v19  ;;  %7971 = vmatmul.msk.bf16.gmra.mxu2 %vm937_vm8, %v5973_v12  ;;  %7987 = vmatmul.msk.bf16.gmra.mxu3 %vm937_vm8, %v5973_v12  ;;  %v6429_v12 = vld [vmem:[#allocation2 + $0x5c] sm:$0x1] }
 0x3e1   : > { %10801 = vst [vmem:[#allocation9_spill] sm:$0xff] %v9968_v11  ;;  %v6548_v9 = vrot.slane %v6429_v12, 5  ;;  %v5974_v11 = vpack.c.b16 %v5947_v14, %v5946_v23  ;;  %v5679_v19 = vor.u32 %v5678_v0, %v5675_v60  ;;  %v6431_v0 = vld [vmem:[#allocation2 + $0x64] sm:$0xf] }
 0x3e3   : > { %v4657_v58 = vpop.f32.mrf.mxu2  ;;  %v4746_v32 = vpop.f32.mrf.mxu3  ;;  %v6549_v51 = vsel %vm8573_vm13, %v6547_v10, %v6548_v9  ;;  %v5522_v10 = vld [vmem:[#allocation2 + $0x60] sm:$0xf]  ;;  %v5523_v9 = vld [vmem:[#allocation2 + $0x64] sm:$0xf] }
 0x3e4   : > { %v4879_v26 = vadd.f32 %v4657_v58, %v10802_v28  ;;  %v4880_v4 = vadd.f32 %v4746_v32, %v10803_v22  ;;  %v9978_v46 = vpop.f32.mrf.mxu0  ;;  %v5684_v28 = vrot.slane %v5682_v16, 5  ;;  %v5521_v22 = vld [vmem:[#allocation2 + $0x5c] sm:$0x1] }
 0x3e5   : > { %v9980_v5 = vpop.f32.mrf.mxu1  ;;  %v5692_v16 = vshll.u32 %v5521_v22, 16  ;;  %v6430_v22 = vld [vmem:[#allocation2 + $0x60] sm:$0xe] }
 0x3e6   : > { %v9985_v58 = vadd.f32 %v9944_v59, %v4879_v26  ;;  %v9988_v32 = vadd.f32 %v9946_v63, %v4880_v4  ;;  %v10807_v59 = vld [vmem:[#allocation11_spill] sm:$0xff]  ;;  %v5689_v4 = vor.u32 %v5688_v43, %v5684_v28 }
 0x3e7   : > { %8021 = vmatmul.msk.bf16.gmra.mxu0 %vm937_vm8, %v6658_v29  ;;  %v5694_v60 = vrot.slane %v5692_v16, 5  ;;  %v5710_v16 = vshrl.u32 %v5523_v9, 16 }
 0x3e8   : > { %8037 = vmatmul.msk.bf16.gmra.mxu1 %vm937_vm8, %v6658_v29  ;;  %10804 = vst [vmem:[#allocation34_spill] sm:$0xff] %v9985_v58  ;;  %v6546_v29 = vsel %vm8573_vm13, %v8005_v41, %v6545_v3  ;;  %v5680_v3 = vrot.slane %v5679_v19, 4  ;;  %v5690_v14 = vrot.slane %v5689_v4, 4  ;;  %v5706_v4 = vshll.u32 %v5523_v9, 16  ;;  %v5524_v9 = vld [vmem:[#allocation2 + $0x68] sm:$0x1] }
 0x3e9   : > { %10805 = vst [vmem:[#allocation35_spill] sm:$0xff] %v9988_v32  ;;  %v6632_v31 = vunpack.c.l.b16 %v6546_v29  ;;  %v6633_v32 = vunpack.c.l.b16 %v6549_v51  ;;  %v10810_v29 = vld [vmem:[#allocation12_spill] sm:$0xff]  ;;  %v10811_v51 = vld [vmem:[#allocation13_spill] sm:$0xff] }
 0x3ea   : > { %v5685_v19 = vsel %vm8588_vm1, %v5680_v3, %v5684_v28 }
 0x3eb   : > { %v4659_v8 = vpop.f32.mrf.mxu2  ;;  %v4748_v40 = vpop.f32.mrf.mxu3  ;;  %v6659_v41 = vpack.c.b16 %v6633_v32, %v6632_v31  ;;  %v6432_v32 = vld [vmem:[#allocation2 + $0x68] sm:$0x1]  ;;  %v8006_v31 = vrot.slane %v6430_v22, 9  ;;  %v5948_v3 = vunpack.c.l.b16 %v5685_v19 }
 0x3ec   : > { %v4881_v47 = vadd.f32 %v4659_v8, %v10806_v62  ;;  %v4882_v26 = vadd.f32 %v4748_v40, %v10807_v59  ;;  %v5205_v12 = vpop.f32.mrf.mxu0  ;;  %v6552_v40 = vrot.slane %v6431_v0, 5  ;;  %v5697_v59 = vshrl.u32 %v5522_v10, 16 }
 0x3ed   : > { %v5294_v63 = vpop.f32.mrf.mxu1 }
 0x3ee   : > { %v9996_v58 = vadd.f32 %v5200_v2, %v4881_v47  ;;  %v9998_v23 = vadd.f32 %v5289_v25, %v4882_v26  ;;  %v5700_v26 = vshll.u32 %v5522_v10, 16  ;;  %v6554_v0 = vrot.slane %v6552_v40, 4 }
 0x3ef   : > { %v5708_v10 = vrot.slane %v5706_v4, 5  ;;  %v5716_v4 = vshll.u32 %v5524_v9, 16  ;;  %v10818_v9 = vld [vmem:[#allocation16_spill] sm:$0xff] }
 0x3f0   : > { %10808 = vst [vmem:[#allocation38_spill] sm:$0xff] %v9996_v58  ;;  %7972 = vmatmul.msk.bf16.gmra.mxu2 %vm937_vm8, %v5974_v11  ;;  %7988 = vmatmul.msk.bf16.gmra.mxu3 %vm937_vm8, %v5974_v11  ;;  %v5695_v11 = vsel %vm8588_vm1, %v5690_v14, %v5694_v60  ;;  %v5699_v60 = vrot.slane %v5697_v59, 4 }
 0x3f1   : > { %10809 = vst [vmem:[#allocation39_spill] sm:$0xff] %v9998_v23  ;;  %v5949_v14 = vunpack.c.l.b16 %v5695_v11 }
 0x3f3   : > { %v4662_v8 = vpop.f32.mrf.mxu2  ;;  %v4751_v43 = vpop.f32.mrf.mxu3 }
 0x3f4   : > { %v4883_v2 = vadd.f32 %v4662_v8, %v10810_v29  ;;  %v4884_v25 = vadd.f32 %v4751_v43, %v10811_v51  ;;  %v10004_v62 = vpop.f32.mrf.mxu0  ;;  %v6555_v8 = vrot.slane %v6432_v32, 5  ;;  %v5702_v29 = vrot.slane %v5700_v26, 5  ;;  %v10815_v32 = vld [vmem:[#allocation15_spill] sm:$0xff] }
 0x3f5   : > { %v10006_v47 = vpop.f32.mrf.mxu1  ;;  %v5712_v51 = vrot.slane %v5710_v16, 4 }
 0x3f6   : > { %v10015_v43 = vadd.f32 %v9978_v46, %v4883_v2  ;;  %v10018_v28 = vadd.f32 %v9980_v5, %v4884_v25  ;;  %v6556_v22 = vsel %vm8573_vm13, %v6554_v0, %v6555_v8  ;;  %v10814_v46 = vld [vmem:[#allocation14_spill] sm:$0xff]  ;;  %v5975_v25 = vpack.c.b16 %v5949_v14, %v5948_v3  ;;  %v5525_v0 = vld [vmem:[#allocation2 + $0x6c] sm:$0xf] }
 0x3f7   : > { %8022 = vmatmul.msk.bf16.gmra.mxu0 %vm937_vm8, %v6659_v41  ;;  %v5703_v59 = vor.u32 %v5702_v29, %v5699_v60  ;;  %v5713_v26 = vor.u32 %v5712_v51, %v5708_v10  ;;  %v5526_v3 = vld [vmem:[#allocation2 + $0x70] sm:$0xf]  ;;  %v6433_v29 = vld [vmem:[#allocation2 + $0x6c] sm:$0xe] }
 0x3f8   : > { %8038 = vmatmul.msk.bf16.gmra.mxu1 %vm937_vm8, %v6659_v41  ;;  %10812 = vst [vmem:[#allocation42_spill] sm:$0xff] %v10015_v43  ;;  %v6553_v41 = vsel %vm8573_vm13, %v8006_v31, %v6552_v40  ;;  %v6434_v40 = vld [vmem:[#allocation2 + $0x70] sm:$0xf] }
 0x3f9   : > { %10813 = vst [vmem:[#allocation43_spill] sm:$0xff] %v10018_v28  ;;  %v6634_v16 = vunpack.c.l.b16 %v6553_v41  ;;  %v6635_v28 = vunpack.c.l.b16 %v6556_v22  ;;  %v5714_v31 = vrot.slane %v5713_v26, 4  ;;  %v6559_v51 = vrot.slane %v6434_v40, 5  ;;  %v10819_v41 = vld [vmem:[#allocation17_spill] sm:$0xff] }
 0x3fa   : > { %v5734_v26 = vshrl.u32 %v5526_v3, 16 }
 0x3fb   : > { %v4664_v23 = vpop.f32.mrf.mxu2  ;;  %v4753_v58 = vpop.f32.mrf.mxu3  ;;  %v6660_v8 = vpack.c.b16 %v6635_v28, %v6634_v16  ;;  %v6561_v16 = vrot.slane %v6559_v51, 4 }
 0x3fc   : > { %v4885_v2 = vadd.f32 %v4664_v23, %v10814_v46  ;;  %v4886_v5 = vadd.f32 %v4753_v58, %v10815_v32  ;;  %v5210_v19 = vpop.f32.mrf.mxu0  ;;  %v5704_v23 = vrot.slane %v5703_v59, 4  ;;  %v5718_v58 = vrot.slane %v5716_v4, 5 }
 0x3fd   : > { %v5299_v11 = vpop.f32.mrf.mxu1  ;;  %v5724_v32 = vshll.u32 %v5525_v0, 16  ;;  %v5730_v59 = vshll.u32 %v5526_v3, 16  ;;  %v8007_v4 = vrot.slane %v6433_v29, 9  ;;  %v5527_v3 = vld [vmem:[#allocation2 + $0x74] sm:$0x1] }
 0x3fe   : > { %v10026_v43 = vadd.f32 %v5205_v12, %v4885_v2  ;;  %v10028_v38 = vadd.f32 %v5294_v63, %v4886_v5  ;;  %v5721_v2 = vshrl.u32 %v5525_v0, 16  ;;  %v6435_v5 = vld [vmem:[#allocation2 + $0x74] sm:$0x1]  ;;  %v5719_v28 = vsel %vm8588_vm1, %v5714_v31, %v5718_v58 }
 0x3ff   : > { %v6562_v40 = vrot.slane %v6435_v5, 5  ;;  %v5732_v31 = vrot.slane %v5730_v59, 5  ;;  %v5736_v58 = vrot.slane %v5734_v26, 4  ;;  %v10823_v5 = vld [vmem:[#allocation19_spill] sm:$0xff]  ;;  %v5740_v59 = vshll.u32 %v5527_v3, 16 }
 0x400   : > { %10816 = vst [vmem:[#allocation10_spill] sm:$0xff] %v10026_v43  ;;  %7973 = vmatmul.msk.bf16.gmra.mxu2 %vm937_vm8, %v5975_v25  ;;  %7989 = vmatmul.msk.bf16.gmra.mxu3 %vm937_vm8, %v5975_v25  ;;  %v5709_v25 = vsel %vm8588_vm1, %v5704_v23, %v5708_v10  ;;  %v5951_v10 = vunpack.c.l.b16 %v5719_v28  ;;  %v5723_v23 = vrot.slane %v5721_v2, 4 }
 0x401   : > { %10817 = vst [vmem:[#allocation11_spill] sm:$0xff] %v10028_v38  ;;  %v6563_v29 = vsel %vm8573_vm13, %v6561_v16, %v6562_v40  ;;  %v5742_v40 = vrot.slane %v5740_v59, 5 }
 0x403   : > { %v4667_v14 = vpop.f32.mrf.mxu2  ;;  %v4756_v60 = vpop.f32.mrf.mxu3 }
 0x404   : > { %v4887_v12 = vadd.f32 %v4667_v14, %v10818_v9  ;;  %v4888_v63 = vadd.f32 %v4756_v60, %v10819_v41  ;;  %v10034_v22 = vpop.f32.mrf.mxu0  ;;  %v5950_v60 = vunpack.c.l.b16 %v5709_v25  ;;  %v5726_v9 = vrot.slane %v5724_v32, 5 }
 0x405   : > { %v10036_v46 = vpop.f32.mrf.mxu1  ;;  %v5737_v32 = vor.u32 %v5736_v58, %v5732_v31 }
 0x406   : > { %v10045_v14 = vadd.f32 %v10004_v62, %v4887_v12  ;;  %v10048_v0 = vadd.f32 %v10006_v47, %v4888_v63  ;;  %v10822_v62 = vld [vmem:[#allocation18_spill] sm:$0xff]  ;;  %v5976_v63 = vpack.c.b16 %v5951_v10, %v5950_v60  ;;  %v5727_v2 = vor.u32 %v5726_v9, %v5723_v23 }
 0x407   : > { %8023 = vmatmul.msk.bf16.gmra.mxu0 %vm937_vm8, %v6660_v8  ;;  %v5738_v16 = vrot.slane %v5737_v32, 4 }
 0x408   : > { %8039 = vmatmul.msk.bf16.gmra.mxu1 %vm937_vm8, %v6660_v8  ;;  %10820 = vst [vmem:[#allocation12_spill] sm:$0xff] %v10045_v14  ;;  %v6560_v8 = vsel %vm8573_vm13, %v8007_v4, %v6559_v51  ;;  %v5528_v14 = vld [vmem:[#allocation2 + $0x78] sm:$0xf]  ;;  %v5529_v51 = vld [vmem:[#allocation2 + $0x7c] sm:$0xf]  ;;  %v5728_v4 = vrot.slane %v5727_v2, 4 }
 0x409   : > { %10821 = vst [vmem:[#allocation13_spill] sm:$0xff] %v10048_v0  ;;  %v6636_v26 = vunpack.c.l.b16 %v6560_v8  ;;  %v6637_v0 = vunpack.c.l.b16 %v6563_v29  ;;  %v5745_v60 = vshrl.u32 %v5528_v14, 16  ;;  %v5748_v10 = vshll.u32 %v5528_v14, 16 }
 0x40a   : > { %v5754_v9 = vshll.u32 %v5529_v51, 16  ;;  %v5758_v58 = vshrl.u32 %v5529_v51, 16  ;;  %v5743_v14 = vsel %vm8588_vm1, %v5738_v16, %v5742_v40 }
 0x40b   : > { %v4669_v41 = vpop.f32.mrf.mxu2  ;;  %v4758_v38 = vpop.f32.mrf.mxu3  ;;  %v6661_v23 = vpack.c.b16 %v6637_v0, %v6636_v26  ;;  %v5747_v0 = vrot.slane %v5745_v60, 4 }
 0x40c   : > { %v4889_v12 = vadd.f32 %v4669_v41, %v10822_v62  ;;  %v4890_v47 = vadd.f32 %v4758_v38, %v10823_v5  ;;  %v5215_v25 = vpop.f32.mrf.mxu0  ;;  %v6437_v38 = vld [vmem:[#allocation2 + $0x7c] sm:$0xf]  ;;  %v6438_v5 = vld [vmem:[#allocation2 + $0x80] sm:$0x1]  ;;  %v5760_v2 = vrot.slane %v5758_v58, 4 }
 0x40d   : > { %v5304_v28 = vpop.f32.mrf.mxu1  ;;  %v6566_v8 = vrot.slane %v6437_v38, 5  ;;  %v6569_v59 = vrot.slane %v6438_v5, 5  ;;  %v5530_v38 = vld [vmem:[#allocation2 + $0x80] sm:$0x1] }
 0x40e   : > { %v10056_v43 = vadd.f32 %v5210_v19, %v4889_v12  ;;  %v10058_v15 = vadd.f32 %v5299_v11, %v4890_v47  ;;  %v6436_v19 = vld [vmem:[#allocation2 + $0x78] sm:$0xe]  ;;  %v5733_v47 = vsel %vm8588_vm1, %v5728_v4, %v5732_v31  ;;  %v5953_v4 = vunpack.c.l.b16 %v5743_v14  ;;  %v10824_v58 = vld [vmem:[#allocation20_spill] sm:$0xff] }
 0x40f   : > { %v6568_v32 = vrot.slane %v6566_v8, 4  ;;  %v5952_v31 = vunpack.c.l.b16 %v5733_v47 }
 0x410   : > { %7974 = vmatmul.msk.bf16.gmra.mxu2 %vm937_vm8, %v5976_v63  ;;  %7990 = vmatmul.msk.bf16.gmra.mxu3 %vm937_vm8, %v5976_v63  ;;  %v5750_v63 = vrot.slane %v5748_v10, 5 }
 0x412   : > { %v5751_v16 = vor.u32 %v5750_v63, %v5747_v0 }
 0x413   : > { %v4672_v3 = vpop.f32.mrf.mxu2  ;;  %v4761_v41 = vpop.f32.mrf.mxu3 }
 0x414   : > { %v4891_v11 = vadd.f32 %v4672_v3, %v9670_v55  ;;  %v4892_v29 = vadd.f32 %v4761_v41, %v9672_v44  ;;  %v10064_v62 = vpop.f32.mrf.mxu0  ;;  %v5756_v55 = vrot.slane %v5754_v9, 5  ;;  %v8008_v44 = vrot.slane %v6436_v19, 9  ;;  %v10825_v41 = vld [vmem:[#allocation21_spill] sm:$0xff] }
 0x415   : > { %v10066_v12 = vpop.f32.mrf.mxu1  ;;  %v5764_v3 = vshll.u32 %v5530_v38, 16  ;;  %v6570_v9 = vsel %vm8573_vm13, %v6568_v32, %v6569_v59  ;;  %v5752_v5 = vrot.slane %v5751_v16, 4  ;;  %v5532_v32 = vld [vmem:[#allocation2 + $0x88] sm:$0xf] }
 0x416   : > { %v10075_v26 = vadd.f32 %v10034_v22, %v4891_v11  ;;  %v10078_v51 = vadd.f32 %v10036_v46, %v4892_v29  ;;  %v5761_v10 = vor.u32 %v5760_v2, %v5756_v55  ;;  %v5977_v46 = vpack.c.b16 %v5953_v4, %v5952_v31 }
 0x417   : > { %8024 = vmatmul.msk.bf16.gmra.mxu0 %vm937_vm8, %v6661_v23  ;;  %v6639_v14 = vunpack.c.l.b16 %v6570_v9  ;;  %v5766_v38 = vrot.slane %v5764_v3, 5  ;;  %v5757_v59 = vsel %vm8588_vm1, %v5752_v5, %v5756_v55  ;;  %v5782_v55 = vshrl.u32 %v5532_v32, 16 }
 0x418   : > { %8040 = vmatmul.msk.bf16.gmra.mxu1 %vm937_vm8, %v6661_v23  ;;  %v6567_v23 = vsel %vm8573_vm13, %v8008_v44, %v6566_v8  ;;  %v5762_v2 = vrot.slane %v5761_v10, 4  ;;  %v5531_v8 = vld [vmem:[#allocation2 + $0x84] sm:$0xf]  ;;  %v6440_v44 = vld [vmem:[#allocation2 + $0x88] sm:$0xf] }
 0x419   : > { %v6638_v47 = vunpack.c.l.b16 %v6567_v23  ;;  %v5769_v4 = vshrl.u32 %v5531_v8, 16  ;;  %v5772_v16 = vshll.u32 %v5531_v8, 16  ;;  %v6573_v10 = vrot.slane %v6440_v44, 5 }
 0x41a   : > { %v5784_v44 = vrot.slane %v5782_v55, 4 }
 0x41b   : > { %v4674_v40 = vpop.f32.mrf.mxu2  ;;  %v4763_v60 = vpop.f32.mrf.mxu3  ;;  %v6662_v31 = vpack.c.b16 %v6639_v14, %v6638_v47  ;;  %v5771_v5 = vrot.slane %v5769_v4, 4  ;;  %v5774_v47 = vrot.slane %v5772_v16, 5 }
 0x41c   : > { %v4893_v22 = vadd.f32 %v4674_v40, %v10824_v58  ;;  %v4894_v19 = vadd.f32 %v4763_v60, %v10825_v41  ;;  %v5220_v11 = vpop.f32.mrf.mxu0  ;;  %v6439_v60 = vld [vmem:[#allocation2 + $0x84] sm:$0xe]  ;;  %v6441_v41 = vld [vmem:[#allocation2 + $0x8c] sm:$0x1] }
 0x41d   : > { %v5309_v29 = vpop.f32.mrf.mxu1  ;;  %v8009_v14 = vrot.slane %v6439_v60, 9 }
 0x41e   : > { %v10086_v0 = vadd.f32 %v5215_v25, %v4893_v22  ;;  %v10088_v63 = vadd.f32 %v5304_v28, %v4894_v19  ;;  %v5767_v28 = vsel %vm8588_vm1, %v5762_v2, %v5766_v38  ;;  %v5778_v22 = vshll.u32 %v5532_v32, 16  ;;  %v5533_v32 = vld [vmem:[#allocation2 + $0x8c] sm:$0x1] }
 0x41f   : > { %v5954_v19 = vunpack.c.l.b16 %v5757_v59  ;;  %v6575_v2 = vrot.slane %v6573_v10, 4 }
 0x420   : > { %7975 = vmatmul.msk.bf16.gmra.mxu2 %vm937_vm8, %v5977_v46  ;;  %7991 = vmatmul.msk.bf16.gmra.mxu3 %vm937_vm8, %v5977_v46  ;;  %v5955_v46 = vunpack.c.l.b16 %v5767_v28  ;;  %v5780_v8 = vrot.slane %v5778_v22, 5  ;;  %v5775_v28 = vor.u32 %v5774_v47, %v5771_v5 }
 0x422   : > { %v5776_v5 = vrot.slane %v5775_v28, 4 }
 0x423   : > { %v4677_v40 = vpop.f32.mrf.mxu2  ;;  %v4766_v25 = vpop.f32.mrf.mxu3 }
 0x424   : > { %v4895_v3 = vadd.f32 %v4677_v40, %v9690_v20  ;;  %v4896_v23 = vadd.f32 %v4766_v25, %v9692_v48  ;;  %v10098_v9 = vpop.f32.mrf.mxu0  ;;  %v6576_v20 = vrot.slane %v6441_v41, 5  ;;  %v5978_v25 = vpack.c.b16 %v5955_v46, %v5954_v19  ;;  %v5534_v41 = vld [vmem:[#allocation2 + $0x90] sm:$0xf]  ;;  %v5535_v19 = vld [vmem:[#allocation2 + $0x94] sm:$0xf] }
 0x425   : > { %v10100_v58 = vpop.f32.mrf.mxu1 }
 0x426   : > { %v10105_v48 = vadd.f32 %v10064_v62, %v4895_v3  ;;  %v10108_v38 = vadd.f32 %v10066_v12, %v4896_v23  ;;  %v6577_v4 = vsel %vm8573_vm13, %v6575_v2, %v6576_v20  ;;  %v5785_v3 = vor.u32 %v5784_v44, %v5780_v8  ;;  %v6443_v2 = vld [vmem:[#allocation2 + $0x94] sm:$0xf] }
 0x427   : > { %8025 = vmatmul.msk.bf16.gmra.mxu0 %vm937_vm8, %v6662_v31  ;;  %v5788_v23 = vshll.u32 %v5533_v32, 16  ;;  %v6641_v55 = vunpack.c.l.b16 %v6577_v4  ;;  %v5796_v20 = vshll.u32 %v5534_v41, 16  ;;  %v5806_v44 = vshrl.u32 %v5535_v19, 16 }
 0x428   : > { %8041 = vmatmul.msk.bf16.gmra.mxu1 %vm937_vm8, %v6662_v31  ;;  %v6574_v31 = vsel %vm8573_vm13, %v8009_v14, %v6573_v10  ;;  %v5786_v47 = vrot.slane %v5785_v3, 4 }
 0x429   : > { %v6640_v22 = vunpack.c.l.b16 %v6574_v31  ;;  %v5790_v14 = vrot.slane %v5788_v23, 5 }
 0x42b   : > { %v4679_v59 = vpop.f32.mrf.mxu2  ;;  %v4768_v40 = vpop.f32.mrf.mxu3  ;;  %v6663_v32 = vpack.c.b16 %v6641_v55, %v6640_v22  ;;  %v5781_v22 = vsel %vm8588_vm1, %v5776_v5, %v5780_v8  ;;  %v5791_v55 = vsel %vm8588_vm1, %v5786_v47, %v5790_v14  ;;  %v5536_v8 = vld [vmem:[#allocation2 + $0x98] sm:$0x1] }
 0x42c   : > { %v4897_v16 = vadd.f32 %v4679_v59, %v9696_v61  ;;  %v4898_v62 = vadd.f32 %v4768_v40, %v9698_v37  ;;  %v10116_v60 = vpop.f32.mrf.mxu0  ;;  %v7160_v61 = vld [vmem:[%s10577_s2] sm:$0x3]  ;;  %v5956_v47 = vunpack.c.l.b16 %v5781_v22  ;;  %v5957_v14 = vunpack.c.l.b16 %v5791_v55 }
 0x42d   : > { %v10118_v12 = vpop.f32.mrf.mxu1  ;;  %v7230_v37 = vld [vmem:[%s10578_s3] sm:$0x3]  ;;  %v10132_v40 = vperm.slane %v7160_v61, 0 }
 0x42e   : > { %v10120_v46 = vadd.f32 %v5220_v11, %v4897_v16  ;;  %v10122_v10 = vadd.f32 %v5309_v29, %v4898_v62  ;;  %v5793_v11 = vshrl.u32 %v5534_v41, 16  ;;  %v5802_v29 = vshll.u32 %v5535_v19, 16  ;;  %v6442_v62 = vld [vmem:[#allocation2 + $0x90] sm:$0xe]  ;;  %v6444_v41 = vld [vmem:[#allocation2 + $0x98] sm:$0x1] }
 0x42f   : > { %v10134_v31 = vperm.slane %v7230_v37, 0  ;;  %v10136_v16 = vperm.slane %v7160_v61, 1  ;;  %v5798_v61 = vrot.slane %v5796_v20, 5  ;;  %v8010_v5 = vrot.slane %v6442_v62, 9 }
 0x430   : > { %10826 = vst [vmem:[#allocation14_spill] sm:$0xff] %v10120_v46  ;;  %7976 = vmatmul.msk.bf16.gmra.mxu2 %vm937_vm8, %v5978_v25  ;;  %7992 = vmatmul.msk.bf16.gmra.mxu3 %vm937_vm8, %v5978_v25  ;;  %v5795_v19 = vrot.slane %v5793_v11, 4  ;;  %v10148_v46 = vrot.slane %v5802_v29, 5  ;;  %v6583_v20 = vrot.slane %v6444_v41, 5  ;;  %v5979_v22 = vpack.c.b16 %v5957_v14, %v5956_v47 }
 0x431   : > { %10827 = vst [vmem:[#allocation15_spill] sm:$0xff] %v10122_v10  ;;  %v6580_v10 = vrot.slane %v6443_v2, 5  ;;  %v5808_v2 = vrot.slane %v5806_v44, 4 }
 0x432   : > { %v5799_v44 = vor.u32 %v5798_v61, %v5795_v19 }
 0x433   : > { %v6051_v59 = vpop.f32.mrf.mxu2  ;;  %v6140_v4 = vpop.f32.mrf.mxu3  ;;  %v6582_v11 = vrot.slane %v6580_v10, 4  ;;  %v6581_v62 = vsel %vm8573_vm13, %v8010_v5, %v6580_v10 }
 0x434   : > { %v6284_v25 = vadd.f32 %v6051_v59, %v9710_v13  ;;  %v6285_v28 = vadd.f32 %v6140_v4, %v9712_v49  ;;  %v10140_v3 = vpop.f32.mrf.mxu0  ;;  %v10152_v59 = vperm.slane %v7230_v37, 1  ;;  %v5812_v37 = vshll.u32 %v5536_v8, 16 }
 0x435   : > { %v10142_v23 = vpop.f32.mrf.mxu1  ;;  %v6584_v55 = vsel %vm8573_vm13, %v6582_v11, %v6583_v20  ;;  %v5800_v8 = vrot.slane %v5799_v44, 4  ;;  %v6642_v10 = vunpack.c.l.b16 %v6581_v62  ;;  %v5537_v20 = vld [vmem:[#allocation2 + $0x9c] sm:$0xf]  ;;  %v5538_v44 = vld [vmem:[#allocation2 + $0xa0] sm:$0xf] }
 0x436   : > { %v6968_v13 = vadd.f32 %v10098_v9, %v6284_v25  ;;  %v6969_v49 = vadd.f32 %v10100_v58, %v6285_v28  ;;  %v5809_v58 = vor.u32 %v5808_v2, %v10148_v46  ;;  %v6643_v11 = vunpack.c.l.b16 %v6584_v55 }
 0x437   : > { %8026 = vmatmul.msk.bf16.gmra.mxu0 %vm937_vm8, %v6663_v32 }
 0x438   : > { %8042 = vmatmul.msk.bf16.gmra.mxu1 %vm937_vm8, %v6663_v32  ;;  %v7166_v29 = vmul.f32 %v10132_v40, %v6968_v13  ;;  %v7167_v9 = vmul.f32 %v10136_v16, %v6969_v49 }
 0x43a   : > { %v7236_v4 = vadd.f32 %v10134_v31, %v7166_v29  ;;  %v7237_v32 = vadd.f32 %v10152_v59, %v7167_v9  ;;  %v5810_v29 = vrot.slane %v5809_v58, 4  ;;  %v5814_v9 = vrot.slane %v5812_v37, 5  ;;  %v6446_v58 = vld [vmem:[#allocation2 + $0xa0] sm:$0xf] }
 0x43b   : > { %v6053_v25 = vpop.f32.mrf.mxu2  ;;  %v6142_v28 = vpop.f32.mrf.mxu3  ;;  %v5820_v37 = vshll.u32 %v5537_v20, 16 }
 0x43c   : > { %v7300_v41 = vmax.f32 %v7236_v4, 0.0  ;;  %v7301_v19 = vmax.f32 %v7237_v32, 0.0  ;;  %v6286_v61 = vadd.f32 %v6053_v25, %v9716_v33  ;;  %v6287_v2 = vadd.f32 %v6142_v28, %v9718_v53  ;;  %v10170_v13 = vpop.f32.mrf.mxu0 }
 0x43d   : > { %v10172_v49 = vpop.f32.mrf.mxu1  ;;  %v5815_v62 = vsel %vm8588_vm1, %v5810_v29, %v5814_v9  ;;  %v6664_v25 = vpack.c.b16 %v6643_v11, %v6642_v10  ;;  %v5822_v11 = vrot.slane %v5820_v37, 5  ;;  %v5539_v37 = vld [vmem:[#allocation2 + $0xa4] sm:$0x1] }
 0x43e   : > { %v7364_v5 = vpack.c.bf16 %v7301_v19, %v7300_v41  ;;  %v6970_v47 = vadd.f32 %v10116_v60, %v6286_v61  ;;  %v6971_v14 = vadd.f32 %v10118_v12, %v6287_v2  ;;  %v5805_v60 = vsel %vm8588_vm1, %v5800_v8, %v10148_v46  ;;  %v6445_v19 = vld [vmem:[#allocation2 + $0x9c] sm:$0xe] }
 0x43f   : > { %v5817_v12 = vshrl.u32 %v5537_v20, 16  ;;  %v5826_v41 = vshll.u32 %v5538_v44, 16  ;;  %v6587_v61 = vrot.slane %v6446_v58, 5  ;;  %v6447_v20 = vld [vmem:[#allocation2 + $0xa4] sm:$0x1]  ;;  %v5958_v29 = vunpack.c.l.b16 %v5805_v60 }
 0x440   : > { %7396 = vst [vmem:[%s10176_s13] sm:$0xff] %v7364_v5  ;;  %v7168_v33 = vmul.f32 %v10132_v40, %v6970_v47  ;;  %v7169_v53 = vmul.f32 %v10136_v16, %v6971_v14  ;;  %7977 = vmatmul.msk.bf16.gmra.mxu2 %vm937_vm8, %v5979_v22  ;;  %7993 = vmatmul.msk.bf16.gmra.mxu3 %vm937_vm8, %v5979_v22  ;;  %v5830_v22 = vshrl.u32 %v5538_v44, 16  ;;  %v5959_v9 = vunpack.c.l.b16 %v5815_v62 }
 0x441   : > { %v5819_v10 = vrot.slane %v5817_v12, 4 }
 0x442   : > { %v7238_v4 = vadd.f32 %v10134_v31, %v7168_v33  ;;  %v7239_v32 = vadd.f32 %v10152_v59, %v7169_v53  ;;  %v5832_v58 = vrot.slane %v5830_v22, 4  ;;  %v5980_v62 = vpack.c.b16 %v5959_v9, %v5958_v29 }
 0x443   : > { %v6056_v28 = vpop.f32.mrf.mxu2  ;;  %v6145_v55 = vpop.f32.mrf.mxu3 }
 0x444   : > { %v7302_v2 = vmax.f32 %v7238_v4, 0.0  ;;  %v7303_v5 = vmax.f32 %v7239_v32, 0.0  ;;  %v6288_v46 = vadd.f32 %v6056_v28, %v9730_v7  ;;  %v6289_v8 = vadd.f32 %v6145_v55, %v9732_v54  ;;  %v10192_v47 = vpop.f32.mrf.mxu0 }
 0x445   : > { %v10194_v14 = vpop.f32.mrf.mxu1  ;;  %v8011_v7 = vrot.slane %v6445_v19, 9  ;;  %v10200_v54 = vrot.slane %v5826_v41, 5  ;;  %v6589_v4 = vrot.slane %v6587_v61, 4  ;;  %v6590_v32 = vrot.slane %v6447_v20, 5  ;;  %v10828_v20 = vld [vmem:[#allocation22_spill] sm:$0xff] }
 0x446   : > { %v7365_v33 = vpack.c.bf16 %v7303_v5, %v7302_v2  ;;  %v6972_v53 = vadd.f32 %v10140_v3, %v6288_v46  ;;  %v6973_v44 = vadd.f32 %v10142_v23, %v6289_v8  ;;  %v5823_v41 = vor.u32 %v5822_v11, %v5819_v10 }
 0x447   : > { %8027 = vmatmul.msk.bf16.gmra.mxu0 %vm937_vm8, %v6664_v25  ;;  %v5833_v22 = vor.u32 %v5832_v58, %v10200_v54  ;;  %v5836_v19 = vshll.u32 %v5539_v37, 16  ;;  %v6591_v2 = vsel %vm8573_vm13, %v6589_v4, %v6590_v32  ;;  %v5541_v58 = vld [vmem:[#allocation2 + $0xac] sm:$0xf] }
 0x448   : > { %8043 = vmatmul.msk.bf16.gmra.mxu1 %vm937_vm8, %v6664_v25  ;;  %7397 = vst [vmem:[%s10176_s13 + $0x8] sm:$0xff] %v7365_v33  ;;  %v7170_v60 = vmul.f32 %v10132_v40, %v6972_v53  ;;  %v7171_v12 = vmul.f32 %v10136_v16, %v6973_v44  ;;  %v6588_v25 = vsel %vm8573_vm13, %v8011_v7, %v6587_v61  ;;  %v6645_v44 = vunpack.c.l.b16 %v6591_v2  ;;  %v5540_v7 = vld [vmem:[#allocation2 + $0xa8] sm:$0xf]  ;;  %v6449_v37 = vld [vmem:[#allocation2 + $0xac] sm:$0xf] }
 0x449   : > { %v6644_v61 = vunpack.c.l.b16 %v6588_v25  ;;  %v5824_v4 = vrot.slane %v5823_v41, 4  ;;  %v5834_v32 = vrot.slane %v5833_v22, 4 }
 0x44a   : > { %v7240_v3 = vadd.f32 %v10134_v31, %v7170_v60  ;;  %v7241_v23 = vadd.f32 %v10152_v59, %v7171_v12  ;;  %v5838_v60 = vrot.slane %v5836_v19, 5 }
 0x44b   : > { %v6058_v28 = vpop.f32.mrf.mxu2  ;;  %v6147_v55 = vpop.f32.mrf.mxu3  ;;  %v5829_v19 = vsel %vm8588_vm1, %v5824_v4, %v10200_v54 }
 0x44c   : > { %v7304_v5 = vmax.f32 %v7240_v3, 0.0  ;;  %v7305_v46 = vmax.f32 %v7241_v23, 0.0  ;;  %v6290_v8 = vadd.f32 %v6058_v28, %v9736_v52  ;;  %v6291_v33 = vadd.f32 %v6147_v55, %v10828_v20  ;;  %v10214_v29 = vpop.f32.mrf.mxu0 }
 0x44d   : > { %v10216_v9 = vpop.f32.mrf.mxu1  ;;  %v5841_v3 = vshrl.u32 %v5540_v7, 16  ;;  %v5850_v23 = vshll.u32 %v5541_v58, 16  ;;  %v6665_v55 = vpack.c.b16 %v6645_v44, %v6644_v61  ;;  %v5839_v2 = vsel %vm8588_vm1, %v5834_v32, %v5838_v60 }
 0x44e   : > { %v7366_v53 = vpack.c.bf16 %v7305_v46, %v7304_v5  ;;  %v6974_v10 = vadd.f32 %v10170_v13, %v6290_v8  ;;  %v6975_v11 = vadd.f32 %v10172_v49, %v6291_v33  ;;  %v5844_v13 = vshll.u32 %v5540_v7, 16 }
 0x44f   : > { %v5854_v49 = vshrl.u32 %v5541_v58, 16  ;;  %v6594_v5 = vrot.slane %v6449_v37, 5  ;;  %v10238_v54 = vrot.slane %v5850_v23, 5  ;;  %v5960_v60 = vunpack.c.l.b16 %v5829_v19 }
 0x450   : > { %7398 = vst [vmem:[%s10176_s13 + $0x10] sm:$0xff] %v7366_v53  ;;  %v7172_v52 = vmul.f32 %v10132_v40, %v6974_v10  ;;  %v7173_v12 = vmul.f32 %v10136_v16, %v6975_v11  ;;  %7978 = vmatmul.msk.bf16.gmra.mxu2 %vm937_vm8, %v5980_v62  ;;  %7994 = vmatmul.msk.bf16.gmra.mxu3 %vm937_vm8, %v5980_v62  ;;  %v6448_v62 = vld [vmem:[#allocation2 + $0xa8] sm:$0xe]  ;;  %v6450_v10 = vld [vmem:[#allocation2 + $0xb0] sm:$0x1]  ;;  %v5843_v11 = vrot.slane %v5841_v3, 4 }
 0x451   : > { %v5846_v44 = vrot.slane %v5844_v13, 5  ;;  %v5856_v7 = vrot.slane %v5854_v49, 4  ;;  %v6597_v37 = vrot.slane %v6450_v10, 5 }
 0x452   : > { %v7242_v25 = vadd.f32 %v10134_v31, %v7172_v52  ;;  %v7243_v28 = vadd.f32 %v10152_v59, %v7173_v12  ;;  %v5961_v52 = vunpack.c.l.b16 %v5839_v2  ;;  %v6596_v12 = vrot.slane %v6594_v5, 4 }
 0x453   : > { %v6061_v41 = vpop.f32.mrf.mxu2  ;;  %v6150_v22 = vpop.f32.mrf.mxu3  ;;  %v5847_v23 = vor.u32 %v5846_v44, %v5843_v11 }
 0x454   : > { %v7306_v46 = vmax.f32 %v7242_v25, 0.0  ;;  %v7307_v8 = vmax.f32 %v7243_v28, 0.0  ;;  %v6292_v20 = vadd.f32 %v6061_v41, %v9750_v6  ;;  %v6293_v33 = vadd.f32 %v6150_v22, %v9752_v36  ;;  %v10234_v53 = vpop.f32.mrf.mxu0  ;;  %v5542_v6 = vld [vmem:[#allocation2 + $0xb0] sm:$0x1] }
 0x455   : > { %v10236_v61 = vpop.f32.mrf.mxu1  ;;  %v8012_v36 = vrot.slane %v6448_v62, 9  ;;  %v5860_v49 = vshll.u32 %v5542_v6, 16  ;;  %v5981_v22 = vpack.c.b16 %v5961_v52, %v5960_v60  ;;  %v6598_v19 = vsel %vm8573_vm13, %v6596_v12, %v6597_v37  ;;  %v5543_v6 = vld [vmem:[#allocation2 + $0xb4] sm:$0xf]  ;;  %v6452_v60 = vld [vmem:[#allocation2 + $0xb8] sm:$0xf] }
 0x456   : > { %v7367_v58 = vpack.c.bf16 %v7307_v8, %v7306_v46  ;;  %v6976_v4 = vadd.f32 %v10192_v47, %v6292_v20  ;;  %v6977_v32 = vadd.f32 %v10194_v14, %v6293_v33  ;;  %v5857_v47 = vor.u32 %v5856_v7, %v10238_v54 }
 0x457   : > { %8028 = vmatmul.msk.bf16.gmra.mxu0 %vm937_vm8, %v6665_v55  ;;  %v6595_v28 = vsel %vm8573_vm13, %v8012_v36, %v6594_v5  ;;  %v5848_v10 = vrot.slane %v5847_v23, 4  ;;  %v5862_v5 = vrot.slane %v5860_v49, 5  ;;  %v5544_v36 = vld [vmem:[#allocation2 + $0xb8] sm:$0xf]  ;;  %v5868_v12 = vshll.u32 %v5543_v6, 16 }
 0x458   : > { %8044 = vmatmul.msk.bf16.gmra.mxu1 %vm937_vm8, %v6665_v55  ;;  %7399 = vst [vmem:[%s10176_s13 + $0x18] sm:$0xff] %v7367_v58  ;;  %v7174_v3 = vmul.f32 %v10132_v40, %v6976_v4  ;;  %v7175_v13 = vmul.f32 %v10136_v16, %v6977_v32  ;;  %v5858_v11 = vrot.slane %v5857_v47, 4  ;;  %v6646_v44 = vunpack.c.l.b16 %v6595_v28 }
 0x459   : > { %v6647_v32 = vunpack.c.l.b16 %v6598_v19  ;;  %v5853_v52 = vsel %vm8588_vm1, %v5848_v10, %v10238_v54  ;;  %v5874_v49 = vshll.u32 %v5544_v36, 16  ;;  %v6601_v28 = vrot.slane %v6452_v60, 5 }
 0x45a   : > { %v7244_v14 = vadd.f32 %v10134_v31, %v7174_v3  ;;  %v7245_v25 = vadd.f32 %v10152_v59, %v7175_v13  ;;  %v5863_v3 = vsel %vm8588_vm1, %v5858_v11, %v5862_v5  ;;  %v5870_v11 = vrot.slane %v5868_v12, 5 }
 0x45b   : > { %v6063_v55 = vpop.f32.mrf.mxu2  ;;  %v6152_v41 = vpop.f32.mrf.mxu3  ;;  %v6666_v13 = vpack.c.b16 %v6647_v32, %v6646_v44 }
 0x45c   : > { %v7308_v2 = vmax.f32 %v7244_v14, 0.0  ;;  %v7309_v62 = vmax.f32 %v7245_v25, 0.0  ;;  %v6294_v46 = vadd.f32 %v6063_v55, %v9756_v30  ;;  %v6295_v8 = vadd.f32 %v6152_v41, %v9758_v45  ;;  %v10256_v20 = vpop.f32.mrf.mxu0  ;;  %v6451_v25 = vld [vmem:[#allocation2 + $0xb4] sm:$0xe] }
 0x45d   : > { %v10258_v33 = vpop.f32.mrf.mxu1  ;;  %v5878_v14 = vshrl.u32 %v5544_v36, 16 }
 0x45e   : > { %v7368_v7 = vpack.c.bf16 %v7309_v62, %v7308_v2  ;;  %v6978_v58 = vadd.f32 %v10214_v29, %v6294_v46  ;;  %v6979_v4 = vadd.f32 %v10216_v9, %v6295_v8  ;;  %v5865_v29 = vshrl.u32 %v5543_v6, 16  ;;  %v6453_v62 = vld [vmem:[#allocation2 + $0xbc] sm:$0x1] }
 0x45f   : > { %v5962_v46 = vunpack.c.l.b16 %v5853_v52  ;;  %v5963_v8 = vunpack.c.l.b16 %v5863_v3  ;;  %v6604_v32 = vrot.slane %v6453_v62, 5 }
 0x460   : > { %7400 = vst [vmem:[%s10176_s13 + $0x20] sm:$0xff] %v7368_v7  ;;  %v7176_v30 = vmul.f32 %v10132_v40, %v6978_v58  ;;  %v7177_v45 = vmul.f32 %v10136_v16, %v6979_v4  ;;  %7979 = vmatmul.msk.bf16.gmra.mxu2 %vm937_vm8, %v5981_v22  ;;  %7995 = vmatmul.msk.bf16.gmra.mxu3 %vm937_vm8, %v5981_v22  ;;  %v5867_v10 = vrot.slane %v5865_v29, 4  ;;  %v5880_v58 = vrot.slane %v5878_v14, 4 }
 0x461   : > { %v6603_v4 = vrot.slane %v6601_v28, 4  ;;  %v5982_v36 = vpack.c.b16 %v5963_v8, %v5962_v46  ;;  %v5547_v46 = vld [vmem:[#allocation2 + $0xc4] sm:$0xf] }
 0x462   : > { %v7246_v9 = vadd.f32 %v10134_v31, %v7176_v30  ;;  %v7247_v37 = vadd.f32 %v10152_v59, %v7177_v45  ;;  %v5545_v45 = vld [vmem:[#allocation2 + $0xbc] sm:$0x1]  ;;  %v5871_v12 = vor.u32 %v5870_v11, %v5867_v10 }
 0x463   : > { %v6066_v23 = vpop.f32.mrf.mxu2  ;;  %v6155_v47 = vpop.f32.mrf.mxu3  ;;  %v6605_v3 = vsel %vm8573_vm13, %v6603_v4, %v6604_v32 }
 0x464   : > { %v7310_v55 = vmax.f32 %v7246_v9, 0.0  ;;  %v7311_v41 = vmax.f32 %v7247_v37, 0.0  ;;  %v6296_v54 = vadd.f32 %v6066_v23, %v9770_v39  ;;  %v6297_v22 = vadd.f32 %v6155_v47, %v9772_v57  ;;  %v10276_v19 = vpop.f32.mrf.mxu0 }
 0x465   : > { %v10278_v2 = vpop.f32.mrf.mxu1  ;;  %v8013_v39 = vrot.slane %v6451_v25, 9  ;;  %v10284_v57 = vrot.slane %v5874_v49, 5  ;;  %v5884_v37 = vshll.u32 %v5545_v45, 16  ;;  %v6649_v62 = vunpack.c.l.b16 %v6605_v3 }
 0x466   : > { %v7369_v5 = vpack.c.bf16 %v7311_v41, %v7310_v55  ;;  %v6980_v44 = vadd.f32 %v10234_v53, %v6296_v54  ;;  %v6981_v7 = vadd.f32 %v10236_v61, %v6297_v22  ;;  %v5546_v55 = vld [vmem:[#allocation2 + $0xc0] sm:$0xf]  ;;  %v5872_v8 = vrot.slane %v5871_v12, 4 }
 0x467   : > { %8029 = vmatmul.msk.bf16.gmra.mxu0 %vm937_vm8, %v6666_v13  ;;  %v6602_v60 = vsel %vm8573_vm13, %v8013_v39, %v6601_v28  ;;  %v5881_v9 = vor.u32 %v5880_v58, %v10284_v57  ;;  %v5886_v11 = vrot.slane %v5884_v37, 5  ;;  %v5898_v39 = vshll.u32 %v5547_v46, 16 }
 0x468   : > { %8045 = vmatmul.msk.bf16.gmra.mxu1 %vm937_vm8, %v6666_v13  ;;  %7401 = vst [vmem:[%s10176_s13 + $0x28] sm:$0xff] %v7369_v5  ;;  %v7178_v6 = vmul.f32 %v10132_v40, %v6980_v44  ;;  %v7179_v30 = vmul.f32 %v10136_v16, %v6981_v7  ;;  %v6648_v28 = vunpack.c.l.b16 %v6602_v60  ;;  %v5889_v5 = vshrl.u32 %v5546_v55, 16  ;;  %v6455_v44 = vld [vmem:[#allocation2 + $0xc4] sm:$0xf]  ;;  %v316_v7 = vld [vmem:[#allocation2 + $0xd4] sm:$0x1] }
 0x469   : > { %v5882_v10 = vrot.slane %v5881_v9, 4  ;;  %v317_v4 = vsel %vm8304_vm5, 0, %v316_v7  ;;  %v6454_v60 = vld [vmem:[#allocation2 + $0xc0] sm:$0xe] }
 0x46a   : > { %v7248_v53 = vadd.f32 %v10134_v31, %v7178_v6  ;;  %v7249_v61 = vadd.f32 %v10152_v59, %v7179_v30  ;;  %v6667_v30 = vpack.c.b16 %v6649_v62, %v6648_v28  ;;  %318 = vst [vmem:[#allocation2 + $0xd4] sm:$0x1] %v317_v4 }
 0x46b   : > { %v6068_v52 = vpop.f32.mrf.mxu2  ;;  %v6157_v29 = vpop.f32.mrf.mxu3 }
 0x46c   : > { %v7312_v13 = vmax.f32 %v7248_v53, 0.0  ;;  %v7313_v23 = vmax.f32 %v7249_v61, 0.0  ;;  %v6298_v47 = vadd.f32 %v6068_v52, %v9776_v42  ;;  %v6299_v49 = vadd.f32 %v6157_v29, %v9778_v27  ;;  %v10298_v14 = vpop.f32.mrf.mxu0 }
 0x46d   : > { %v10300_v25 = vpop.f32.mrf.mxu1  ;;  %v5877_v61 = vsel %vm8588_vm1, %v5872_v8, %v10284_v57  ;;  %v6608_v52 = vrot.slane %v6455_v44, 5  ;;  %v10324_v57 = vrot.slane %v5898_v39, 5 }
 0x46e   : > { %v7370_v41 = vpack.c.bf16 %v7313_v23, %v7312_v13  ;;  %v6982_v54 = vadd.f32 %v10256_v20, %v6298_v47  ;;  %v6983_v22 = vadd.f32 %v10258_v33, %v6299_v49  ;;  %v5892_v20 = vshll.u32 %v5546_v55, 16  ;;  %v6456_v23 = vld [vmem:[#allocation2 + $0xc8] sm:$0x1] }
 0x46f   : > { %v5902_v33 = vshrl.u32 %v5547_v46, 16  ;;  %v5891_v47 = vrot.slane %v5889_v5, 4  ;;  %v6610_v46 = vrot.slane %v6608_v52, 4  ;;  %v6611_v8 = vrot.slane %v6456_v23, 5 }
 0x470   : > { %7402 = vst [vmem:[%s10176_s13 + $0x30] sm:$0xff] %v7370_v41  ;;  %v7180_v42 = vmul.f32 %v10132_v40, %v6982_v54  ;;  %v7181_v27 = vmul.f32 %v10136_v16, %v6983_v22  ;;  %7980 = vmatmul.msk.bf16.gmra.mxu2 %vm937_vm8, %v5982_v36  ;;  %7996 = vmatmul.msk.bf16.gmra.mxu3 %vm937_vm8, %v5982_v36  ;;  %v5894_v49 = vrot.slane %v5892_v20, 5  ;;  %v5964_v22 = vunpack.c.l.b16 %v5877_v61 }
 0x471   : > { %v5887_v36 = vsel %vm8588_vm1, %v5882_v10, %v5886_v11  ;;  %v5904_v28 = vrot.slane %v5902_v33, 4  ;;  %v6612_v33 = vsel %vm8573_vm13, %v6610_v46, %v6611_v8 }
 0x472   : > { %v7250_v32 = vadd.f32 %v10134_v31, %v7180_v42  ;;  %v7251_v6 = vadd.f32 %v10152_v59, %v7181_v27  ;;  %v5965_v62 = vunpack.c.l.b16 %v5887_v36  ;;  %v5895_v42 = vor.u32 %v5894_v49, %v5891_v47  ;;  %v5549_v47 = vld [vmem:[#allocation2 + $0xcc] sm:$0xf] }
 0x473   : > { %v6071_v45 = vpop.f32.mrf.mxu2  ;;  %v6160_v53 = vpop.f32.mrf.mxu3  ;;  %v6651_v23 = vunpack.c.l.b16 %v6612_v33  ;;  %v6459_v33 = vld [vmem:[#allocation2 + $0xd4] sm:$0x1] }
 0x474   : > { %v7314_v29 = vmax.f32 %v7250_v32, 0.0  ;;  %v7315_v12 = vmax.f32 %v7251_v6, 0.0  ;;  %v6300_v9 = vadd.f32 %v6071_v45, %v9790_v34  ;;  %v6301_v37 = vadd.f32 %v6160_v53, %v9792_v18  ;;  %v10320_v3 = vpop.f32.mrf.mxu0  ;;  %v5548_v34 = vld [vmem:[#allocation2 + $0xc8] sm:$0x1]  ;;  %v10830_v32 = vld [vmem:[#allocation23_spill] sm:$0xff] }
 0x475   : > { %v10322_v13 = vpop.f32.mrf.mxu1  ;;  %v8014_v18 = vrot.slane %v6454_v60, 9  ;;  %v5908_v27 = vshll.u32 %v5548_v34, 16  ;;  %v5983_v39 = vpack.c.b16 %v5965_v62, %v5964_v22  ;;  %v5896_v36 = vrot.slane %v5895_v42, 4  ;;  %v6457_v42 = vld [vmem:[#allocation2 + $0xcc] sm:$0xe] }
 0x476   : > { %v7371_v55 = vpack.c.bf16 %v7315_v12, %v7314_v29  ;;  %v6984_v41 = vadd.f32 %v10276_v19, %v6300_v9  ;;  %v6985_v54 = vadd.f32 %v10278_v2, %v6301_v37  ;;  %v5905_v19 = vor.u32 %v5904_v28, %v10324_v57 }
 0x477   : > { %8030 = vmatmul.msk.bf16.gmra.mxu0 %vm937_vm8, %v6667_v30  ;;  %v6609_v44 = vsel %vm8573_vm13, %v8014_v18, %v6608_v52  ;;  %v5910_v52 = vrot.slane %v5908_v27, 5  ;;  %v5916_v34 = vshll.u32 %v5549_v47, 16 }
 0x478   : > { %8046 = vmatmul.msk.bf16.gmra.mxu1 %vm937_vm8, %v6667_v30  ;;  %7403 = vst [vmem:[%s10176_s13 + $0x38] sm:$0xff] %v7371_v55  ;;  %v7182_v10 = vmul.f32 %v10132_v40, %v6984_v41  ;;  %v7183_v11 = vmul.f32 %v10136_v16, %v6985_v54  ;;  %v10831_v30 = vld [vmem:[#allocation24_spill] sm:$0xff]  ;;  %v5906_v60 = vrot.slane %v5905_v19, 4  ;;  %v6650_v29 = vunpack.c.l.b16 %v6609_v44  ;;  %v5550_v55 = vld [vmem:[#allocation2 + $0xd0] sm:$0xf] }
 0x479   : > { %v6458_v41 = vld [vmem:[#allocation2 + $0xd0] sm:$0xf]  ;;  %v5901_v54 = vsel %vm8588_vm1, %v5896_v36, %v10324_v57 }
 0x47a   : > { %v7252_v2 = vadd.f32 %v10134_v31, %v7182_v10  ;;  %v7253_v5 = vadd.f32 %v10152_v59, %v7183_v11  ;;  %v5911_v22 = vsel %vm8588_vm1, %v5906_v60, %v5910_v52  ;;  %v6668_v62 = vpack.c.b16 %v6651_v23, %v6650_v29  ;;  %v10833_v44 = vld [vmem:[#allocation26_spill] sm:$0xff] }
 0x47b   : > { %v6073_v7 = vpop.f32.mrf.mxu2  ;;  %v6162_v20 = vpop.f32.mrf.mxu3  ;;  %v5922_v10 = vshll.u32 %v5550_v55, 16  ;;  %v5926_v11 = vshrl.u32 %v5550_v55, 16  ;;  %v6615_v19 = vrot.slane %v6458_v41, 5  ;;  %v8015_v60 = vrot.slane %v6457_v42, 9 }
 0x47c   : > { %v7316_v58 = vmax.f32 %v7252_v2, 0.0  ;;  %v7317_v4 = vmax.f32 %v7253_v5, 0.0  ;;  %v6302_v6 = vadd.f32 %v6073_v7, %v10830_v32  ;;  %v6303_v45 = vadd.f32 %v6162_v20, %v10831_v30  ;;  %v10342_v53 = vpop.f32.mrf.mxu0  ;;  %v10832_v5 = vld [vmem:[#allocation25_spill] sm:$0xff] }
 0x47d   : > { %v10344_v61 = vpop.f32.mrf.mxu1  ;;  %v5924_v52 = vrot.slane %v5922_v10, 5  ;;  %v5928_v29 = vrot.slane %v5926_v11, 4 }
 0x47e   : > { %v7372_v12 = vpack.c.bf16 %v7317_v4, %v7316_v58  ;;  %v6986_v9 = vadd.f32 %v10298_v14, %v6302_v6  ;;  %v6987_v37 = vadd.f32 %v10300_v25, %v6303_v45  ;;  %v5913_v14 = vshrl.u32 %v5549_v47, 16  ;;  %v5551_v47 = vld [vmem:[#allocation2 + $0xd4] sm:$0x1] }
 0x47f   : > { %v5966_v58 = vunpack.c.l.b16 %v5901_v54  ;;  %v5967_v4 = vunpack.c.l.b16 %v5911_v22  ;;  %v5918_v6 = vrot.slane %v5916_v34, 5  ;;  %v5932_v34 = vshll.u32 %v5551_v47, 16 }
 0x480   : > { %7404 = vst [vmem:[%s10176_s13 + $0x40] sm:$0xff] %v7372_v12  ;;  %v7184_v49 = vmul.f32 %v10132_v40, %v6986_v9  ;;  %v7185_v28 = vmul.f32 %v10136_v16, %v6987_v37  ;;  %7981 = vmatmul.msk.bf16.gmra.mxu2 %vm937_vm8, %v5983_v39  ;;  %7997 = vmatmul.msk.bf16.gmra.mxu3 %vm937_vm8, %v5983_v39  ;;  %v5915_v32 = vrot.slane %v5913_v14, 4  ;;  %v6617_v12 = vrot.slane %v6615_v19, 4 }
 0x481   : > { %v6618_v9 = vrot.slane %v6459_v33, 5  ;;  %v5929_v14 = vor.u32 %v5928_v29, %v5924_v52  ;;  %v5934_v21 = vrot.slane %v5932_v34, 5 }
 0x482   : > { %v7254_v25 = vadd.f32 %v10134_v31, %v7184_v49  ;;  %v7255_v18 = vadd.f32 %v10152_v59, %v7185_v28  ;;  %v6616_v28 = vsel %vm8573_vm13, %v8015_v60, %v6615_v19  ;;  %v5919_v54 = vor.u32 %v5918_v6, %v5915_v32 }
 0x483   : > { %v6076_v46 = vpop.f32.mrf.mxu2  ;;  %v6165_v8 = vpop.f32.mrf.mxu3 }
 0x484   : > { %v7318_v27 = vmax.f32 %v7254_v25, 0.0  ;;  %v7319_v2 = vmax.f32 %v7255_v18, 0.0  ;;  %v6304_v57 = vadd.f32 %v6076_v46, %v10832_v5  ;;  %v6305_v7 = vadd.f32 %v6165_v8, %v10833_v44  ;;  %v10362_v20 = vpop.f32.mrf.mxu0  ;;  %v10835_v8 = vld [vmem:[#allocation28_spill] sm:$0xff] }
 0x485   : > { %v10364_v39 = vpop.f32.mrf.mxu1  ;;  %v6619_v25 = vsel %vm8573_vm13, %v6617_v12, %v6618_v9  ;;  %v5920_v44 = vrot.slane %v5919_v54, 4 }
 0x486   : > { %v7373_v30 = vpack.c.bf16 %v7319_v2, %v7318_v27  ;;  %v6988_v45 = vadd.f32 %v10320_v3, %v6304_v57  ;;  %v6989_v36 = vadd.f32 %v10322_v13, %v6305_v7  ;;  %v5984_v13 = vpack.c.b16 %v5967_v4, %v5966_v58 }
 0x487   : > { %8031 = vmatmul.msk.bf16.gmra.mxu0 %vm937_vm8, %v6668_v62  ;;  %v6652_v27 = vunpack.c.l.b16 %v6616_v28  ;;  %v6653_v57 = vunpack.c.l.b16 %v6619_v25  ;;  %v5930_v7 = vrot.slane %v5929_v14, 4 }
 0x488   : > { %8047 = vmatmul.msk.bf16.gmra.mxu1 %vm937_vm8, %v6668_v62  ;;  %7405 = vst [vmem:[%s10176_s13 + $0x48] sm:$0xff] %v7373_v30  ;;  %v7186_v37 = vmul.f32 %v10132_v40, %v6988_v45  ;;  %v7187_v23 = vmul.f32 %v10136_v16, %v6989_v36  ;;  %v10834_v62 = vld [vmem:[#allocation27_spill] sm:$0xff]  ;;  %v5925_v30 = vsel %vm8588_vm1, %v5920_v44, %v5924_v52 }
 0x489   : > { %v5935_v45 = vsel %vm8588_vm1, %v5930_v7, %v5934_v21  ;;  %v5968_v52 = vunpack.c.l.b16 %v5925_v30 }
 0x48a   : > { %v7256_v49 = vadd.f32 %v10134_v31, %v7186_v37  ;;  %v7257_v3 = vadd.f32 %v10152_v59, %v7187_v23  ;;  %v5969_v50 = vunpack.c.l.b16 %v5935_v45  ;;  %v10837_v45 = vld [vmem:[#allocation30_spill] sm:$0xff] }
 0x48b   : > { %v6078_v55 = vpop.f32.mrf.mxu2  ;;  %v6167_v41 = vpop.f32.mrf.mxu3 }
 0x48c   : > { %v7320_v18 = vmax.f32 %v7256_v49, 0.0  ;;  %v7321_v22 = vmax.f32 %v7257_v3, 0.0  ;;  %v6306_v46 = vadd.f32 %v6078_v55, %v10834_v62  ;;  %v6307_v10 = vadd.f32 %v6167_v41, %v10835_v8  ;;  %v6767_v11 = vpop.f32.mrf.mxu0 }
 0x48d   : > { %v6856_v42 = vpop.f32.mrf.mxu1  ;;  %v5985_v55 = vpack.c.b16 %v5969_v50, %v5968_v52 }
 0x48e   : > { %v7374_v2 = vpack.c.bf16 %v7321_v22, %v7320_v18  ;;  %v6990_v19 = vadd.f32 %v10342_v53, %v6306_v46  ;;  %v6991_v5 = vadd.f32 %v10344_v61, %v6307_v10  ;;  %v6669_v53 = vpack.c.b16 %v6653_v57, %v6652_v27 }
 0x490   : > { %7406 = vst [vmem:[%s10176_s13 + $0x50] sm:$0xff] %v7374_v2  ;;  %v7188_v33 = vmul.f32 %v10132_v40, %v6990_v19  ;;  %v7189_v58 = vmul.f32 %v10136_v16, %v6991_v5  ;;  %7982 = vmatmul.msk.bf16.gmra.mxu2 %vm937_vm8, %v5984_v13  ;;  %7998 = vmatmul.msk.bf16.gmra.mxu3 %vm937_vm8, %v5984_v13 }
 0x492   : > { %v7258_v4 = vadd.f32 %v10134_v31, %v7188_v33  ;;  %v7259_v32 = vadd.f32 %v10152_v59, %v7189_v58 }
 0x493   : > { %v6081_v6 = vpop.f32.mrf.mxu2  ;;  %v6170_v61 = vpop.f32.mrf.mxu3 }
 0x494   : > { %v7322_v36 = vmax.f32 %v7258_v4, 0.0  ;;  %v7323_v60 = vmax.f32 %v7259_v32, 0.0  ;;  %v6308_v29 = vadd.f32 %v6081_v6, %v9836_v17  ;;  %v6309_v12 = vadd.f32 %v6170_v61, %v9838_v1  ;;  %v6770_v9 = vpop.f32.mrf.mxu0 }
 0x495   : > { %v6859_v37 = vpop.f32.mrf.mxu1 }
 0x496   : > { %v7375_v23 = vpack.c.bf16 %v7323_v60, %v7322_v36  ;;  %v6992_v47 = vadd.f32 %v10362_v20, %v6308_v29  ;;  %v6993_v49 = vadd.f32 %v10364_v39, %v6309_v12  ;;  %v10838_v60 = vld [vmem:[#allocation31_spill] sm:$0xff] }
 0x497   : > { %8032 = vmatmul.msk.bf16.gmra.mxu0 %vm937_vm8, %v6669_v53 }
 0x498   : > { %8048 = vmatmul.msk.bf16.gmra.mxu1 %vm937_vm8, %v6669_v53  ;;  %7407 = vst [vmem:[%s10176_s13 + $0x58] sm:$0xff] %v7375_v23  ;;  %v7190_v3 = vmul.f32 %v10132_v40, %v6992_v47  ;;  %v7191_v17 = vmul.f32 %v10136_v16, %v6993_v49 }
 0x49a   : > { %v7260_v1 = vadd.f32 %v10134_v31, %v7190_v3  ;;  %v7261_v13 = vadd.f32 %v10152_v59, %v7191_v17 }
 0x49b   : > { %v6083_v28 = vpop.f32.mrf.mxu2  ;;  %v6172_v20 = vpop.f32.mrf.mxu3 }
 0x49c   : > { %v7324_v39 = vmax.f32 %v7260_v1, 0.0  ;;  %v7325_v41 = vmax.f32 %v7261_v13, 0.0  ;;  %v6310_v54 = vadd.f32 %v6083_v28, %v9846_v56  ;;  %v6311_v14 = vadd.f32 %v6172_v20, %v9848_v24  ;;  %v6772_v34 = vpop.f32.mrf.mxu0  ;;  %v10839_v20 = vld [vmem:[#allocation32_spill] sm:$0xff] }
 0x49d   : > { %v6861_v25 = vpop.f32.mrf.mxu1 }
 0x49e   : > { %v7376_v18 = vpack.c.bf16 %v7325_v41, %v7324_v39  ;;  %v6994_v22 = vadd.f32 %v6767_v11, %v6310_v54  ;;  %v6995_v62 = vadd.f32 %v6856_v42, %v6311_v14  ;;  %v10836_v42 = vld [vmem:[#allocation29_spill] sm:$0xff] }
 0x49f   : > { %v10840_v39 = vld [vmem:[#allocation33_spill] sm:$0xff] }
 0x4a0   : > { %7408 = vst [vmem:[%s10176_s13 + $0x60] sm:$0xff] %v7376_v18  ;;  %v7192_v46 = vmul.f32 %v10132_v40, %v6994_v22  ;;  %v7193_v8 = vmul.f32 %v10136_v16, %v6995_v62  ;;  %7983 = vmatmul.msk.bf16.gmra.mxu2 %vm937_vm8, %v5985_v55  ;;  %7999 = vmatmul.msk.bf16.gmra.mxu3 %vm937_vm8, %v5985_v55 }
 0x4a2   : > { %v7262_v10 = vadd.f32 %v10134_v31, %v7192_v46  ;;  %v7263_v56 = vadd.f32 %v10152_v59, %v7193_v8 }
 0x4a3   : > { %v6086_v24 = vpop.f32.mrf.mxu2  ;;  %v6175_v27 = vpop.f32.mrf.mxu3 }
 0x4a4   : > { %v7326_v2 = vmax.f32 %v7262_v10, 0.0  ;;  %v7327_v19 = vmax.f32 %v7263_v56, 0.0  ;;  %v6312_v11 = vadd.f32 %v6086_v24, %v9865_v35  ;;  %v6313_v5 = vadd.f32 %v6175_v27, %v10836_v42  ;;  %v6775_v57 = vpop.f32.mrf.mxu0 }
 0x4a5   : > { %v6864_v44 = vpop.f32.mrf.mxu1 }
 0x4a6   : > { %v7377_v7 = vpack.c.bf16 %v7327_v19, %v7326_v2  ;;  %v6996_v21 = vadd.f32 %v6770_v9, %v6312_v11  ;;  %v6997_v33 = vadd.f32 %v6859_v37, %v6313_v5  ;;  %v10841_v2 = vld [vmem:[#allocation36_spill] sm:$0xff]  ;;  %v10842_v11 = vld [vmem:[#allocation37_spill] sm:$0xff] }
 0x4a8   : > { %7409 = vst [vmem:[%s10176_s13 + $0x68] sm:$0xff] %v7377_v7  ;;  %v7194_v58 = vmul.f32 %v10132_v40, %v6996_v21  ;;  %v7195_v4 = vmul.f32 %v10136_v16, %v6997_v33 }
 0x4aa   : > { %v7264_v32 = vadd.f32 %v10134_v31, %v7194_v58  ;;  %v7265_v53 = vadd.f32 %v10152_v59, %v7195_v4 }
 0x4ab   : > { %v6088_v6 = vpop.f32.mrf.mxu2  ;;  %v6177_v61 = vpop.f32.mrf.mxu3 }
 0x4ac   : > { %v7328_v35 = vmax.f32 %v7264_v32, 0.0  ;;  %v7329_v30 = vmax.f32 %v7265_v53, 0.0  ;;  %v6314_v36 = vadd.f32 %v6088_v6, %v10837_v45  ;;  %v6315_v29 = vadd.f32 %v6177_v61, %v10838_v60  ;;  %v6777_v12 = vpop.f32.mrf.mxu0 }
 0x4ad   : > { %v6866_v9 = vpop.f32.mrf.mxu1 }
 0x4ae   : > { %v7378_v37 = vpack.c.bf16 %v7329_v30, %v7328_v35  ;;  %v6998_v23 = vadd.f32 %v6772_v34, %v6314_v36  ;;  %v6999_v47 = vadd.f32 %v6861_v25, %v6315_v29  ;;  %v10843_v30 = vld [vmem:[#allocation40_spill] sm:$0xff]  ;;  %v10844_v36 = vld [vmem:[#allocation41_spill] sm:$0xff] }
 0x4b0   : > { %7410 = vst [vmem:[%s10176_s13 + $0x70] sm:$0xff] %v7378_v37  ;;  %v7196_v49 = vmul.f32 %v10132_v40, %v6998_v23  ;;  %v7197_v52 = vmul.f32 %v10136_v16, %v6999_v47 }
 0x4b2   : > { %v7266_v50 = vadd.f32 %v10134_v31, %v7196_v49  ;;  %v7267_v3 = vadd.f32 %v10152_v59, %v7197_v52 }
 0x4b3   : > { %v6091_v17 = vpop.f32.mrf.mxu2  ;;  %v6180_v1 = vpop.f32.mrf.mxu3 }
 0x4b4   : > { %v7330_v13 = vmax.f32 %v7266_v50, 0.0  ;;  %v7331_v28 = vmax.f32 %v7267_v3, 0.0  ;;  %v6316_v55 = vadd.f32 %v6091_v17, %v10839_v20  ;;  %v6317_v41 = vadd.f32 %v6180_v1, %v10840_v39  ;;  %v6780_v54 = vpop.f32.mrf.mxu0 }
 0x4b5   : > { %v6869_v14 = vpop.f32.mrf.mxu1 }
 0x4b6   : > { %v7379_v34 = vpack.c.bf16 %v7331_v28, %v7330_v13  ;;  %v7000_v25 = vadd.f32 %v6775_v57, %v6316_v55  ;;  %v7001_v18 = vadd.f32 %v6864_v44, %v6317_v41  ;;  %v10845_v28 = vld [vmem:[#allocation44_spill] sm:$0xff]  ;;  %v10846_v55 = vld [vmem:[#allocation45_spill] sm:$0xff] }
 0x4b8   : > { %7411 = vst [vmem:[%s10176_s13 + $0x78] sm:$0xff] %v7379_v34  ;;  %v7198_v22 = vmul.f32 %v10132_v40, %v7000_v25  ;;  %v7199_v62 = vmul.f32 %v10136_v16, %v7001_v18 }
 0x4ba   : > { %v7268_v46 = vadd.f32 %v10134_v31, %v7198_v22  ;;  %v7269_v8 = vadd.f32 %v10152_v59, %v7199_v62 }
 0x4bb   : > { %v6093_v10 = vpop.f32.mrf.mxu2  ;;  %v6182_v56 = vpop.f32.mrf.mxu3 }
 0x4bc   : > { %v7332_v24 = vmax.f32 %v7268_v46, 0.0  ;;  %v7333_v27 = vmax.f32 %v7269_v8, 0.0  ;;  %v6318_v19 = vadd.f32 %v6093_v10, %v10841_v2  ;;  %v6319_v42 = vadd.f32 %v6182_v56, %v10842_v11  ;;  %v6782_v5 = vpop.f32.mrf.mxu0 }
 0x4bd   : > { %v6871_v57 = vpop.f32.mrf.mxu1 }
 0x4be   : > { %v7380_v44 = vpack.c.bf16 %v7333_v27, %v7332_v24  ;;  %v7002_v7 = vadd.f32 %v6777_v12, %v6318_v19  ;;  %v7003_v21 = vadd.f32 %v6866_v9, %v6319_v42  ;;  %v10847_v27 = vld [vmem:[#allocation46_spill] sm:$0xff]  ;;  %v10848_v19 = vld [vmem:[#allocation47_spill] sm:$0xff] }
 0x4c0   : > { %7412 = vst [vmem:[%s10176_s13 + $0x80] sm:$0xff] %v7380_v44  ;;  %v7200_v33 = vmul.f32 %v10132_v40, %v7002_v7  ;;  %v7201_v58 = vmul.f32 %v10136_v16, %v7003_v21 }
 0x4c2   : > { %v7270_v4 = vadd.f32 %v10134_v31, %v7200_v33  ;;  %v7271_v32 = vadd.f32 %v10152_v59, %v7201_v58 }
 0x4c3   : > { %v6096_v53 = vpop.f32.mrf.mxu2  ;;  %v6185_v6 = vpop.f32.mrf.mxu3 }
 0x4c4   : > { %v7334_v61 = vmax.f32 %v7270_v4, 0.0  ;;  %v7335_v35 = vmax.f32 %v7271_v32, 0.0  ;;  %v6320_v45 = vadd.f32 %v6096_v53, %v10843_v30  ;;  %v6321_v60 = vadd.f32 %v6185_v6, %v10844_v36  ;;  %v6785_v29 = vpop.f32.mrf.mxu0 }
 0x4c5   : > { %v6874_v12 = vpop.f32.mrf.mxu1 }
 0x4c6   : > { %v7381_v9 = vpack.c.bf16 %v7335_v35, %v7334_v61  ;;  %v7004_v37 = vadd.f32 %v6780_v54, %v6320_v45  ;;  %v7005_v23 = vadd.f32 %v6869_v14, %v6321_v60  ;;  %v10849_v35 = vld [vmem:[#allocation8_spill] sm:$0xff]  ;;  %v10850_v45 = vld [vmem:[#allocation9_spill] sm:$0xff] }
 0x4c8   : > { %7413 = vst [vmem:[%s10176_s13 + $0x88] sm:$0xff] %v7381_v9  ;;  %v7202_v47 = vmul.f32 %v10132_v40, %v7004_v37  ;;  %v7203_v49 = vmul.f32 %v10136_v16, %v7005_v23 }
 0x4ca   : > { %v7272_v52 = vadd.f32 %v10134_v31, %v7202_v47  ;;  %v7273_v50 = vadd.f32 %v10152_v59, %v7203_v49 }
 0x4cb   : > { %v6098_v3 = vpop.f32.mrf.mxu2  ;;  %v6187_v17 = vpop.f32.mrf.mxu3 }
 0x4cc   : > { %v7336_v1 = vmax.f32 %v7272_v52, 0.0  ;;  %v7337_v13 = vmax.f32 %v7273_v50, 0.0  ;;  %v6322_v20 = vadd.f32 %v6098_v3, %v10845_v28  ;;  %v6323_v39 = vadd.f32 %v6187_v17, %v10846_v55  ;;  %v6787_v41 = vpop.f32.mrf.mxu0 }
 0x4cd   : > { %v6876_v54 = vpop.f32.mrf.mxu1 }
 0x4ce   : > { %v7382_v14 = vpack.c.bf16 %v7337_v13, %v7336_v1  ;;  %v7006_v34 = vadd.f32 %v6782_v5, %v6322_v20  ;;  %v7007_v25 = vadd.f32 %v6871_v57, %v6323_v39  ;;  %v10851_v13 = vld [vmem:[#allocation34_spill] sm:$0xff]  ;;  %v10852_v20 = vld [vmem:[#allocation35_spill] sm:$0xff] }
 0x4d0   : > { %7414 = vst [vmem:[%s10176_s13 + $0x90] sm:$0xff] %v7382_v14  ;;  %v7204_v18 = vmul.f32 %v10132_v40, %v7006_v34  ;;  %v7205_v22 = vmul.f32 %v10136_v16, %v7007_v25 }
 0x4d2   : > { %v7274_v62 = vadd.f32 %v10134_v31, %v7204_v18  ;;  %v7275_v46 = vadd.f32 %v10152_v59, %v7205_v22 }
 0x4d3   : > { %v6101_v8 = vpop.f32.mrf.mxu2  ;;  %v6190_v10 = vpop.f32.mrf.mxu3 }
 0x4d4   : > { %v7338_v56 = vmax.f32 %v7274_v62, 0.0  ;;  %v7339_v24 = vmax.f32 %v7275_v46, 0.0  ;;  %v6324_v2 = vadd.f32 %v6101_v8, %v10847_v27  ;;  %v6325_v11 = vadd.f32 %v6190_v10, %v10848_v19  ;;  %v6790_v42 = vpop.f32.mrf.mxu0 }
 0x4d5   : > { %v6879_v5 = vpop.f32.mrf.mxu1 }
 0x4d6   : > { %v7383_v57 = vpack.c.bf16 %v7339_v24, %v7338_v56  ;;  %v7008_v44 = vadd.f32 %v6785_v29, %v6324_v2  ;;  %v7009_v7 = vadd.f32 %v6874_v12, %v6325_v11  ;;  %v10853_v24 = vld [vmem:[#allocation38_spill] sm:$0xff]  ;;  %v10854_v2 = vld [vmem:[#allocation39_spill] sm:$0xff] }
 0x4d8   : > { %7415 = vst [vmem:[%s10176_s13 + $0x98] sm:$0xff] %v7383_v57  ;;  %v7206_v21 = vmul.f32 %v10132_v40, %v7008_v44  ;;  %v7207_v33 = vmul.f32 %v10136_v16, %v7009_v7 }
 0x4da   : > { %v7276_v58 = vadd.f32 %v10134_v31, %v7206_v21  ;;  %v7277_v4 = vadd.f32 %v10152_v59, %v7207_v33 }
 0x4db   : > { %v6103_v32 = vpop.f32.mrf.mxu2  ;;  %v6192_v53 = vpop.f32.mrf.mxu3 }
 0x4dc   : > { %v7340_v6 = vmax.f32 %v7276_v58, 0.0  ;;  %v7341_v61 = vmax.f32 %v7277_v4, 0.0  ;;  %v6326_v30 = vadd.f32 %v6103_v32, %v10849_v35  ;;  %v6327_v36 = vadd.f32 %v6192_v53, %v10850_v45  ;;  %v6792_v60 = vpop.f32.mrf.mxu0 }
 0x4dd   : > { %v6881_v29 = vpop.f32.mrf.mxu1 }
 0x4de   : > { %v7384_v12 = vpack.c.bf16 %v7341_v61, %v7340_v6  ;;  %v7010_v9 = vadd.f32 %v6787_v41, %v6326_v30  ;;  %v7011_v37 = vadd.f32 %v6876_v54, %v6327_v36  ;;  %v10855_v61 = vld [vmem:[#allocation42_spill] sm:$0xff]  ;;  %v10856_v30 = vld [vmem:[#allocation43_spill] sm:$0xff] }
 0x4e0   : > { %7416 = vst [vmem:[%s10176_s13 + $0xa0] sm:$0xff] %v7384_v12  ;;  %v7208_v23 = vmul.f32 %v10132_v40, %v7010_v9  ;;  %v7209_v47 = vmul.f32 %v10136_v16, %v7011_v37 }
 0x4e2   : > { %v7278_v49 = vadd.f32 %v10134_v31, %v7208_v23  ;;  %v7279_v52 = vadd.f32 %v10152_v59, %v7209_v47 }
 0x4e3   : > { %v6106_v50 = vpop.f32.mrf.mxu2  ;;  %v6195_v3 = vpop.f32.mrf.mxu3 }
 0x4e4   : > { %v7342_v17 = vmax.f32 %v7278_v49, 0.0  ;;  %v7343_v1 = vmax.f32 %v7279_v52, 0.0  ;;  %v6328_v28 = vadd.f32 %v6106_v50, %v10851_v13  ;;  %v6329_v55 = vadd.f32 %v6195_v3, %v10852_v20  ;;  %v6795_v14 = vpop.f32.mrf.mxu0 }
 0x4e5   : > { %v6884_v34 = vpop.f32.mrf.mxu1 }
 0x4e6   : > { %v7385_v39 = vpack.c.bf16 %v7343_v1, %v7342_v17  ;;  %v7012_v41 = vadd.f32 %v6790_v42, %v6328_v28  ;;  %v7013_v54 = vadd.f32 %v6879_v5, %v6329_v55  ;;  %v10857_v1 = vld [vmem:[#allocation10_spill] sm:$0xff]  ;;  %v10858_v28 = vld [vmem:[#allocation11_spill] sm:$0xff] }
 0x4e8   : > { %7417 = vst [vmem:[%s10176_s13 + $0xa8] sm:$0xff] %v7385_v39  ;;  %v7210_v25 = vmul.f32 %v10132_v40, %v7012_v41  ;;  %v7211_v18 = vmul.f32 %v10136_v16, %v7013_v54 }
 0x4ea   : > { %v7280_v22 = vadd.f32 %v10134_v31, %v7210_v25  ;;  %v7281_v62 = vadd.f32 %v10152_v59, %v7211_v18 }
 0x4eb   : > { %v6108_v46 = vpop.f32.mrf.mxu2  ;;  %v6197_v8 = vpop.f32.mrf.mxu3 }
 0x4ec   : > { %v7344_v10 = vmax.f32 %v7280_v22, 0.0  ;;  %v7345_v56 = vmax.f32 %v7281_v62, 0.0  ;;  %v6330_v27 = vadd.f32 %v6108_v46, %v10853_v24  ;;  %v6331_v19 = vadd.f32 %v6197_v8, %v10854_v2  ;;  %v6797_v7 = vpop.f32.mrf.mxu0  ;;  %v10859_v8 = vld [vmem:[#allocation12_spill] sm:$0xff] }
 0x4ed   : > { %v6886_v21 = vpop.f32.mrf.mxu1 }
 0x4ee   : > { %v7386_v11 = vpack.c.bf16 %v7345_v56, %v7344_v10  ;;  %v7014_v42 = vadd.f32 %v6792_v60, %v6330_v27  ;;  %v7015_v5 = vadd.f32 %v6881_v29, %v6331_v19  ;;  %v10860_v56 = vld [vmem:[#allocation13_spill] sm:$0xff] }
 0x4f0   : > { %7418 = vst [vmem:[%s10176_s13 + $0xb0] sm:$0xff] %v7386_v11  ;;  %v7212_v57 = vmul.f32 %v10132_v40, %v7014_v42  ;;  %v7213_v44 = vmul.f32 %v10136_v16, %v7015_v5 }
 0x4f2   : > { %v7282_v33 = vadd.f32 %v10134_v31, %v7212_v57  ;;  %v7283_v58 = vadd.f32 %v10152_v59, %v7213_v44 }
 0x4f3   : > { %v6111_v4 = vpop.f32.mrf.mxu2  ;;  %v6200_v32 = vpop.f32.mrf.mxu3 }
 0x4f4   : > { %v7346_v53 = vmax.f32 %v7282_v33, 0.0  ;;  %v7347_v6 = vmax.f32 %v7283_v58, 0.0  ;;  %v6332_v35 = vadd.f32 %v6111_v4, %v10855_v61  ;;  %v6333_v45 = vadd.f32 %v6200_v32, %v10856_v30  ;;  %v6800_v47 = vpop.f32.mrf.mxu0 }
 0x4f5   : > { %v6889_v49 = vpop.f32.mrf.mxu1 }
 0x4f6   : > { %v7387_v36 = vpack.c.bf16 %v7347_v6, %v7346_v53  ;;  %v7016_v60 = vadd.f32 %v6795_v14, %v6332_v35  ;;  %v7017_v29 = vadd.f32 %v6884_v34, %v6333_v45 }
 0x4f8   : > { %7419 = vst [vmem:[%s10176_s13 + $0xb8] sm:$0xff] %v7387_v36  ;;  %v7214_v12 = vmul.f32 %v10132_v40, %v7016_v60  ;;  %v7215_v9 = vmul.f32 %v10136_v16, %v7017_v29 }
 0x4fa   : > { %v7284_v37 = vadd.f32 %v10134_v31, %v7214_v12  ;;  %v7285_v23 = vadd.f32 %v10152_v59, %v7215_v9 }
 0x4fb   : > { %v6113_v52 = vpop.f32.mrf.mxu2  ;;  %v6202_v50 = vpop.f32.mrf.mxu3 }
 0x4fc   : > { %v7348_v3 = vmax.f32 %v7284_v37, 0.0  ;;  %v7349_v17 = vmax.f32 %v7285_v23, 0.0  ;;  %v6334_v13 = vadd.f32 %v6113_v52, %v10857_v1  ;;  %v6335_v20 = vadd.f32 %v6202_v50, %v10858_v28  ;;  %v6802_v27 = vpop.f32.mrf.mxu0 }
 0x4fd   : > { %v6891_v2 = vpop.f32.mrf.mxu1 }
 0x4fe   : > { %v7388_v55 = vpack.c.bf16 %v7349_v17, %v7348_v3  ;;  %v7018_v39 = vadd.f32 %v6797_v7, %v6334_v13  ;;  %v7019_v41 = vadd.f32 %v6886_v21, %v6335_v20 }
 0x500   : > { %7420 = vst [vmem:[%s10176_s13 + $0xc0] sm:$0xff] %v7388_v55  ;;  %v7216_v54 = vmul.f32 %v10132_v40, %v7018_v39  ;;  %v7217_v14 = vmul.f32 %v10136_v16, %v7019_v41 }
 0x502   : > { %v7286_v34 = vadd.f32 %v10134_v31, %v7216_v54  ;;  %v7287_v25 = vadd.f32 %v10152_v59, %v7217_v14 }
 0x503   : > { %v6116_v18 = vpop.f32.mrf.mxu2  ;;  %v6205_v22 = vpop.f32.mrf.mxu3 }
 0x504   : > { %v7350_v62 = vmax.f32 %v7286_v34, 0.0  ;;  %v7351_v46 = vmax.f32 %v7287_v25, 0.0  ;;  %v6336_v10 = vadd.f32 %v6116_v18, %v10859_v8  ;;  %v6337_v24 = vadd.f32 %v6205_v22, %v10860_v56  ;;  %v6805_v30 = vpop.f32.mrf.mxu0 }
 0x505   : > { %v6894_v45 = vpop.f32.mrf.mxu1 }
 0x506   : > { %v7389_v19 = vpack.c.bf16 %v7351_v46, %v7350_v62  ;;  %v7020_v11 = vadd.f32 %v6800_v47, %v6336_v10  ;;  %v7021_v42 = vadd.f32 %v6889_v49, %v6337_v24 }
 0x508   : > { %7421 = vst [vmem:[%s10176_s13 + $0xc8] sm:$0xff] %v7389_v19  ;;  %v7218_v5 = vmul.f32 %v10132_v40, %v7020_v11  ;;  %v7219_v57 = vmul.f32 %v10136_v16, %v7021_v42 }
 0x50a   : > { %v7288_v44 = vadd.f32 %v10134_v31, %v7218_v5  ;;  %v7289_v7 = vadd.f32 %v10152_v59, %v7219_v57 }
 0x50b   : > { %v6118_v21 = vpop.f32.mrf.mxu2  ;;  %v6207_v33 = vpop.f32.mrf.mxu3 }
 0x50c   : > { %v7352_v58 = vmax.f32 %v7288_v44, 0.0  ;;  %v7353_v4 = vmax.f32 %v7289_v7, 0.0  ;;  %v6338_v32 = vadd.f32 %v6118_v21, %v10056_v43  ;;  %v6339_v53 = vadd.f32 %v6207_v33, %v10058_v15  ;;  %v6807_v1 = vpop.f32.mrf.mxu0 }
 0x50d   : > { %v6896_v13 = vpop.f32.mrf.mxu1 }
 0x50e   : > { %v7390_v6 = vpack.c.bf16 %v7353_v4, %v7352_v58  ;;  %v7022_v61 = vadd.f32 %v6802_v27, %v6338_v32  ;;  %v7023_v35 = vadd.f32 %v6891_v2, %v6339_v53  ;;  %v10861_v4 = vld [vmem:[#allocation14_spill] sm:$0xff]  ;;  %v10862_v32 = vld [vmem:[#allocation15_spill] sm:$0xff] }
 0x510   : > { %7422 = vst [vmem:[%s10176_s13 + $0xd0] sm:$0xff] %v7390_v6  ;;  %v7220_v36 = vmul.f32 %v10132_v40, %v7022_v61  ;;  %v7221_v60 = vmul.f32 %v10136_v16, %v7023_v35 }
 0x512   : > { %v7290_v29 = vadd.f32 %v10134_v31, %v7220_v36  ;;  %v7291_v12 = vadd.f32 %v10152_v59, %v7221_v60 }
 0x513   : > { %v6121_v9 = vpop.f32.mrf.mxu2  ;;  %v6210_v37 = vpop.f32.mrf.mxu3 }
 0x514   : > { %v7354_v43 = vmax.f32 %v7290_v29, 0.0  ;;  %v7355_v23 = vmax.f32 %v7291_v12, 0.0  ;;  %v6340_v15 = vadd.f32 %v6121_v9, %v10075_v26  ;;  %v6341_v47 = vadd.f32 %v6210_v37, %v10078_v51  ;;  %v6810_v8 = vpop.f32.mrf.mxu0 }
 0x515   : > { %v6899_v10 = vpop.f32.mrf.mxu1 }
 0x516   : > { %v7391_v49 = vpack.c.bf16 %v7355_v23, %v7354_v43  ;;  %v7024_v52 = vadd.f32 %v6805_v30, %v6340_v15  ;;  %v7025_v50 = vadd.f32 %v6894_v45, %v6341_v47 }
 0x518   : > { %7423 = vst [vmem:[%s10176_s13 + $0xd8] sm:$0xff] %v7391_v49  ;;  %v7222_v3 = vmul.f32 %v10132_v40, %v7024_v52  ;;  %v7223_v17 = vmul.f32 %v10136_v16, %v7025_v50 }
 0x51a   : > { %v7292_v28 = vadd.f32 %v10134_v31, %v7222_v3  ;;  %v7293_v20 = vadd.f32 %v10152_v59, %v7223_v17 }
 0x51b   : > { %v6123_v55 = vpop.f32.mrf.mxu2  ;;  %v6212_v39 = vpop.f32.mrf.mxu3 }
 0x51c   : > { %v7356_v26 = vmax.f32 %v7292_v28, 0.0  ;;  %v7357_v41 = vmax.f32 %v7293_v20, 0.0  ;;  %v6342_v51 = vadd.f32 %v6123_v55, %v10086_v0  ;;  %v6343_v54 = vadd.f32 %v6212_v39, %v10088_v63  ;;  %v6812_v6 = vpop.f32.mrf.mxu0 }
 0x51d   : > { %v6901_v61 = vpop.f32.mrf.mxu1 }
 0x51e   : > { %v7392_v14 = vpack.c.bf16 %v7357_v41, %v7356_v26  ;;  %v7026_v34 = vadd.f32 %v6807_v1, %v6342_v51  ;;  %v7027_v25 = vadd.f32 %v6896_v13, %v6343_v54 }
 0x520   : > { %7424 = vst [vmem:[%s10176_s13 + $0xe0] sm:$0xff] %v7392_v14  ;;  %v7224_v18 = vmul.f32 %v10132_v40, %v7026_v34  ;;  %v7225_v22 = vmul.f32 %v10136_v16, %v7027_v25 }
 0x522   : > { %v7294_v62 = vadd.f32 %v10134_v31, %v7224_v18  ;;  %v7295_v46 = vadd.f32 %v10152_v59, %v7225_v22 }
 0x523   : > { %v6126_v56 = vpop.f32.mrf.mxu2  ;;  %v6215_v24 = vpop.f32.mrf.mxu3 }
 0x524   : > { %v7358_v0 = vmax.f32 %v7294_v62, 0.0  ;;  %v7359_v27 = vmax.f32 %v7295_v46, 0.0  ;;  %v6344_v63 = vadd.f32 %v6126_v56, %v10105_v48  ;;  %v6345_v2 = vadd.f32 %v6215_v24, %v10108_v38 }
 0x526   : > { %v7393_v19 = vpack.c.bf16 %v7359_v27, %v7358_v0  ;;  %v7028_v11 = vadd.f32 %v6810_v8, %v6344_v63  ;;  %v7029_v42 = vadd.f32 %v6899_v10, %v6345_v2 }
 0x528   : > { %7425 = vst [vmem:[%s10176_s13 + $0xe8] sm:$0xff] %v7393_v19  ;;  %v7226_v5 = vmul.f32 %v10132_v40, %v7028_v11  ;;  %v7227_v57 = vmul.f32 %v10136_v16, %v7029_v42 }
 0x52a   : > { %v7296_v44 = vadd.f32 %v10134_v31, %v7226_v5  ;;  %v7297_v7 = vadd.f32 %v10152_v59, %v7227_v57 }
 0x52b   : > { %v6128_v21 = vpop.f32.mrf.mxu2  ;;  %v6217_v33 = vpop.f32.mrf.mxu3 }
 0x52c   : > { %v7360_v58 = vmax.f32 %v7296_v44, 0.0  ;;  %v7361_v48 = vmax.f32 %v7297_v7, 0.0  ;;  %v6346_v38 = vadd.f32 %v6128_v21, %v10861_v4  ;;  %v6347_v53 = vadd.f32 %v6217_v33, %v10862_v32 }
 0x52e   : > { %v7394_v35 = vpack.c.bf16 %v7361_v48, %v7360_v58  ;;  %v7030_v30 = vadd.f32 %v6812_v6, %v6346_v38  ;;  %v7031_v45 = vadd.f32 %v6901_v61, %v6347_v53 }
 0x530   : > { %7426 = vst [vmem:[%s10176_s13 + $0xf0] sm:$0xff] %v7394_v35  ;;  %v7228_v36 = vmul.f32 %v10132_v40, %v7030_v30  ;;  %v7229_v60 = vmul.f32 %v10136_v16, %v7031_v45 }
 0x532   : > { %v7298_v29 = vadd.f32 %v10134_v31, %v7228_v36  ;;  %v7299_v12 = vadd.f32 %v10152_v59, %v7229_v60 }
 0x534   : > { %v7362_v9 = vmax.f32 %v7298_v29, 0.0  ;;  %v7363_v37 = vmax.f32 %v7299_v12, 0.0 }
 0x536   : > { %v7395_v43 = vpack.c.bf16 %v7363_v37, %v7362_v9 }
 0x538   : > { %7427 = vst [vmem:[%s10176_s13 + $0xf8] sm:$0xff] %v7395_v43 }
 0x539   : > { %8175 = shalt.err (!%p8172_p3)
}
 0x53a   : > { %s8213_s10 = smov 128   ;;  %s8214_s11 = smov 8  }
 0x53b   : > { %8106 = dma.vmem_to_hbm [thread:$0]  (%p8278_p5), %s7442_s19, 4096, %s7444_s27, %s7429_s28, %s8213_s10, %s8213_s10, %s8214_s11  }
 0x53c PF: > { %p8112_p4 = scmp.ge.s32.totalorder %s8210_s18, 2  ;;  %s7458_s12 = sand.u32 1, %s8198_s15  }
 0x53d   : > { %s7459_s13 = scalar_lea.sflag [#allocation5], %s7458_s12 }
 0x53e   : > { %p8109_p7 = pnand %p8112_p4, %p8282_p6 }
 0x540   : > { %p8110_p8 = pneg %p8109_p7 }
 0x542   : > { %8193 = dma.done.wait (%p8110_p8), %s7459_s13, 4096  }
 0x543   : > { %8195 = vsyncadd (%p8110_p8), %s7459_s13, 4294963200  ;;  %p14_p9 = scmp.ge.s32.totalorder %s8265_s21, 4   ;;  %s10863_s15 = smov %s8202_s16 }
 0x544   : > { %s10864_s16 = smov %s8206_s17  ;;  %s10865_s17 = smov %s8276_s24 }
 0x545   : > { %s10866_s18 = smov %s8265_s21  ;;  %16 = sbr.rel (!%p14_p9) target bundleno = 3 (0x3), region = 82 }
 0x54a   :  { %7465 = vsyncpa [#allocation5], 1 }
 0x54b   :  { %7467 = vsyncpa [#allocation5 + $0x1], 1 }

</bundles_post_ra>
